<compile_context>
chip_gen: v7x
topology: tpu7x:2x2x1
jax: 0.10.0
libtpu: 0.0.40
codegen_flags: <defaults>
</compile_context>

<pallas_src>
import jax
import jax.numpy as jnp
import numpy as np
from jax.experimental import pallas as pl
from jax.experimental.pallas import tpu as pltpu

BN_EPS = 1e-3                       # nn.BatchNorm2d(eps=0.001)
_VMEM_LIMIT = 48 * 1024 * 1024      # leaves headroom on v7x's 64 MiB VMEM


def _compiler_params(semantics):
    return pltpu.CompilerParams(dimension_semantics=semantics,
                                vmem_limit_bytes=_VMEM_LIMIT)


def _row_tile(rows, target=512):
    """Largest multiple-of-8 divisor of `rows` that is <= target and (when
    possible) leaves >= 2 grid steps so the cross-tile BN reduction and the
    double-buffered pipeline are actually exercised."""
    cands = [t for t in range(8, min(target, rows) + 1, 8)
             if rows % t == 0 and t < rows]
    return max(cands) if cands else rows


# --------------------------------------------------------------------------
# Pallas kernels
# --------------------------------------------------------------------------
def _conv1x1_kernel(x_ref, w_ref, out_ref, stats_ref):
    """Row-tiled 1x1 conv (single MXU matmul) emitting the pre-BN output and
    accumulating per-channel sum / sum-of-squares across the row grid."""
    @pl.when(pl.program_id(0) == 0)
    def _():
        stats_ref[...] = jnp.zeros_like(stats_ref)

    y = jnp.dot(x_ref[...], w_ref[...], preferred_element_type=jnp.float32)
    out_ref[...] = y
    stats_ref[0:1, :] += jnp.sum(y, axis=0, keepdims=True)
    stats_ref[1:2, :] += jnp.sum(y * y, axis=0, keepdims=True)


def _conv3x3_kernel(x_ref, w_ref, scale_ref, shift_ref, out_ref, stats_ref,
                    xpad_ref, acc_ref):
    """Fused (previous layer's BN+ReLU) -> 3x3/stride-1 conv, one image per
    grid step.  The affine+ReLU is applied to the pre-BN input tile, written
    into a zero-padded VMEM scratch, and the conv is 9 shifted matmuls
    accumulated into a f32 VMEM scratch accumulator."""
    _, H, W, Cin = x_ref.shape
    Cout = out_ref.shape[-1]

    @pl.when(pl.program_id(0) == 0)
    def _():
        stats_ref[...] = jnp.zeros_like(stats_ref)

    # Deferred BatchNorm + ReLU of the previous layer (input-side fusion),
    # applied BEFORE the zero padding so the padded border stays exactly 0.
    xa = jnp.maximum(x_ref[0] * scale_ref[...] + shift_ref[...], 0.0)
    xpad_ref[...] = jnp.zeros_like(xpad_ref)
    xpad_ref[1:H + 1, 1:W + 1, :] = xa

    acc_ref[...] = jnp.zeros_like(acc_ref)
    for kh in range(3):
        for kw in range(3):
            patch = xpad_ref[kh:kh + H, kw:kw + W, :].reshape(H * W, Cin)
            acc_ref[...] += jnp.dot(patch, w_ref[kh, kw],
                                    preferred_element_type=jnp.float32)

    y = acc_ref[...]
    out_ref[...] = y.reshape(1, H, W, Cout)
    stats_ref[0:1, :] += jnp.sum(y, axis=0, keepdims=True)
    stats_ref[1:2, :] += jnp.sum(y * y, axis=0, keepdims=True)


def _pool_conv1x1_kernel(x_ref, w_ref, out_ref, stats_ref, xpad_ref):
    """Fused 3x3/stride-1/pad-1 max-pool -> 1x1 conv (branch3), one image per
    grid step.  The pool runs on the VPU before the MXU matmul, so the pooled
    activation never round-trips through HBM."""
    _, H, W, Cin = x_ref.shape
    Cout = out_ref.shape[-1]

    @pl.when(pl.program_id(0) == 0)
    def _():
        stats_ref[...] = jnp.zeros_like(stats_ref)

    xpad_ref[...] = jnp.full_like(xpad_ref, -jnp.inf)
    xpad_ref[1:H + 1, 1:W + 1, :] = x_ref[0]

    pooled = xpad_ref[1:H + 1, 1:W + 1, :]          # center tap
    for kh in range(3):
        for kw in range(3):
            if kh == 1 and kw == 1:
                continue
            pooled = jnp.maximum(pooled, xpad_ref[kh:kh + H, kw:kw + W, :])

    y = jnp.dot(pooled.reshape(H * W, Cin), w_ref[...],
                preferred_element_type=jnp.float32)
    out_ref[...] = y.reshape(1, H, W, Cout)
    stats_ref[0:1, :] += jnp.sum(y, axis=0, keepdims=True)
    stats_ref[1:2, :] += jnp.sum(y * y, axis=0, keepdims=True)


def _finalize_concat_kernel(*refs):
    """Apply each branch's BatchNorm+ReLU and write it into its channel slice
    of the channel-concatenated (rows, C_total) output block -- a lane-dense
    fused replacement for four normalize passes + jnp.concatenate."""
    out_ref = refs[-1]
    ins = refs[:-1]
    off = 0
    for i in range(0, len(ins), 3):
        pre, scale, shift = ins[i], ins[i + 1], ins[i + 2]
        c = pre.shape[-1]
        out_ref[:, off:off + c] = jnp.maximum(
            pre[...] * scale[...] + shift[...], 0.0)
        off += c


# --------------------------------------------------------------------------
# pallas_call wrappers
# --------------------------------------------------------------------------
def conv1x1_stats(x2d, w2d):
    R, Cin = x2d.shape
    Cout = w2d.shape[-1]
    tr = _row_tile(R)
    out, stats = pl.pallas_call(
        _conv1x1_kernel,
        grid=(R // tr,),
        in_specs=[pl.BlockSpec((tr, Cin), lambda i: (i, 0)),
                  pl.BlockSpec((Cin, Cout), lambda i: (0, 0))],
        out_specs=[pl.BlockSpec((tr, Cout), lambda i: (i, 0)),
                   pl.BlockSpec((2, Cout), lambda i: (0, 0))],
        out_shape=[jax.ShapeDtypeStruct((R, Cout), jnp.float32),
                   jax.ShapeDtypeStruct((2, Cout), jnp.float32)],
        compiler_params=_compiler_params(("arbitrary",)),  # stats accumulate
    )(x2d, w2d)
    return out, stats


def conv3x3_stats(x_nhwc, w, in_scale, in_shift):
    N, H, W, Cin = x_nhwc.shape
    KH, KW, _, Cout = w.shape
    out, stats = pl.pallas_call(
        _conv3x3_kernel,
        grid=(N,),
        in_specs=[pl.BlockSpec((1, H, W, Cin), lambda n: (n, 0, 0, 0)),
                  pl.BlockSpec((KH, KW, Cin, Cout), lambda n: (0, 0, 0, 0)),
                  pl.BlockSpec((1, Cin), lambda n: (0, 0)),
                  pl.BlockSpec((1, Cin), lambda n: (0, 0))],
        out_specs=[pl.BlockSpec((1, H, W, Cout), lambda n: (n, 0, 0, 0)),
                   pl.BlockSpec((2, Cout), lambda n: (0, 0))],
        out_shape=[jax.ShapeDtypeStruct((N, H, W, Cout), jnp.float32),
                   jax.ShapeDtypeStruct((2, Cout), jnp.float32)],
        scratch_shapes=[pltpu.VMEM((H + 2, W + 2, Cin), jnp.float32),
                        pltpu.VMEM((H * W, Cout), jnp.float32)],
        compiler_params=_compiler_params(("arbitrary",)),
    )(x_nhwc, w, in_scale, in_shift)
    return out, stats


def pool_conv1x1_stats(x_nhwc, w2d):
    N, H, W, Cin = x_nhwc.shape
    Cout = w2d.shape[-1]
    out, stats = pl.pallas_call(
        _pool_conv1x1_kernel,
        grid=(N,),
        in_specs=[pl.BlockSpec((1, H, W, Cin), lambda n: (n, 0, 0, 0)),
                  pl.BlockSpec((Cin, Cout), lambda n: (0, 0))],
        out_specs=[pl.BlockSpec((1, H, W, Cout), lambda n: (n, 0, 0, 0)),
                   pl.BlockSpec((2, Cout), lambda n: (0, 0))],
        out_shape=[jax.ShapeDtypeStruct((N, H, W, Cout), jnp.float32),
                   jax.ShapeDtypeStruct((2, Cout), jnp.float32)],
        scratch_shapes=[pltpu.VMEM((H + 2, W + 2, Cin), jnp.float32)],
        compiler_params=_compiler_params(("arbitrary",)),
    )(x_nhwc, w2d)
    return out, stats


def finalize_concat(pre_list, scale_list, shift_list):
    R = pre_list[0].shape[0]
    ctot = sum(p.shape[-1] for p in pre_list)
    tr = _row_tile(R)
    in_specs, args = [], []
    for pre, sc, sh in zip(pre_list, scale_list, shift_list):
        c = pre.shape[-1]
        in_specs += [pl.BlockSpec((tr, c), lambda i: (i, 0)),
                     pl.BlockSpec((1, c), lambda i: (0, 0)),
                     pl.BlockSpec((1, c), lambda i: (0, 0))]
        args += [pre, sc, sh]
    return pl.pallas_call(
        _finalize_concat_kernel,
        grid=(R // tr,),
        in_specs=in_specs,
        out_specs=pl.BlockSpec((tr, ctot), lambda i: (i, 0)),
        out_shape=jax.ShapeDtypeStruct((R, ctot), jnp.float32),
        compiler_params=_compiler_params(("parallel",)),
    )(*args)


# --------------------------------------------------------------------------
# BatchNorm statistics -> (scale, shift)   (tiny per-channel math, plain JAX)
# --------------------------------------------------------------------------
def _bn_scale_shift(stats, gamma, beta, count):
    mean = stats[0] / count
    # TODO(synk): for very large activations a Welford/two-pass reduction is
    # numerically safer than E[x^2]-E[x]^2; at these scales f32 is fine.
    var = jnp.maximum(stats[1] / count - mean * mean, 0.0)
    scale = gamma * jax.lax.rsqrt(var + BN_EPS)
    shift = beta - mean * scale
    return scale.reshape(1, -1), shift.reshape(1, -1)


# --------------------------------------------------------------------------
# Deterministic parameter init (shapes from the module's __init__)
# --------------------------------------------------------------------------
def _init_basic_conv(key, cin, cout, ksize):
    k_w, k_g, k_b = jax.random.split(key, 3)
    fan_in = cin * ksize * ksize
    w = jax.random.normal(k_w, (ksize, ksize, cin, cout),
                          jnp.float32) / jnp.sqrt(float(fan_in))
    gamma = 1.0 + 0.1 * jax.random.normal(k_g, (cout,), jnp.float32)
    beta = 0.1 * jax.random.normal(k_b, (cout,), jnp.float32)
    return {"w": w, "gamma": gamma, "beta": beta}


def init_inception(key, in_ch, b1_1, b1_3a, b1_3b, b2_1, b2_3, b3_1, b4_1):
    ks = jax.random.split(key, 7)
    return {
        "branch1": [_init_basic_conv(ks[0], in_ch, b1_1, 1),
                    _init_basic_conv(ks[1], b1_1, b1_3a, 3),
                    _init_basic_conv(ks[2], b1_3a, b1_3b, 3)],
        "branch2": [_init_basic_conv(ks[3], in_ch, b2_1, 1),
                    _init_basic_conv(ks[4], b2_1, b2_3, 3)],
        "branch3": [_init_basic_conv(ks[5], in_ch, b3_1, 1)],
        "branch4": [_init_basic_conv(ks[6], in_ch, b4_1, 1)],
    }


# --------------------------------------------------------------------------
# Inception forward (Pallas) and pure-JAX reference
# --------------------------------------------------------------------------
def inception_forward(x_nchw, params):
    x = jnp.transpose(x_nchw, (0, 2, 3, 1))        # NCHW -> NHWC
    N, H, W, Cin = x.shape
    R = N * H * W
    x2d = x.reshape(R, Cin)

    def conv1x1(inp2d, p):
        w2d = p["w"].reshape(p["w"].shape[2], p["w"].shape[3])
        y, st = conv1x1_stats(inp2d, w2d)
        sc, sh = _bn_scale_shift(st, p["gamma"], p["beta"], R)
        return y, sc, sh

    def conv3x3(inp_nhwc, p, in_scale, in_shift):
        y, st = conv3x3_stats(inp_nhwc, p["w"], in_scale, in_shift)
        sc, sh = _bn_scale_shift(st, p["gamma"], p["beta"], R)
        return y, sc, sh

    # branch1: 1x1 -> 3x3 -> 3x3  (each layer's BN+ReLU fused into the next)
    p1 = params["branch1"]
    y0, sc0, sh0 = conv1x1(x2d, p1[0])
    y1, sc1, sh1 = conv3x3(y0.reshape(N, H, W, -1), p1[1], sc0, sh0)
    y2, sc2, sh2 = conv3x3(y1, p1[2], sc1, sh1)
    b1_pre, b1_sc, b1_sh = y2.reshape(R, -1), sc2, sh2

    # branch2: 1x1 -> 3x3
    p2 = params["branch2"]
    z0, tc0, th0 = conv1x1(x2d, p2[0])
    z1, tc1, th1 = conv3x3(z0.reshape(N, H, W, -1), p2[1], tc0, th0)
    b2_pre, b2_sc, b2_sh = z1.reshape(R, -1), tc1, th1

    # branch3: fused 3x3 max-pool -> 1x1
    p3 = params["branch3"][0]
    w3 = p3["w"].reshape(p3["w"].shape[2], p3["w"].shape[3])
    y3, st3 = pool_conv1x1_stats(x, w3)
    b3_sc, b3_sh = _bn_scale_shift(st3, p3["gamma"], p3["beta"], R)
    b3_pre = y3.reshape(R, -1)

    # branch4: 1x1
    y4, b4_sc, b4_sh = conv1x1(x2d, params["branch4"][0])
    b4_pre = y4

    # Fused BN+ReLU + channel concat of all four branches (lane-dense output).
    out2d = finalize_concat([b1_pre, b2_pre, b3_pre, b4_pre],
                            [b1_sc, b2_sc, b3_sc, b4_sc],
                            [b1_sh, b2_sh, b3_sh, b4_sh])
    ctot = out2d.shape[-1]
    return jnp.transpose(out2d.reshape(N, H, W, ctot), (0, 3, 1, 2))


def _conv_bn_relu_ref(x, w, gamma, beta):
    pad = w.shape[0] // 2
    y = jax.lax.conv_general_dilated(
        x, w, window_strides=(1, 1), padding=((pad, pad), (pad, pad)),
        dimension_numbers=("NHWC", "HWIO", "NHWC"))
    mean = y.mean(axis=(0, 1, 2), keepdims=True)
    var = y.var(axis=(0, 1, 2), keepdims=True)      # biased, BN training mode
    y = (y - mean) / jnp.sqrt(var + BN_EPS) * gamma + beta
    return jnp.maximum(y, 0.0)


def _maxpool_ref(x):
    return jax.lax.reduce_window(
        x, -jnp.inf, jax.lax.max, (1, 3, 3, 1), (1, 1, 1, 1),
        padding=((0, 0), (1, 1), (1, 1), (0, 0)))


def inception_reference(x_nchw, params):
    x = jnp.transpose(x_nchw, (0, 2, 3, 1))

    def run(h, layers):
        for p in layers:
            h = _conv_bn_relu_ref(h, p["w"], p["gamma"], p["beta"])
        return h

    b1 = run(x, params["branch1"])
    b2 = run(x, params["branch2"])
    b3 = run(_maxpool_ref(x), params["branch3"])
    b4 = run(x, params["branch4"])
    y = jnp.concatenate([b1, b2, b3, b4], axis=-1)
    return jnp.transpose(y, (0, 3, 1, 2))


# --------------------------------------------------------------------------
if __name__ == "__main__":
    N, Cin, H, W = 2, 4, 16, 16
    b1_1, b1_3a, b1_3b = 8, 8, 8
    b2_1, b2_3 = 8, 8
    b3_1, b4_1 = 8, 8

    key = jax.random.PRNGKey(0)
    k_x, k_p = jax.random.split(key)
    x = jax.random.normal(k_x, (N, Cin, H, W), jnp.float32)
    params = init_inception(k_p, Cin, b1_1, b1_3a, b1_3b, b2_1, b2_3, b3_1, b4_1)

    fwd = jax.jit(inception_forward)
    out = jax.block_until_ready(fwd(x, params))

    expected_channels = b1_3b + b2_3 + b3_1 + b4_1
    assert out.shape == (N, expected_channels, H, W), out.shape

    ref = jax.block_until_ready(inception_reference(x, params))
    np.testing.assert_allclose(np.asarray(out), np.asarray(ref),
                               rtol=2e-3, atol=2e-3)

    # TODO(synk): BatchNorm running-stat updates (training-time side effect)
    # are not modeled; they do not affect the forward output.
    print("KERNEL_OK")
</pallas_src>

<mosaic_0001>
module attributes {stable_mosaic.version = 11 : i64} {
  func.func @_conv1x1_kernel(%arg0: i32, %arg1: memref<256x4xf32, #tpu.memory_space<vmem>>, %arg2: memref<4x8xf32, #tpu.memory_space<vmem>>, %arg3: memref<256x8xf32, #tpu.memory_space<vmem>>, %arg4: memref<2x8xf32, #tpu.memory_space<vmem>>) attributes {dimension_semantics = [#tpu.dimension_semantics<arbitrary>], iteration_bounds = array<i64: 2>, scalar_prefetch = 0 : i64, scratch_operands = 0 : i64, tpu.core_type = #tpu.core_type<tc>, window_params = [{transform_indices = @transform_0, window_bounds = array<i64: 256, 4>}, {pipeline_mode = #tpu.pipeline_mode<synchronous>, transform_indices = @transform_1, window_bounds = array<i64: 4, 8>}, {transform_indices = @transform_2, window_bounds = array<i64: 256, 8>}, {pipeline_mode = #tpu.pipeline_mode<synchronous>, transform_indices = @transform_3, window_bounds = array<i64: 2, 8>}]} {
    %c0_i32 = arith.constant 0 : i32
    %0 = arith.cmpi eq, %arg0, %c0_i32 : i32
    %1 = arith.extui %0 : i1 to i32
    %c0_i32_0 = arith.constant 0 : i32
    %2 = arith.cmpi ne, %1, %c0_i32_0 : i32
    scf.if %2 {
      %cst_15 = arith.constant 0.000000e+00 : f32
      %18 = vector.broadcast %cst_15 : f32 to vector<2x8xf32>
      %c0_16 = arith.constant 0 : index
      %c0_17 = arith.constant 0 : index
      %19 = vector.load %arg4[%c0_16, %c0_17] : memref<2x8xf32, #tpu.memory_space<vmem>>, vector<2x8xf32>
      tpu.vector_store %arg4[%c0_16, %c0_17], %18 {strides = array<i32>} : memref<2x8xf32, #tpu.memory_space<vmem>>, vector<2x8xf32>,
    } else {
    }
    %c0 = arith.constant 0 : index
    %c0_1 = arith.constant 0 : index
    %3 = vector.load %arg1[%c0, %c0_1] : memref<256x4xf32, #tpu.memory_space<vmem>>, vector<256x4xf32>
    %c0_2 = arith.constant 0 : index
    %c0_3 = arith.constant 0 : index
    %4 = vector.load %arg2[%c0_2, %c0_3] : memref<4x8xf32, #tpu.memory_space<vmem>>, vector<4x8xf32>
    %cst = arith.constant dense<0.000000e+00> : vector<256x8xf32>
    %5 = tpu.matmul %3, %4, %cst {dimension_numbers = #tpu.dot_dimension_numbers<[1], [0], [0], [1], [0, 0, 1, 1], [], []>} : vector<256x4xf32>, vector<4x8xf32>, vector<256x8xf32> -> vector<256x8xf32>
    %c0_4 = arith.constant 0 : index
    %c0_5 = arith.constant 0 : index
    %6 = vector.load %arg3[%c0_4, %c0_5] : memref<256x8xf32, #tpu.memory_space<vmem>>, vector<256x8xf32>
    tpu.vector_store %arg3[%c0_4, %c0_5], %5 {strides = array<i32>} : memref<256x8xf32, #tpu.memory_space<vmem>>, vector<256x8xf32>,
    %c0_6 = arith.constant 0 : index
    %c0_7 = arith.constant 0 : index
    %7 = vector.load %arg4[%c0_6, %c0_7] : memref<2x8xf32, #tpu.memory_space<vmem>>, vector<1x8xf32>
    %cst_8 = arith.constant dense<0.000000e+00> : vector<8xf32>
    %8 = vector.multi_reduction <add>, %5, %cst_8 [0] : vector<256x8xf32> to vector<8xf32>
    %9 = vector.shape_cast %8 : vector<8xf32> to vector<1x8xf32>
    %10 = arith.addf %7, %9 : vector<1x8xf32>
    %c0_9 = arith.constant 0 : index
    %c0_10 = arith.constant 0 : index
    %11 = vector.load %arg4[%c0_9, %c0_10] : memref<2x8xf32, #tpu.memory_space<vmem>>, vector<1x8xf32>
    tpu.vector_store %arg4[%c0_9, %c0_10], %10 {strides = array<i32>} : memref<2x8xf32, #tpu.memory_space<vmem>>, vector<1x8xf32>,
    %c1 = arith.constant 1 : index
    %c0_11 = arith.constant 0 : index
    %12 = vector.load %arg4[%c1, %c0_11] : memref<2x8xf32, #tpu.memory_space<vmem>>, vector<1x8xf32>
    %13 = arith.mulf %5, %5 : vector<256x8xf32>
    %cst_12 = arith.constant dense<0.000000e+00> : vector<8xf32>
    %14 = vector.multi_reduction <add>, %13, %cst_12 [0] : vector<256x8xf32> to vector<8xf32>
    %15 = vector.shape_cast %14 : vector<8xf32> to vector<1x8xf32>
    %16 = arith.addf %12, %15 : vector<1x8xf32>
    %c1_13 = arith.constant 1 : index
    %c0_14 = arith.constant 0 : index
    %17 = vector.load %arg4[%c1_13, %c0_14] : memref<2x8xf32, #tpu.memory_space<vmem>>, vector<1x8xf32>
    tpu.vector_store %arg4[%c1_13, %c0_14], %16 {strides = array<i32>} : memref<2x8xf32, #tpu.memory_space<vmem>>, vector<1x8xf32>,
    return
  }
  func.func @transform_0(%arg0: i32) -> (i32, i32) {
    %c0_i32 = arith.constant 0 : i32
    %c0_i32_0 = arith.constant 0 : i32
    return %arg0, %c0_i32 : i32, i32
  }
  func.func @transform_1(%arg0: i32) -> (i32, i32) {
    %c0_i32 = arith.constant 0 : i32
    %c0_i32_0 = arith.constant 0 : i32
    %c0_i32_1 = arith.constant 0 : i32
    return %c0_i32, %c0_i32_0 : i32, i32
  }
  func.func @transform_2(%arg0: i32) -> (i32, i32) {
    %c0_i32 = arith.constant 0 : i32
    %c0_i32_0 = arith.constant 0 : i32
    return %arg0, %c0_i32 : i32, i32
  }
  func.func @transform_3(%arg0: i32) -> (i32, i32) {
    %c0_i32 = arith.constant 0 : i32
    %c0_i32_0 = arith.constant 0 : i32
    %c0_i32_1 = arith.constant 0 : i32
    return %c0_i32, %c0_i32_0 : i32, i32
  }
}

module attributes {stable_mosaic.version = 11 : i64} {
  func.func @_conv3x3_kernel(%arg0: i32, %arg1: memref<1x16x16x8xf32, #tpu.memory_space<vmem>>, %arg2: memref<3x3x8x8xf32, #tpu.memory_space<vmem>>, %arg3: memref<1x8xf32, #tpu.memory_space<vmem>>, %arg4: memref<1x8xf32, #tpu.memory_space<vmem>>, %arg5: memref<1x16x16x8xf32, #tpu.memory_space<vmem>>, %arg6: memref<2x8xf32, #tpu.memory_space<vmem>>, %arg7: memref<18x18x8xf32, #tpu.memory_space<vmem>>, %arg8: memref<256x8xf32, #tpu.memory_space<vmem>>) attributes {dimension_semantics = [#tpu.dimension_semantics<arbitrary>], iteration_bounds = array<i64: 2>, scalar_prefetch = 0 : i64, scratch_operands = 2 : i64, tpu.core_type = #tpu.core_type<tc>, window_params = [{transform_indices = @transform_0, window_bounds = array<i64: 1, 16, 16, 8>}, {pipeline_mode = #tpu.pipeline_mode<synchronous>, transform_indices = @transform_1, window_bounds = array<i64: 3, 3, 8, 8>}, {pipeline_mode = #tpu.pipeline_mode<synchronous>, transform_indices = @transform_2, window_bounds = array<i64: 1, 8>}, {pipeline_mode = #tpu.pipeline_mode<synchronous>, transform_indices = @transform_3, window_bounds = array<i64: 1, 8>}, {transform_indices = @transform_4, window_bounds = array<i64: 1, 16, 16, 8>}, {pipeline_mode = #tpu.pipeline_mode<synchronous>, transform_indices = @transform_5, window_bounds = array<i64: 2, 8>}]} {
    %c0_i32 = arith.constant 0 : i32
    %0 = arith.cmpi eq, %arg0, %c0_i32 : i32
    %1 = arith.extui %0 : i1 to i32
    %c0_i32_0 = arith.constant 0 : i32
    %2 = arith.cmpi ne, %1, %c0_i32_0 : i32
    scf.if %2 {
      %cst_140 = arith.constant 0.000000e+00 : f32
      %106 = vector.broadcast %cst_140 : f32 to vector<2x8xf32>
      %c0_141 = arith.constant 0 : index
      %c0_142 = arith.constant 0 : index
      %107 = vector.load %arg6[%c0_141, %c0_142] : memref<2x8xf32, #tpu.memory_space<vmem>>, vector<2x8xf32>
      tpu.vector_store %arg6[%c0_141, %c0_142], %106 {strides = array<i32>} : memref<2x8xf32, #tpu.memory_space<vmem>>, vector<2x8xf32>,
    } else {
    }
    %c0 = arith.constant 0 : index
    %c0_1 = arith.constant 0 : index
    %c0_2 = arith.constant 0 : index
    %c0_3 = arith.constant 0 : index
    %3 = vector.load %arg1[%c0, %c0_1, %c0_2, %c0_3] : memref<1x16x16x8xf32, #tpu.memory_space<vmem>>, vector<1x16x16x8xf32>
    %4 = vector.shape_cast %3 : vector<1x16x16x8xf32> to vector<16x16x8xf32>
    %c0_4 = arith.constant 0 : index
    %c0_5 = arith.constant 0 : index
    %5 = vector.load %arg3[%c0_4, %c0_5] : memref<1x8xf32, #tpu.memory_space<vmem>>, vector<1x8xf32>
    %6 = vector.shape_cast %5 : vector<1x8xf32> to vector<1x1x8xf32>
    %7 = vector.broadcast %6 : vector<1x1x8xf32> to vector<16x16x8xf32>
    %8 = arith.mulf %4, %7 : vector<16x16x8xf32>
    %c0_6 = arith.constant 0 : index
    %c0_7 = arith.constant 0 : index
    %9 = vector.load %arg4[%c0_6, %c0_7] : memref<1x8xf32, #tpu.memory_space<vmem>>, vector<1x8xf32>
    %10 = vector.shape_cast %9 : vector<1x8xf32> to vector<1x1x8xf32>
    %11 = vector.broadcast %10 : vector<1x1x8xf32> to vector<16x16x8xf32>
    %12 = arith.addf %8, %11 : vector<16x16x8xf32>
    %cst = arith.constant 0.000000e+00 : f32
    %13 = vector.broadcast %cst : f32 to vector<16x16x8xf32>
    %14 = arith.maximumf %12, %13 : vector<16x16x8xf32>
    %cst_8 = arith.constant 0.000000e+00 : f32
    %15 = vector.broadcast %cst_8 : f32 to vector<18x18x8xf32>
    %c0_9 = arith.constant 0 : index
    %c0_10 = arith.constant 0 : index
    %c0_11 = arith.constant 0 : index
    %16 = vector.load %arg7[%c0_9, %c0_10, %c0_11] : memref<18x18x8xf32, #tpu.memory_space<vmem>>, vector<18x18x8xf32>
    tpu.vector_store %arg7[%c0_9, %c0_10, %c0_11], %15 {strides = array<i32>} : memref<18x18x8xf32, #tpu.memory_space<vmem>>, vector<18x18x8xf32>,
    %c1 = arith.constant 1 : index
    %c1_12 = arith.constant 1 : index
    %c0_13 = arith.constant 0 : index
    %17 = vector.load %arg7[%c1, %c1_12, %c0_13] : memref<18x18x8xf32, #tpu.memory_space<vmem>>, vector<16x16x8xf32>
    tpu.vector_store %arg7[%c1, %c1_12, %c0_13], %14 {strides = array<i32>} : memref<18x18x8xf32, #tpu.memory_space<vmem>>, vector<16x16x8xf32>,
    %cst_14 = arith.constant 0.000000e+00 : f32
    %18 = vector.broadcast %cst_14 : f32 to vector<256x8xf32>
    %c0_15 = arith.constant 0 : index
    %c0_16 = arith.constant 0 : index
    %19 = vector.load %arg8[%c0_15, %c0_16] : memref<256x8xf32, #tpu.memory_space<vmem>>, vector<256x8xf32>
    tpu.vector_store %arg8[%c0_15, %c0_16], %18 {strides = array<i32>} : memref<256x8xf32, #tpu.memory_space<vmem>>, vector<256x8xf32>,
    %c0_17 = arith.constant 0 : index
    %c0_18 = arith.constant 0 : index
    %c0_19 = arith.constant 0 : index
    %20 = vector.load %arg7[%c0_17, %c0_18, %c0_19] : memref<18x18x8xf32, #tpu.memory_space<vmem>>, vector<16x16x8xf32>
    %21 = vector.shape_cast %20 : vector<16x16x8xf32> to vector<256x8xf32>
    %c0_20 = arith.constant 0 : index
    %c0_21 = arith.constant 0 : index
    %22 = vector.load %arg8[%c0_20, %c0_21] : memref<256x8xf32, #tpu.memory_space<vmem>>, vector<256x8xf32>
    %c0_22 = arith.constant 0 : index
    %c0_23 = arith.constant 0 : index
    %c0_24 = arith.constant 0 : index
    %c0_25 = arith.constant 0 : index
    %23 = vector.load %arg2[%c0_22, %c0_23, %c0_24, %c0_25] : memref<3x3x8x8xf32, #tpu.memory_space<vmem>>, vector<1x1x8x8xf32>
    %24 = vector.shape_cast %23 : vector<1x1x8x8xf32> to vector<8x8xf32>
    %cst_26 = arith.constant dense<0.000000e+00> : vector<256x8xf32>
    %25 = tpu.matmul %21, %24, %cst_26 {dimension_numbers = #tpu.dot_dimension_numbers<[1], [0], [0], [1], [0, 0, 1, 1], [], []>} : vector<256x8xf32>, vector<8x8xf32>, vector<256x8xf32> -> vector<256x8xf32>
    %26 = arith.addf %22, %25 : vector<256x8xf32>
    %c0_27 = arith.constant 0 : index
    %c0_28 = arith.constant 0 : index
    %27 = vector.load %arg8[%c0_27, %c0_28] : memref<256x8xf32, #tpu.memory_space<vmem>>, vector<256x8xf32>
    tpu.vector_store %arg8[%c0_27, %c0_28], %26 {strides = array<i32>} : memref<256x8xf32, #tpu.memory_space<vmem>>, vector<256x8xf32>,
    %c0_29 = arith.constant 0 : index
    %c1_30 = arith.constant 1 : index
    %c0_31 = arith.constant 0 : index
    %28 = vector.load %arg7[%c0_29, %c1_30, %c0_31] : memref<18x18x8xf32, #tpu.memory_space<vmem>>, vector<16x16x8xf32>
    %29 = vector.shape_cast %28 : vector<16x16x8xf32> to vector<256x8xf32>
    %c0_32 = arith.constant 0 : index
    %c0_33 = arith.constant 0 : index
    %30 = vector.load %arg8[%c0_32, %c0_33] : memref<256x8xf32, #tpu.memory_space<vmem>>, vector<256x8xf32>
    %c0_34 = arith.constant 0 : index
    %c1_35 = arith.constant 1 : index
    %c0_36 = arith.constant 0 : index
    %c0_37 = arith.constant 0 : index
    %31 = vector.load %arg2[%c0_34, %c1_35, %c0_36, %c0_37] : memref<3x3x8x8xf32, #tpu.memory_space<vmem>>, vector<1x1x8x8xf32>
    %32 = vector.shape_cast %31 : vector<1x1x8x8xf32> to vector<8x8xf32>
    %cst_38 = arith.constant dense<0.000000e+00> : vector<256x8xf32>
    %33 = tpu.matmul %29, %32, %cst_38 {dimension_numbers = #tpu.dot_dimension_numbers<[1], [0], [0], [1], [0, 0, 1, 1], [], []>} : vector<256x8xf32>, vector<8x8xf32>, vector<256x8xf32> -> vector<256x8xf32>
    %34 = arith.addf %30, %33 : vector<256x8xf32>
    %c0_39 = arith.constant 0 : index
    %c0_40 = arith.constant 0 : index
    %35 = vector.load %arg8[%c0_39, %c0_40] : memref<256x8xf32, #tpu.memory_space<vmem>>, vector<256x8xf32>
    tpu.vector_store %arg8[%c0_39, %c0_40], %34 {strides = array<i32>} : memref<256x8xf32, #tpu.memory_space<vmem>>, vector<256x8xf32>,
    %c0_41 = arith.constant 0 : index
    %c2 = arith.constant 2 : index
    %c0_42 = arith.constant 0 : index
    %36 = vector.load %arg7[%c0_41, %c2, %c0_42] : memref<18x18x8xf32, #tpu.memory_space<vmem>>, vector<16x16x8xf32>
    %37 = vector.shape_cast %36 : vector<16x16x8xf32> to vector<256x8xf32>
    %c0_43 = arith.constant 0 : index
    %c0_44 = arith.constant 0 : index
    %38 = vector.load %arg8[%c0_43, %c0_44] : memref<256x8xf32, #tpu.memory_space<vmem>>, vector<256x8xf32>
    %c0_45 = arith.constant 0 : index
    %c2_46 = arith.constant 2 : index
    %c0_47 = arith.constant 0 : index
    %c0_48 = arith.constant 0 : index
    %39 = vector.load %arg2[%c0_45, %c2_46, %c0_47, %c0_48] : memref<3x3x8x8xf32, #tpu.memory_space<vmem>>, vector<1x1x8x8xf32>
    %40 = vector.shape_cast %39 : vector<1x1x8x8xf32> to vector<8x8xf32>
    %cst_49 = arith.constant dense<0.000000e+00> : vector<256x8xf32>
    %41 = tpu.matmul %37, %40, %cst_49 {dimension_numbers = #tpu.dot_dimension_numbers<[1], [0], [0], [1], [0, 0, 1, 1], [], []>} : vector<256x8xf32>, vector<8x8xf32>, vector<256x8xf32> -> vector<256x8xf32>
    %42 = arith.addf %38, %41 : vector<256x8xf32>
    %c0_50 = arith.constant 0 : index
    %c0_51 = arith.constant 0 : index
    %43 = vector.load %arg8[%c0_50, %c0_51] : memref<256x8xf32, #tpu.memory_space<vmem>>, vector<256x8xf32>
    tpu.vector_store %arg8[%c0_50, %c0_51], %42 {strides = array<i32>} : memref<256x8xf32, #tpu.memory_space<vmem>>, vector<256x8xf32>,
    %c1_52 = arith.constant 1 : index
    %c0_53 = arith.constant 0 : index
    %c0_54 = arith.constant 0 : index
    %44 = vector.load %arg7[%c1_52, %c0_53, %c0_54] : memref<18x18x8xf32, #tpu.memory_space<vmem>>, vector<16x16x8xf32>
    %45 = vector.shape_cast %44 : vector<16x16x8xf32> to vector<256x8xf32>
    %c0_55 = arith.constant 0 : index
    %c0_56 = arith.constant 0 : index
    %46 = vector.load %arg8[%c0_55, %c0_56] : memref<256x8xf32, #tpu.memory_space<vmem>>, vector<256x8xf32>
    %c1_57 = arith.constant 1 : index
    %c0_58 = arith.constant 0 : index
    %c0_59 = arith.constant 0 : index
    %c0_60 = arith.constant 0 : index
    %47 = vector.load %arg2[%c1_57, %c0_58, %c0_59, %c0_60] : memref<3x3x8x8xf32, #tpu.memory_space<vmem>>, vector<1x1x8x8xf32>
    %48 = vector.shape_cast %47 : vector<1x1x8x8xf32> to vector<8x8xf32>
    %cst_61 = arith.constant dense<0.000000e+00> : vector<256x8xf32>
    %49 = tpu.matmul %45, %48, %cst_61 {dimension_numbers = #tpu.dot_dimension_numbers<[1], [0], [0], [1], [0, 0, 1, 1], [], []>} : vector<256x8xf32>, vector<8x8xf32>, vector<256x8xf32> -> vector<256x8xf32>
    %50 = arith.addf %46, %49 : vector<256x8xf32>
    %c0_62 = arith.constant 0 : index
    %c0_63 = arith.constant 0 : index
    %51 = vector.load %arg8[%c0_62, %c0_63] : memref<256x8xf32, #tpu.memory_space<vmem>>, vector<256x8xf32>
    tpu.vector_store %arg8[%c0_62, %c0_63], %50 {strides = array<i32>} : memref<256x8xf32, #tpu.memory_space<vmem>>, vector<256x8xf32>,
    %c1_64 = arith.constant 1 : index
    %c1_65 = arith.constant 1 : index
    %c0_66 = arith.constant 0 : index
    %52 = vector.load %arg7[%c1_64, %c1_65, %c0_66] : memref<18x18x8xf32, #tpu.memory_space<vmem>>, vector<16x16x8xf32>
    %53 = vector.shape_cast %52 : vector<16x16x8xf32> to vector<256x8xf32>
    %c0_67 = arith.constant 0 : index
    %c0_68 = arith.constant 0 : index
    %54 = vector.load %arg8[%c0_67, %c0_68] : memref<256x8xf32, #tpu.memory_space<vmem>>, vector<256x8xf32>
    %c1_69 = arith.constant 1 : index
    %c1_70 = arith.constant 1 : index
    %c0_71 = arith.constant 0 : index
    %c0_72 = arith.constant 0 : index
    %55 = vector.load %arg2[%c1_69, %c1_70, %c0_71, %c0_72] : memref<3x3x8x8xf32, #tpu.memory_space<vmem>>, vector<1x1x8x8xf32>
    %56 = vector.shape_cast %55 : vector<1x1x8x8xf32> to vector<8x8xf32>
    %cst_73 = arith.constant dense<0.000000e+00> : vector<256x8xf32>
    %57 = tpu.matmul %53, %56, %cst_73 {dimension_numbers = #tpu.dot_dimension_numbers<[1], [0], [0], [1], [0, 0, 1, 1], [], []>} : vector<256x8xf32>, vector<8x8xf32>, vector<256x8xf32> -> vector<256x8xf32>
    %58 = arith.addf %54, %57 : vector<256x8xf32>
    %c0_74 = arith.constant 0 : index
    %c0_75 = arith.constant 0 : index
    %59 = vector.load %arg8[%c0_74, %c0_75] : memref<256x8xf32, #tpu.memory_space<vmem>>, vector<256x8xf32>
    tpu.vector_store %arg8[%c0_74, %c0_75], %58 {strides = array<i32>} : memref<256x8xf32, #tpu.memory_space<vmem>>, vector<256x8xf32>,
    %c1_76 = arith.constant 1 : index
    %c2_77 = arith.constant 2 : index
    %c0_78 = arith.constant 0 : index
    %60 = vector.load %arg7[%c1_76, %c2_77, %c0_78] : memref<18x18x8xf32, #tpu.memory_space<vmem>>, vector<16x16x8xf32>
    %61 = vector.shape_cast %60 : vector<16x16x8xf32> to vector<256x8xf32>
    %c0_79 = arith.constant 0 : index
    %c0_80 = arith.constant 0 : index
    %62 = vector.load %arg8[%c0_79, %c0_80] : memref<256x8xf32, #tpu.memory_space<vmem>>, vector<256x8xf32>
    %c1_81 = arith.constant 1 : index
    %c2_82 = arith.constant 2 : index
    %c0_83 = arith.constant 0 : index
    %c0_84 = arith.constant 0 : index
    %63 = vector.load %arg2[%c1_81, %c2_82, %c0_83, %c0_84] : memref<3x3x8x8xf32, #tpu.memory_space<vmem>>, vector<1x1x8x8xf32>
    %64 = vector.shape_cast %63 : vector<1x1x8x8xf32> to vector<8x8xf32>
    %cst_85 = arith.constant dense<0.000000e+00> : vector<256x8xf32>
    %65 = tpu.matmul %61, %64, %cst_85 {dimension_numbers = #tpu.dot_dimension_numbers<[1], [0], [0], [1], [0, 0, 1, 1], [], []>} : vector<256x8xf32>, vector<8x8xf32>, vector<256x8xf32> -> vector<256x8xf32>
    %66 = arith.addf %62, %65 : vector<256x8xf32>
    %c0_86 = arith.constant 0 : index
    %c0_87 = arith.constant 0 : index
    %67 = vector.load %arg8[%c0_86, %c0_87] : memref<256x8xf32, #tpu.memory_space<vmem>>, vector<256x8xf32>
    tpu.vector_store %arg8[%c0_86, %c0_87], %66 {strides = array<i32>} : memref<256x8xf32, #tpu.memory_space<vmem>>, vector<256x8xf32>,
    %c2_88 = arith.constant 2 : index
    %c0_89 = arith.constant 0 : index
    %c0_90 = arith.constant 0 : index
    %68 = vector.load %arg7[%c2_88, %c0_89, %c0_90] : memref<18x18x8xf32, #tpu.memory_space<vmem>>, vector<16x16x8xf32>
    %69 = vector.shape_cast %68 : vector<16x16x8xf32> to vector<256x8xf32>
    %c0_91 = arith.constant 0 : index
    %c0_92 = arith.constant 0 : index
    %70 = vector.load %arg8[%c0_91, %c0_92] : memref<256x8xf32, #tpu.memory_space<vmem>>, vector<256x8xf32>
    %c2_93 = arith.constant 2 : index
    %c0_94 = arith.constant 0 : index
    %c0_95 = arith.constant 0 : index
    %c0_96 = arith.constant 0 : index
    %71 = vector.load %arg2[%c2_93, %c0_94, %c0_95, %c0_96] : memref<3x3x8x8xf32, #tpu.memory_space<vmem>>, vector<1x1x8x8xf32>
    %72 = vector.shape_cast %71 : vector<1x1x8x8xf32> to vector<8x8xf32>
    %cst_97 = arith.constant dense<0.000000e+00> : vector<256x8xf32>
    %73 = tpu.matmul %69, %72, %cst_97 {dimension_numbers = #tpu.dot_dimension_numbers<[1], [0], [0], [1], [0, 0, 1, 1], [], []>} : vector<256x8xf32>, vector<8x8xf32>, vector<256x8xf32> -> vector<256x8xf32>
    %74 = arith.addf %70, %73 : vector<256x8xf32>
    %c0_98 = arith.constant 0 : index
    %c0_99 = arith.constant 0 : index
    %75 = vector.load %arg8[%c0_98, %c0_99] : memref<256x8xf32, #tpu.memory_space<vmem>>, vector<256x8xf32>
    tpu.vector_store %arg8[%c0_98, %c0_99], %74 {strides = array<i32>} : memref<256x8xf32, #tpu.memory_space<vmem>>, vector<256x8xf32>,
    %c2_100 = arith.constant 2 : index
    %c1_101 = arith.constant 1 : index
    %c0_102 = arith.constant 0 : index
    %76 = vector.load %arg7[%c2_100, %c1_101, %c0_102] : memref<18x18x8xf32, #tpu.memory_space<vmem>>, vector<16x16x8xf32>
    %77 = vector.shape_cast %76 : vector<16x16x8xf32> to vector<256x8xf32>
    %c0_103 = arith.constant 0 : index
    %c0_104 = arith.constant 0 : index
    %78 = vector.load %arg8[%c0_103, %c0_104] : memref<256x8xf32, #tpu.memory_space<vmem>>, vector<256x8xf32>
    %c2_105 = arith.constant 2 : index
    %c1_106 = arith.constant 1 : index
    %c0_107 = arith.constant 0 : index
    %c0_108 = arith.constant 0 : index
    %79 = vector.load %arg2[%c2_105, %c1_106, %c0_107, %c0_108] : memref<3x3x8x8xf32, #tpu.memory_space<vmem>>, vector<1x1x8x8xf32>
    %80 = vector.shape_cast %79 : vector<1x1x8x8xf32> to vector<8x8xf32>
    %cst_109 = arith.constant dense<0.000000e+00> : vector<256x8xf32>
    %81 = tpu.matmul %77, %80, %cst_109 {dimension_numbers = #tpu.dot_dimension_numbers<[1], [0], [0], [1], [0, 0, 1, 1], [], []>} : vector<256x8xf32>, vector<8x8xf32>, vector<256x8xf32> -> vector<256x8xf32>
    %82 = arith.addf %78, %81 : vector<256x8xf32>
    %c0_110 = arith.constant 0 : index
    %c0_111 = arith.constant 0 : index
    %83 = vector.load %arg8[%c0_110, %c0_111] : memref<256x8xf32, #tpu.memory_space<vmem>>, vector<256x8xf32>
    tpu.vector_store %arg8[%c0_110, %c0_111], %82 {strides = array<i32>} : memref<256x8xf32, #tpu.memory_space<vmem>>, vector<256x8xf32>,
    %c2_112 = arith.constant 2 : index
    %c2_113 = arith.constant 2 : index
    %c0_114 = arith.constant 0 : index
    %84 = vector.load %arg7[%c2_112, %c2_113, %c0_114] : memref<18x18x8xf32, #tpu.memory_space<vmem>>, vector<16x16x8xf32>
    %85 = vector.shape_cast %84 : vector<16x16x8xf32> to vector<256x8xf32>
    %c0_115 = arith.constant 0 : index
    %c0_116 = arith.constant 0 : index
    %86 = vector.load %arg8[%c0_115, %c0_116] : memref<256x8xf32, #tpu.memory_space<vmem>>, vector<256x8xf32>
    %c2_117 = arith.constant 2 : index
    %c2_118 = arith.constant 2 : index
    %c0_119 = arith.constant 0 : index
    %c0_120 = arith.constant 0 : index
    %87 = vector.load %arg2[%c2_117, %c2_118, %c0_119, %c0_120] : memref<3x3x8x8xf32, #tpu.memory_space<vmem>>, vector<1x1x8x8xf32>
    %88 = vector.shape_cast %87 : vector<1x1x8x8xf32> to vector<8x8xf32>
    %cst_121 = arith.constant dense<0.000000e+00> : vector<256x8xf32>
    %89 = tpu.matmul %85, %88, %cst_121 {dimension_numbers = #tpu.dot_dimension_numbers<[1], [0], [0], [1], [0, 0, 1, 1], [], []>} : vector<256x8xf32>, vector<8x8xf32>, vector<256x8xf32> -> vector<256x8xf32>
    %90 = arith.addf %86, %89 : vector<256x8xf32>
    %c0_122 = arith.constant 0 : index
    %c0_123 = arith.constant 0 : index
    %91 = vector.load %arg8[%c0_122, %c0_123] : memref<256x8xf32, #tpu.memory_space<vmem>>, vector<256x8xf32>
    tpu.vector_store %arg8[%c0_122, %c0_123], %90 {strides = array<i32>} : memref<256x8xf32, #tpu.memory_space<vmem>>, vector<256x8xf32>,
    %c0_124 = arith.constant 0 : index
    %c0_125 = arith.constant 0 : index
    %92 = vector.load %arg8[%c0_124, %c0_125] : memref<256x8xf32, #tpu.memory_space<vmem>>, vector<256x8xf32>
    %93 = vector.shape_cast %92 : vector<256x8xf32> to vector<1x16x16x8xf32>
    %c0_126 = arith.constant 0 : index
    %c0_127 = arith.constant 0 : index
    %c0_128 = arith.constant 0 : index
    %c0_129 = arith.constant 0 : index
    %94 = vector.load %arg5[%c0_126, %c0_127, %c0_128, %c0_129] : memref<1x16x16x8xf32, #tpu.memory_space<vmem>>, vector<1x16x16x8xf32>
    tpu.vector_store %arg5[%c0_126, %c0_127, %c0_128, %c0_129], %93 {strides = array<i32>} : memref<1x16x16x8xf32, #tpu.memory_space<vmem>>, vector<1x16x16x8xf32>,
    %c0_130 = arith.constant 0 : index
    %c0_131 = arith.constant 0 : index
    %95 = vector.load %arg6[%c0_130, %c0_131] : memref<2x8xf32, #tpu.memory_space<vmem>>, vector<1x8xf32>
    %cst_132 = arith.constant dense<0.000000e+00> : vector<8xf32>
    %96 = vector.multi_reduction <add>, %92, %cst_132 [0] : vector<256x8xf32> to vector<8xf32>
    %97 = vector.shape_cast %96 : vector<8xf32> to vector<1x8xf32>
    %98 = arith.addf %95, %97 : vector<1x8xf32>
    %c0_133 = arith.constant 0 : index
    %c0_134 = arith.constant 0 : index
    %99 = vector.load %arg6[%c0_133, %c0_134] : memref<2x8xf32, #tpu.memory_space<vmem>>, vector<1x8xf32>
    tpu.vector_store %arg6[%c0_133, %c0_134], %98 {strides = array<i32>} : memref<2x8xf32, #tpu.memory_space<vmem>>, vector<1x8xf32>,
    %c1_135 = arith.constant 1 : index
    %c0_136 = arith.constant 0 : index
    %100 = vector.load %arg6[%c1_135, %c0_136] : memref<2x8xf32, #tpu.memory_space<vmem>>, vector<1x8xf32>
    %101 = arith.mulf %92, %92 : vector<256x8xf32>
    %cst_137 = arith.constant dense<0.000000e+00> : vector<8xf32>
    %102 = vector.multi_reduction <add>, %101, %cst_137 [0] : vector<256x8xf32> to vector<8xf32>
    %103 = vector.shape_cast %102 : vector<8xf32> to vector<1x8xf32>
    %104 = arith.addf %100, %103 : vector<1x8xf32>
    %c1_138 = arith.constant 1 : index
    %c0_139 = arith.constant 0 : index
    %105 = vector.load %arg6[%c1_138, %c0_139] : memref<2x8xf32, #tpu.memory_space<vmem>>, vector<1x8xf32>
    tpu.vector_store %arg6[%c1_138, %c0_139], %104 {strides = array<i32>} : memref<2x8xf32, #tpu.memory_space<vmem>>, vector<1x8xf32>,
    return
  }
  func.func @transform_0(%arg0: i32) -> (i32, i32, i32, i32) {
    %c0_i32 = arith.constant 0 : i32
    %c0_i32_0 = arith.constant 0 : i32
    %c0_i32_1 = arith.constant 0 : i32
    %c0_i32_2 = arith.constant 0 : i32
    return %arg0, %c0_i32, %c0_i32_0, %c0_i32_1 : i32, i32, i32, i32
  }
  func.func @transform_1(%arg0: i32) -> (i32, i32, i32, i32) {
    %c0_i32 = arith.constant 0 : i32
    %c0_i32_0 = arith.constant 0 : i32
    %c0_i32_1 = arith.constant 0 : i32
    %c0_i32_2 = arith.constant 0 : i32
    %c0_i32_3 = arith.constant 0 : i32
    return %c0_i32, %c0_i32_0, %c0_i32_1, %c0_i32_2 : i32, i32, i32, i32
  }
  func.func @transform_2(%arg0: i32) -> (i32, i32) {
    %c0_i32 = arith.constant 0 : i32
    %c0_i32_0 = arith.constant 0 : i32
    %c0_i32_1 = arith.constant 0 : i32
    return %c0_i32, %c0_i32_0 : i32, i32
  }
  func.func @transform_3(%arg0: i32) -> (i32, i32) {
    %c0_i32 = arith.constant 0 : i32
    %c0_i32_0 = arith.constant 0 : i32
    %c0_i32_1 = arith.constant 0 : i32
    return %c0_i32, %c0_i32_0 : i32, i32
  }
  func.func @transform_4(%arg0: i32) -> (i32, i32, i32, i32) {
    %c0_i32 = arith.constant 0 : i32
    %c0_i32_0 = arith.constant 0 : i32
    %c0_i32_1 = arith.constant 0 : i32
    %c0_i32_2 = arith.constant 0 : i32
    return %arg0, %c0_i32, %c0_i32_0, %c0_i32_1 : i32, i32, i32, i32
  }
  func.func @transform_5(%arg0: i32) -> (i32, i32) {
    %c0_i32 = arith.constant 0 : i32
    %c0_i32_0 = arith.constant 0 : i32
    %c0_i32_1 = arith.constant 0 : i32
    return %c0_i32, %c0_i32_0 : i32, i32
  }
}

module attributes {stable_mosaic.version = 11 : i64} {
  func.func @_finalize_concat_kernel(%arg0: i32, %arg1: memref<256x8xf32, #tpu.memory_space<vmem>>, %arg2: memref<1x8xf32, #tpu.memory_space<vmem>>, %arg3: memref<1x8xf32, #tpu.memory_space<vmem>>, %arg4: memref<256x8xf32, #tpu.memory_space<vmem>>, %arg5: memref<1x8xf32, #tpu.memory_space<vmem>>, %arg6: memref<1x8xf32, #tpu.memory_space<vmem>>, %arg7: memref<256x8xf32, #tpu.memory_space<vmem>>, %arg8: memref<1x8xf32, #tpu.memory_space<vmem>>, %arg9: memref<1x8xf32, #tpu.memory_space<vmem>>, %arg10: memref<256x8xf32, #tpu.memory_space<vmem>>, %arg11: memref<1x8xf32, #tpu.memory_space<vmem>>, %arg12: memref<1x8xf32, #tpu.memory_space<vmem>>, %arg13: memref<256x32xf32, #tpu.memory_space<vmem>>) attributes {dimension_semantics = [#tpu.dimension_semantics<parallel>], iteration_bounds = array<i64: 2>, scalar_prefetch = 0 : i64, scratch_operands = 0 : i64, tpu.core_type = #tpu.core_type<tc>, window_params = [{transform_indices = @transform_0, window_bounds = array<i64: 256, 8>}, {pipeline_mode = #tpu.pipeline_mode<synchronous>, transform_indices = @transform_1, window_bounds = array<i64: 1, 8>}, {pipeline_mode = #tpu.pipeline_mode<synchronous>, transform_indices = @transform_2, window_bounds = array<i64: 1, 8>}, {transform_indices = @transform_3, window_bounds = array<i64: 256, 8>}, {pipeline_mode = #tpu.pipeline_mode<synchronous>, transform_indices = @transform_4, window_bounds = array<i64: 1, 8>}, {pipeline_mode = #tpu.pipeline_mode<synchronous>, transform_indices = @transform_5, window_bounds = array<i64: 1, 8>}, {transform_indices = @transform_6, window_bounds = array<i64: 256, 8>}, {pipeline_mode = #tpu.pipeline_mode<synchronous>, transform_indices = @transform_7, window_bounds = array<i64: 1, 8>}, {pipeline_mode = #tpu.pipeline_mode<synchronous>, transform_indices = @transform_8, window_bounds = array<i64: 1, 8>}, {transform_indices = @transform_9, window_bounds = array<i64: 256, 8>}, {pipeline_mode = #tpu.pipeline_mode<synchronous>, transform_indices = @transform_10, window_bounds = array<i64: 1, 8>}, {pipeline_mode = #tpu.pipeline_mode<synchronous>, transform_indices = @transform_11, window_bounds = array<i64: 1, 8>}, {transform_indices = @transform_12, window_bounds = array<i64: 256, 32>}]} {
    %c0 = arith.constant 0 : index
    %c0_0 = arith.constant 0 : index
    %0 = vector.load %arg1[%c0, %c0_0] : memref<256x8xf32, #tpu.memory_space<vmem>>, vector<256x8xf32>
    %c0_1 = arith.constant 0 : index
    %c0_2 = arith.constant 0 : index
    %1 = vector.load %arg2[%c0_1, %c0_2] : memref<1x8xf32, #tpu.memory_space<vmem>>, vector<1x8xf32>
    %2 = vector.broadcast %1 : vector<1x8xf32> to vector<256x8xf32>
    %3 = arith.mulf %0, %2 : vector<256x8xf32>
    %c0_3 = arith.constant 0 : index
    %c0_4 = arith.constant 0 : index
    %4 = vector.load %arg3[%c0_3, %c0_4] : memref<1x8xf32, #tpu.memory_space<vmem>>, vector<1x8xf32>
    %5 = vector.broadcast %4 : vector<1x8xf32> to vector<256x8xf32>
    %6 = arith.addf %3, %5 : vector<256x8xf32>
    %cst = arith.constant 0.000000e+00 : f32
    %7 = vector.broadcast %cst : f32 to vector<256x8xf32>
    %8 = arith.maximumf %6, %7 : vector<256x8xf32>
    %c0_5 = arith.constant 0 : index
    %c0_6 = arith.constant 0 : index
    %9 = vector.load %arg13[%c0_5, %c0_6] : memref<256x32xf32, #tpu.memory_space<vmem>>, vector<256x8xf32>
    tpu.vector_store %arg13[%c0_5, %c0_6], %8 {strides = array<i32>} : memref<256x32xf32, #tpu.memory_space<vmem>>, vector<256x8xf32>,
    %c0_7 = arith.constant 0 : index
    %c0_8 = arith.constant 0 : index
    %10 = vector.load %arg4[%c0_7, %c0_8] : memref<256x8xf32, #tpu.memory_space<vmem>>, vector<256x8xf32>
    %c0_9 = arith.constant 0 : index
    %c0_10 = arith.constant 0 : index
    %11 = vector.load %arg5[%c0_9, %c0_10] : memref<1x8xf32, #tpu.memory_space<vmem>>, vector<1x8xf32>
    %12 = vector.broadcast %11 : vector<1x8xf32> to vector<256x8xf32>
    %13 = arith.mulf %10, %12 : vector<256x8xf32>
    %c0_11 = arith.constant 0 : index
    %c0_12 = arith.constant 0 : index
    %14 = vector.load %arg6[%c0_11, %c0_12] : memref<1x8xf32, #tpu.memory_space<vmem>>, vector<1x8xf32>
    %15 = vector.broadcast %14 : vector<1x8xf32> to vector<256x8xf32>
    %16 = arith.addf %13, %15 : vector<256x8xf32>
    %cst_13 = arith.constant 0.000000e+00 : f32
    %17 = vector.broadcast %cst_13 : f32 to vector<256x8xf32>
    %18 = arith.maximumf %16, %17 : vector<256x8xf32>
    %c0_14 = arith.constant 0 : index
    %c8 = arith.constant 8 : index
    %19 = vector.load %arg13[%c0_14, %c8] : memref<256x32xf32, #tpu.memory_space<vmem>>, vector<256x8xf32>
    tpu.vector_store %arg13[%c0_14, %c8], %18 {strides = array<i32>} : memref<256x32xf32, #tpu.memory_space<vmem>>, vector<256x8xf32>,
    %c0_15 = arith.constant 0 : index
    %c0_16 = arith.constant 0 : index
    %20 = vector.load %arg7[%c0_15, %c0_16] : memref<256x8xf32, #tpu.memory_space<vmem>>, vector<256x8xf32>
    %c0_17 = arith.constant 0 : index
    %c0_18 = arith.constant 0 : index
    %21 = vector.load %arg8[%c0_17, %c0_18] : memref<1x8xf32, #tpu.memory_space<vmem>>, vector<1x8xf32>
    %22 = vector.broadcast %21 : vector<1x8xf32> to vector<256x8xf32>
    %23 = arith.mulf %20, %22 : vector<256x8xf32>
    %c0_19 = arith.constant 0 : index
    %c0_20 = arith.constant 0 : index
    %24 = vector.load %arg9[%c0_19, %c0_20] : memref<1x8xf32, #tpu.memory_space<vmem>>, vector<1x8xf32>
    %25 = vector.broadcast %24 : vector<1x8xf32> to vector<256x8xf32>
    %26 = arith.addf %23, %25 : vector<256x8xf32>
    %cst_21 = arith.constant 0.000000e+00 : f32
    %27 = vector.broadcast %cst_21 : f32 to vector<256x8xf32>
    %28 = arith.maximumf %26, %27 : vector<256x8xf32>
    %c0_22 = arith.constant 0 : index
    %c16 = arith.constant 16 : index
    %29 = vector.load %arg13[%c0_22, %c16] : memref<256x32xf32, #tpu.memory_space<vmem>>, vector<256x8xf32>
    tpu.vector_store %arg13[%c0_22, %c16], %28 {strides = array<i32>} : memref<256x32xf32, #tpu.memory_space<vmem>>, vector<256x8xf32>,
    %c0_23 = arith.constant 0 : index
    %c0_24 = arith.constant 0 : index
    %30 = vector.load %arg10[%c0_23, %c0_24] : memref<256x8xf32, #tpu.memory_space<vmem>>, vector<256x8xf32>
    %c0_25 = arith.constant 0 : index
    %c0_26 = arith.constant 0 : index
    %31 = vector.load %arg11[%c0_25, %c0_26] : memref<1x8xf32, #tpu.memory_space<vmem>>, vector<1x8xf32>
    %32 = vector.broadcast %31 : vector<1x8xf32> to vector<256x8xf32>
    %33 = arith.mulf %30, %32 : vector<256x8xf32>
    %c0_27 = arith.constant 0 : index
    %c0_28 = arith.constant 0 : index
    %34 = vector.load %arg12[%c0_27, %c0_28] : memref<1x8xf32, #tpu.memory_space<vmem>>, vector<1x8xf32>
    %35 = vector.broadcast %34 : vector<1x8xf32> to vector<256x8xf32>
    %36 = arith.addf %33, %35 : vector<256x8xf32>
    %cst_29 = arith.constant 0.000000e+00 : f32
    %37 = vector.broadcast %cst_29 : f32 to vector<256x8xf32>
    %38 = arith.maximumf %36, %37 : vector<256x8xf32>
    %c0_30 = arith.constant 0 : index
    %c24 = arith.constant 24 : index
    %39 = vector.load %arg13[%c0_30, %c24] : memref<256x32xf32, #tpu.memory_space<vmem>>, vector<256x8xf32>
    tpu.vector_store %arg13[%c0_30, %c24], %38 {strides = array<i32>} : memref<256x32xf32, #tpu.memory_space<vmem>>, vector<256x8xf32>,
    return
  }
  func.func @transform_0(%arg0: i32) -> (i32, i32) {
    %c0_i32 = arith.constant 0 : i32
    %c0_i32_0 = arith.constant 0 : i32
    return %arg0, %c0_i32 : i32, i32
  }
  func.func @transform_1(%arg0: i32) -> (i32, i32) {
    %c0_i32 = arith.constant 0 : i32
    %c0_i32_0 = arith.constant 0 : i32
    %c0_i32_1 = arith.constant 0 : i32
    return %c0_i32, %c0_i32_0 : i32, i32
  }
  func.func @transform_2(%arg0: i32) -> (i32, i32) {
    %c0_i32 = arith.constant 0 : i32
    %c0_i32_0 = arith.constant 0 : i32
    %c0_i32_1 = arith.constant 0 : i32
    return %c0_i32, %c0_i32_0 : i32, i32
  }
  func.func @transform_3(%arg0: i32) -> (i32, i32) {
    %c0_i32 = arith.constant 0 : i32
    %c0_i32_0 = arith.constant 0 : i32
    return %arg0, %c0_i32 : i32, i32
  }
  func.func @transform_4(%arg0: i32) -> (i32, i32) {
    %c0_i32 = arith.constant 0 : i32
    %c0_i32_0 = arith.constant 0 : i32
    %c0_i32_1 = arith.constant 0 : i32
    return %c0_i32, %c0_i32_0 : i32, i32
  }
  func.func @transform_5(%arg0: i32) -> (i32, i32) {
    %c0_i32 = arith.constant 0 : i32
    %c0_i32_0 = arith.constant 0 : i32
    %c0_i32_1 = arith.constant 0 : i32
    return %c0_i32, %c0_i32_0 : i32, i32
  }
  func.func @transform_6(%arg0: i32) -> (i32, i32) {
    %c0_i32 = arith.constant 0 : i32
    %c0_i32_0 = arith.constant 0 : i32
    return %arg0, %c0_i32 : i32, i32
  }
  func.func @transform_7(%arg0: i32) -> (i32, i32) {
    %c0_i32 = arith.constant 0 : i32
    %c0_i32_0 = arith.constant 0 : i32
    %c0_i32_1 = arith.constant 0 : i32
    return %c0_i32, %c0_i32_0 : i32, i32
  }
  func.func @transform_8(%arg0: i32) -> (i32, i32) {
    %c0_i32 = arith.constant 0 : i32
    %c0_i32_0 = arith.constant 0 : i32
    %c0_i32_1 = arith.constant 0 : i32
    return %c0_i32, %c0_i32_0 : i32, i32
  }
  func.func @transform_9(%arg0: i32) -> (i32, i32) {
    %c0_i32 = arith.constant 0 : i32
    %c0_i32_0 = arith.constant 0 : i32
    return %arg0, %c0_i32 : i32, i32
  }
  func.func @transform_10(%arg0: i32) -> (i32, i32) {
    %c0_i32 = arith.constant 0 : i32
    %c0_i32_0 = arith.constant 0 : i32
    %c0_i32_1 = arith.constant 0 : i32
    return %c0_i32, %c0_i32_0 : i32, i32
  }
  func.func @transform_11(%arg0: i32) -> (i32, i32) {
    %c0_i32 = arith.constant 0 : i32
    %c0_i32_0 = arith.constant 0 : i32
    %c0_i32_1 = arith.constant 0 : i32
    return %c0_i32, %c0_i32_0 : i32, i32
  }
  func.func @transform_12(%arg0: i32) -> (i32, i32) {
    %c0_i32 = arith.constant 0 : i32
    %c0_i32_0 = arith.constant 0 : i32
    return %arg0, %c0_i32 : i32, i32
  }
}

module attributes {stable_mosaic.version = 11 : i64} {
  func.func @_pool_conv1x1_kernel(%arg0: i32, %arg1: memref<1x16x16x4xf32, #tpu.memory_space<vmem>>, %arg2: memref<4x8xf32, #tpu.memory_space<vmem>>, %arg3: memref<1x16x16x8xf32, #tpu.memory_space<vmem>>, %arg4: memref<2x8xf32, #tpu.memory_space<vmem>>, %arg5: memref<18x18x4xf32, #tpu.memory_space<vmem>>) attributes {dimension_semantics = [#tpu.dimension_semantics<arbitrary>], iteration_bounds = array<i64: 2>, scalar_prefetch = 0 : i64, scratch_operands = 1 : i64, tpu.core_type = #tpu.core_type<tc>, window_params = [{transform_indices = @transform_0, window_bounds = array<i64: 1, 16, 16, 4>}, {pipeline_mode = #tpu.pipeline_mode<synchronous>, transform_indices = @transform_1, window_bounds = array<i64: 4, 8>}, {transform_indices = @transform_2, window_bounds = array<i64: 1, 16, 16, 8>}, {pipeline_mode = #tpu.pipeline_mode<synchronous>, transform_indices = @transform_3, window_bounds = array<i64: 2, 8>}]} {
    %c0_i32 = arith.constant 0 : i32
    %0 = arith.cmpi eq, %arg0, %c0_i32 : i32
    %1 = arith.extui %0 : i1 to i32
    %c0_i32_0 = arith.constant 0 : i32
    %2 = arith.cmpi ne, %1, %c0_i32_0 : i32
    scf.if %2 {
      %cst_52 = arith.constant 0.000000e+00 : f32
      %41 = vector.broadcast %cst_52 : f32 to vector<2x8xf32>
      %c0_53 = arith.constant 0 : index
      %c0_54 = arith.constant 0 : index
      %42 = vector.load %arg4[%c0_53, %c0_54] : memref<2x8xf32, #tpu.memory_space<vmem>>, vector<2x8xf32>
      tpu.vector_store %arg4[%c0_53, %c0_54], %41 {strides = array<i32>} : memref<2x8xf32, #tpu.memory_space<vmem>>, vector<2x8xf32>,
    } else {
    }
    %cst = arith.constant 0xFF800000 : f32
    %3 = vector.broadcast %cst : f32 to vector<18x18x4xf32>
    %c0 = arith.constant 0 : index
    %c0_1 = arith.constant 0 : index
    %c0_2 = arith.constant 0 : index
    %4 = vector.load %arg5[%c0, %c0_1, %c0_2] : memref<18x18x4xf32, #tpu.memory_space<vmem>>, vector<18x18x4xf32>
    tpu.vector_store %arg5[%c0, %c0_1, %c0_2], %3 {strides = array<i32>} : memref<18x18x4xf32, #tpu.memory_space<vmem>>, vector<18x18x4xf32>,
    %c0_3 = arith.constant 0 : index
    %c0_4 = arith.constant 0 : index
    %c0_5 = arith.constant 0 : index
    %c0_6 = arith.constant 0 : index
    %5 = vector.load %arg1[%c0_3, %c0_4, %c0_5, %c0_6] : memref<1x16x16x4xf32, #tpu.memory_space<vmem>>, vector<1x16x16x4xf32>
    %6 = vector.shape_cast %5 : vector<1x16x16x4xf32> to vector<16x16x4xf32>
    %c1 = arith.constant 1 : index
    %c1_7 = arith.constant 1 : index
    %c0_8 = arith.constant 0 : index
    %7 = vector.load %arg5[%c1, %c1_7, %c0_8] : memref<18x18x4xf32, #tpu.memory_space<vmem>>, vector<16x16x4xf32>
    tpu.vector_store %arg5[%c1, %c1_7, %c0_8], %6 {strides = array<i32>} : memref<18x18x4xf32, #tpu.memory_space<vmem>>, vector<16x16x4xf32>,
    %c1_9 = arith.constant 1 : index
    %c1_10 = arith.constant 1 : index
    %c0_11 = arith.constant 0 : index
    %8 = vector.load %arg5[%c1_9, %c1_10, %c0_11] : memref<18x18x4xf32, #tpu.memory_space<vmem>>, vector<16x16x4xf32>
    %c0_12 = arith.constant 0 : index
    %c0_13 = arith.constant 0 : index
    %c0_14 = arith.constant 0 : index
    %9 = vector.load %arg5[%c0_12, %c0_13, %c0_14] : memref<18x18x4xf32, #tpu.memory_space<vmem>>, vector<16x16x4xf32>
    %10 = arith.maximumf %8, %9 : vector<16x16x4xf32>
    %c0_15 = arith.constant 0 : index
    %c1_16 = arith.constant 1 : index
    %c0_17 = arith.constant 0 : index
    %11 = vector.load %arg5[%c0_15, %c1_16, %c0_17] : memref<18x18x4xf32, #tpu.memory_space<vmem>>, vector<16x16x4xf32>
    %12 = arith.maximumf %10, %11 : vector<16x16x4xf32>
    %c0_18 = arith.constant 0 : index
    %c2 = arith.constant 2 : index
    %c0_19 = arith.constant 0 : index
    %13 = vector.load %arg5[%c0_18, %c2, %c0_19] : memref<18x18x4xf32, #tpu.memory_space<vmem>>, vector<16x16x4xf32>
    %14 = arith.maximumf %12, %13 : vector<16x16x4xf32>
    %c1_20 = arith.constant 1 : index
    %c0_21 = arith.constant 0 : index
    %c0_22 = arith.constant 0 : index
    %15 = vector.load %arg5[%c1_20, %c0_21, %c0_22] : memref<18x18x4xf32, #tpu.memory_space<vmem>>, vector<16x16x4xf32>
    %16 = arith.maximumf %14, %15 : vector<16x16x4xf32>
    %c1_23 = arith.constant 1 : index
    %c2_24 = arith.constant 2 : index
    %c0_25 = arith.constant 0 : index
    %17 = vector.load %arg5[%c1_23, %c2_24, %c0_25] : memref<18x18x4xf32, #tpu.memory_space<vmem>>, vector<16x16x4xf32>
    %18 = arith.maximumf %16, %17 : vector<16x16x4xf32>
    %c2_26 = arith.constant 2 : index
    %c0_27 = arith.constant 0 : index
    %c0_28 = arith.constant 0 : index
    %19 = vector.load %arg5[%c2_26, %c0_27, %c0_28] : memref<18x18x4xf32, #tpu.memory_space<vmem>>, vector<16x16x4xf32>
    %20 = arith.maximumf %18, %19 : vector<16x16x4xf32>
    %c2_29 = arith.constant 2 : index
    %c1_30 = arith.constant 1 : index
    %c0_31 = arith.constant 0 : index
    %21 = vector.load %arg5[%c2_29, %c1_30, %c0_31] : memref<18x18x4xf32, #tpu.memory_space<vmem>>, vector<16x16x4xf32>
    %22 = arith.maximumf %20, %21 : vector<16x16x4xf32>
    %c2_32 = arith.constant 2 : index
    %c2_33 = arith.constant 2 : index
    %c0_34 = arith.constant 0 : index
    %23 = vector.load %arg5[%c2_32, %c2_33, %c0_34] : memref<18x18x4xf32, #tpu.memory_space<vmem>>, vector<16x16x4xf32>
    %24 = arith.maximumf %22, %23 : vector<16x16x4xf32>
    %25 = vector.shape_cast %24 : vector<16x16x4xf32> to vector<256x4xf32>
    %c0_35 = arith.constant 0 : index
    %c0_36 = arith.constant 0 : index
    %26 = vector.load %arg2[%c0_35, %c0_36] : memref<4x8xf32, #tpu.memory_space<vmem>>, vector<4x8xf32>
    %cst_37 = arith.constant dense<0.000000e+00> : vector<256x8xf32>
    %27 = tpu.matmul %25, %26, %cst_37 {dimension_numbers = #tpu.dot_dimension_numbers<[1], [0], [0], [1], [0, 0, 1, 1], [], []>} : vector<256x4xf32>, vector<4x8xf32>, vector<256x8xf32> -> vector<256x8xf32>
    %28 = vector.shape_cast %27 : vector<256x8xf32> to vector<1x16x16x8xf32>
    %c0_38 = arith.constant 0 : index
    %c0_39 = arith.constant 0 : index
    %c0_40 = arith.constant 0 : index
    %c0_41 = arith.constant 0 : index
    %29 = vector.load %arg3[%c0_38, %c0_39, %c0_40, %c0_41] : memref<1x16x16x8xf32, #tpu.memory_space<vmem>>, vector<1x16x16x8xf32>
    tpu.vector_store %arg3[%c0_38, %c0_39, %c0_40, %c0_41], %28 {strides = array<i32>} : memref<1x16x16x8xf32, #tpu.memory_space<vmem>>, vector<1x16x16x8xf32>,
    %c0_42 = arith.constant 0 : index
    %c0_43 = arith.constant 0 : index
    %30 = vector.load %arg4[%c0_42, %c0_43] : memref<2x8xf32, #tpu.memory_space<vmem>>, vector<1x8xf32>
    %cst_44 = arith.constant dense<0.000000e+00> : vector<8xf32>
    %31 = vector.multi_reduction <add>, %27, %cst_44 [0] : vector<256x8xf32> to vector<8xf32>
    %32 = vector.shape_cast %31 : vector<8xf32> to vector<1x8xf32>
    %33 = arith.addf %30, %32 : vector<1x8xf32>
    %c0_45 = arith.constant 0 : index
    %c0_46 = arith.constant 0 : index
    %34 = vector.load %arg4[%c0_45, %c0_46] : memref<2x8xf32, #tpu.memory_space<vmem>>, vector<1x8xf32>
    tpu.vector_store %arg4[%c0_45, %c0_46], %33 {strides = array<i32>} : memref<2x8xf32, #tpu.memory_space<vmem>>, vector<1x8xf32>,
    %c1_47 = arith.constant 1 : index
    %c0_48 = arith.constant 0 : index
    %35 = vector.load %arg4[%c1_47, %c0_48] : memref<2x8xf32, #tpu.memory_space<vmem>>, vector<1x8xf32>
    %36 = arith.mulf %27, %27 : vector<256x8xf32>
    %cst_49 = arith.constant dense<0.000000e+00> : vector<8xf32>
    %37 = vector.multi_reduction <add>, %36, %cst_49 [0] : vector<256x8xf32> to vector<8xf32>
    %38 = vector.shape_cast %37 : vector<8xf32> to vector<1x8xf32>
    %39 = arith.addf %35, %38 : vector<1x8xf32>
    %c1_50 = arith.constant 1 : index
    %c0_51 = arith.constant 0 : index
    %40 = vector.load %arg4[%c1_50, %c0_51] : memref<2x8xf32, #tpu.memory_space<vmem>>, vector<1x8xf32>
    tpu.vector_store %arg4[%c1_50, %c0_51], %39 {strides = array<i32>} : memref<2x8xf32, #tpu.memory_space<vmem>>, vector<1x8xf32>,
    return
  }
  func.func @transform_0(%arg0: i32) -> (i32, i32, i32, i32) {
    %c0_i32 = arith.constant 0 : i32
    %c0_i32_0 = arith.constant 0 : i32
    %c0_i32_1 = arith.constant 0 : i32
    %c0_i32_2 = arith.constant 0 : i32
    return %arg0, %c0_i32, %c0_i32_0, %c0_i32_1 : i32, i32, i32, i32
  }
  func.func @transform_1(%arg0: i32) -> (i32, i32) {
    %c0_i32 = arith.constant 0 : i32
    %c0_i32_0 = arith.constant 0 : i32
    %c0_i32_1 = arith.constant 0 : i32
    return %c0_i32, %c0_i32_0 : i32, i32
  }
  func.func @transform_2(%arg0: i32) -> (i32, i32, i32, i32) {
    %c0_i32 = arith.constant 0 : i32
    %c0_i32_0 = arith.constant 0 : i32
    %c0_i32_1 = arith.constant 0 : i32
    %c0_i32_2 = arith.constant 0 : i32
    return %arg0, %c0_i32, %c0_i32_0, %c0_i32_1 : i32, i32, i32, i32
  }
  func.func @transform_3(%arg0: i32) -> (i32, i32) {
    %c0_i32 = arith.constant 0 : i32
    %c0_i32_0 = arith.constant 0 : i32
    %c0_i32_1 = arith.constant 0 : i32
    return %c0_i32, %c0_i32_0 : i32, i32
  }
}

</mosaic_0001>

<bundles_post_ra>
// kernel: inception_forward.8
= control target key start
LH: loop header
LB: loop body
LE: loop exit
PB: predicated region body
PF: predicated region fallthrough
CT: control target
= control target key end

     0   :  { %s977_s12 = smov 0   ;;  %s1307_s0 = inlined_call_operand.vmem [shape: f32[512,4], index: 0, kind: input, shape index: {}]   ;;  %s1308_s1 = inlined_call_operand.vmem [shape: f32[4,8], index: 1, kind: input, shape index: {}]   ;;  %s1309_s2 = inlined_call_operand.vmem [shape: f32[512,8], index: 2, kind: output, shape index: {0}]   ;;  %s1310_s3 = inlined_call_operand.vmem [shape: f32[2,8], index: 3, kind: output, shape index: {1}]  }
   0x1 LB: > { %s809_s13 = sadd.s32 4294967295, %s954_s12   ;;  %p813_p0 = scmp.ge.s32.totalorder %s954_s12, 1  ;;  %s954_s12 = sphi %s977_s12, %s14_s12  }
   0x2   : > { %p136_p1 = scmp.lt.s32.totalorder %s954_s12, 3 }
   0x4   : > { %p137_p2 = pnand %p813_p0, %p136_p1 }
   0x5   : > { %s814_s14 = sshll.u32 (!%p137_p2), %s809_s13, 5  ;;  %p818_p4 = scmp.ne.s32.totalorder (!%p137_p2), %s809_s13, 0 }
   0x6   : > { %140 = sbr.rel (%p137_p2) target bundleno = 318 (0x13e), region = 28  ;;  %p161_p3 = scmp.lt.s32.totalorder (!%p137_p2), %s814_s14, 63 }
   0xd   : > { %s1312_s14 = smov (!%p161_p3, %s814_s14), 63  ;;  %175 = sbr.rel (%p818_p4) target bundleno = 20 (0x14), region = 32 }
   0xe   : > { %s815_s15 = sshll.u32 %s1312_s14, 3  ;;  %vm176_vm0 = vcmask (!%p818_p4), 58368   ;;  %v956_v0 = vmov (!%p818_p4), 0.0  }
   0xf   : > { %s988_s18 = scalar_lea.vmem %s1307_s0, %s815_s15  ;;  %s993_s21 = scalar_lea.vmem %s1309_s2, %s815_s15  ;;  %177 = vst.msk [vmem:[%s1310_s3] sm:$0x3] (!%p818_p4), %vm176_vm0, %v956_v0 }
  0x14 PF: > { %v210_v1 = vld [vmem:[%s1308_s1] sm:$0xf]  ;;  %vm308_vm1 = vcmask 1043456   ;;  %vm211_vm2 = vcmask 31744   ;;  %v179_v3 = vld [vmem:[%s988_s18 + $0x8] sm:$0xff]  ;;  %v180_v4 = vld [vmem:[%s988_s18 + $0x10] sm:$0xff] }
  0x15   : > { %v178_v2 = vld [vmem:[%s988_s18] sm:$0xff]  ;;  %887 = vmatprep.subr.msk.mxu0 %vm308_vm1, %v210_v1  ;;  %937 = vmatprep.subr.msk.mxu1 %vm308_vm1, %v210_v1  ;;  %v181_v5 = vld [vmem:[%s988_s18 + $0x18] sm:$0xff]  ;;  %v195_v8 = vld [vmem:[%s988_s18 + $0x88] sm:$0xff]  ;;  %vm537_vm3 = vcmask 64512   ;;  %vm641_vm4 = vcmask 57344  }
  0x16   : > { %889 = vmatprep.mubr.msk.f32.mxu0 %vm211_vm2, %v178_v2  ;;  %888 = vmatpush3.msk.msra.mxu0 %vm308_vm1, %v210_v1  ;;  %v182_v6 = vld [vmem:[%s988_s18 + $0x20] sm:$0xff]  ;;  %v196_v9 = vld [vmem:[%s988_s18 + $0x90] sm:$0xff]  ;;  %v183_v10 = vld [vmem:[%s988_s18 + $0x28] sm:$0xff] }
  0x17   : > { %890 = vmatmul.mubr.msk.f32.vlgmr.msra.gmra.mrb[0].mxu0 %vm211_vm2, %v179_v3  ;;  %938 = vmatpush3.msk.msra.mxu1 %vm308_vm1, %v210_v1  ;;  %v194_v7 = vld [vmem:[%s988_s18 + $0x80] sm:$0xff]  ;;  %v197_v11 = vld [vmem:[%s988_s18 + $0x98] sm:$0xff]  ;;  %v184_v12 = vld [vmem:[%s988_s18 + $0x30] sm:$0xff] }
  0x18   : > { %892 = vmatprep.mubr.msk.f32.mxu0 %vm211_vm2, %v180_v4  ;;  %913 = vmatprep.mubr.msk.f32.mxu1 %vm211_vm2, %v194_v7  ;;  %v198_v13 = vld [vmem:[%s988_s18 + $0xa0] sm:$0xff]  ;;  %v185_v14 = vld [vmem:[%s988_s18 + $0x38] sm:$0xff]  ;;  %v199_v15 = vld [vmem:[%s988_s18 + $0xa8] sm:$0xff] }
  0x19   : > { %914 = vmatmul.mubr.msk.f32.vlgmr.msra.gmra.mrb[0].mxu1 %vm211_vm2, %v195_v8  ;;  %v186_v16 = vld [vmem:[%s988_s18 + $0x40] sm:$0xff]  ;;  %v200_v17 = vld [vmem:[%s988_s18 + $0xb0] sm:$0xff]  ;;  %v187_v18 = vld [vmem:[%s988_s18 + $0x48] sm:$0xff] }
  0x1a   : > { %916 = vmatprep.mubr.msk.f32.mxu1 %vm211_vm2, %v196_v9  ;;  %v201_v19 = vld [vmem:[%s988_s18 + $0xb8] sm:$0xff]  ;;  %v188_v20 = vld [vmem:[%s988_s18 + $0x50] sm:$0xff]  ;;  %v202_v21 = vld [vmem:[%s988_s18 + $0xc0] sm:$0xff] }
  0x1b   : > { %893 = vmatmul.mubr.msk.f32.gmra.mrb[2].mxu0 %vm211_vm2, %v181_v5  ;;  %v189_v22 = vld [vmem:[%s988_s18 + $0x58] sm:$0xff]  ;;  %v203_v23 = vld [vmem:[%s988_s18 + $0xc8] sm:$0xff]  ;;  %v190_v24 = vld [vmem:[%s988_s18 + $0x60] sm:$0xff] }
  0x1c   : > { %895 = vmatprep.mubr.msk.f32.mxu0 %vm211_vm2, %v182_v6  ;;  %v204_v25 = vld [vmem:[%s988_s18 + $0xd0] sm:$0xff]  ;;  %v191_v26 = vld [vmem:[%s988_s18 + $0x68] sm:$0xff]  ;;  %v205_v27 = vld [vmem:[%s988_s18 + $0xd8] sm:$0xff] }
  0x1d   : > { %917 = vmatmul.mubr.msk.f32.gmra.mrb[2].mxu1 %vm211_vm2, %v197_v11  ;;  %v192_v28 = vld [vmem:[%s988_s18 + $0x70] sm:$0xff]  ;;  %v206_v29 = vld [vmem:[%s988_s18 + $0xe0] sm:$0xff]  ;;  %v193_v30 = vld [vmem:[%s988_s18 + $0x78] sm:$0xff] }
  0x1e   : > { %919 = vmatprep.mubr.msk.f32.mxu1 %vm211_vm2, %v198_v13  ;;  %v207_v31 = vld [vmem:[%s988_s18 + $0xe8] sm:$0xff]  ;;  %v208_v32 = vld [vmem:[%s988_s18 + $0xf0] sm:$0xff]  ;;  %v209_v33 = vld [vmem:[%s988_s18 + $0xf8] sm:$0xff] }
  0x1f   : > { %896 = vmatmul.mubr.msk.f32.gmra.mrb[4].mxu0 %vm211_vm2, %v183_v10 }
  0x20   : > { %898 = vmatprep.mubr.msk.f32.mxu0 %vm211_vm2, %v184_v12 }
  0x21   : > { %920 = vmatmul.mubr.msk.f32.gmra.mrb[4].mxu1 %vm211_vm2, %v199_v15 }
  0x22   : > { %922 = vmatprep.mubr.msk.f32.mxu1 %vm211_vm2, %v200_v17 }
  0x23   : > { %899 = vmatmul.mubr.msk.f32.gmra.mrb[6].mxu0 %vm211_vm2, %v185_v14 }
  0x24   : > { %901 = vmatprep.mubr.msk.f32.mxu0 %vm211_vm2, %v186_v16 }
  0x25   : > { %923 = vmatmul.mubr.msk.f32.gmra.mrb[6].mxu1 %vm211_vm2, %v201_v19 }
  0x26   : > { %925 = vmatprep.mubr.msk.f32.mxu1 %vm211_vm2, %v202_v21 }
  0x27   : > { %902 = vmatmul.mubr.msk.f32.gmra.mrb[8].mxu0 %vm211_vm2, %v187_v18 }
  0x28   : > { %904 = vmatprep.mubr.msk.f32.mxu0 %vm211_vm2, %v188_v20 }
  0x29   : > { %926 = vmatmul.mubr.msk.f32.gmra.mrb[8].mxu1 %vm211_vm2, %v203_v23 }
  0x2a   : > { %928 = vmatprep.mubr.msk.f32.mxu1 %vm211_vm2, %v204_v25 }
  0x2b   : > { %905 = vmatmul.mubr.msk.f32.gmra.mrb[10].mxu0 %vm211_vm2, %v189_v22 }
  0x2c   : > { %907 = vmatprep.mubr.msk.f32.mxu0 %vm211_vm2, %v190_v24 }
  0x2d   : > { %929 = vmatmul.mubr.msk.f32.gmra.mrb[10].mxu1 %vm211_vm2, %v205_v27 }
  0x2e   : > { %931 = vmatprep.mubr.msk.f32.mxu1 %vm211_vm2, %v206_v29 }
  0x2f   : > { %908 = vmatmul.mubr.msk.f32.gmra.mrb[12].mxu0 %vm211_vm2, %v191_v26 }
  0x30   : > { %910 = vmatprep.mubr.msk.f32.mxu0 %vm211_vm2, %v192_v28 }
  0x31   : > { %932 = vmatmul.mubr.msk.f32.gmra.mrb[12].mxu1 %vm211_vm2, %v207_v31 }
  0x32   : > { %934 = vmatprep.mubr.msk.f32.mxu1 %vm211_vm2, %v208_v32 }
  0x33   : > { %911 = vmatmul.mubr.msk.f32.gmra.mrb[14].mxu0 %vm211_vm2, %v193_v30 }
  0x35   : > { %935 = vmatmul.mubr.msk.f32.gmra.mrb[14].mxu1 %vm211_vm2, %v209_v33 }
  0xea   : > { %v891_v34 = vpop.f32.mrb[0].mxu0 }
  0xeb   : > { %539 = vst.msk [vmem:[%s993_s21 + $0x8] sm:$0xff] %vm537_vm3, %v891_v34  ;;  %v572_v35 = vsel %vm537_vm3, %v891_v34, 0.0  ;;  %v645_v36 = vmul.f32 %v891_v34, %v891_v34  ;;  %v378_v37 = vpop.f32.mrb[1].mxu0 }
  0xec   : > { %538 = vst.msk [vmem:[%s993_s21] sm:$0xff] %vm537_vm3, %v378_v37  ;;  %v571_v38 = vsel %vm537_vm3, %v378_v37, 0.0  ;;  %v644_v39 = vmul.f32 %v378_v37, %v378_v37  ;;  %v1073_v44 = vpop.f32.mrb[0].mxu1 }
  0xed   : > { %v677_v40 = vsel %vm537_vm3, %v645_v36, 0.0  ;;  %v573_v41 = vadd.f32 %v572_v35, %v571_v38  ;;  %555 = vst.msk [vmem:[%s993_s21 + $0x88] sm:$0xff] %vm537_vm3, %v1073_v44  ;;  %v1080_v47 = vpop.f32.mrb[1].mxu1 }
  0xee   : > { %v676_v42 = vsel %vm537_vm3, %v644_v39, 0.0  ;;  %v894_v43 = vpop.f32.mrb[2].mxu0  ;;  %554 = vst.msk [vmem:[%s993_s21 + $0x80] sm:$0xff] %vm537_vm3, %v1080_v47 }
  0xef   : > { %v678_v45 = vadd.f32 %v677_v40, %v676_v42  ;;  %541 = vst.msk [vmem:[%s993_s21 + $0x18] sm:$0xff] %vm537_vm3, %v894_v43  ;;  %v388_v46 = vpop.f32.mrb[3].mxu0  ;;  %v647_v48 = vmul.f32 %v894_v43, %v894_v43  ;;  %v576_v52 = vsel %vm537_vm3, %v894_v43, 0.0 }
  0xf0   : > { %540 = vst.msk [vmem:[%s993_s21 + $0x10] sm:$0xff] %vm537_vm3, %v388_v46  ;;  %v574_v49 = vsel %vm537_vm3, %v388_v46, 0.0  ;;  %v646_v50 = vmul.f32 %v388_v46, %v388_v46  ;;  %v1090_v55 = vpop.f32.mrb[2].mxu1 }
  0xf1   : > { %v575_v51 = vadd.f32 %v574_v49, %v573_v41  ;;  %557 = vst.msk [vmem:[%s993_s21 + $0x98] sm:$0xff] %vm537_vm3, %v1090_v55  ;;  %v1097_v59 = vpop.f32.mrb[3].mxu1  ;;  %v681_v60 = vsel %vm537_vm3, %v647_v48, 0.0 }
  0xf2   : > { %v679_v53 = vsel %vm537_vm3, %v646_v50, 0.0  ;;  %v897_v54 = vpop.f32.mrb[4].mxu0  ;;  %556 = vst.msk [vmem:[%s993_s21 + $0x90] sm:$0xff] %vm537_vm3, %v1097_v59 }
  0xf3   : > { %v680_v56 = vadd.f32 %v679_v53, %v678_v45  ;;  %543 = vst.msk [vmem:[%s993_s21 + $0x28] sm:$0xff] %vm537_vm3, %v897_v54  ;;  %v398_v57 = vpop.f32.mrb[5].mxu0  ;;  %v577_v58 = vadd.f32 %v576_v52, %v575_v51  ;;  %v649_v61 = vmul.f32 %v897_v54, %v897_v54  ;;  %v580_v2 = vsel %vm537_vm3, %v897_v54, 0.0 }
  0xf4   : > { %542 = vst.msk [vmem:[%s993_s21 + $0x20] sm:$0xff] %vm537_vm3, %v398_v57  ;;  %v578_v62 = vsel %vm537_vm3, %v398_v57, 0.0  ;;  %v648_v63 = vmul.f32 %v398_v57, %v398_v57  ;;  %v1108_v5 = vpop.f32.mrb[4].mxu1 }
  0xf5   : > { %v579_v0 = vadd.f32 %v578_v62, %v577_v58  ;;  %v682_v1 = vadd.f32 %v681_v60, %v680_v56  ;;  %559 = vst.msk [vmem:[%s993_s21 + $0xa8] sm:$0xff] %vm537_vm3, %v1108_v5  ;;  %v1115_v9 = vpop.f32.mrb[5].mxu1  ;;  %v685_v10 = vsel %vm537_vm3, %v649_v61, 0.0 }
  0xf6   : > { %v683_v3 = vsel %vm537_vm3, %v648_v63, 0.0  ;;  %v900_v4 = vpop.f32.mrb[6].mxu0  ;;  %558 = vst.msk [vmem:[%s993_s21 + $0xa0] sm:$0xff] %vm537_vm3, %v1115_v9 }
  0xf7   : > { %v684_v6 = vadd.f32 %v683_v3, %v682_v1  ;;  %545 = vst.msk [vmem:[%s993_s21 + $0x38] sm:$0xff] %vm537_vm3, %v900_v4  ;;  %v408_v7 = vpop.f32.mrb[7].mxu0  ;;  %v581_v8 = vadd.f32 %v580_v2, %v579_v0  ;;  %v651_v11 = vmul.f32 %v900_v4, %v900_v4  ;;  %v584_v16 = vsel %vm537_vm3, %v900_v4, 0.0 }
  0xf8   : > { %544 = vst.msk [vmem:[%s993_s21 + $0x30] sm:$0xff] %vm537_vm3, %v408_v7  ;;  %v582_v12 = vsel %vm537_vm3, %v408_v7, 0.0  ;;  %v650_v13 = vmul.f32 %v408_v7, %v408_v7  ;;  %v1126_v19 = vpop.f32.mrb[6].mxu1 }
  0xf9   : > { %v583_v14 = vadd.f32 %v582_v12, %v581_v8  ;;  %v686_v15 = vadd.f32 %v685_v10, %v684_v6  ;;  %561 = vst.msk [vmem:[%s993_s21 + $0xb8] sm:$0xff] %vm537_vm3, %v1126_v19  ;;  %v1133_v23 = vpop.f32.mrb[7].mxu1  ;;  %v689_v24 = vsel %vm537_vm3, %v651_v11, 0.0  ;;  %v660_v6 = vmul.f32 %v1080_v47, %v1080_v47 }
  0xfa   : > { %v687_v17 = vsel %vm537_vm3, %v650_v13, 0.0  ;;  %v903_v18 = vpop.f32.mrb[8].mxu0  ;;  %560 = vst.msk [vmem:[%s993_s21 + $0xb0] sm:$0xff] %vm537_vm3, %v1133_v23 }
  0xfb   : > { %v688_v20 = vadd.f32 %v687_v17, %v686_v15  ;;  %547 = vst.msk [vmem:[%s993_s21 + $0x48] sm:$0xff] %vm537_vm3, %v903_v18  ;;  %v418_v21 = vpop.f32.mrb[9].mxu0  ;;  %v585_v22 = vadd.f32 %v584_v16, %v583_v14  ;;  %v653_v25 = vmul.f32 %v903_v18, %v903_v18  ;;  %v588_v30 = vsel %vm537_vm3, %v903_v18, 0.0 }
  0xfc   : > { %546 = vst.msk [vmem:[%s993_s21 + $0x40] sm:$0xff] %vm537_vm3, %v418_v21  ;;  %v586_v26 = vsel %vm537_vm3, %v418_v21, 0.0  ;;  %v652_v27 = vmul.f32 %v418_v21, %v418_v21  ;;  %v1144_v33 = vpop.f32.mrb[8].mxu1  ;;  %v602_v17 = vsel %vm537_vm3, %v1080_v47, 0.0  ;;  %v662_v47 = vmul.f32 %v1097_v59, %v1097_v59 }
  0xfd   : > { %v587_v28 = vadd.f32 %v586_v26, %v585_v22  ;;  %v690_v29 = vadd.f32 %v689_v24, %v688_v20  ;;  %563 = vst.msk [vmem:[%s993_s21 + $0xc8] sm:$0xff] %vm537_vm3, %v1144_v33  ;;  %v1151_v37 = vpop.f32.mrb[9].mxu1  ;;  %v693_v38 = vsel %vm537_vm3, %v653_v25, 0.0  ;;  %v661_v26 = vmul.f32 %v1073_v44, %v1073_v44 }
  0xfe   : > { %v691_v31 = vsel %vm537_vm3, %v652_v27, 0.0  ;;  %v906_v32 = vpop.f32.mrb[10].mxu0  ;;  %562 = vst.msk [vmem:[%s993_s21 + $0xc0] sm:$0xff] %vm537_vm3, %v1151_v37  ;;  %v707_v27 = vsel %vm537_vm3, %v660_v6, 0.0  ;;  %v669_v6 = vmul.f32 %v1144_v33, %v1144_v33 }
  0xff   : > { %v692_v34 = vadd.f32 %v691_v31, %v690_v29  ;;  %549 = vst.msk [vmem:[%s993_s21 + $0x58] sm:$0xff] %vm537_vm3, %v906_v32  ;;  %v428_v35 = vpop.f32.mrb[11].mxu0  ;;  %v589_v36 = vadd.f32 %v588_v30, %v587_v28  ;;  %v655_v39 = vmul.f32 %v906_v32, %v906_v32  ;;  %v592_v45 = vsel %vm537_vm3, %v906_v32, 0.0 }
 0x100   : > { %548 = vst.msk [vmem:[%s993_s21 + $0x50] sm:$0xff] %vm537_vm3, %v428_v35  ;;  %v590_v40 = vsel %vm537_vm3, %v428_v35, 0.0  ;;  %v654_v41 = vmul.f32 %v428_v35, %v428_v35  ;;  %v1162_v49 = vpop.f32.mrb[10].mxu1  ;;  %v604_v31 = vsel %vm537_vm3, %v1073_v44, 0.0  ;;  %v606_v32 = vsel %vm537_vm3, %v1097_v59, 0.0 }
 0x101   : > { %v591_v42 = vadd.f32 %v590_v40, %v589_v36  ;;  %v694_v43 = vadd.f32 %v693_v38, %v692_v34  ;;  %565 = vst.msk [vmem:[%s993_s21 + $0xd8] sm:$0xff] %vm537_vm3, %v1162_v49  ;;  %v1169_v53 = vpop.f32.mrb[11].mxu1  ;;  %v697_v54 = vsel %vm537_vm3, %v655_v39, 0.0  ;;  %v709_v36 = vsel %vm537_vm3, %v661_v26, 0.0 }
 0x102   : > { %v695_v46 = vsel %vm537_vm3, %v654_v41, 0.0  ;;  %v909_v48 = vpop.f32.mrb[12].mxu0  ;;  %564 = vst.msk [vmem:[%s993_s21 + $0xd0] sm:$0xff] %vm537_vm3, %v1169_v53  ;;  %v663_v38 = vmul.f32 %v1090_v55, %v1090_v55  ;;  %v711_v39 = vsel %vm537_vm3, %v662_v47, 0.0  ;;  %v664_v40 = vmul.f32 %v1115_v9, %v1115_v9 }
 0x103   : > { %v696_v50 = vadd.f32 %v695_v46, %v694_v43  ;;  %551 = vst.msk [vmem:[%s993_s21 + $0x68] sm:$0xff] %vm537_vm3, %v909_v48  ;;  %v438_v51 = vpop.f32.mrb[13].mxu0  ;;  %v593_v52 = vadd.f32 %v592_v45, %v591_v42  ;;  %v657_v56 = vmul.f32 %v909_v48, %v909_v48  ;;  %v596_v62 = vsel %vm537_vm3, %v909_v48, 0.0 }
 0x104   : > { %550 = vst.msk [vmem:[%s993_s21 + $0x60] sm:$0xff] %vm537_vm3, %v438_v51  ;;  %v594_v57 = vsel %vm537_vm3, %v438_v51, 0.0  ;;  %v656_v58 = vmul.f32 %v438_v51, %v438_v51  ;;  %v1180_v1 = vpop.f32.mrb[12].mxu1  ;;  %v608_v44 = vsel %vm537_vm3, %v1090_v55, 0.0  ;;  %v610_v59 = vsel %vm537_vm3, %v1115_v9, 0.0 }
 0x105   : > { %v595_v60 = vadd.f32 %v594_v57, %v593_v52  ;;  %v698_v61 = vadd.f32 %v697_v54, %v696_v50  ;;  %567 = vst.msk [vmem:[%s993_s21 + $0xe8] sm:$0xff] %vm537_vm3, %v1180_v1  ;;  %v1189_v7 = vpop.f32.mrb[13].mxu1  ;;  %v701_v8 = vsel %vm537_vm3, %v657_v56, 0.0  ;;  %v713_v46 = vsel %vm537_vm3, %v663_v38, 0.0 }
 0x106   : > { %v699_v63 = vsel %vm537_vm3, %v656_v58, 0.0  ;;  %v912_v0 = vpop.f32.mrb[14].mxu0  ;;  %566 = vst.msk [vmem:[%s993_s21 + $0xe0] sm:$0xff] %vm537_vm3, %v1189_v7  ;;  %v665_v48 = vmul.f32 %v1108_v5, %v1108_v5  ;;  %v715_v50 = vsel %vm537_vm3, %v664_v40, 0.0  ;;  %v666_v51 = vmul.f32 %v1133_v23, %v1133_v23 }
 0x107   : > { %v700_v2 = vadd.f32 %v699_v63, %v698_v61  ;;  %553 = vst.msk [vmem:[%s993_s21 + $0x78] sm:$0xff] %vm537_vm3, %v912_v0  ;;  %v448_v3 = vpop.f32.mrb[15].mxu0  ;;  %v597_v4 = vadd.f32 %v596_v62, %v595_v60  ;;  %v659_v10 = vmul.f32 %v912_v0, %v912_v0  ;;  %v600_v15 = vsel %vm537_vm3, %v912_v0, 0.0 }
 0x108   : > { %552 = vst.msk [vmem:[%s993_s21 + $0x70] sm:$0xff] %vm537_vm3, %v448_v3  ;;  %v598_v11 = vsel %vm537_vm3, %v448_v3, 0.0  ;;  %v658_v12 = vmul.f32 %v448_v3, %v448_v3  ;;  %v1202_v18 = vpop.f32.mrb[14].mxu1  ;;  %v612_v55 = vsel %vm537_vm3, %v1108_v5, 0.0  ;;  %v614_v9 = vsel %vm537_vm3, %v1133_v23, 0.0 }
 0x109   : > { %v599_v13 = vadd.f32 %v598_v11, %v597_v4  ;;  %v702_v14 = vadd.f32 %v701_v8, %v700_v2  ;;  %569 = vst.msk [vmem:[%s993_s21 + $0xf8] sm:$0xff] %vm537_vm3, %v1202_v18  ;;  %v675_v22 = vmul.f32 %v1202_v18, %v1202_v18  ;;  %v1209_v24 = vpop.f32.mrb[15].mxu1  ;;  %v705_v25 = vsel %vm537_vm3, %v659_v10, 0.0 }
 0x10a   : > { %v703_v16 = vsel %vm537_vm3, %v658_v12, 0.0  ;;  %568 = vst.msk [vmem:[%s993_s21 + $0xf0] sm:$0xff] %vm537_vm3, %v1209_v24  ;;  %v717_v58 = vsel %vm537_vm3, %v665_v48, 0.0  ;;  %v667_v60 = vmul.f32 %v1126_v19, %v1126_v19  ;;  %v719_v61 = vsel %vm537_vm3, %v666_v51, 0.0 }
 0x10b   : > { %v601_v20 = vadd.f32 %v600_v15, %v599_v13  ;;  %v704_v21 = vadd.f32 %v703_v16, %v702_v14  ;;  %v1221_v30 = vsel %vm537_vm3, %v675_v22, 0.0  ;;  %v668_v62 = vmul.f32 %v1151_v37, %v1151_v37 }
 0x10c   : > { %v616_v5 = vsel %vm537_vm3, %v1126_v19, 0.0  ;;  %v618_v23 = vsel %vm537_vm3, %v1151_v37, 0.0  ;;  %v721_v4 = vsel %vm537_vm3, %v667_v60, 0.0  ;;  %v670_v10 = vmul.f32 %v1169_v53, %v1169_v53 }
 0x10d   : > { %v706_v28 = vadd.f32 %v705_v25, %v704_v21  ;;  %v603_v29 = vadd.f32 %v602_v17, %v601_v20  ;;  %v723_v8 = vsel %vm537_vm3, %v668_v62, 0.0  ;;  %v620_v19 = vsel %vm537_vm3, %v1144_v33, 0.0 }
 0x10e   : > { %v622_v37 = vsel %vm537_vm3, %v1169_v53, 0.0  ;;  %v725_v15 = vsel %vm537_vm3, %v669_v6, 0.0  ;;  %v671_v16 = vmul.f32 %v1162_v49, %v1162_v49  ;;  %v727_v17 = vsel %vm537_vm3, %v670_v10, 0.0 }
 0x10f   : > { %v708_v34 = vadd.f32 %v707_v27, %v706_v28  ;;  %v605_v35 = vadd.f32 %v604_v31, %v603_v29  ;;  %v672_v20 = vmul.f32 %v1189_v7, %v1189_v7  ;;  %v624_v33 = vsel %vm537_vm3, %v1162_v49, 0.0 }
 0x110   : > { %v626_v53 = vsel %vm537_vm3, %v1189_v7, 0.0  ;;  %v729_v27 = vsel %vm537_vm3, %v671_v16, 0.0  ;;  %v673_v47 = vmul.f32 %v1180_v1, %v1180_v1  ;;  %v674_v29 = vmul.f32 %v1209_v24, %v1209_v24 }
 0x111   : > { %v607_v41 = vadd.f32 %v606_v32, %v605_v35  ;;  %v710_v42 = vadd.f32 %v709_v36, %v708_v34  ;;  %v731_v28 = vsel %vm537_vm3, %v672_v20, 0.0  ;;  %v628_v49 = vsel %vm537_vm3, %v1180_v1, 0.0 }
 0x112   : > { %v630_v7 = vsel %vm537_vm3, %v1209_v24, 0.0  ;;  %v733_v36 = vsel %vm537_vm3, %v673_v47, 0.0  ;;  %v735_v38 = vsel %vm537_vm3, %v674_v29, 0.0 }
 0x113   : > { %v712_v43 = vadd.f32 %v711_v39, %v710_v42  ;;  %v609_v45 = vadd.f32 %v608_v44, %v607_v41  ;;  %v632_v41 = vsel %vm537_vm3, %v1202_v18, 0.0  ;;  %v643_v18 = vld [vmem:[%s1310_s3 + $0x1] sm:$0x1] }
 0x115   : > { %v611_v52 = vadd.f32 %v610_v59, %v609_v45  ;;  %v714_v54 = vadd.f32 %v713_v46, %v712_v43 }
 0x117   : > { %v716_v56 = vadd.f32 %v715_v50, %v714_v54  ;;  %v613_v57 = vadd.f32 %v612_v55, %v611_v52  ;;  %v570_v54 = vld [vmem:[%s1310_s3] sm:$0x1] }
 0x119   : > { %v615_v63 = vadd.f32 %v614_v9, %v613_v57  ;;  %v718_v0 = vadd.f32 %v717_v58, %v716_v56 }
 0x11b   : > { %v720_v2 = vadd.f32 %v719_v61, %v718_v0  ;;  %v617_v3 = vadd.f32 %v616_v5, %v615_v63 }
 0x11d   : > { %v619_v11 = vadd.f32 %v618_v23, %v617_v3  ;;  %v722_v12 = vadd.f32 %v721_v4, %v720_v2 }
 0x11f   : > { %v724_v13 = vadd.f32 %v723_v8, %v722_v12  ;;  %v621_v14 = vadd.f32 %v620_v19, %v619_v11 }
 0x121   : > { %v623_v21 = vadd.f32 %v622_v37, %v621_v14  ;;  %v726_v22 = vadd.f32 %v725_v15, %v724_v13 }
 0x123   : > { %v728_v25 = vadd.f32 %v727_v17, %v726_v22  ;;  %v625_v26 = vadd.f32 %v624_v33, %v623_v21 }
 0x125   : > { %v627_v31 = vadd.f32 %v626_v53, %v625_v26  ;;  %v730_v32 = vadd.f32 %v729_v27, %v728_v25 }
 0x127   : > { %v732_v34 = vadd.f32 %v731_v28, %v730_v32  ;;  %v629_v35 = vadd.f32 %v628_v49, %v627_v31 }
 0x129   : > { %v631_v39 = vadd.f32 %v630_v7, %v629_v35  ;;  %v734_v40 = vadd.f32 %v733_v36, %v732_v34 }
 0x12b   : > { %v633_v42 = vadd.f32 %v632_v41, %v631_v39  ;;  %v736_v44 = vadd.f32 %v735_v38, %v734_v40 }
 0x12d   : > { %v634_v59 = vrot.slane %v633_v42, 4  ;;  %v738_v43 = vadd.f32 %v1221_v30, %v736_v44 }
 0x12f   : > { %v635_v1 = vadd.f32 %v634_v59, %v633_v42  ;;  %v739_v45 = vrot.slane %v738_v43, 4 }
 0x131   : > { %v636_v46 = vrot.slane %v635_v1, 2  ;;  %v740_v24 = vadd.f32 %v739_v45, %v738_v43 }
 0x133   : > { %v637_v48 = vadd.f32 %v636_v46, %v635_v1  ;;  %v741_v50 = vrot.slane %v740_v24, 2 }
 0x135   : > { %v638_v51 = vrot.slane %v637_v48, 1  ;;  %v742_v52 = vadd.f32 %v741_v50, %v740_v24 }
 0x137   : > { %v639_v55 = vadd.f32 %v638_v51, %v637_v48  ;;  %v743_v9 = vrot.slane %v742_v52, 1 }
 0x139   : > { %v640_v30 = vadd.f32 %v639_v55, %v570_v54  ;;  %v744_v56 = vadd.f32 %v743_v9, %v742_v52 }
 0x13b   : > { %642 = vst.msk [vmem:[%s1310_s3] sm:$0x1] %vm641_vm4, %v640_v30  ;;  %v745_v57 = vadd.f32 %v744_v56, %v643_v18 }
 0x13d   : > { %746 = vst.msk [vmem:[%s1310_s3 + $0x1] sm:$0x1] %vm641_vm4, %v745_v57 }
 0x13e PF: > { %s14_s12 = sadd.s32 1, %s954_s12  }
 0x13f   : > { %p11_p5 = scmp.ge.s32.totalorder %s14_s12, 4  }
 0x141   :  { %13 = sbr.rel (!%p11_p5) target bundleno = 1 (0x1), region = 70 }

// kernel: inception_forward.15
= control target key start
LH: loop header
LB: loop body
LE: loop exit
PB: predicated region body
PF: predicated region fallthrough
CT: control target
= control target key end

     0   :  { %s2796_s0 = inlined_call_operand.vmem [shape: f32[512,8], index: 0, kind: input, shape index: {}]   ;;  %s2797_s1 = inlined_call_operand.vmem [shape: f32[1,8], index: 1, kind: input, shape index: {}]   ;;  %s2798_s2 = inlined_call_operand.vmem [shape: f32[1,8], index: 2, kind: input, shape index: {}]   ;;  %s2799_s3 = inlined_call_operand.vmem [shape: f32[512,8], index: 3, kind: input, shape index: {}]   ;;  %s2800_s4 = inlined_call_operand.vmem [shape: f32[1,8], index: 4, kind: input, shape index: {}]   ;;  %s2801_s5 = inlined_call_operand.vmem [shape: f32[1,8], index: 5, kind: input, shape index: {}]   ;;  %s2802_s6 = inlined_call_operand.vmem [shape: f32[512,8], index: 6, kind: input, shape index: {}]   ;;  %s2803_s7 = inlined_call_operand.vmem [shape: f32[1,8], index: 7, kind: input, shape index: {}]   ;;  %s2804_s8 = inlined_call_operand.vmem [shape: f32[1,8], index: 8, kind: input, shape index: {}]   ;;  %s2805_s9 = inlined_call_operand.vmem [shape: f32[512,8], index: 9, kind: input, shape index: {}]   ;;  %s2806_s10 = inlined_call_operand.vmem [shape: f32[1,8], index: 10, kind: input, shape index: {}]   ;;  %s2807_s11 = inlined_call_operand.vmem [shape: f32[1,8], index: 11, kind: input, shape index: {}]   ;;  %s2808_s12 = inlined_call_operand.hbm [shape: f32[512,32], index: 12, kind: output, shape index: {}]  }
   0x1   :  { %2810 = sst [smem:[#allocation5_spill]] %s2796_s0 }
   0x2   :  { %17 = vsyncpa [#allocation3], 0 }
   0x3   :  { %19 = vsyncpa [#allocation3 + $0x1], 0  ;;  %s1881_s21 = smov 0   ;;  %s1883_s22 = smov 0  }
   0x4   :  { %s1885_s23 = smov 0   ;;  %s1887_s24 = smov 0  }
   0x5 LB: > { %s1902_s25 = sadd.s32 4294967295, %s1809_s24   ;;  %s1677_s26 = sadd.s32 4294967294, %s1809_s24   ;;  %s1809_s24 = sphi %s1887_s24, %s2818_s24   ;;  %s1805_s23 = sphi %s1885_s23, %s2817_s23   ;;  %s1801_s22 = sphi %s1883_s22, %s2816_s22   ;;  %s1797_s21 = sphi %s1881_s21, %s2815_s21  }
   0x6   : > { %s1906_s27 = sadd.s32 1, %s1809_s24   ;;  %s304_s28 = sadd.s32 1, %s1805_s23 }
   0x7   : > { %s301_s29 = ssub.s32 %s1809_s24, %s1906_s27  ;;  %p314_p0 = scmp.ne.s32.totalorder %s1805_s23, %s1801_s22 }
   0x8   : > { %p302_p1 = scmp.eq.s32.totalorder %s301_s29, 0  ;;  %p315_p2 = scmp.eq.s32.totalorder %s1902_s25, 1 }
   0x9   : > { %p320_p3 = scmp.ne.s32.totalorder %s1801_s22, %s1797_s21  ;;  %p321_p4 = scmp.eq.s32.totalorder %s1677_s26, 1 }
   0xa   : > { %s1917_s30 = scalar_select %p302_p1, %s1805_s23, %s304_s28  }
   0xb   : > { %p1919_p5 = por %p315_p2, %p314_p0  ;;  %p1923_p6 = por %p321_p4, %p320_p3 }
   0xc   : > { %p1680_p7 = scmp.ge.s32.totalorder %s1809_s24, 1  ;;  %p399_p8 = scmp.lt.s32.totalorder %s1809_s24, 3 }
   0xe   : > { %p400_p9 = pnand %p1680_p7, %p399_p8 }
   0xf   : > { %s1682_s15 = sshll.u32 (!%p400_p9), %s1902_s25, 5  ;;  %v1935_v0 = vld [vmem:[%s2800_s4] ss:$0 sm:$0xff] (!%p400_p9)  ;;  %s2813_s0 = sld [smem:[#allocation5_spill]] (!%p400_p9)  ;;  %vm623_vm0 = vcmask (!%p400_p9), 64512   ;;  %vm926_vm1 = vcmask (!%p400_p9), 130112  }
  0x10   : > { %403 = sbr.rel (%p400_p9) target bundleno = 351 (0x15f), region = 68  ;;  %p457_p10 = scmp.lt.s32.totalorder (!%p400_p9), %s1682_s15, 63  ;;  %v1946_v1 = vld [vmem:[%s2801_s5] ss:$0 sm:$0xff] (!%p400_p9)  ;;  %vm1229_vm2 = vcmask (!%p400_p9), 195712   ;;  %vm1532_vm3 = vcmask (!%p400_p9), 261312  }
  0x11   : > { %s453_s29 = sand.u32 (!%p400_p9), 1, %s1801_s22   ;;  %s1812_s17 = smov (!%p400_p9), 16  }
  0x12   : > { %s2068_s20 = sshll.u32 (!%p400_p9), %s453_s29, 8 }
  0x13   : > { %s2095_s28 = scalar_lea.vmem (!%p400_p9), [#allocation2], %s2068_s20 }
  0x17   : > { %s2820_s15 = smov (!%p457_p10, %s1682_s15), 63 }
  0x18   : > { %s1930_s16 = sshll.u32 %s2820_s15, 3  ;;  %s2809_s15 = smov 8  }
  0x19   : > { %s1941_s26 = scalar_lea.vmem %s2799_s3, %s1930_s16  ;;  %s2035_s19 = scalar_lea.vmem %s2813_s0, %s1930_s16 }
  0x1a   : > { %v658_v2 = vld [vmem:[%s1941_s26 + $0x10] sm:$0xff]  ;;  %v656_v3 = vld [vmem:[%s1941_s26] sm:$0xff]  ;;  %v659_v4 = vld [vmem:[%s1941_s26 + $0x18] sm:$0xff]  ;;  %s2121_s20 = scalar_lea.vmem %s2802_s6, %s1930_s16 }
  0x1b   : > { %v697_v5 = vmul.f32 %v1935_v0, %v658_v2  ;;  %v695_v6 = vmul.f32 %v1935_v0, %v656_v3  ;;  %v698_v7 = vmul.f32 %v1935_v0, %v659_v4  ;;  %v657_v8 = vld [vmem:[%s1941_s26 + $0x8] sm:$0xff]  ;;  %v660_v10 = vld [vmem:[%s1941_s26 + $0x20] sm:$0xff]  ;;  %v663_v17 = vld [vmem:[%s1941_s26 + $0x38] sm:$0xff] }
  0x1c   : > { %v661_v9 = vld [vmem:[%s1941_s26 + $0x28] sm:$0xff]  ;;  %v696_v11 = vmul.f32 %v1935_v0, %v657_v8  ;;  %v699_v16 = vmul.f32 %v1935_v0, %v660_v10  ;;  %v662_v19 = vld [vmem:[%s1941_s26 + $0x30] sm:$0xff]  ;;  %v702_v23 = vmul.f32 %v1935_v0, %v663_v17  ;;  %v664_v29 = vld [vmem:[%s1941_s26 + $0x40] sm:$0xff] }
  0x1d   : > { %v700_v12 = vmul.f32 %v1935_v0, %v661_v9  ;;  %v736_v13 = vadd.f32 %v1946_v1, %v697_v5  ;;  %v734_v14 = vadd.f32 %v1946_v1, %v695_v6  ;;  %v737_v15 = vadd.f32 %v1946_v1, %v698_v7  ;;  %v665_v28 = vld [vmem:[%s1941_s26 + $0x48] sm:$0xff]  ;;  %v667_v36 = vld [vmem:[%s1941_s26 + $0x58] sm:$0xff]  ;;  %v666_v37 = vld [vmem:[%s1941_s26 + $0x50] sm:$0xff] }
  0x1e   : > { %v735_v18 = vadd.f32 %v1946_v1, %v696_v11  ;;  %v738_v26 = vadd.f32 %v1946_v1, %v699_v16  ;;  %v701_v27 = vmul.f32 %v1935_v0, %v662_v19  ;;  %v741_v31 = vadd.f32 %v1946_v1, %v702_v23  ;;  %v669_v44 = vld [vmem:[%s1941_s26 + $0x68] sm:$0xff]  ;;  %v668_v45 = vld [vmem:[%s1941_s26 + $0x60] sm:$0xff]  ;;  %v671_v52 = vld [vmem:[%s1941_s26 + $0x78] sm:$0xff] }
  0x1f   : > { %v768_v20 = vmax.f32 %v736_v13, 0.0  ;;  %v766_v21 = vmax.f32 %v734_v14, 0.0  ;;  %v739_v22 = vadd.f32 %v1946_v1, %v700_v12  ;;  %v769_v24 = vmax.f32 %v737_v15, 0.0  ;;  %v670_v53 = vld [vmem:[%s1941_s26 + $0x70] sm:$0xff]  ;;  %v673_v60 = vld [vmem:[%s1941_s26 + $0x88] sm:$0xff]  ;;  %v672_v61 = vld [vmem:[%s1941_s26 + $0x80] sm:$0xff] }
  0x20   : > { %v767_v25 = vmax.f32 %v735_v18, 0.0  ;;  %v770_v32 = vmax.f32 %v738_v26, 0.0  ;;  %v740_v33 = vadd.f32 %v1946_v1, %v701_v27  ;;  %v704_v34 = vmul.f32 %v1935_v0, %v665_v28  ;;  %v675_v6 = vld [vmem:[%s1941_s26 + $0x98] sm:$0xff]  ;;  %v674_v7 = vld [vmem:[%s1941_s26 + $0x90] sm:$0xff]  ;;  %v677_v14 = vld [vmem:[%s1941_s26 + $0xa8] sm:$0xff] }
  0x21   : > { %834 = vrot.lane.b32.xlu1 %v768_v20, %s2809_s15  ;;  %830 = vrot.lane.b32.xlu0 %v766_v21, %s2809_s15  ;;  %v771_v30 = vmax.f32 %v739_v22, 0.0  ;;  %v703_v35 = vmul.f32 %v1935_v0, %v664_v29  ;;  %v773_v38 = vmax.f32 %v741_v31, 0.0  ;;  %v706_v39 = vmul.f32 %v1935_v0, %v667_v36  ;;  %v676_v15 = vld [vmem:[%s1941_s26 + $0xa0] sm:$0xff]  ;;  %v679_v18 = vld [vmem:[%s1941_s26 + $0xb8] sm:$0xff] }
  0x22   : > { %v772_v40 = vmax.f32 %v740_v33, 0.0  ;;  %v743_v41 = vadd.f32 %v1946_v1, %v704_v34  ;;  %v705_v43 = vmul.f32 %v1935_v0, %v666_v37  ;;  %v708_v46 = vmul.f32 %v1935_v0, %v669_v44  ;;  %v678_v23 = vld [vmem:[%s1941_s26 + $0xb0] sm:$0xff]  ;;  %v680_v31 = vld [vmem:[%s1941_s26 + $0xc0] sm:$0xff]  ;;  %v683_v37 = vld [vmem:[%s1941_s26 + $0xd8] sm:$0xff] }
  0x23   : > { %v742_v42 = vadd.f32 %v1946_v1, %v703_v35  ;;  %v707_v47 = vmul.f32 %v1935_v0, %v668_v45  ;;  %v745_v50 = vadd.f32 %v1946_v1, %v706_v39  ;;  %v710_v55 = vmul.f32 %v1935_v0, %v671_v52  ;;  %v2048_v33 = vld [vmem:[%s2797_s1] ss:$0 sm:$0xff]  ;;  %v483_v34 = vld [vmem:[%s2035_s19 + $0x10] sm:$0xff]  ;;  %v484_v44 = vld [vmem:[%s2035_s19 + $0x18] sm:$0xff] }
  0x24   : > { %v775_v48 = vmax.f32 %v743_v41, 0.0  ;;  %v744_v51 = vadd.f32 %v1946_v1, %v705_v43  ;;  %v747_v54 = vadd.f32 %v1946_v1, %v708_v46  ;;  %v709_v59 = vmul.f32 %v1935_v0, %v670_v53  ;;  %v481_v35 = vld [vmem:[%s2035_s19] sm:$0xff]  ;;  %v682_v43 = vld [vmem:[%s1941_s26 + $0xd0] sm:$0xff] }
  0x25   : > { %836 = vrot.lane.b32.xlu1 %v769_v24, %s2809_s15  ;;  %832 = vrot.lane.b32.xlu0 %v767_v25, %s2809_s15  ;;  %v774_v49 = vmax.f32 %v742_v42, 0.0  ;;  %v777_v56 = vmax.f32 %v745_v50, 0.0  ;;  %v746_v58 = vadd.f32 %v1946_v1, %v707_v47  ;;  %v749_v63 = vadd.f32 %v1946_v1, %v710_v55  ;;  %v482_v47 = vld [vmem:[%s2035_s19 + $0x8] sm:$0xff]  ;;  %v684_v52 = vld [vmem:[%s1941_s26 + $0xe0] sm:$0xff] }
  0x26   : > { %v776_v57 = vmax.f32 %v744_v51, 0.0  ;;  %v779_v62 = vmax.f32 %v747_v54, 0.0  ;;  %v748_v3 = vadd.f32 %v1946_v1, %v709_v59  ;;  %v712_v4 = vmul.f32 %v1935_v0, %v673_v60  ;;  %v685_v51 = vld [vmem:[%s1941_s26 + $0xe8] sm:$0xff] }
  0x27   : > { %v778_v2 = vmax.f32 %v746_v58, 0.0  ;;  %v711_v5 = vmul.f32 %v1935_v0, %v672_v61  ;;  %v781_v8 = vmax.f32 %v749_v63, 0.0  ;;  %v714_v9 = vmul.f32 %v1935_v0, %v675_v6  ;;  %v486_v60 = vld [vmem:[%s2035_s19 + $0x28] sm:$0xff]  ;;  %v485_v61 = vld [vmem:[%s2035_s19 + $0x20] sm:$0xff]  ;;  %v488_v6 = vld [vmem:[%s2035_s19 + $0x38] sm:$0xff] }
  0x28   : > { %v780_v10 = vmax.f32 %v748_v3, 0.0  ;;  %v751_v11 = vadd.f32 %v1946_v1, %v712_v4  ;;  %v713_v13 = vmul.f32 %v1935_v0, %v674_v7  ;;  %v716_v16 = vmul.f32 %v1935_v0, %v677_v14 }
  0x29   : > { %840 = vrot.lane.b32.xlu1 %v771_v30, %s2809_s15  ;;  %838 = vrot.lane.b32.xlu0 %v770_v32, %s2809_s15  ;;  %v750_v12 = vadd.f32 %v1946_v1, %v711_v5  ;;  %v715_v17 = vmul.f32 %v1935_v0, %v676_v15  ;;  %v753_v21 = vadd.f32 %v1946_v1, %v714_v9  ;;  %v681_v30 = vld [vmem:[%s1941_s26 + $0xc8] sm:$0xff] }
  0x2a   : > { %v783_v19 = vmax.f32 %v751_v11, 0.0  ;;  %v752_v22 = vadd.f32 %v1946_v1, %v713_v13  ;;  %v718_v24 = vmul.f32 %v1935_v0, %v679_v18  ;;  %v755_v25 = vadd.f32 %v1946_v1, %v716_v16  ;;  %v686_v16 = vld [vmem:[%s1941_s26 + $0xf0] sm:$0xff] }
  0x2b   : > { %v782_v20 = vmax.f32 %v750_v12, 0.0  ;;  %v785_v26 = vmax.f32 %v753_v21, 0.0  ;;  %v754_v28 = vadd.f32 %v1946_v1, %v715_v17  ;;  %v717_v29 = vmul.f32 %v1935_v0, %v678_v23  ;;  %v487_v12 = vld [vmem:[%s2035_s19 + $0x30] sm:$0xff] }
  0x2c   : > { %v784_v27 = vmax.f32 %v752_v22, 0.0  ;;  %v757_v32 = vadd.f32 %v1946_v1, %v718_v24  ;;  %v787_v36 = vmax.f32 %v755_v25, 0.0  ;;  %v720_v41 = vmul.f32 %v1935_v0, %v681_v30  ;;  %v490_v24 = vld [vmem:[%s2035_s19 + $0x48] sm:$0xff]  ;;  %v489_v25 = vld [vmem:[%s2035_s19 + $0x40] sm:$0xff] }
  0x2d   : > { %844 = vrot.lane.b32.xlu1 %v773_v38, %s2809_s15  ;;  %842 = vrot.lane.b32.xlu0 %v772_v40, %s2809_s15  ;;  %v2057_v38 = vld [vmem:[%s2798_s2] ss:$0 sm:$0xff]  ;;  %v786_v39 = vmax.f32 %v754_v28, 0.0  ;;  %v756_v40 = vadd.f32 %v1946_v1, %v717_v29  ;;  %v719_v42 = vmul.f32 %v1935_v0, %v680_v31  ;;  %v522_v45 = vmul.f32 %v2048_v33, %v483_v34 }
  0x2e   : > { %v520_v46 = vmul.f32 %v2048_v33, %v481_v35  ;;  %v721_v50 = vmul.f32 %v1935_v0, %v682_v43  ;;  %v523_v55 = vmul.f32 %v2048_v33, %v484_v44  ;;  %v521_v59 = vmul.f32 %v2048_v33, %v482_v47  ;;  %v2136_v34 = vld [vmem:[%s2803_s7] ss:$0 sm:$0xff]  ;;  %v492_v35 = vld [vmem:[%s2035_s19 + $0x58] sm:$0xff] }
  0x2f   : > { %v561_v53 = vadd.f32 %v2057_v38, %v522_v45  ;;  %v758_v58 = vadd.f32 %v1946_v1, %v719_v42  ;;  %v724_v3 = vmul.f32 %v1935_v0, %v685_v51  ;;  %v723_v4 = vmul.f32 %v1935_v0, %v684_v52  ;;  %v491_v42 = vld [vmem:[%s2035_s19 + $0x50] sm:$0xff]  ;;  %v962_v47 = vld [vmem:[%s2121_s20 + $0x18] sm:$0xff] }
  0x30   : > { %v559_v54 = vadd.f32 %v2057_v38, %v520_v46  ;;  %v560_v5 = vadd.f32 %v2057_v38, %v521_v59  ;;  %v524_v11 = vmul.f32 %v2048_v33, %v485_v61  ;;  %v760_v15 = vadd.f32 %v1946_v1, %v721_v50 }
  0x31   : > { %848 = vrot.lane.b32.xlu1 %v775_v48, %s2809_s15  ;;  %846 = vrot.lane.b32.xlu0 %v774_v49, %s2809_s15  ;;  %v789_v48 = vmax.f32 %v757_v32, 0.0  ;;  %v722_v49 = vmul.f32 %v1935_v0, %v683_v37  ;;  %v790_v14 = vmax.f32 %v758_v58, 0.0  ;;  %v2114_v21 = vadd.f32 %v1946_v1, %v724_v3  ;;  %v959_v37 = vld [vmem:[%s2121_s20] sm:$0xff] }
  0x32   : > { %v591_v63 = vmax.f32 %v559_v54, 0.0  ;;  %v592_v17 = vmax.f32 %v560_v5, 0.0  ;;  %v526_v23 = vmul.f32 %v2048_v33, %v487_v12  ;;  %v792_v31 = vmax.f32 %v760_v15, 0.0  ;;  %v963_v5 = vld [vmem:[%s2121_s20 + $0x20] sm:$0xff] }
  0x33   : > { %v761_v7 = vadd.f32 %v1946_v1, %v722_v49  ;;  %v762_v32 = vadd.f32 %v1946_v1, %v723_v4  ;;  %v795_v43 = vmax.f32 %v2114_v21, 0.0  ;;  %v531_v51 = vmul.f32 %v2048_v33, %v492_v35  ;;  %v964_v4 = vld [vmem:[%s2121_s20 + $0x28] sm:$0xff]  ;;  %v497_v21 = vld [vmem:[%s2035_s19 + $0x80] sm:$0xff] }
  0x34   : > { %624 = vst.msk [vmem:[%s2095_s28] sm:$0xff] %vm623_vm0, %v591_v63  ;;  %625 = vst.msk [vmem:[%s2095_s28 + $0x8] sm:$0xff] %vm623_vm0, %v592_v17  ;;  %v530_v54 = vmul.f32 %v2048_v33, %v491_v42  ;;  %v1003_v17 = vmul.f32 %v2136_v34, %v964_v4  ;;  %v503_v4 = vld [vmem:[%s2035_s19 + $0xb0] sm:$0xff] }
  0x35   : > { %852 = vrot.lane.b32.xlu1 %v777_v56, %s2809_s15  ;;  %850 = vrot.lane.b32.xlu0 %v776_v57, %s2809_s15  ;;  %v788_v56 = vmax.f32 %v756_v40, 0.0  ;;  %v759_v57 = vadd.f32 %v1946_v1, %v720_v41  ;;  %v793_v30 = vmax.f32 %v761_v7, 0.0  ;;  %v529_v40 = vmul.f32 %v2048_v33, %v490_v24 }
  0x36   : > { %v528_v41 = vmul.f32 %v2048_v33, %v489_v25  ;;  %v794_v52 = vmax.f32 %v762_v32, 0.0  ;;  %v569_v63 = vadd.f32 %v2057_v38, %v530_v54  ;;  %v965_v32 = vld [vmem:[%s2121_s20 + $0x30] sm:$0xff] }
  0x37   : > { %v791_v13 = vmax.f32 %v759_v57, 0.0  ;;  %v568_v49 = vadd.f32 %v2057_v38, %v529_v40  ;;  %v2171_v57 = vld [vmem:[%s2804_s8] ss:$0 sm:$0xff] }
  0x38   : > { %v567_v50 = vadd.f32 %v2057_v38, %v528_v41 }
  0x39   : > { %856 = vrot.lane.b32.xlu1 %v779_v62, %s2809_s15  ;;  %854 = vrot.lane.b32.xlu0 %v778_v2, %s2809_s15  ;;  %v593_v62 = vmax.f32 %v561_v53, 0.0  ;;  %v562_v2 = vadd.f32 %v2057_v38, %v523_v55  ;;  %v494_v55 = vld [vmem:[%s2035_s19 + $0x68] sm:$0xff]  ;;  %v600_v58 = vmax.f32 %v568_v49, 0.0 }
  0x3a   : > { %v599_v59 = vmax.f32 %v567_v50, 0.0  ;;  %v533_v7 = vmul.f32 %v2048_v33, %v494_v55  ;;  %v502_v50 = vld [vmem:[%s2035_s19 + $0xa8] sm:$0xff] }
  0x3b   : > { %626 = vst.msk [vmem:[%s2095_s28 + $0x10] sm:$0xff] %vm623_vm0, %v593_v62  ;;  %v594_v9 = vmax.f32 %v562_v2, 0.0  ;;  %v1001_v62 = vmul.f32 %v2136_v34, %v962_v47  ;;  %v496_v2 = vld [vmem:[%s2035_s19 + $0x78] sm:$0xff]  ;;  %633 = vst.msk [vmem:[%s2095_s28 + $0x48] sm:$0xff] %vm623_vm0, %v600_v58 }
  0x3c   : > { %632 = vst.msk [vmem:[%s2095_s28 + $0x40] sm:$0xff] %vm623_vm0, %v599_v59 }
  0x3d   : > { %860 = vrot.lane.b32.xlu1 %v781_v8, %s2809_s15  ;;  %858 = vrot.lane.b32.xlu0 %v780_v10, %s2809_s15  ;;  %v687_v8 = vld [vmem:[%s1941_s26 + $0xf8] sm:$0xff]  ;;  %v525_v10 = vmul.f32 %v2048_v33, %v486_v60  ;;  %627 = vst.msk [vmem:[%s2095_s28 + $0x18] sm:$0xff] %vm623_vm0, %v594_v9  ;;  %v570_v60 = vadd.f32 %v2057_v38, %v531_v51  ;;  %s2397_s26 = scalar_lea.vmem %s2805_s9, %s1930_s16  ;;  %s1579_s16 = sshll.u32 %s2095_s28, 4  ;;  %s2746_s16 = int_to_ptr.vmem [resolvable:$true] %s1579_s16 }
  0x3e   : > { %v726_v22 = vmul.f32 %v1935_v0, %v687_v8  ;;  %v495_v9 = vld [vmem:[%s2035_s19 + $0x70] sm:$0xff]  ;;  %v501_v51 = vld [vmem:[%s2035_s19 + $0xa0] sm:$0xff] }
  0x3f   : > { %v564_v18 = vadd.f32 %v2057_v38, %v525_v10 }
  0x40   : > { %v765_v44 = vadd.f32 %v1946_v1, %v726_v22  ;;  %v1040_v22 = vadd.f32 %v2171_v57, %v1001_v62  ;;  %v970_v62 = vld [vmem:[%s2121_s20 + $0x58] sm:$0xff] }
  0x41   : > { %864 = vrot.lane.b32.xlu1 %v783_v19, %s2809_s15  ;;  %862 = vrot.lane.b32.xlu0 %v782_v20, %s2809_s15  ;;  %v563_v19 = vadd.f32 %v2057_v38, %v524_v11  ;;  %v527_v20 = vmul.f32 %v2048_v33, %v488_v6  ;;  %v602_v6 = vmax.f32 %v570_v60, 0.0  ;;  %v504_v60 = vld [vmem:[%s2035_s19 + $0xb8] sm:$0xff] }
  0x42   : > { %v797_v61 = vmax.f32 %v765_v44, 0.0 }
  0x43   : > { %v595_v28 = vmax.f32 %v563_v19, 0.0  ;;  %v566_v29 = vadd.f32 %v2057_v38, %v527_v20  ;;  %635 = vst.msk [vmem:[%s2095_s28 + $0x58] sm:$0xff] %vm623_vm0, %v602_v6  ;;  %v534_v19 = vmul.f32 %v2048_v33, %v495_v9  ;;  %v498_v20 = vld [vmem:[%s2035_s19 + $0x88] sm:$0xff] }
  0x44   : > { %v537_v35 = vmul.f32 %v2048_v33, %v498_v20  ;;  %v971_v20 = vld [vmem:[%s2121_s20 + $0x60] sm:$0xff] }
  0x45   : > { %868 = vrot.lane.b32.xlu1 %v785_v26, %s2809_s15  ;;  %866 = vrot.lane.b32.xlu0 %v784_v27, %s2809_s15  ;;  %v725_v26 = vmul.f32 %v1935_v0, %v686_v16  ;;  %v596_v27 = vmax.f32 %v564_v18, 0.0  ;;  %v565_v0 = vadd.f32 %v2057_v38, %v526_v23  ;;  %628 = vst.msk [vmem:[%s2095_s28 + $0x20] sm:$0xff] %vm623_vm0, %v595_v28  ;;  %v966_v23 = vld [vmem:[%s2121_s20 + $0x38] sm:$0xff] }
  0x46   : > { %v535_v16 = vmul.f32 %v2048_v33, %v496_v2  ;;  %v1002_v18 = vmul.f32 %v2136_v34, %v963_v5  ;;  %v1005_v40 = vmul.f32 %v2136_v34, %v966_v23  ;;  %v541_v2 = vmul.f32 %v2048_v33, %v502_v50 }
  0x47   : > { %629 = vst.msk [vmem:[%s2095_s28 + $0x28] sm:$0xff] %vm623_vm0, %v596_v27  ;;  %v597_v45 = vmax.f32 %v565_v0, 0.0  ;;  %v764_v46 = vadd.f32 %v1946_v1, %v725_v26  ;;  %v998_v1 = vmul.f32 %v2136_v34, %v959_v37  ;;  %v499_v37 = vld [vmem:[%s2035_s19 + $0x90] sm:$0xff] }
  0x48   : > { %v574_v26 = vadd.f32 %v2057_v38, %v535_v16  ;;  %v1041_v42 = vadd.f32 %v2171_v57, %v1002_v18  ;;  %v538_v49 = vmul.f32 %v2048_v33, %v499_v37  ;;  %v1044_v58 = vadd.f32 %v2171_v57, %v1005_v40  ;;  %v506_v16 = vld [vmem:[%s2035_s19 + $0xc8] sm:$0xff]  ;;  %v973_v40 = vld [vmem:[%s2121_s20 + $0x70] sm:$0xff] }
  0x49   : > { %872 = vrot.lane.b32.xlu1 %v787_v36, %s2809_s15  ;;  %870 = vrot.lane.b32.xlu0 %v786_v39, %s2809_s15  ;;  %v960_v36 = vld [vmem:[%s2121_s20 + $0x8] sm:$0xff]  ;;  %v598_v39 = vmax.f32 %v566_v29, 0.0  ;;  %630 = vst.msk [vmem:[%s2095_s28 + $0x30] sm:$0xff] %vm623_vm0, %v597_v45  ;;  %v796_v10 = vmax.f32 %v764_v46, 0.0  ;;  %v1037_v12 = vadd.f32 %v2171_v57, %v998_v1  ;;  %v1072_v46 = vmax.f32 %v1040_v22, 0.0 }
  0x4a   : > { %v999_v53 = vmul.f32 %v2136_v34, %v960_v36  ;;  %v606_v0 = vmax.f32 %v574_v26, 0.0  ;;  %v536_v36 = vmul.f32 %v2048_v33, %v497_v21  ;;  %v577_v59 = vadd.f32 %v2057_v38, %v538_v49  ;;  %v509_v49 = vld [vmem:[%s2035_s19 + $0xe0] sm:$0xff] }
  0x4b   : > { %631 = vst.msk [vmem:[%s2095_s28 + $0x38] sm:$0xff] %vm623_vm0, %v598_v39  ;;  %v1069_v28 = vmax.f32 %v1037_v12, 0.0  ;;  %v1042_v39 = vadd.f32 %v2171_v57, %v1003_v17  ;;  %v543_v12 = vmul.f32 %v2048_v33, %v504_v60  ;;  %v505_v17 = vld [vmem:[%s2035_s19 + $0xc0] sm:$0xff]  ;;  %v548_v60 = vmul.f32 %v2048_v33, %v509_v49 }
  0x4c   : > { %v1038_v11 = vadd.f32 %v2171_v57, %v999_v53  ;;  %639 = vst.msk [vmem:[%s2095_s28 + $0x78] sm:$0xff] %vm623_vm0, %v606_v0  ;;  %v575_v44 = vadd.f32 %v2057_v38, %v536_v36  ;;  %v967_v53 = vld [vmem:[%s2121_s20 + $0x40] sm:$0xff]  ;;  %v609_v9 = vmax.f32 %v577_v59, 0.0 }
  0x4d   : > { %876 = vrot.lane.b32.xlu1 %v789_v48, %s2809_s15  ;;  %874 = vrot.lane.b32.xlu0 %v788_v56, %s2809_s15  ;;  %v961_v48 = vld [vmem:[%s2121_s20 + $0x10] sm:$0xff]  ;;  %v493_v56 = vld [vmem:[%s2035_s19 + $0x60] sm:$0xff]  ;;  %v582_v23 = vadd.f32 %v2057_v38, %v543_v12 }
  0x4e   : > { %v1000_v3 = vmul.f32 %v2136_v34, %v961_v48  ;;  %v532_v8 = vmul.f32 %v2048_v33, %v493_v56  ;;  %v1070_v27 = vmax.f32 %v1038_v11, 0.0  ;;  %v1004_v48 = vmul.f32 %v2136_v34, %v965_v32  ;;  %642 = vst.msk [vmem:[%s2095_s28 + $0x90] sm:$0xff] %vm623_vm0, %v609_v9  ;;  %v507_v32 = vld [vmem:[%s2035_s19 + $0xd0] sm:$0xff] }
  0x4f   : > { %v607_v54 = vmax.f32 %v575_v44, 0.0  ;;  %v1074_v56 = vmax.f32 %v1042_v39, 0.0  ;;  %v974_v39 = vld [vmem:[%s2121_s20 + $0x78] sm:$0xff] }
  0x50   : > { %v571_v15 = vadd.f32 %v2057_v38, %v532_v8  ;;  %v1039_v29 = vadd.f32 %v2171_v57, %v1000_v3  ;;  %v540_v3 = vmul.f32 %v2048_v33, %v501_v51  ;;  %v1043_v5 = vadd.f32 %v2171_v57, %v1004_v48  ;;  %v969_v8 = vld [vmem:[%s2121_s20 + $0x50] sm:$0xff]  ;;  %v510_v48 = vld [vmem:[%s2035_s19 + $0xe8] sm:$0xff] }
  0x51   : > { %880 = vrot.lane.b32.xlu1 %v791_v13, %s2809_s15  ;;  %878 = vrot.lane.b32.xlu0 %v790_v14, %s2809_s15  ;;  %v601_v13 = vmax.f32 %v569_v63, 0.0  ;;  %v572_v14 = vadd.f32 %v2057_v38, %v533_v7  ;;  %640 = vst.msk [vmem:[%s2095_s28 + $0x80] sm:$0xff] %vm623_vm0, %v607_v54  ;;  %v1006_v7 = vmul.f32 %v2136_v34, %v967_v53 }
  0x52   : > { %v603_v25 = vmax.f32 %v571_v15, 0.0  ;;  %v1071_v47 = vmax.f32 %v1039_v29, 0.0  ;;  %v579_v11 = vadd.f32 %v2057_v38, %v540_v3  ;;  %v542_v15 = vmul.f32 %v2048_v33, %v503_v4  ;;  %v976_v4 = vld [vmem:[%s2121_s20 + $0x88] sm:$0xff] }
  0x53   : > { %634 = vst.msk [vmem:[%s2095_s28 + $0x50] sm:$0xff] %vm623_vm0, %v601_v13  ;;  %v604_v24 = vmax.f32 %v572_v14, 0.0  ;;  %v1076_v13 = vmax.f32 %v1044_v58, 0.0  ;;  %v1009_v14 = vmul.f32 %v2136_v34, %v970_v62  ;;  %v1008_v18 = vmul.f32 %v2136_v34, %v969_v8 }
  0x54   : > { %636 = vst.msk [vmem:[%s2095_s28 + $0x60] sm:$0xff] %vm623_vm0, %v603_v25  ;;  %v611_v22 = vmax.f32 %v579_v11, 0.0  ;;  %v1045_v26 = vadd.f32 %v2171_v57, %v1006_v7  ;;  %v614_v29 = vmax.f32 %v582_v23, 0.0  ;;  %v549_v59 = vmul.f32 %v2048_v33, %v510_v48 }
  0x55   : > { %884 = vrot.lane.b32.xlu1 %v793_v30, %s2809_s15  ;;  %882 = vrot.lane.b32.xlu0 %v792_v31, %s2809_s15  ;;  %v573_v30 = vadd.f32 %v2057_v38, %v534_v19  ;;  %v500_v31 = vld [vmem:[%s2035_s19 + $0x98] sm:$0xff]  ;;  %637 = vst.msk [vmem:[%s2095_s28 + $0x68] sm:$0xff] %vm623_vm0, %v604_v24  ;;  %v1075_v24 = vmax.f32 %v1043_v5, 0.0  ;;  %v1048_v37 = vadd.f32 %v2171_v57, %v1009_v14 }
  0x56   : > { %v539_v45 = vmul.f32 %v2048_v33, %v500_v31  ;;  %v972_v19 = vld [vmem:[%s2121_s20 + $0x68] sm:$0xff]  ;;  %644 = vst.msk [vmem:[%s2095_s28 + $0xa0] sm:$0xff] %vm623_vm0, %v611_v22  ;;  %v544_v31 = vmul.f32 %v2048_v33, %v505_v17  ;;  %647 = vst.msk [vmem:[%s2095_s28 + $0xb8] sm:$0xff] %vm623_vm0, %v614_v29  ;;  %v975_v5 = vld [vmem:[%s2121_s20 + $0x80] sm:$0xff]  ;;  %v587_v7 = vadd.f32 %v2057_v38, %v548_v60 }
  0x57   : > { %v605_v41 = vmax.f32 %v573_v30, 0.0  ;;  %v545_v30 = vmul.f32 %v2048_v33, %v506_v16  ;;  %v1011_v0 = vmul.f32 %v2136_v34, %v972_v19  ;;  %v1080_v62 = vmax.f32 %v1048_v37, 0.0  ;;  %v978_v19 = vld [vmem:[%s2121_s20 + $0x98] sm:$0xff]  ;;  %v979_v29 = vld [vmem:[%s2121_s20 + $0xa0] sm:$0xff] }
  0x58   : > { %v578_v55 = vadd.f32 %v2057_v38, %v539_v45  ;;  %v1077_v45 = vmax.f32 %v1045_v26, 0.0  ;;  %v619_v14 = vmax.f32 %v587_v7, 0.0  ;;  %v1015_v17 = vmul.f32 %v2136_v34, %v976_v4  ;;  %v982_v37 = vld [vmem:[%s2121_s20 + $0xb8] sm:$0xff] }
  0x59   : > { %888 = vrot.lane.b32.xlu1 %v795_v43, %s2809_s15  ;;  %886 = vrot.lane.b32.xlu0 %v794_v52, %s2809_s15  ;;  %v576_v43 = vadd.f32 %v2057_v38, %v537_v35  ;;  %638 = vst.msk [vmem:[%s2095_s28 + $0x70] sm:$0xff] %vm623_vm0, %v605_v41  ;;  %v968_v52 = vld [vmem:[%s2121_s20 + $0x48] sm:$0xff]  ;;  %v1010_v35 = vmul.f32 %v2136_v34, %v971_v20 }
  0x5a   : > { %v610_v63 = vmax.f32 %v578_v55, 0.0  ;;  %v1007_v6 = vmul.f32 %v2136_v34, %v968_v52  ;;  %v584_v41 = vadd.f32 %v2057_v38, %v545_v30  ;;  %v1050_v53 = vadd.f32 %v2171_v57, %v1011_v0  ;;  %v512_v55 = vld [vmem:[%s2035_s19 + $0xf8] sm:$0xff]  ;;  %v977_v20 = vld [vmem:[%s2121_s20 + $0x90] sm:$0xff]  ;;  %652 = vst.msk [vmem:[%s2095_s28 + $0xe0] sm:$0xff] %vm623_vm0, %v619_v14 }
  0x5b   : > { %v608_v1 = vmax.f32 %v576_v43, 0.0  ;;  %v551_v8 = vmul.f32 %v2048_v33, %v512_v55 }
  0x5c   : > { %643 = vst.msk [vmem:[%s2095_s28 + $0x98] sm:$0xff] %vm623_vm0, %v610_v63  ;;  %v1046_v25 = vadd.f32 %v2171_v57, %v1007_v6  ;;  %v616_v50 = vmax.f32 %v584_v41, 0.0  ;;  %v588_v6 = vadd.f32 %v2057_v38, %v549_v59  ;;  %v1082_v9 = vmax.f32 %v1050_v53, 0.0 }
  0x5d   : > { %892 = vrot.lane.b32.xlu1 %v797_v61, %s2809_s15  ;;  %890 = vrot.lane.b32.xlu0 %v796_v10, %s2809_s15  ;;  %v1073_v61 = vmax.f32 %v1041_v42, 0.0  ;;  %641 = vst.msk [vmem:[%s2095_s28 + $0x88] sm:$0xff] %vm623_vm0, %v608_v1  ;;  %v580_v10 = vadd.f32 %v2057_v38, %v541_v2  ;;  %v583_v42 = vadd.f32 %v2057_v38, %v544_v31 }
  0x5e   : > { %v1078_v44 = vmax.f32 %v1046_v25, 0.0  ;;  %v1013_v1 = vmul.f32 %v2136_v34, %v974_v39  ;;  %649 = vst.msk [vmem:[%s2095_s28 + $0xc8] sm:$0xff] %vm623_vm0, %v616_v50  ;;  %v1049_v2 = vadd.f32 %v2171_v57, %v1010_v35  ;;  %v1054_v25 = vadd.f32 %v2171_v57, %v1015_v17  ;;  %v981_v39 = vld [vmem:[%s2121_s20 + $0xb0] sm:$0xff]  ;;  %v2409_v17 = vld [vmem:[%s2806_s10] ss:$0 sm:$0xff] }
  0x5f   : > { %v612_v21 = vmax.f32 %v580_v10, 0.0  ;;  %v615_v51 = vmax.f32 %v583_v42, 0.0  ;;  %v1018_v31 = vmul.f32 %v2136_v34, %v979_v29  ;;  %v1021_v41 = vmul.f32 %v2136_v34, %v982_v37 }
  0x60   : > { %v1052_v10 = vadd.f32 %v2171_v57, %v1013_v1  ;;  %v1081_v16 = vmax.f32 %v1049_v2, 0.0  ;;  %v986_v1 = vld [vmem:[%s2121_s20 + $0xd8] sm:$0xff] }
  0x61   : > { %1135 = vrot.lane.b32.xlu1 %v1070_v27, %s1812_s17  ;;  %1133 = vrot.lane.b32.xlu0 %v1069_v28, %s1812_s17  ;;  %v581_v27 = vadd.f32 %v2057_v38, %v542_v15  ;;  %v508_v28 = vld [vmem:[%s2035_s19 + $0xd8] sm:$0xff]  ;;  %645 = vst.msk [vmem:[%s2095_s28 + $0xa8] sm:$0xff] %vm623_vm0, %v612_v21  ;;  %v590_v15 = vadd.f32 %v2057_v38, %v551_v8 }
  0x62   : > { %v547_v43 = vmul.f32 %v2048_v33, %v508_v28  ;;  %648 = vst.msk [vmem:[%s2095_s28 + $0xc0] sm:$0xff] %vm623_vm0, %v615_v51  ;;  %v1084_v23 = vmax.f32 %v1052_v10, 0.0  ;;  %v980_v28 = vld [vmem:[%s2121_s20 + $0xa8] sm:$0xff]  ;;  %v1060_v49 = vadd.f32 %v2171_v57, %v1021_v41  ;;  %v990_v8 = vld [vmem:[%s2121_s20 + $0xf8] sm:$0xff] }
  0x63   : > { %v613_v36 = vmax.f32 %v581_v27, 0.0  ;;  %v622_v21 = vmax.f32 %v590_v15, 0.0  ;;  %v1016_v27 = vmul.f32 %v2136_v34, %v977_v20  ;;  %v1019_v30 = vmul.f32 %v2136_v34, %v980_v28 }
  0x64   : > { %v586_v52 = vadd.f32 %v2057_v38, %v547_v43  ;;  %v1092_v55 = vmax.f32 %v1060_v49, 0.0 }
  0x65   : > { %1139 = vrot.lane.b32.xlu1 %v1072_v46, %s1812_s17  ;;  %1137 = vrot.lane.b32.xlu0 %v1071_v47, %s1812_s17  ;;  %v1047_v46 = vadd.f32 %v2171_v57, %v1008_v18  ;;  %646 = vst.msk [vmem:[%s2095_s28 + $0xb0] sm:$0xff] %vm623_vm0, %v613_v36  ;;  %v546_v47 = vmul.f32 %v2048_v33, %v507_v32  ;;  %655 = vst.msk [vmem:[%s2095_s28 + $0xf8] sm:$0xff] %vm623_vm0, %v622_v21  ;;  %v1086_v32 = vmax.f32 %v1054_v25, 0.0 }
  0x66   : > { %v618_v58 = vmax.f32 %v586_v52, 0.0  ;;  %v1014_v18 = vmul.f32 %v2136_v34, %v975_v5  ;;  %v1055_v36 = vadd.f32 %v2171_v57, %v1016_v27  ;;  %v2426_v25 = vld [vmem:[%s2807_s11] ss:$0 sm:$0xff] }
  0x67   : > { %v585_v54 = vadd.f32 %v2057_v38, %v546_v47  ;;  %v1079_v63 = vmax.f32 %v1047_v46, 0.0  ;;  %v984_v46 = vld [vmem:[%s2121_s20 + $0xc8] sm:$0xff]  ;;  %v983_v47 = vld [vmem:[%s2121_s20 + $0xc0] sm:$0xff] }
  0x68   : > { %651 = vst.msk [vmem:[%s2095_s28 + $0xd8] sm:$0xff] %vm623_vm0, %v618_v58  ;;  %v1053_v26 = vadd.f32 %v2171_v57, %v1014_v18  ;;  %v1087_v43 = vmax.f32 %v1055_v36, 0.0  ;;  %v1023_v52 = vmul.f32 %v2136_v34, %v984_v46  ;;  %v1022_v53 = vmul.f32 %v2136_v34, %v983_v47  ;;  %v1262_v18 = vld [vmem:[%s2397_s26] sm:$0xff]  ;;  %v1269_v46 = vld [vmem:[%s2397_s26 + $0x38] sm:$0xff]  ;;  %v1268_v47 = vld [vmem:[%s2397_s26 + $0x30] sm:$0xff] }
  0x69   : > { %1143 = vrot.lane.b32.xlu1 %v1074_v56, %s1812_s17  ;;  %1141 = vrot.lane.b32.xlu0 %v1073_v61, %s1812_s17  ;;  %v1012_v56 = vmul.f32 %v2136_v34, %v973_v40  ;;  %v511_v61 = vld [vmem:[%s2035_s19 + $0xf0] sm:$0xff]  ;;  %v617_v3 = vmax.f32 %v585_v54, 0.0  ;;  %v1058_v40 = vadd.f32 %v2171_v57, %v1019_v30  ;;  %v1266_v36 = vld [vmem:[%s2397_s26 + $0x20] sm:$0xff] }
  0x6a   : > { %v550_v11 = vmul.f32 %v2048_v33, %v511_v61  ;;  %v1085_v0 = vmax.f32 %v1053_v26, 0.0  ;;  %v985_v54 = vld [vmem:[%s2121_s20 + $0xd0] sm:$0xff]  ;;  %v1062_v59 = vadd.f32 %v2171_v57, %v1023_v52  ;;  %v1061_v60 = vadd.f32 %v2171_v57, %v1022_v53 }
  0x6b   : > { %650 = vst.msk [vmem:[%s2095_s28 + $0xd0] sm:$0xff] %vm623_vm0, %v617_v3  ;;  %v1051_v12 = vadd.f32 %v2171_v57, %v1012_v56  ;;  %v1090_v48 = vmax.f32 %v1058_v40, 0.0  ;;  %v1025_v56 = vmul.f32 %v2136_v34, %v986_v1  ;;  %v1024_v61 = vmul.f32 %v2136_v34, %v985_v54  ;;  %v1264_v26 = vld [vmem:[%s2397_s26 + $0x10] sm:$0xff] }
  0x6c   : > { %v589_v33 = vadd.f32 %v2057_v38, %v550_v11  ;;  %v1094_v4 = vmax.f32 %v1062_v59, 0.0  ;;  %v1093_v5 = vmax.f32 %v1061_v60, 0.0  ;;  %v1029_v11 = vmul.f32 %v2136_v34, %v990_v8 }
  0x6d   : > { %1147 = vrot.lane.b32.xlu1 %v1076_v13, %s1812_s17  ;;  %1145 = vrot.lane.b32.xlu0 %v1075_v24, %s1812_s17  ;;  %v620_v13 = vmax.f32 %v588_v6, 0.0  ;;  %v1017_v24 = vmul.f32 %v2136_v34, %v978_v19  ;;  %v1083_v38 = vmax.f32 %v1051_v12, 0.0  ;;  %v1064_v2 = vadd.f32 %v2171_v57, %v1025_v56  ;;  %v1270_v56 = vld [vmem:[%s2397_s26 + $0x40] sm:$0xff] }
  0x6e   : > { %v621_v22 = vmax.f32 %v589_v33, 0.0  ;;  %v1063_v6 = vadd.f32 %v2171_v57, %v1024_v61  ;;  %v1307_v54 = vmul.f32 %v2409_v17, %v1268_v47 }
  0x6f   : > { %653 = vst.msk [vmem:[%s2095_s28 + $0xe8] sm:$0xff] %vm623_vm0, %v620_v13  ;;  %v1056_v35 = vadd.f32 %v2171_v57, %v1017_v24  ;;  %v1096_v12 = vmax.f32 %v1064_v2, 0.0  ;;  %v1301_v24 = vmul.f32 %v2409_v17, %v1262_v18 }
  0x70   : > { %654 = vst.msk [vmem:[%s2095_s28 + $0xf0] sm:$0xff] %vm623_vm0, %v621_v22  ;;  %v1095_v13 = vmax.f32 %v1063_v6, 0.0 }
  0x71   : > { %1151 = vrot.lane.b32.xlu1 %v1078_v44, %s1812_s17  ;;  %1149 = vrot.lane.b32.xlu0 %v1077_v45, %s1812_s17  ;;  %v1088_v42 = vmax.f32 %v1056_v35, 0.0  ;;  %v1057_v44 = vadd.f32 %v2171_v57, %v1018_v31  ;;  %v1020_v45 = vmul.f32 %v2136_v34, %v981_v39  ;;  %v1267_v35 = vld [vmem:[%s2397_s26 + $0x28] sm:$0xff] }
  0x72   : > { %v1306_v41 = vmul.f32 %v2409_v17, %v1267_v35 }
  0x73   : > { %v1089_v50 = vmax.f32 %v1057_v44, 0.0  ;;  %v1059_v51 = vadd.f32 %v2171_v57, %v1020_v45  ;;  %v1305_v45 = vmul.f32 %v2409_v17, %v1266_v36 }
  0x75   : > { %1155 = vrot.lane.b32.xlu1 %v1080_v62, %s1812_s17  ;;  %1153 = vrot.lane.b32.xlu0 %v1079_v63, %s1812_s17  ;;  %v1091_v58 = vmax.f32 %v1059_v51, 0.0  ;;  %v988_v62 = vld [vmem:[%s2121_s20 + $0xe8] sm:$0xff]  ;;  %v987_v63 = vld [vmem:[%s2121_s20 + $0xe0] sm:$0xff]  ;;  %v1308_v51 = vmul.f32 %v2409_v17, %v1269_v46  ;;  %v1344_v1 = vadd.f32 %v2426_v25, %v1305_v45 }
  0x76   : > { %v1027_v3 = vmul.f32 %v2136_v34, %v988_v62  ;;  %v1026_v7 = vmul.f32 %v2136_v34, %v987_v63  ;;  %v1346_v63 = vadd.f32 %v2426_v25, %v1307_v54  ;;  %v1280_v45 = vld [vmem:[%s2397_s26 + $0x90] sm:$0xff]  ;;  %v1282_v54 = vld [vmem:[%s2397_s26 + $0xa0] sm:$0xff] }
  0x77   : > { %v1347_v61 = vadd.f32 %v2426_v25, %v1308_v51  ;;  %v1376_v62 = vmax.f32 %v1344_v1, 0.0  ;;  %v1283_v1 = vld [vmem:[%s2397_s26 + $0xa8] sm:$0xff] }
  0x78   : > { %v1066_v10 = vadd.f32 %v2171_v57, %v1027_v3  ;;  %v1065_v14 = vadd.f32 %v2171_v57, %v1026_v7  ;;  %v1309_v3 = vmul.f32 %v2409_v17, %v1270_v56 }
  0x79   : > { %1159 = vrot.lane.b32.xlu1 %v1082_v9, %s1812_s17  ;;  %1157 = vrot.lane.b32.xlu0 %v1081_v16, %s1812_s17  ;;  %v989_v9 = vld [vmem:[%s2121_s20 + $0xf0] sm:$0xff]  ;;  %v1263_v16 = vld [vmem:[%s2397_s26 + $0x8] sm:$0xff]  ;;  %v1379_v8 = vmax.f32 %v1347_v61, 0.0 }
  0x7a   : > { %v1028_v15 = vmul.f32 %v2136_v34, %v989_v9  ;;  %v1098_v20 = vmax.f32 %v1066_v10, 0.0  ;;  %v1068_v34 = vadd.f32 %v2171_v57, %v1029_v11  ;;  %v1097_v21 = vmax.f32 %v1065_v14, 0.0  ;;  %v1275_v14 = vld [vmem:[%s2397_s26 + $0x68] sm:$0xff] }
  0x7b   : > { %v1378_v10 = vmax.f32 %v1346_v63, 0.0  ;;  %v1321_v63 = vmul.f32 %v2409_v17, %v1282_v54 }
  0x7c   : > { %v1067_v22 = vadd.f32 %v2171_v57, %v1028_v15  ;;  %v1100_v57 = vmax.f32 %v1068_v34, 0.0  ;;  %v1274_v15 = vld [vmem:[%s2397_s26 + $0x60] sm:$0xff] }
  0x7d   : > { %1163 = vrot.lane.b32.xlu1 %v1084_v23, %s1812_s17  ;;  %1161 = vrot.lane.b32.xlu0 %v1083_v38, %s1812_s17  ;;  %v1302_v23 = vmul.f32 %v2409_v17, %v1263_v16  ;;  %v1265_v38 = vld [vmem:[%s2397_s26 + $0x18] sm:$0xff] }
  0x7e   : > { %v1304_v29 = vmul.f32 %v2409_v17, %v1265_v38  ;;  %v1099_v30 = vmax.f32 %v1067_v22, 0.0  ;;  %v1313_v22 = vmul.f32 %v2409_v17, %v1274_v15 }
  0x7f   : > { %v1341_v31 = vadd.f32 %v2426_v25, %v1302_v23  ;;  %v1277_v23 = vld [vmem:[%s2397_s26 + $0x78] sm:$0xff] }
  0x80   : > { %v1343_v40 = vadd.f32 %v2426_v25, %v1304_v29 }
  0x81   : > { %1167 = vrot.lane.b32.xlu1 %v1086_v32, %s1812_s17  ;;  %1165 = vrot.lane.b32.xlu0 %v1085_v0, %s1812_s17  ;;  %v1340_v32 = vadd.f32 %v2426_v25, %v1301_v24  ;;  %v1303_v0 = vmul.f32 %v2409_v17, %v1264_v26  ;;  %v1276_v24 = vld [vmem:[%s2397_s26 + $0x70] sm:$0xff] }
  0x82   : > { %v1375_v52 = vmax.f32 %v1343_v40, 0.0 }
  0x83   : > { %v1342_v44 = vadd.f32 %v2426_v25, %v1303_v0  ;;  %v1278_v0 = vld [vmem:[%s2397_s26 + $0x80] sm:$0xff] }
  0x85   : > { %1171 = vrot.lane.b32.xlu1 %v1088_v42, %s1812_s17  ;;  %1169 = vrot.lane.b32.xlu0 %v1087_v43, %s1812_s17  ;;  %v1373_v42 = vmax.f32 %v1341_v31, 0.0  ;;  %v1372_v43 = vmax.f32 %v1340_v32, 0.0  ;;  %v1374_v53 = vmax.f32 %v1342_v44, 0.0  ;;  %v1315_v31 = vmul.f32 %v2409_v17, %v1276_v24  ;;  %v1279_v32 = vld [vmem:[%s2397_s26 + $0x88] sm:$0xff]  ;;  %v1281_v44 = vld [vmem:[%s2397_s26 + $0x98] sm:$0xff] }
  0x89   : > { %1175 = vrot.lane.b32.xlu1 %v1090_v48, %s1812_s17  ;;  %1173 = vrot.lane.b32.xlu0 %v1089_v50, %s1812_s17  ;;  %v1345_v50 = vadd.f32 %v2426_v25, %v1306_v41  ;;  %v1354_v41 = vadd.f32 %v2426_v25, %v1315_v31  ;;  %v1290_v31 = vld [vmem:[%s2397_s26 + $0xe0] sm:$0xff] }
  0x8b   : > { %v1377_v60 = vmax.f32 %v1345_v50, 0.0  ;;  %v1386_v50 = vmax.f32 %v1354_v41, 0.0  ;;  %v1329_v41 = vmul.f32 %v2409_v17, %v1290_v31 }
  0x8d   : > { %1179 = vrot.lane.b32.xlu1 %v1092_v55, %s1812_s17  ;;  %1177 = vrot.lane.b32.xlu0 %v1091_v58, %s1812_s17  ;;  %v1271_v55 = vld [vmem:[%s2397_s26 + $0x48] sm:$0xff] }
  0x8e   : > { %v1310_v2 = vmul.f32 %v2409_v17, %v1271_v55 }
  0x90   : > { %v1349_v11 = vadd.f32 %v2426_v25, %v1310_v2  ;;  %v1285_v2 = vld [vmem:[%s2397_s26 + $0xb8] sm:$0xff] }
  0x91   : > { %1183 = vrot.lane.b32.xlu1 %v1094_v4, %s1812_s17  ;;  %1181 = vrot.lane.b32.xlu0 %v1093_v5, %s1812_s17  ;;  %v1273_v4 = vld [vmem:[%s2397_s26 + $0x58] sm:$0xff]  ;;  %v1272_v5 = vld [vmem:[%s2397_s26 + $0x50] sm:$0xff] }
  0x92   : > { %v1312_v9 = vmul.f32 %v2409_v17, %v1273_v4 }
  0x93   : > { %v835_v19 = vpop.permute.xlu1 %834  ;;  %v831_v33 = vpop.permute.xlu0 %830 }
  0x94   : > { %929 = vst.msk [vmem:[%s2095_s28 + $0x10] sm:$0xff] %vm926_vm1, %v835_v19  ;;  %927 = vst.msk [vmem:[%s2095_s28] sm:$0xff] %vm926_vm1, %v831_v33  ;;  %v1351_v19 = vadd.f32 %v2426_v25, %v1312_v9  ;;  %v1314_v33 = vmul.f32 %v2409_v17, %v1275_v14 }
  0x95   : > { %1187 = vrot.lane.b32.xlu1 %v1096_v12, %s1812_s17  ;;  %1185 = vrot.lane.b32.xlu0 %v1095_v13, %s1812_s17  ;;  %v1348_v12 = vadd.f32 %v2426_v25, %v1309_v3  ;;  %v1311_v13 = vmul.f32 %v2409_v17, %v1272_v5  ;;  %v1284_v3 = vld [vmem:[%s2397_s26 + $0xb0] sm:$0xff] }
  0x97   : > { %v837_v27 = vpop.permute.xlu1 %836  ;;  %v833_v28 = vpop.permute.xlu0 %832  ;;  %v1380_v34 = vmax.f32 %v1348_v12, 0.0  ;;  %v1287_v12 = vld [vmem:[%s2397_s26 + $0xc8] sm:$0xff] }
  0x98   : > { %930 = vst.msk [vmem:[%s2095_s28 + $0x18] sm:$0xff] %vm926_vm1, %v837_v27  ;;  %928 = vst.msk [vmem:[%s2095_s28 + $0x8] sm:$0xff] %vm926_vm1, %v833_v28  ;;  %v1353_v27 = vadd.f32 %v2426_v25, %v1314_v33  ;;  %v1316_v28 = vmul.f32 %v2409_v17, %v1277_v23 }
  0x99   : > { %1191 = vrot.lane.b32.xlu1 %v1098_v20, %s1812_s17  ;;  %1189 = vrot.lane.b32.xlu0 %v1097_v21, %s1812_s17  ;;  %v1381_v20 = vmax.f32 %v1349_v11, 0.0  ;;  %v1350_v21 = vadd.f32 %v2426_v25, %v1311_v13  ;;  %v1323_v11 = vmul.f32 %v2409_v17, %v1284_v3  ;;  %v1286_v13 = vld [vmem:[%s2397_s26 + $0xc0] sm:$0xff] }
  0x9b   : > { %v841_v37 = vpop.permute.xlu1 %840  ;;  %v839_v39 = vpop.permute.xlu0 %838  ;;  %v1382_v29 = vmax.f32 %v1350_v21, 0.0  ;;  %v1362_v33 = vadd.f32 %v2426_v25, %v1323_v11  ;;  %v1289_v21 = vld [vmem:[%s2397_s26 + $0xd8] sm:$0xff] }
  0x9c   : > { %932 = vst.msk [vmem:[%s2095_s28 + $0x28] sm:$0xff] %vm926_vm1, %v841_v37  ;;  %931 = vst.msk [vmem:[%s2095_s28 + $0x20] sm:$0xff] %vm926_vm1, %v839_v39  ;;  %v1385_v37 = vmax.f32 %v1353_v27, 0.0  ;;  %v1355_v39 = vadd.f32 %v2426_v25, %v1316_v28 }
  0x9d   : > { %1195 = vrot.lane.b32.xlu1 %v1100_v57, %s1812_s17  ;;  %1193 = vrot.lane.b32.xlu0 %v1099_v30, %s1812_s17  ;;  %s1813_s17 = smov 24   ;;  %v1383_v57 = vmax.f32 %v1351_v19, 0.0  ;;  %v1352_v30 = vadd.f32 %v2426_v25, %v1313_v22  ;;  %v1288_v22 = vld [vmem:[%s2397_s26 + $0xd0] sm:$0xff]  ;;  %v1394_v27 = vmax.f32 %v1362_v33, 0.0 }
  0x9f   : > { %v845_v48 = vpop.permute.xlu1 %844  ;;  %v843_v49 = vpop.permute.xlu0 %842  ;;  %v1384_v40 = vmax.f32 %v1352_v30, 0.0  ;;  %v1291_v30 = vld [vmem:[%s2397_s26 + $0xe8] sm:$0xff] }
  0xa0   : > { %934 = vst.msk [vmem:[%s2095_s28 + $0x38] sm:$0xff] %vm926_vm1, %v845_v48  ;;  %933 = vst.msk [vmem:[%s2095_s28 + $0x30] sm:$0xff] %vm926_vm1, %v843_v49  ;;  %v1387_v48 = vmax.f32 %v1355_v39, 0.0  ;;  %v1320_v49 = vmul.f32 %v2409_v17, %v1281_v44 }
  0xa1   : > { %1438 = vrot.lane.b32.xlu1 %v1373_v42, %s1813_s17  ;;  %1436 = vrot.lane.b32.xlu0 %v1372_v43, %s1813_s17  ;;  %v1318_v42 = vmul.f32 %v2409_v17, %v1279_v32  ;;  %v1317_v43 = vmul.f32 %v2409_v17, %v1278_v0 }
  0xa3   : > { %v849_v58 = vpop.permute.xlu1 %848  ;;  %v847_v59 = vpop.permute.xlu0 %846  ;;  %v1357_v51 = vadd.f32 %v2426_v25, %v1318_v42  ;;  %v1293_v42 = vld [vmem:[%s2397_s26 + $0xf8] sm:$0xff] }
  0xa4   : > { %936 = vst.msk [vmem:[%s2095_s28 + $0x48] sm:$0xff] %vm926_vm1, %v849_v58  ;;  %935 = vst.msk [vmem:[%s2095_s28 + $0x40] sm:$0xff] %vm926_vm1, %v847_v59  ;;  %v1359_v58 = vadd.f32 %v2426_v25, %v1320_v49  ;;  %v1322_v59 = vmul.f32 %v2409_v17, %v1283_v1 }
  0xa5   : > { %1442 = vrot.lane.b32.xlu1 %v1375_v52, %s1813_s17  ;;  %1440 = vrot.lane.b32.xlu0 %v1374_v53, %s1813_s17  ;;  %v1356_v52 = vadd.f32 %v2426_v25, %v1317_v43  ;;  %v1319_v53 = vmul.f32 %v2409_v17, %v1280_v45  ;;  %v1292_v43 = vld [vmem:[%s2397_s26 + $0xf0] sm:$0xff]  ;;  %s1703_s26 = sshll.u32 %s1902_s25, 12  ;;  %s2754_s25 = scalar_lea.sflag [#allocation3], %s453_s29 }
  0xa6   : > { %s2744_s18 = scalar_lea.hbm %s2808_s12, %s1703_s26  ;;  %s1814_s26 = smov [#allocation2]  }
  0xa7   : > { %v853_v6 = vpop.permute.xlu1 %852  ;;  %v851_v7 = vpop.permute.xlu0 %850  ;;  %v1388_v61 = vmax.f32 %v1356_v52, 0.0  ;;  %s1751_s20 = sshll.u32 %s1814_s26, 4  ;;  %s1752_s20 = int_to_ptr.vmem [resolvable:$false] %s1751_s20 }
  0xa8   : > { %938 = vst.msk [vmem:[%s2095_s28 + $0x58] sm:$0xff] %vm926_vm1, %v853_v6  ;;  %937 = vst.msk [vmem:[%s2095_s28 + $0x50] sm:$0xff] %vm926_vm1, %v851_v7  ;;  %v1361_v6 = vadd.f32 %v2426_v25, %v1322_v59  ;;  %v1324_v7 = vmul.f32 %v2409_v17, %v1285_v2  ;;  %s1753_s19 = scalar_lea.vmem %s1752_s20, 8192  ;;  %p1754_p0 = scmp.lt.s32.totalorder %s2746_s16, %s1752_s20 }
  0xa9   : > { %1446 = vrot.lane.b32.xlu1 %v1377_v60, %s1813_s17  ;;  %1444 = vrot.lane.b32.xlu0 %v1376_v62, %s1813_s17  ;;  %v1389_v60 = vmax.f32 %v1357_v51, 0.0  ;;  %v1358_v62 = vadd.f32 %v2426_v25, %v1319_v53  ;;  %v1331_v51 = vmul.f32 %v2409_v17, %v1292_v43 }
  0xab   : > { %v857_v16 = vpop.permute.xlu1 %856  ;;  %v855_v18 = vpop.permute.xlu0 %854  ;;  %v1390_v9 = vmax.f32 %v1358_v62, 0.0 }
  0xac   : > { %940 = vst.msk [vmem:[%s2095_s28 + $0x68] sm:$0xff] %vm926_vm1, %v857_v16  ;;  %939 = vst.msk [vmem:[%s2095_s28 + $0x60] sm:$0xff] %vm926_vm1, %v855_v18  ;;  %v1393_v16 = vmax.f32 %v1361_v6, 0.0  ;;  %v1363_v18 = vadd.f32 %v2426_v25, %v1324_v7 }
  0xad   : > { %1450 = vrot.lane.b32.xlu1 %v1379_v8, %s1813_s17  ;;  %1448 = vrot.lane.b32.xlu0 %v1378_v10, %s1813_s17  ;;  %v1391_v8 = vmax.f32 %v1359_v58, 0.0  ;;  %v1360_v10 = vadd.f32 %v2426_v25, %v1321_v63 }
  0xaf   : > { %v861_v38 = vpop.permute.xlu1 %860  ;;  %v859_v26 = vpop.permute.xlu0 %858  ;;  %v1392_v19 = vmax.f32 %v1360_v10, 0.0 }
  0xb0   : > { %942 = vst.msk [vmem:[%s2095_s28 + $0x78] sm:$0xff] %vm926_vm1, %v861_v38  ;;  %941 = vst.msk [vmem:[%s2095_s28 + $0x70] sm:$0xff] %vm926_vm1, %v859_v26  ;;  %v1395_v38 = vmax.f32 %v1363_v18, 0.0  ;;  %v1328_v26 = vmul.f32 %v2409_v17, %v1289_v21 }
  0xb1   : > { %1454 = vrot.lane.b32.xlu1 %v1381_v20, %s1813_s17  ;;  %1452 = vrot.lane.b32.xlu0 %v1380_v34, %s1813_s17  ;;  %v1326_v20 = vmul.f32 %v2409_v17, %v1287_v12  ;;  %v1325_v34 = vmul.f32 %v2409_v17, %v1286_v13 }
  0xb3   : > { %v865_v35 = vpop.permute.xlu1 %864  ;;  %v863_v36 = vpop.permute.xlu0 %862  ;;  %v1365_v28 = vadd.f32 %v2426_v25, %v1326_v20 }
  0xb4   : > { %944 = vst.msk [vmem:[%s2095_s28 + $0x88] sm:$0xff] %vm926_vm1, %v865_v35  ;;  %943 = vst.msk [vmem:[%s2095_s28 + $0x80] sm:$0xff] %vm926_vm1, %v863_v36  ;;  %v1367_v35 = vadd.f32 %v2426_v25, %v1328_v26  ;;  %v1330_v36 = vmul.f32 %v2409_v17, %v1291_v30 }
  0xb5   : > { %1458 = vrot.lane.b32.xlu1 %v1383_v57, %s1813_s17  ;;  %1456 = vrot.lane.b32.xlu0 %v1382_v29, %s1813_s17  ;;  %v1364_v57 = vadd.f32 %v2426_v25, %v1325_v34  ;;  %v1327_v29 = vmul.f32 %v2409_v17, %v1288_v22 }
  0xb7   : > { %v869_v46 = vpop.permute.xlu1 %868  ;;  %v867_v47 = vpop.permute.xlu0 %866  ;;  %v1396_v39 = vmax.f32 %v1364_v57, 0.0 }
  0xb8   : > { %946 = vst.msk [vmem:[%s2095_s28 + $0x98] sm:$0xff] %vm926_vm1, %v869_v46  ;;  %945 = vst.msk [vmem:[%s2095_s28 + $0x90] sm:$0xff] %vm926_vm1, %v867_v47  ;;  %v1369_v46 = vadd.f32 %v2426_v25, %v1330_v36  ;;  %v1332_v47 = vmul.f32 %v2409_v17, %v1293_v42 }
  0xb9   : > { %1462 = vrot.lane.b32.xlu1 %v1385_v37, %s1813_s17  ;;  %1460 = vrot.lane.b32.xlu0 %v1384_v40, %s1813_s17  ;;  %v1397_v37 = vmax.f32 %v1365_v28, 0.0  ;;  %v1366_v40 = vadd.f32 %v2426_v25, %v1327_v29 }
  0xba   : > { %v1401_v1 = vmax.f32 %v1369_v46, 0.0 }
  0xbb   : > { %v873_v55 = vpop.permute.xlu1 %872  ;;  %v871_v56 = vpop.permute.xlu0 %870  ;;  %v1398_v49 = vmax.f32 %v1366_v40, 0.0 }
  0xbc   : > { %948 = vst.msk [vmem:[%s2095_s28 + $0xa8] sm:$0xff] %vm926_vm1, %v873_v55  ;;  %947 = vst.msk [vmem:[%s2095_s28 + $0xa0] sm:$0xff] %vm926_vm1, %v871_v56  ;;  %v1371_v55 = vadd.f32 %v2426_v25, %v1332_v47  ;;  %v1370_v56 = vadd.f32 %v2426_v25, %v1331_v51 }
  0xbd   : > { %1466 = vrot.lane.b32.xlu1 %v1387_v48, %s1813_s17  ;;  %1464 = vrot.lane.b32.xlu0 %v1386_v50, %s1813_s17  ;;  %v1399_v48 = vmax.f32 %v1367_v35, 0.0  ;;  %v1368_v50 = vadd.f32 %v2426_v25, %v1329_v41 }
  0xbe   : > { %v1403_v59 = vmax.f32 %v1371_v55, 0.0 }
  0xbf   : > { %v877_v4 = vpop.permute.xlu1 %876  ;;  %v875_v5 = vpop.permute.xlu0 %874  ;;  %v1400_v54 = vmax.f32 %v1368_v50, 0.0 }
  0xc0   : > { %950 = vst.msk [vmem:[%s2095_s28 + $0xb8] sm:$0xff] %vm926_vm1, %v877_v4  ;;  %949 = vst.msk [vmem:[%s2095_s28 + $0xb0] sm:$0xff] %vm926_vm1, %v875_v5 }
  0xc1   : > { %1470 = vrot.lane.b32.xlu1 %v1389_v60, %s1813_s17  ;;  %1468 = vrot.lane.b32.xlu0 %v1388_v61, %s1813_s17  ;;  %v1402_v60 = vmax.f32 %v1370_v56, 0.0 }
  0xc3   : > { %v881_v14 = vpop.permute.xlu1 %880  ;;  %v879_v15 = vpop.permute.xlu0 %878 }
  0xc4   : > { %952 = vst.msk [vmem:[%s2095_s28 + $0xc8] sm:$0xff] %vm926_vm1, %v881_v14  ;;  %951 = vst.msk [vmem:[%s2095_s28 + $0xc0] sm:$0xff] %vm926_vm1, %v879_v15 }
  0xc5   : > { %1474 = vrot.lane.b32.xlu1 %v1391_v8, %s1813_s17  ;;  %1472 = vrot.lane.b32.xlu0 %v1390_v9, %s1813_s17 }
  0xc7   : > { %v885_v23 = vpop.permute.xlu1 %884  ;;  %v883_v24 = vpop.permute.xlu0 %882 }
  0xc8   : > { %954 = vst.msk [vmem:[%s2095_s28 + $0xd8] sm:$0xff] %vm926_vm1, %v885_v23  ;;  %953 = vst.msk [vmem:[%s2095_s28 + $0xd0] sm:$0xff] %vm926_vm1, %v883_v24 }
  0xc9   : > { %1478 = vrot.lane.b32.xlu1 %v1393_v16, %s1813_s17  ;;  %1476 = vrot.lane.b32.xlu0 %v1392_v19, %s1813_s17 }
  0xcb   : > { %v889_v32 = vpop.permute.xlu1 %888  ;;  %v887_v0 = vpop.permute.xlu0 %886 }
  0xcc   : > { %956 = vst.msk [vmem:[%s2095_s28 + $0xe8] sm:$0xff] %vm926_vm1, %v889_v32  ;;  %955 = vst.msk [vmem:[%s2095_s28 + $0xe0] sm:$0xff] %vm926_vm1, %v887_v0 }
  0xcd   : > { %1482 = vrot.lane.b32.xlu1 %v1395_v38, %s1813_s17  ;;  %1480 = vrot.lane.b32.xlu0 %v1394_v27, %s1813_s17 }
  0xcf   : > { %v893_v44 = vpop.permute.xlu1 %892  ;;  %v891_v45 = vpop.permute.xlu0 %890 }
  0xd0   : > { %958 = vst.msk [vmem:[%s2095_s28 + $0xf8] sm:$0xff] %vm926_vm1, %v893_v44  ;;  %957 = vst.msk [vmem:[%s2095_s28 + $0xf0] sm:$0xff] %vm926_vm1, %v891_v45 }
  0xd1   : > { %1486 = vrot.lane.b32.xlu1 %v1397_v37, %s1813_s17  ;;  %1484 = vrot.lane.b32.xlu0 %v1396_v39, %s1813_s17 }
  0xd3   : > { %v1136_v52 = vpop.permute.xlu1 %1135  ;;  %v1134_v53 = vpop.permute.xlu0 %1133 }
  0xd4   : > { %1231 = vst.msk [vmem:[%s2095_s28 + $0x8] sm:$0xff] %vm1229_vm2, %v1136_v52  ;;  %1230 = vst.msk [vmem:[%s2095_s28] sm:$0xff] %vm1229_vm2, %v1134_v53 }
  0xd5   : > { %1490 = vrot.lane.b32.xlu1 %v1399_v48, %s1813_s17  ;;  %1488 = vrot.lane.b32.xlu0 %v1398_v49, %s1813_s17 }
  0xd7   : > { %v1140_v58 = vpop.permute.xlu1 %1139  ;;  %v1138_v17 = vpop.permute.xlu0 %1137 }
  0xd8   : > { %1233 = vst.msk [vmem:[%s2095_s28 + $0x18] sm:$0xff] %vm1229_vm2, %v1140_v58  ;;  %1232 = vst.msk [vmem:[%s2095_s28 + $0x10] sm:$0xff] %vm1229_vm2, %v1138_v17 }
  0xd9   : > { %1494 = vrot.lane.b32.xlu1 %v1401_v1, %s1813_s17  ;;  %1492 = vrot.lane.b32.xlu0 %v1400_v54, %s1813_s17 }
  0xdb   : > { %v1144_v61 = vpop.permute.xlu1 %1143  ;;  %v1142_v62 = vpop.permute.xlu0 %1141 }
  0xdc   : > { %1235 = vst.msk [vmem:[%s2095_s28 + $0x28] sm:$0xff] %vm1229_vm2, %v1144_v61  ;;  %1234 = vst.msk [vmem:[%s2095_s28 + $0x20] sm:$0xff] %vm1229_vm2, %v1142_v62 }
  0xdd   : > { %1498 = vrot.lane.b32.xlu1 %v1403_v59, %s1813_s17  ;;  %1496 = vrot.lane.b32.xlu0 %v1402_v60, %s1813_s17  ;;  %s1747_s17 = scalar_lea.vmem %s2746_s16, 4096 }
  0xde   : > { %p1748_p11 = scmp.ne.s32.totalorder %s2746_s16, %s1747_s17  ;;  %p1755_p1 = scmp.lt.s32.totalorder %s1753_s19, %s1747_s17 }
  0xdf   : > { %v1148_v25 = vpop.permute.xlu1 %1147  ;;  %v1146_v63 = vpop.permute.xlu0 %1145 }
  0xe0   : > { %1237 = vst.msk [vmem:[%s2095_s28 + $0x38] sm:$0xff] %vm1229_vm2, %v1148_v25  ;;  %1236 = vst.msk [vmem:[%s2095_s28 + $0x30] sm:$0xff] %vm1229_vm2, %v1146_v63  ;;  %p1749_p12 = pnand %p1748_p11, %p1919_p5  ;;  %p1756_p2 = por %p1755_p1, %p1754_p0 }
  0xe2   : > { %p1750_p13 = pneg %p1749_p12 }
  0xe3   : > { %v1152_v2 = vpop.permute.xlu1 %1151  ;;  %v1150_v3 = vpop.permute.xlu0 %1149 }
  0xe4   : > { %1239 = vst.msk [vmem:[%s2095_s28 + $0x48] sm:$0xff] %vm1229_vm2, %v1152_v2  ;;  %1238 = vst.msk [vmem:[%s2095_s28 + $0x40] sm:$0xff] %vm1229_vm2, %v1150_v3  ;;  %p1757_p3 = pnand %p1756_p2, %p1750_p13 }
  0xe7   : > { %v1156_v4 = vpop.permute.xlu1 %1155  ;;  %v1154_v5 = vpop.permute.xlu0 %1153 }
  0xe8   : > { %1241 = vst.msk [vmem:[%s2095_s28 + $0x58] sm:$0xff] %vm1229_vm2, %v1156_v4  ;;  %1240 = vst.msk [vmem:[%s2095_s28 + $0x50] sm:$0xff] %vm1229_vm2, %v1154_v5 }
  0xeb   : > { %v1160_v6 = vpop.permute.xlu1 %1159  ;;  %v1158_v7 = vpop.permute.xlu0 %1157 }
  0xec   : > { %1243 = vst.msk [vmem:[%s2095_s28 + $0x68] sm:$0xff] %vm1229_vm2, %v1160_v6  ;;  %1242 = vst.msk [vmem:[%s2095_s28 + $0x60] sm:$0xff] %vm1229_vm2, %v1158_v7 }
  0xef   : > { %v1164_v8 = vpop.permute.xlu1 %1163  ;;  %v1162_v9 = vpop.permute.xlu0 %1161 }
  0xf0   : > { %1245 = vst.msk [vmem:[%s2095_s28 + $0x78] sm:$0xff] %vm1229_vm2, %v1164_v8  ;;  %1244 = vst.msk [vmem:[%s2095_s28 + $0x70] sm:$0xff] %vm1229_vm2, %v1162_v9 }
  0xf3   : > { %v1168_v10 = vpop.permute.xlu1 %1167  ;;  %v1166_v11 = vpop.permute.xlu0 %1165 }
  0xf4   : > { %1247 = vst.msk [vmem:[%s2095_s28 + $0x88] sm:$0xff] %vm1229_vm2, %v1168_v10  ;;  %1246 = vst.msk [vmem:[%s2095_s28 + $0x80] sm:$0xff] %vm1229_vm2, %v1166_v11 }
  0xf7   : > { %v1172_v12 = vpop.permute.xlu1 %1171  ;;  %v1170_v13 = vpop.permute.xlu0 %1169 }
  0xf8   : > { %1249 = vst.msk [vmem:[%s2095_s28 + $0x98] sm:$0xff] %vm1229_vm2, %v1172_v12  ;;  %1248 = vst.msk [vmem:[%s2095_s28 + $0x90] sm:$0xff] %vm1229_vm2, %v1170_v13 }
  0xfb   : > { %v1176_v14 = vpop.permute.xlu1 %1175  ;;  %v1174_v15 = vpop.permute.xlu0 %1173 }
  0xfc   : > { %1251 = vst.msk [vmem:[%s2095_s28 + $0xa8] sm:$0xff] %vm1229_vm2, %v1176_v14  ;;  %1250 = vst.msk [vmem:[%s2095_s28 + $0xa0] sm:$0xff] %vm1229_vm2, %v1174_v15 }
  0xff   : > { %v1180_v16 = vpop.permute.xlu1 %1179  ;;  %v1178_v18 = vpop.permute.xlu0 %1177 }
 0x100   : > { %1253 = vst.msk [vmem:[%s2095_s28 + $0xb8] sm:$0xff] %vm1229_vm2, %v1180_v16  ;;  %1252 = vst.msk [vmem:[%s2095_s28 + $0xb0] sm:$0xff] %vm1229_vm2, %v1178_v18 }
 0x103   : > { %v1184_v19 = vpop.permute.xlu1 %1183  ;;  %v1182_v33 = vpop.permute.xlu0 %1181 }
 0x104   : > { %1255 = vst.msk [vmem:[%s2095_s28 + $0xc8] sm:$0xff] %vm1229_vm2, %v1184_v19  ;;  %1254 = vst.msk [vmem:[%s2095_s28 + $0xc0] sm:$0xff] %vm1229_vm2, %v1182_v33 }
 0x107   : > { %v1188_v20 = vpop.permute.xlu1 %1187  ;;  %v1186_v34 = vpop.permute.xlu0 %1185 }
 0x108   : > { %1257 = vst.msk [vmem:[%s2095_s28 + $0xd8] sm:$0xff] %vm1229_vm2, %v1188_v20  ;;  %1256 = vst.msk [vmem:[%s2095_s28 + $0xd0] sm:$0xff] %vm1229_vm2, %v1186_v34 }
 0x10b   : > { %v1192_v21 = vpop.permute.xlu1 %1191  ;;  %v1190_v22 = vpop.permute.xlu0 %1189 }
 0x10c   : > { %1259 = vst.msk [vmem:[%s2095_s28 + $0xe8] sm:$0xff] %vm1229_vm2, %v1192_v21  ;;  %1258 = vst.msk [vmem:[%s2095_s28 + $0xe0] sm:$0xff] %vm1229_vm2, %v1190_v22 }
 0x10f   : > { %v1196_v23 = vpop.permute.xlu1 %1195  ;;  %v1194_v24 = vpop.permute.xlu0 %1193 }
 0x110   : > { %1261 = vst.msk [vmem:[%s2095_s28 + $0xf8] sm:$0xff] %vm1229_vm2, %v1196_v23  ;;  %1260 = vst.msk [vmem:[%s2095_s28 + $0xf0] sm:$0xff] %vm1229_vm2, %v1194_v24 }
 0x113   : > { %v1439_v38 = vpop.permute.xlu1 %1438  ;;  %v1437_v26 = vpop.permute.xlu0 %1436 }
 0x114   : > { %1534 = vst.msk [vmem:[%s2095_s28 + $0x8] sm:$0xff] %vm1532_vm3, %v1439_v38  ;;  %1533 = vst.msk [vmem:[%s2095_s28] sm:$0xff] %vm1532_vm3, %v1437_v26 }
 0x117   : > { %v1443_v27 = vpop.permute.xlu1 %1442  ;;  %v1441_v28 = vpop.permute.xlu0 %1440 }
 0x118   : > { %1536 = vst.msk [vmem:[%s2095_s28 + $0x18] sm:$0xff] %vm1532_vm3, %v1443_v27  ;;  %1535 = vst.msk [vmem:[%s2095_s28 + $0x10] sm:$0xff] %vm1532_vm3, %v1441_v28 }
 0x11b   : > { %v1447_v57 = vpop.permute.xlu1 %1446  ;;  %v1445_v29 = vpop.permute.xlu0 %1444 }
 0x11c   : > { %1538 = vst.msk [vmem:[%s2095_s28 + $0x28] sm:$0xff] %vm1532_vm3, %v1447_v57  ;;  %1537 = vst.msk [vmem:[%s2095_s28 + $0x20] sm:$0xff] %vm1532_vm3, %v1445_v29 }
 0x11f   : > { %v1451_v30 = vpop.permute.xlu1 %1450  ;;  %v1449_v31 = vpop.permute.xlu0 %1448 }
 0x120   : > { %1540 = vst.msk [vmem:[%s2095_s28 + $0x38] sm:$0xff] %vm1532_vm3, %v1451_v30  ;;  %1539 = vst.msk [vmem:[%s2095_s28 + $0x30] sm:$0xff] %vm1532_vm3, %v1449_v31 }
 0x123   : > { %v1455_v32 = vpop.permute.xlu1 %1454  ;;  %v1453_v0 = vpop.permute.xlu0 %1452 }
 0x124   : > { %1542 = vst.msk [vmem:[%s2095_s28 + $0x48] sm:$0xff] %vm1532_vm3, %v1455_v32  ;;  %1541 = vst.msk [vmem:[%s2095_s28 + $0x40] sm:$0xff] %vm1532_vm3, %v1453_v0 }
 0x127   : > { %v1459_v35 = vpop.permute.xlu1 %1458  ;;  %v1457_v36 = vpop.permute.xlu0 %1456 }
 0x128   : > { %1544 = vst.msk [vmem:[%s2095_s28 + $0x58] sm:$0xff] %vm1532_vm3, %v1459_v35  ;;  %1543 = vst.msk [vmem:[%s2095_s28 + $0x50] sm:$0xff] %vm1532_vm3, %v1457_v36 }
 0x12b   : > { %v1463_v37 = vpop.permute.xlu1 %1462  ;;  %v1461_v39 = vpop.permute.xlu0 %1460 }
 0x12c   : > { %1546 = vst.msk [vmem:[%s2095_s28 + $0x68] sm:$0xff] %vm1532_vm3, %v1463_v37  ;;  %1545 = vst.msk [vmem:[%s2095_s28 + $0x60] sm:$0xff] %vm1532_vm3, %v1461_v39 }
 0x12f   : > { %v1467_v40 = vpop.permute.xlu1 %1466  ;;  %v1465_v41 = vpop.permute.xlu0 %1464 }
 0x130   : > { %1548 = vst.msk [vmem:[%s2095_s28 + $0x78] sm:$0xff] %vm1532_vm3, %v1467_v40  ;;  %1547 = vst.msk [vmem:[%s2095_s28 + $0x70] sm:$0xff] %vm1532_vm3, %v1465_v41 }
 0x133   : > { %v1471_v42 = vpop.permute.xlu1 %1470  ;;  %v1469_v43 = vpop.permute.xlu0 %1468 }
 0x134   : > { %1550 = vst.msk [vmem:[%s2095_s28 + $0x88] sm:$0xff] %vm1532_vm3, %v1471_v42  ;;  %1549 = vst.msk [vmem:[%s2095_s28 + $0x80] sm:$0xff] %vm1532_vm3, %v1469_v43 }
 0x137   : > { %v1475_v44 = vpop.permute.xlu1 %1474  ;;  %v1473_v45 = vpop.permute.xlu0 %1472 }
 0x138   : > { %1552 = vst.msk [vmem:[%s2095_s28 + $0x98] sm:$0xff] %vm1532_vm3, %v1475_v44  ;;  %1551 = vst.msk [vmem:[%s2095_s28 + $0x90] sm:$0xff] %vm1532_vm3, %v1473_v45 }
 0x13b   : > { %v1479_v46 = vpop.permute.xlu1 %1478  ;;  %v1477_v47 = vpop.permute.xlu0 %1476 }
 0x13c   : > { %1554 = vst.msk [vmem:[%s2095_s28 + $0xa8] sm:$0xff] %vm1532_vm3, %v1479_v46  ;;  %1553 = vst.msk [vmem:[%s2095_s28 + $0xa0] sm:$0xff] %vm1532_vm3, %v1477_v47 }
 0x13f   : > { %v1483_v48 = vpop.permute.xlu1 %1482  ;;  %v1481_v49 = vpop.permute.xlu0 %1480 }
 0x140   : > { %1556 = vst.msk [vmem:[%s2095_s28 + $0xb8] sm:$0xff] %vm1532_vm3, %v1483_v48  ;;  %1555 = vst.msk [vmem:[%s2095_s28 + $0xb0] sm:$0xff] %vm1532_vm3, %v1481_v49 }
 0x143   : > { %v1487_v50 = vpop.permute.xlu1 %1486  ;;  %v1485_v51 = vpop.permute.xlu0 %1484 }
 0x144   : > { %1558 = vst.msk [vmem:[%s2095_s28 + $0xc8] sm:$0xff] %vm1532_vm3, %v1487_v50  ;;  %1557 = vst.msk [vmem:[%s2095_s28 + $0xc0] sm:$0xff] %vm1532_vm3, %v1485_v51 }
 0x147   : > { %v1491_v52 = vpop.permute.xlu1 %1490  ;;  %v1489_v53 = vpop.permute.xlu0 %1488 }
 0x148   : > { %1560 = vst.msk [vmem:[%s2095_s28 + $0xd8] sm:$0xff] %vm1532_vm3, %v1491_v52  ;;  %1559 = vst.msk [vmem:[%s2095_s28 + $0xd0] sm:$0xff] %vm1532_vm3, %v1489_v53 }
 0x14b   : > { %v1495_v1 = vpop.permute.xlu1 %1494  ;;  %v1493_v54 = vpop.permute.xlu0 %1492 }
 0x14c   : > { %1562 = vst.msk [vmem:[%s2095_s28 + $0xe8] sm:$0xff] %vm1532_vm3, %v1495_v1  ;;  %1561 = vst.msk [vmem:[%s2095_s28 + $0xe0] sm:$0xff] %vm1532_vm3, %v1493_v54 }
 0x14f   : > { %v1499_v55 = vpop.permute.xlu1 %1498  ;;  %v1497_v56 = vpop.permute.xlu0 %1496 }
 0x150   : > { %1564 = vst.msk [vmem:[%s2095_s28 + $0xf8] sm:$0xff] %vm1532_vm3, %v1499_v55  ;;  %1563 = vst.msk [vmem:[%s2095_s28 + $0xf0] sm:$0xff] %vm1532_vm3, %v1497_v56 }
 0x151   : > { %1760 = shalt.err (!%p1757_p3)
}
 0x152   : > { %s1761_s29 = scalar_lea.hbm %s2744_s18, 4096  ;;  %s1765_s26 = scalar_lea.hbm %s2808_s12, 8192 }
 0x153   : > { %p1762_p4 = scmp.ne.s32.totalorder %s2744_s18, %s1761_s29  ;;  %p1766_p9 = scmp.lt.u32.totalorder %s2744_s18, %s2808_s12 }
 0x154   : > { %p1767_p10 = scmp.lt.u32.totalorder %s1765_s26, %s1761_s29  ;;  %p1769_p12 = scmp.lt.u32.totalorder %s1761_s29, %s2744_s18 }
 0x155   : > { %p1763_p7 = pnand %p1762_p4, %p1919_p5 }
 0x156   : > { %p1768_p11 = por %p1767_p10, %p1766_p9 }
 0x157   : > { %p1764_p8 = pneg %p1763_p7 }
 0x158   : > { %p1770_p13 = por %p1769_p12, %p1768_p11 }
 0x15a   : > { %p1771_p0 = pnand %p1770_p13, %p1764_p8 }
 0x15c   : > { %1774 = shalt.err (!%p1771_p0)
}
 0x15d   : > { %s1815_s17 = smov 128   ;;  %s2814_s19 = smov 8  }
 0x15e   : > { %1704 = dma.vmem_to_hbm [thread:$0]  (%p1919_p5), %s2746_s16, 4096, %s2744_s18, %s2754_s25, %s1815_s17, %s1815_s17, %s2814_s19  }
 0x15f PF: > { %p1710_p1 = scmp.ge.s32.totalorder %s1809_s24, 2  ;;  %s1594_s0 = sand.u32 1, %s1797_s21  }
 0x160   : > { %s1595_s15 = scalar_lea.sflag [#allocation3], %s1594_s0 }
 0x161   : > { %p1707_p2 = pnand %p1710_p1, %p1923_p6 }
 0x163   : > { %1792 = dma.done.wait (!%p1707_p2), %s1595_s15, 4096  }
 0x164   : > { %1794 = vsyncadd (!%p1707_p2), %s1595_s15, 4294963200  ;;  %p22_p3 = scmp.ge.s32.totalorder %s1906_s27, 4   ;;  %s2815_s21 = smov %s1801_s22 }
 0x165   : > { %s2816_s22 = smov %s1805_s23  ;;  %s2817_s23 = smov %s1917_s30 }
 0x166   : > { %s2818_s24 = smov %s1906_s27  ;;  %24 = sbr.rel (!%p22_p3) target bundleno = 5 (0x5), region = 112 }
 0x16d   :  { %1600 = vsyncpa [#allocation3], 1 }
 0x16e   :  { %1602 = vsyncpa [#allocation3 + $0x1], 1 }

// kernel: inception_forward.13
= control target key start
LH: loop header
LB: loop body
LE: loop exit
PB: predicated region body
PF: predicated region fallthrough
CT: control target
= control target key end

     0   :  { %s1610_s12 = smov 0   ;;  %s2105_s0 = inlined_call_operand.vmem [shape: f32[2,16,16,4], index: 0, kind: input, shape index: {}]   ;;  %s2106_s1 = inlined_call_operand.vmem [shape: f32[4,8], index: 1, kind: input, shape index: {}]   ;;  %s2107_s2 = inlined_call_operand.vmem [shape: f32[2,16,16,8], index: 2, kind: output, shape index: {0}]   ;;  %s2108_s3 = inlined_call_operand.vmem [shape: f32[2,8], index: 3, kind: output, shape index: {1}]  }
   0x1 LB: > { %s1438_s13 = sadd.s32 4294967295, %s1586_s12   ;;  %p1442_p0 = scmp.ge.s32.totalorder %s1586_s12, 1  ;;  %s1586_s12 = sphi %s1610_s12, %s14_s12  }
   0x2   : > { %p135_p1 = scmp.lt.s32.totalorder %s1586_s12, 3 }
   0x4   : > { %p136_p2 = pnand %p1442_p0, %p135_p1 }
   0x5   : > { %p159_p3 = scmp.lt.s32.totalorder (!%p136_p2), %s1438_s13, 1  ;;  %p1447_p4 = scmp.ne.s32.totalorder (!%p136_p2), %s1438_s13, 0 }
   0x6   : > { %139 = sbr.rel (%p136_p2) target bundleno = 369 (0x171), region = 28 }
   0xd   : > { %s160_s14 = scalar_select %p159_p3, %s1438_s13, 1 }
   0xe   : > { %172 = sbr.rel (%p1447_p4) target bundleno = 21 (0x15), region = 32  ;;  %vm173_vm0 = vcmask (!%p1447_p4), 58368   ;;  %v1588_v0 = vmov (!%p1447_p4), 0.0  }
   0xf   : > { %s1483_s15 = sshll.u32 %s160_s14, 8  ;;  %174 = vst.msk [vmem:[%s2108_s3] sm:$0x3] (!%p1447_p4), %vm173_vm0, %v1588_v0 }
  0x10   : > { %s1621_s18 = scalar_lea.vmem %s2105_s0, %s1483_s15  ;;  %s1626_s21 = scalar_lea.vmem %s2107_s2, %s1483_s15 }
  0x15 PF: > { %v1634_v1 = vld [vmem:[%s2106_s1] sm:$0xf]  ;;  %vm938_vm1 = vcmask 1043456   ;;  %vm175_vm2 = vcmask 31744   ;;  %vm178_vm3 = vcmask 25600   ;;  %v1589_v2 = vmov -inf  }
  0x16   : > { %1518 = vmatprep.subr.msk.mxu0 %vm938_vm1, %v1634_v1  ;;  %176 = vst.msk [vmem:[#allocation2] sm:$0xff] %vm175_vm2, %v1589_v2  ;;  %177 = vst.msk [vmem:[#allocation2 + $0x8] sm:$0xff] %vm175_vm2, %v1589_v2  ;;  %v231_v3 = vld [vmem:[%s1621_s18] sm:$0xff]  ;;  %v232_v4 = vld [vmem:[%s1621_s18 + $0x8] sm:$0xff]  ;;  %1568 = vmatprep.subr.msk.mxu1 %vm938_vm1, %v1634_v1  ;;  %vm1167_vm4 = vcmask 64512   ;;  %vm1271_vm5 = vcmask 57344  }
  0x17   : > { %180 = vst.msk [vmem:[#allocation2 + $0x18] sm:$0xff] %vm175_vm2, %v1589_v2  ;;  %181 = vst.msk [vmem:[#allocation2 + $0x20] sm:$0xff] %vm175_vm2, %v1589_v2  ;;  %v233_v5 = vld [vmem:[%s1621_s18 + $0x10] sm:$0xff]  ;;  %1519 = vmatpush3.msk.msra.mxu0 %vm938_vm1, %v1634_v1  ;;  %v234_v6 = vld [vmem:[%s1621_s18 + $0x18] sm:$0xff]  ;;  %1569 = vmatpush3.msk.msra.mxu1 %vm938_vm1, %v1634_v1 }
  0x18   : > { %182 = vst.msk [vmem:[#allocation2 + $0x28] sm:$0x3] %vm178_vm3, %v1589_v2  ;;  %185 = vst.msk [vmem:[#allocation2 + $0x40] sm:$0x3] %vm178_vm3, %v1589_v2  ;;  %v235_v7 = vld [vmem:[%s1621_s18 + $0x20] sm:$0xff]  ;;  %v236_v8 = vld [vmem:[%s1621_s18 + $0x28] sm:$0xff] }
  0x19   : > { %183 = vst.msk [vmem:[#allocation2 + $0x30] sm:$0xff] %vm175_vm2, %v1589_v2  ;;  %184 = vst.msk [vmem:[#allocation2 + $0x38] sm:$0xff] %vm175_vm2, %v1589_v2  ;;  %v237_v9 = vld [vmem:[%s1621_s18 + $0x30] sm:$0xff]  ;;  %v238_v10 = vld [vmem:[%s1621_s18 + $0x38] sm:$0xff] }
  0x1a   : > { %179 = vst.msk [vmem:[#allocation2 + $0x10] sm:$0x3] %vm178_vm3, %v1589_v2  ;;  %188 = vst.msk [vmem:[#allocation2 + $0x58] sm:$0x3] %vm178_vm3, %v1589_v2  ;;  %v239_v11 = vld [vmem:[%s1621_s18 + $0x40] sm:$0xff]  ;;  %v240_v12 = vld [vmem:[%s1621_s18 + $0x48] sm:$0xff] }
  0x1b   : > { %186 = vst.msk [vmem:[#allocation2 + $0x48] sm:$0xff] %vm175_vm2, %v1589_v2  ;;  %187 = vst.msk [vmem:[#allocation2 + $0x50] sm:$0xff] %vm175_vm2, %v1589_v2  ;;  %v241_v13 = vld [vmem:[%s1621_s18 + $0x50] sm:$0xff]  ;;  %v242_v14 = vld [vmem:[%s1621_s18 + $0x58] sm:$0xff] }
  0x1c   : > { %189 = vst.msk [vmem:[#allocation2 + $0x60] sm:$0xff] %vm175_vm2, %v1589_v2  ;;  %190 = vst.msk [vmem:[#allocation2 + $0x68] sm:$0xff] %vm175_vm2, %v1589_v2  ;;  %v243_v15 = vld [vmem:[%s1621_s18 + $0x60] sm:$0xff]  ;;  %v244_v16 = vld [vmem:[%s1621_s18 + $0x68] sm:$0xff] }
  0x1d   : > { %191 = vst.msk [vmem:[#allocation2 + $0x70] sm:$0x3] %vm178_vm3, %v1589_v2  ;;  %194 = vst.msk [vmem:[#allocation2 + $0x88] sm:$0x3] %vm178_vm3, %v1589_v2  ;;  %v245_v17 = vld [vmem:[%s1621_s18 + $0x70] sm:$0xff]  ;;  %v246_v18 = vld [vmem:[%s1621_s18 + $0x78] sm:$0xff] }
  0x1e   : > { %192 = vst.msk [vmem:[#allocation2 + $0x78] sm:$0xff] %vm175_vm2, %v1589_v2  ;;  %193 = vst.msk [vmem:[#allocation2 + $0x80] sm:$0xff] %vm175_vm2, %v1589_v2  ;;  %v247_v19 = vld [vmem:[%s1621_s18 + $0x80] sm:$0xff]  ;;  %v248_v20 = vld [vmem:[%s1621_s18 + $0x88] sm:$0xff] }
  0x1f   : > { %195 = vst.msk [vmem:[#allocation2 + $0x90] sm:$0xff] %vm175_vm2, %v1589_v2  ;;  %196 = vst.msk [vmem:[#allocation2 + $0x98] sm:$0xff] %vm175_vm2, %v1589_v2  ;;  %v249_v21 = vld [vmem:[%s1621_s18 + $0x90] sm:$0xff]  ;;  %v250_v22 = vld [vmem:[%s1621_s18 + $0x98] sm:$0xff] }
  0x20   : > { %197 = vst.msk [vmem:[#allocation2 + $0xa0] sm:$0x3] %vm178_vm3, %v1589_v2  ;;  %200 = vst.msk [vmem:[#allocation2 + $0xb8] sm:$0x3] %vm178_vm3, %v1589_v2  ;;  %v251_v23 = vld [vmem:[%s1621_s18 + $0xa0] sm:$0xff]  ;;  %v329_v32 = vld [vmem:[#allocation2 + $0x8] sm:$0xff] }
  0x21   : > { %198 = vst.msk [vmem:[#allocation2 + $0xa8] sm:$0xff] %vm175_vm2, %v1589_v2  ;;  %199 = vst.msk [vmem:[#allocation2 + $0xb0] sm:$0xff] %vm175_vm2, %v1589_v2  ;;  %v328_v24 = vld [vmem:[#allocation2] sm:$0xff]  ;;  %v393_v33 = vld [vmem:[#allocation2 + $0x9] sm:$0xff] }
  0x22   : > { %201 = vst.msk [vmem:[#allocation2 + $0xc0] sm:$0xff] %vm175_vm2, %v1589_v2  ;;  %202 = vst.msk [vmem:[#allocation2 + $0xc8] sm:$0xff] %vm175_vm2, %v1589_v2  ;;  %v392_v26 = vld [vmem:[#allocation2 + $0x1] sm:$0xff]  ;;  %v457_v40 = vld [vmem:[#allocation2 + $0xa] sm:$0xff] }
  0x23   : > { %203 = vst.msk [vmem:[#allocation2 + $0xd0] sm:$0x3] %vm178_vm3, %v1589_v2  ;;  %206 = vst.msk [vmem:[#allocation2 + $0xe8] sm:$0x3] %vm178_vm3, %v1589_v2  ;;  %v456_v29 = vld [vmem:[#allocation2 + $0x2] sm:$0xff] }
  0x24   : > { %204 = vst.msk [vmem:[#allocation2 + $0xd8] sm:$0xff] %vm175_vm2, %v1589_v2  ;;  %205 = vst.msk [vmem:[#allocation2 + $0xe0] sm:$0xff] %vm175_vm2, %v1589_v2 }
  0x25   : > { %207 = vst.msk [vmem:[#allocation2 + $0xf0] sm:$0xff] %vm175_vm2, %v1589_v2  ;;  %208 = vst.msk [vmem:[#allocation2 + $0xf8] sm:$0xff] %vm175_vm2, %v1589_v2 }
  0x26   : > { %209 = vst.msk [vmem:[#allocation2 + $0x100] sm:$0x3] %vm178_vm3, %v1589_v2  ;;  %212 = vst.msk [vmem:[#allocation2 + $0x118] sm:$0x3] %vm178_vm3, %v1589_v2 }
  0x27   : > { %210 = vst.msk [vmem:[#allocation2 + $0x108] sm:$0xff] %vm175_vm2, %v1589_v2  ;;  %211 = vst.msk [vmem:[#allocation2 + $0x110] sm:$0xff] %vm175_vm2, %v1589_v2 }
  0x28   : > { %213 = vst.msk [vmem:[#allocation2 + $0x120] sm:$0xff] %vm175_vm2, %v1589_v2  ;;  %214 = vst.msk [vmem:[#allocation2 + $0x128] sm:$0xff] %vm175_vm2, %v1589_v2 }
  0x29   : > { %215 = vst.msk [vmem:[#allocation2 + $0x130] sm:$0x3] %vm178_vm3, %v1589_v2  ;;  %218 = vst.msk [vmem:[#allocation2 + $0x148] sm:$0x3] %vm178_vm3, %v1589_v2 }
  0x2a   : > { %216 = vst.msk [vmem:[#allocation2 + $0x138] sm:$0xff] %vm175_vm2, %v1589_v2  ;;  %217 = vst.msk [vmem:[#allocation2 + $0x140] sm:$0xff] %vm175_vm2, %v1589_v2 }
  0x2b   : > { %219 = vst.msk [vmem:[#allocation2 + $0x150] sm:$0xff] %vm175_vm2, %v1589_v2  ;;  %220 = vst.msk [vmem:[#allocation2 + $0x158] sm:$0xff] %vm175_vm2, %v1589_v2 }
  0x2c   : > { %221 = vst.msk [vmem:[#allocation2 + $0x160] sm:$0x3] %vm178_vm3, %v1589_v2  ;;  %224 = vst.msk [vmem:[#allocation2 + $0x178] sm:$0x3] %vm178_vm3, %v1589_v2 }
  0x2d   : > { %222 = vst.msk [vmem:[#allocation2 + $0x168] sm:$0xff] %vm175_vm2, %v1589_v2  ;;  %223 = vst.msk [vmem:[#allocation2 + $0x170] sm:$0xff] %vm175_vm2, %v1589_v2 }
  0x2e   : > { %225 = vst.msk [vmem:[#allocation2 + $0x180] sm:$0xff] %vm175_vm2, %v1589_v2  ;;  %226 = vst.msk [vmem:[#allocation2 + $0x188] sm:$0xff] %vm175_vm2, %v1589_v2 }
  0x2f   : > { %227 = vst.msk [vmem:[#allocation2 + $0x190] sm:$0x3] %vm178_vm3, %v1589_v2  ;;  %230 = vst.msk [vmem:[#allocation2 + $0x1a8] sm:$0x3] %vm178_vm3, %v1589_v2 }
  0x30   : > { %228 = vst.msk [vmem:[#allocation2 + $0x198] sm:$0xff] %vm175_vm2, %v1589_v2  ;;  %229 = vst.msk [vmem:[#allocation2 + $0x1a0] sm:$0xff] %vm175_vm2, %v1589_v2 }
  0x31   : > { %264 = vst.msk [vmem:[#allocation2 + $0x19] sm:$0xff] %vm175_vm2, %v231_v3  ;;  %265 = vst.msk [vmem:[#allocation2 + $0x21] sm:$0xff] %vm175_vm2, %v232_v4 }
  0x32   : > { %266 = vst.msk [vmem:[#allocation2 + $0x31] sm:$0xff] %vm175_vm2, %v233_v5  ;;  %267 = vst.msk [vmem:[#allocation2 + $0x39] sm:$0xff] %vm175_vm2, %v234_v6 }
  0x33   : > { %268 = vst.msk [vmem:[#allocation2 + $0x49] sm:$0xff] %vm175_vm2, %v235_v7  ;;  %269 = vst.msk [vmem:[#allocation2 + $0x51] sm:$0xff] %vm175_vm2, %v236_v8 }
  0x34   : > { %270 = vst.msk [vmem:[#allocation2 + $0x61] sm:$0xff] %vm175_vm2, %v237_v9  ;;  %271 = vst.msk [vmem:[#allocation2 + $0x69] sm:$0xff] %vm175_vm2, %v238_v10 }
  0x35   : > { %272 = vst.msk [vmem:[#allocation2 + $0x79] sm:$0xff] %vm175_vm2, %v239_v11  ;;  %273 = vst.msk [vmem:[#allocation2 + $0x81] sm:$0xff] %vm175_vm2, %v240_v12 }
  0x36   : > { %274 = vst.msk [vmem:[#allocation2 + $0x91] sm:$0xff] %vm175_vm2, %v241_v13  ;;  %275 = vst.msk [vmem:[#allocation2 + $0x99] sm:$0xff] %vm175_vm2, %v242_v14 }
  0x37   : > { %276 = vst.msk [vmem:[#allocation2 + $0xa9] sm:$0xff] %vm175_vm2, %v243_v15  ;;  %277 = vst.msk [vmem:[#allocation2 + $0xb1] sm:$0xff] %vm175_vm2, %v244_v16 }
  0x38   : > { %278 = vst.msk [vmem:[#allocation2 + $0xc1] sm:$0xff] %vm175_vm2, %v245_v17  ;;  %279 = vst.msk [vmem:[#allocation2 + $0xc9] sm:$0xff] %vm175_vm2, %v246_v18  ;;  %v296_v25 = vld [vmem:[#allocation2 + $0x19] sm:$0xff]  ;;  %v297_v31 = vld [vmem:[#allocation2 + $0x21] sm:$0xff] }
  0x39   : > { %280 = vst.msk [vmem:[#allocation2 + $0xd9] sm:$0xff] %vm175_vm2, %v247_v19  ;;  %281 = vst.msk [vmem:[#allocation2 + $0xe1] sm:$0xff] %vm175_vm2, %v248_v20  ;;  %v520_v27 = vld [vmem:[#allocation2 + $0x18] sm:$0xff]  ;;  %v360_v28 = vmax.f32 %v296_v25, %v328_v24  ;;  %v649_v37 = vld [vmem:[#allocation2 + $0x30] sm:$0xff]  ;;  %v361_v38 = vmax.f32 %v297_v31, %v329_v32 }
  0x3a   : > { %282 = vst.msk [vmem:[#allocation2 + $0xf1] sm:$0xff] %vm175_vm2, %v249_v21  ;;  %283 = vst.msk [vmem:[#allocation2 + $0xf9] sm:$0xff] %vm175_vm2, %v250_v22  ;;  %v1740_v30 = vld [vmem:[#allocation2 + $0x31] sm:$0xff]  ;;  %v584_v36 = vld [vmem:[#allocation2 + $0x1a] sm:$0xff] }
  0x3b   : > { %284 = vst.msk [vmem:[#allocation2 + $0x109] sm:$0xff] %vm175_vm2, %v251_v23  ;;  %v362_v34 = vmax.f32 %v1740_v30, %v520_v27  ;;  %v424_v35 = vmax.f32 %v360_v28, %v392_v26  ;;  %v521_v39 = vld [vmem:[#allocation2 + $0x20] sm:$0xff]  ;;  %v650_v41 = vld [vmem:[#allocation2 + $0x38] sm:$0xff]  ;;  %v425_v45 = vmax.f32 %v361_v38, %v393_v33  ;;  %v651_v46 = vld [vmem:[#allocation2 + $0x48] sm:$0xff] }
  0x3c   : > { %v1743_v42 = vld [vmem:[#allocation2 + $0x39] sm:$0xff]  ;;  %v715_v47 = vld [vmem:[#allocation2 + $0x49] sm:$0xff]  ;;  %v1746_v51 = vld [vmem:[#allocation2 + $0x51] sm:$0xff] }
  0x3d   : > { %v426_v43 = vmax.f32 %v362_v34, %v296_v25  ;;  %v488_v44 = vmax.f32 %v424_v35, %v456_v29  ;;  %v363_v48 = vmax.f32 %v1743_v42, %v521_v39  ;;  %v585_v49 = vld [vmem:[#allocation2 + $0x22] sm:$0xff]  ;;  %v364_v52 = vmax.f32 %v715_v47, %v649_v37  ;;  %v777_v54 = vld [vmem:[#allocation2 + $0x32] sm:$0xff]  ;;  %v778_v60 = vld [vmem:[#allocation2 + $0x3a] sm:$0xff] }
  0x3e   : > { %v489_v55 = vmax.f32 %v425_v45, %v457_v40  ;;  %v652_v57 = vld [vmem:[#allocation2 + $0x50] sm:$0xff]  ;;  %v1748_v58 = vld [vmem:[#allocation2 + $0x61] sm:$0xff]  ;;  %v365_v59 = vmax.f32 %v1746_v51, %v650_v41  ;;  %v719_v28 = vld [vmem:[#allocation2 + $0x79] sm:$0xff] }
  0x3f   : > { %v490_v50 = vmax.f32 %v426_v43, %v584_v36  ;;  %v552_v53 = vmax.f32 %v488_v44, %v520_v27  ;;  %v427_v56 = vmax.f32 %v363_v48, %v297_v31  ;;  %v428_v62 = vmax.f32 %v364_v52, %v1740_v30  ;;  %v1752_v63 = vld [vmem:[#allocation2 + $0x69] sm:$0xff]  ;;  %v780_v13 = vld [vmem:[#allocation2 + $0x52] sm:$0xff]  ;;  %v653_v22 = vld [vmem:[#allocation2 + $0x60] sm:$0xff] }
  0x40   : > { %v366_v0 = vmax.f32 %v1748_v58, %v651_v46  ;;  %v553_v2 = vmax.f32 %v489_v55, %v521_v39  ;;  %v779_v3 = vld [vmem:[#allocation2 + $0x4a] sm:$0xff]  ;;  %v429_v5 = vmax.f32 %v365_v59, %v1743_v42  ;;  %v367_v9 = vmax.f32 %v1752_v63, %v652_v57  ;;  %v1759_v23 = vld [vmem:[#allocation2 + $0x62] sm:$0xff]  ;;  %v655_v40 = vld [vmem:[#allocation2 + $0x78] sm:$0xff] }
  0x41   : > { %v554_v61 = vmax.f32 %v490_v50, %v649_v37  ;;  %v616_v1 = vmax.f32 %v552_v53, %v584_v36  ;;  %v491_v4 = vmax.f32 %v427_v56, %v585_v49  ;;  %v492_v7 = vmax.f32 %v428_v62, %v777_v54  ;;  %v654_v35 = vld [vmem:[#allocation2 + $0x68] sm:$0xff]  ;;  %v1767_v43 = vld [vmem:[#allocation2 + $0x91] sm:$0xff]  ;;  %v656_v50 = vld [vmem:[#allocation2 + $0x80] sm:$0xff] }
  0x42   : > { %v430_v8 = vmax.f32 %v366_v0, %v715_v47  ;;  %v617_v11 = vmax.f32 %v553_v2, %v585_v49  ;;  %v493_v14 = vmax.f32 %v429_v5, %v778_v60  ;;  %v431_v18 = vmax.f32 %v367_v9, %v1746_v51  ;;  %v1762_v36 = vld [vmem:[#allocation2 + $0x6a] sm:$0xff]  ;;  %v1774_v53 = vld [vmem:[#allocation2 + $0x99] sm:$0xff] }
  0x43   : > { %v618_v6 = vmax.f32 %v554_v61, %v777_v54  ;;  %v681_v10 = vmax.f32 %v616_v1, %v649_v37  ;;  %v555_v12 = vmax.f32 %v491_v4, %v650_v41  ;;  %v556_v16 = vmax.f32 %v492_v7, %v651_v46  ;;  %v1778_v56 = vld [vmem:[#allocation2 + $0x7a] sm:$0xff]  ;;  %v1788_v1 = vld [vmem:[#allocation2 + $0x82] sm:$0xff]  ;;  %v1795_v4 = vld [vmem:[#allocation2 + $0xb1] sm:$0xff] }
  0x44   : > { %v494_v17 = vmax.f32 %v430_v8, %v779_v3  ;;  %v682_v20 = vmax.f32 %v617_v11, %v650_v41  ;;  %v557_v24 = vmax.f32 %v493_v14, %v652_v57  ;;  %v495_v29 = vmax.f32 %v431_v18, %v780_v13  ;;  %v1799_v7 = vld [vmem:[#allocation2 + $0x92] sm:$0xff]  ;;  %v1806_v11 = vld [vmem:[#allocation2 + $0xc9] sm:$0xff] }
  0x45   : > { %v683_v15 = vmax.f32 %v618_v6, %v651_v46  ;;  %v745_v19 = vmax.f32 %v681_v10, %v1740_v30  ;;  %v619_v21 = vmax.f32 %v555_v12, %v778_v60  ;;  %v620_v26 = vmax.f32 %v556_v16, %v779_v3  ;;  %v1764_v30 = vld [vmem:[#allocation2 + $0x81] sm:$0xff]  ;;  %v1802_v10 = vld [vmem:[#allocation2 + $0xb0] sm:$0xff] }
  0x46   : > { %v558_v27 = vmax.f32 %v494_v17, %v653_v22  ;;  %v746_v32 = vmax.f32 %v682_v20, %v1743_v42  ;;  %v621_v34 = vmax.f32 %v557_v24, %v780_v13  ;;  %v559_v41 = vmax.f32 %v495_v29, %v654_v35  ;;  %v252_v12 = vld [vmem:[%s1621_s18 + $0xa8] sm:$0xff]  ;;  %v1812_v16 = vld [vmem:[#allocation2 + $0x9a] sm:$0xff]  ;;  %v253_v18 = vld [vmem:[%s1621_s18 + $0xb0] sm:$0xff] }
  0x47   : > { %v747_v25 = vmax.f32 %v683_v15, %v715_v47  ;;  %v809_v31 = vmax.f32 %v745_v19, %v777_v54  ;;  %v684_v33 = vmax.f32 %v619_v21, %v652_v57  ;;  %v685_v38 = vmax.f32 %v620_v26, %v653_v22  ;;  %v1781_v57 = vld [vmem:[#allocation2 + $0x90] sm:$0xff]  ;;  %285 = vst.msk [vmem:[#allocation2 + $0x111] sm:$0xff] %vm175_vm2, %v252_v12  ;;  %v254_v19 = vld [vmem:[%s1621_s18 + $0xb8] sm:$0xff]  ;;  %v255_v20 = vld [vmem:[%s1621_s18 + $0xc0] sm:$0xff] }
  0x48   : > { %v622_v39 = vmax.f32 %v558_v27, %v1759_v23  ;;  %v810_v44 = vmax.f32 %v746_v32, %v778_v60  ;;  %v686_v45 = vmax.f32 %v621_v34, %v654_v35  ;;  %v368_v46 = vmax.f32 %v719_v28, %v653_v22  ;;  %v1784_v60 = vld [vmem:[#allocation2 + $0xa9] sm:$0xff]  ;;  %286 = vst.msk [vmem:[#allocation2 + $0x121] sm:$0xff] %vm175_vm2, %v253_v18  ;;  %v258_v27 = vld [vmem:[%s1621_s18 + $0xd8] sm:$0xff] }
  0x49   : > { %v811_v37 = vmax.f32 %v747_v25, %v779_v3  ;;  %1520 = vmatprep.mubr.msk.f32.mxu0 %vm175_vm2, %v809_v31  ;;  %v748_v42 = vmax.f32 %v684_v33, %v1746_v51  ;;  %v749_v47 = vmax.f32 %v685_v38, %v1748_v58  ;;  %v623_v49 = vmax.f32 %v559_v41, %v1762_v36  ;;  %v1791_v3 = vld [vmem:[#allocation2 + $0x98] sm:$0xff]  ;;  %v256_v25 = vld [vmem:[%s1621_s18 + $0xc8] sm:$0xff]  ;;  %v257_v26 = vld [vmem:[%s1621_s18 + $0xd0] sm:$0xff] }
  0x4a   : > { %v687_v48 = vmax.f32 %v622_v39, %v655_v40  ;;  %v369_v52 = vmax.f32 %v1764_v30, %v654_v35  ;;  %1521 = vmatmul.mubr.msk.f32.vlgmr.msra.gmra.mrb[0].mxu0 %vm175_vm2, %v810_v44  ;;  %v750_v55 = vmax.f32 %v686_v45, %v1752_v63  ;;  %v432_v51 = vmax.f32 %v368_v46, %v1748_v58  ;;  %v1793_v58 = vld [vmem:[#allocation2 + $0xa8] sm:$0xff]  ;;  %v259_v33 = vld [vmem:[%s1621_s18 + $0xe0] sm:$0xff]  ;;  %v261_v35 = vld [vmem:[%s1621_s18 + $0xf0] sm:$0xff] }
  0x4b   : > { %v812_v54 = vmax.f32 %v748_v42, %v780_v13  ;;  %v370_v59 = vmax.f32 %v1767_v43, %v655_v40  ;;  %1523 = vmatprep.mubr.msk.f32.mxu0 %vm175_vm2, %v811_v37  ;;  %v813_v61 = vmax.f32 %v749_v47, %v1759_v23  ;;  %v688_v0 = vmax.f32 %v623_v49, %v656_v50  ;;  %v260_v34 = vld [vmem:[%s1621_s18 + $0xe8] sm:$0xff]  ;;  %v788_v49 = vld [vmem:[#allocation2 + $0xb2] sm:$0xff] }
  0x4c   : > { %v751_v62 = vmax.f32 %v687_v48, %v719_v28  ;;  %v433_v2 = vmax.f32 %v369_v52, %v1752_v63  ;;  %v814_v5 = vmax.f32 %v750_v55, %v1762_v36  ;;  %v496_v6 = vmax.f32 %v432_v51, %v1759_v23  ;;  %v1804_v63 = vld [vmem:[#allocation2 + $0xc1] sm:$0xff]  ;;  %287 = vst.msk [vmem:[#allocation2 + $0x129] sm:$0xff] %vm175_vm2, %v254_v19  ;;  %v787_v37 = vld [vmem:[#allocation2 + $0xaa] sm:$0xff]  ;;  %v663_v18 = vld [vmem:[#allocation2 + $0xd8] sm:$0xff] }
  0x4d   : > { %v434_v8 = vmax.f32 %v370_v59, %v719_v28  ;;  %v371_v9 = vmax.f32 %v1774_v53, %v656_v50  ;;  %v752_v14 = vmax.f32 %v688_v0, %v1764_v30  ;;  %v372_v17 = vmax.f32 %v1784_v60, %v1781_v57  ;;  %288 = vst.msk [vmem:[#allocation2 + $0x139] sm:$0xff] %vm175_vm2, %v255_v20  ;;  %v662_v12 = vld [vmem:[#allocation2 + $0xc8] sm:$0xff]  ;;  %v1875_v20 = vld [vmem:[#allocation2 + $0xf1] sm:$0xff] }
  0x4e   : > { %v815_v13 = vmax.f32 %v751_v62, %v1778_v56  ;;  %v497_v15 = vmax.f32 %v433_v2, %v1762_v36  ;;  %1524 = vmatmul.mubr.msk.f32.gmra.mrb[2].mxu0 %vm175_vm2, %v812_v54  ;;  %v560_v21 = vmax.f32 %v496_v6, %v655_v40  ;;  %v373_v24 = vmax.f32 %v1795_v4, %v1791_v3  ;;  %v262_v40 = vld [vmem:[%s1621_s18 + $0xf8] sm:$0xff]  ;;  %v789_v62 = vld [vmem:[#allocation2 + $0xc2] sm:$0xff] }
  0x4f   : > { %v498_v22 = vmax.f32 %v434_v8, %v1778_v56  ;;  %v435_v23 = vmax.f32 %v371_v9, %v1764_v30  ;;  %1526 = vmatprep.mubr.msk.f32.mxu0 %vm175_vm2, %v813_v61  ;;  %v816_v28 = vmax.f32 %v752_v14, %v1788_v1  ;;  %v436_v31 = vmax.f32 %v372_v17, %v1767_v43  ;;  %v661_v61 = vld [vmem:[#allocation2 + $0xc0] sm:$0xff] }
  0x50   : > { %v561_v29 = vmax.f32 %v497_v15, %v656_v50  ;;  %v374_v32 = vmax.f32 %v1804_v63, %v1793_v58  ;;  %289 = vst.msk [vmem:[#allocation2 + $0x141] sm:$0xff] %vm175_vm2, %v256_v25  ;;  %290 = vst.msk [vmem:[#allocation2 + $0x151] sm:$0xff] %vm175_vm2, %v257_v26  ;;  %v624_v36 = vmax.f32 %v560_v21, %v1778_v56  ;;  %v728_v14 = vld [vmem:[#allocation2 + $0xe1] sm:$0xff] }
  0x51   : > { %291 = vst.msk [vmem:[#allocation2 + $0x159] sm:$0xff] %vm175_vm2, %v258_v27  ;;  %v562_v30 = vmax.f32 %v498_v22, %v1781_v57  ;;  %v499_v38 = vmax.f32 %v435_v23, %v1788_v1  ;;  %v437_v39 = vmax.f32 %v373_v24, %v1774_v53  ;;  %292 = vst.msk [vmem:[#allocation2 + $0x169] sm:$0xff] %vm175_vm2, %v259_v33  ;;  %v664_v25 = vld [vmem:[#allocation2 + $0xe0] sm:$0xff] }
  0x52   : > { %293 = vst.msk [vmem:[#allocation2 + $0x171] sm:$0xff] %vm175_vm2, %v260_v34  ;;  %294 = vst.msk [vmem:[#allocation2 + $0x181] sm:$0xff] %vm175_vm2, %v261_v35  ;;  %v625_v41 = vmax.f32 %v561_v29, %v1788_v1  ;;  %v500_v44 = vmax.f32 %v436_v31, %v1799_v7  ;;  %v438_v42 = vmax.f32 %v374_v32, %v1784_v60  ;;  %1527 = vmatmul.mubr.msk.f32.gmra.mrb[4].mxu0 %vm175_vm2, %v814_v5  ;;  %v665_v31 = vld [vmem:[#allocation2 + $0xf0] sm:$0xff]  ;;  %v791_v35 = vld [vmem:[#allocation2 + $0xda] sm:$0xff] }
  0x53   : > { %v375_v45 = vmax.f32 %v1806_v11, %v1802_v10  ;;  %295 = vst.msk [vmem:[#allocation2 + $0x189] sm:$0xff] %vm175_vm2, %v262_v40  ;;  %v689_v46 = vmax.f32 %v624_v36, %v1781_v57  ;;  %v626_v47 = vmax.f32 %v562_v30, %v1799_v7  ;;  %v563_v48 = vmax.f32 %v499_v38, %v1791_v3  ;;  %v1886_v32 = vld [vmem:[#allocation2 + $0x109] sm:$0xff]  ;;  %v1890_v38 = vld [vmem:[#allocation2 + $0x111] sm:$0xff] }
  0x54   : > { %v501_v50 = vmax.f32 %v437_v39, %v1812_v16  ;;  %1529 = vmatprep.mubr.msk.f32.mxu0 %vm175_vm2, %v815_v13  ;;  %v690_v52 = vmax.f32 %v625_v41, %v1791_v3  ;;  %v564_v54 = vmax.f32 %v500_v44, %v1793_v58  ;;  %v502_v55 = vmax.f32 %v438_v42, %v787_v37  ;;  %v727_v3 = vld [vmem:[#allocation2 + $0xd9] sm:$0xff]  ;;  %v790_v13 = vld [vmem:[#allocation2 + $0xca] sm:$0xff]  ;;  %v1893_v42 = vld [vmem:[#allocation2 + $0x121] sm:$0xff] }
  0x55   : > { %v439_v56 = vmax.f32 %v375_v45, %v1795_v4  ;;  %v753_v51 = vmax.f32 %v689_v46, %v1767_v43  ;;  %v691_v57 = vmax.f32 %v626_v47, %v1793_v58  ;;  %v627_v59 = vmax.f32 %v563_v48, %v1812_v16  ;;  %v792_v47 = vld [vmem:[#allocation2 + $0xe2] sm:$0xff] }
  0x56   : > { %v565_v0 = vmax.f32 %v501_v50, %v1802_v10  ;;  %v754_v1 = vmax.f32 %v690_v52, %v1774_v53  ;;  %v628_v2 = vmax.f32 %v564_v54, %v787_v37  ;;  %v566_v5 = vmax.f32 %v502_v55, %v661_v61  ;;  %1530 = vmatmul.mubr.msk.f32.gmra.mrb[6].mxu0 %vm175_vm2, %v816_v28  ;;  %v793_v50 = vld [vmem:[#allocation2 + $0xf2] sm:$0xff] }
  0x57   : > { %v503_v6 = vmax.f32 %v439_v56, %v788_v49  ;;  %v817_v8 = vmax.f32 %v753_v51, %v1799_v7  ;;  %v755_v43 = vmax.f32 %v691_v57, %v1784_v60  ;;  %v692_v58 = vmax.f32 %v627_v59, %v1802_v10  ;;  %v668_v55 = vld [vmem:[#allocation2 + $0x110] sm:$0xff] }
  0x58   : > { %v629_v9 = vmax.f32 %v565_v0, %v788_v49  ;;  %v818_v15 = vmax.f32 %v754_v1, %v1812_v16  ;;  %v693_v17 = vmax.f32 %v628_v2, %v661_v61  ;;  %v630_v53 = vmax.f32 %v566_v5, %v789_v62  ;;  %v1880_v16 = vld [vmem:[#allocation2 + $0xf9] sm:$0xff]  ;;  %v1898_v51 = vld [vmem:[#allocation2 + $0x129] sm:$0xff] }
  0x59   : > { %v567_v19 = vmax.f32 %v503_v6, %v662_v12  ;;  %1532 = vmatprep.mubr.msk.f32.mxu0 %vm175_vm2, %v817_v8  ;;  %v819_v21 = vmax.f32 %v755_v43, %v787_v37  ;;  %v756_v7 = vmax.f32 %v692_v58, %v1795_v4  ;;  %v376_v22 = vmax.f32 %v727_v3, %v661_v61  ;;  %v666_v37 = vld [vmem:[#allocation2 + $0xf8] sm:$0xff]  ;;  %v795_v5 = vld [vmem:[#allocation2 + $0x10a] sm:$0xff] }
  0x5a   : > { %v694_v60 = vmax.f32 %v629_v9, %v662_v12  ;;  %v757_v10 = vmax.f32 %v693_v17, %v1804_v63  ;;  %v695_v23 = vmax.f32 %v630_v53, %v663_v18  ;;  %v377_v26 = vmax.f32 %v728_v14, %v662_v12  ;;  %1533 = vmatmul.mubr.msk.f32.gmra.mrb[8].mxu0 %vm175_vm2, %v818_v15  ;;  %v794_v61 = vld [vmem:[#allocation2 + $0xfa] sm:$0xff]  ;;  %v796_v15 = vld [vmem:[#allocation2 + $0x112] sm:$0xff] }
  0x5b   : > { %v631_v24 = vmax.f32 %v567_v19, %v790_v13  ;;  %v820_v27 = vmax.f32 %v756_v7, %v788_v49  ;;  %v440_v29 = vmax.f32 %v376_v22, %v1804_v63  ;;  %v378_v4 = vmax.f32 %v1875_v20, %v663_v18  ;;  %1535 = vmatprep.mubr.msk.f32.mxu0 %vm175_vm2, %v819_v21  ;;  %v667_v63 = vld [vmem:[#allocation2 + $0x108] sm:$0xff] }
  0x5c   : > { %v758_v28 = vmax.f32 %v694_v60, %v1806_v11  ;;  %v821_v33 = vmax.f32 %v757_v10, %v789_v62  ;;  %v759_v34 = vmax.f32 %v695_v23, %v727_v3  ;;  %v441_v30 = vmax.f32 %v377_v26, %v1806_v11  ;;  %v669_v10 = vld [vmem:[#allocation2 + $0x120] sm:$0xff] }
  0x5d   : > { %v696_v36 = vmax.f32 %v631_v24, %v664_v25  ;;  %v504_v40 = vmax.f32 %v440_v29, %v789_v62  ;;  %v442_v41 = vmax.f32 %v378_v4, %v727_v3  ;;  %v379_v44 = vmax.f32 %v1880_v16, %v664_v25  ;;  %v797_v23 = vld [vmem:[#allocation2 + $0x122] sm:$0xff] }
  0x5e   : > { %v822_v39 = vmax.f32 %v758_v28, %v790_v13  ;;  %v823_v45 = vmax.f32 %v759_v34, %v791_v35  ;;  %v505_v48 = vmax.f32 %v441_v30, %v790_v13  ;;  %v380_v49 = vmax.f32 %v1886_v32, %v665_v31  ;;  %1536 = vmatmul.mubr.msk.f32.gmra.mrb[10].mxu0 %vm175_vm2, %v820_v27  ;;  %v735_v28 = vld [vmem:[#allocation2 + $0x139] sm:$0xff] }
  0x5f   : > { %v760_v46 = vmax.f32 %v696_v36, %v728_v14  ;;  %v568_v11 = vmax.f32 %v504_v40, %v663_v18  ;;  %v506_v52 = vmax.f32 %v442_v41, %v791_v35  ;;  %v443_v54 = vmax.f32 %v379_v44, %v728_v14  ;;  %1538 = vmatprep.mubr.msk.f32.mxu0 %vm175_vm2, %v821_v33  ;;  %v736_v36 = vld [vmem:[#allocation2 + $0x141] sm:$0xff]  ;;  %v671_v40 = vld [vmem:[#allocation2 + $0x138] sm:$0xff] }
  0x60   : > { %v381_v56 = vmax.f32 %v1890_v38, %v666_v37  ;;  %v569_v59 = vmax.f32 %v505_v48, %v664_v25  ;;  %v444_v62 = vmax.f32 %v380_v49, %v1875_v20  ;;  %v382_v0 = vmax.f32 %v1893_v42, %v667_v63  ;;  %v672_v49 = vld [vmem:[#allocation2 + $0x140] sm:$0xff] }
  0x61   : > { %v824_v57 = vmax.f32 %v760_v46, %v792_v47  ;;  %v632_v1 = vmax.f32 %v568_v11, %v791_v35  ;;  %v570_v2 = vmax.f32 %v506_v52, %v665_v31  ;;  %v507_v3 = vmax.f32 %v443_v54, %v792_v47  ;;  %v670_v35 = vld [vmem:[#allocation2 + $0x128] sm:$0xff] }
  0x62   : > { %v445_v6 = vmax.f32 %v381_v56, %v1880_v16  ;;  %v633_v8 = vmax.f32 %v569_v59, %v792_v47  ;;  %v508_v43 = vmax.f32 %v444_v62, %v793_v50  ;;  %v446_v58 = vmax.f32 %v382_v0, %v1886_v32  ;;  %1539 = vmatmul.mubr.msk.f32.gmra.mrb[12].mxu0 %vm175_vm2, %v822_v39  ;;  %v799_v62 = vld [vmem:[#allocation2 + $0x13a] sm:$0xff] }
  0x63   : > { %v383_v9 = vmax.f32 %v1898_v51, %v668_v55  ;;  %v697_v12 = vmax.f32 %v632_v1, %v665_v31  ;;  %v634_v13 = vmax.f32 %v570_v2, %v793_v50  ;;  %v571_v14 = vmax.f32 %v507_v3, %v666_v37  ;;  %1541 = vmatprep.mubr.msk.f32.mxu0 %vm175_vm2, %v823_v45  ;;  %v674_v2 = vld [vmem:[#allocation2 + $0x158] sm:$0xff] }
  0x64   : > { %v509_v17 = vmax.f32 %v445_v6, %v794_v61  ;;  %v698_v53 = vmax.f32 %v633_v8, %v666_v37  ;;  %v572_v18 = vmax.f32 %v508_v43, %v667_v63  ;;  %v510_v19 = vmax.f32 %v446_v58, %v795_v5  ;;  %v675_v43 = vld [vmem:[#allocation2 + $0x168] sm:$0xff] }
  0x65   : > { %v447_v21 = vmax.f32 %v383_v9, %v1890_v38  ;;  %v761_v7 = vmax.f32 %v697_v12, %v1875_v20  ;;  %v699_v60 = vmax.f32 %v634_v13, %v667_v63  ;;  %v635_v22 = vmax.f32 %v571_v14, %v794_v61  ;;  %v798_v20 = vld [vmem:[#allocation2 + $0x12a] sm:$0xff]  ;;  %v1931_v58 = vld [vmem:[#allocation2 + $0x181] sm:$0xff] }
  0x66   : > { %v573_v24 = vmax.f32 %v509_v17, %v668_v55  ;;  %v762_v25 = vmax.f32 %v698_v53, %v1880_v16  ;;  %v636_v26 = vmax.f32 %v572_v18, %v795_v5  ;;  %v574_v27 = vmax.f32 %v510_v19, %v669_v10  ;;  %1542 = vmatmul.mubr.msk.f32.gmra.mrb[14].mxu0 %vm175_vm2, %v824_v57  ;;  %v1913_v16 = vld [vmem:[#allocation2 + $0x151] sm:$0xff]  ;;  %v1925_v57 = vld [vmem:[#allocation2 + $0x169] sm:$0xff] }
  0x67   : > { %v511_v29 = vmax.f32 %v447_v21, %v796_v15  ;;  %v825_v31 = vmax.f32 %v761_v7, %v793_v50  ;;  %v763_v4 = vmax.f32 %v699_v60, %v1886_v32  ;;  %v700_v33 = vmax.f32 %v635_v22, %v668_v55  ;;  %v1919_v50 = vld [vmem:[#allocation2 + $0x159] sm:$0xff]  ;;  %v800_v13 = vld [vmem:[#allocation2 + $0x142] sm:$0xff]  ;;  %v676_v19 = vld [vmem:[#allocation2 + $0x170] sm:$0xff] }
  0x68   : > { %v637_v34 = vmax.f32 %v573_v24, %v796_v15  ;;  %v826_v30 = vmax.f32 %v762_v25, %v794_v61  ;;  %v701_v37 = vmax.f32 %v636_v26, %v669_v10  ;;  %v638_v39 = vmax.f32 %v574_v27, %v797_v23  ;;  %v801_v17 = vld [vmem:[#allocation2 + $0x152] sm:$0xff]  ;;  %v1937_v7 = vld [vmem:[#allocation2 + $0x189] sm:$0xff] }
  0x69   : > { %v575_v41 = vmax.f32 %v511_v29, %v670_v35  ;;  %1544 = vmatprep.mubr.msk.f32.mxu1 %vm175_vm2, %v825_v31  ;;  %v827_v63 = vmax.f32 %v763_v4, %v795_v5  ;;  %v764_v44 = vmax.f32 %v700_v33, %v1890_v38  ;;  %v384_v46 = vmax.f32 %v735_v28, %v669_v10  ;;  %v673_v38 = vld [vmem:[#allocation2 + $0x150] sm:$0xff]  ;;  %v802_v10 = vld [vmem:[#allocation2 + $0x15a] sm:$0xff] }
  0x6a   : > { %v702_v45 = vmax.f32 %v637_v34, %v670_v35  ;;  %1545 = vmatmul.mubr.msk.f32.vlgmr.msra.gmra.mrb[0].mxu1 %vm175_vm2, %v826_v30  ;;  %v765_v32 = vmax.f32 %v701_v37, %v1893_v42  ;;  %v703_v47 = vmax.f32 %v638_v39, %v671_v40  ;;  %v385_v11 = vmax.f32 %v736_v36, %v670_v35  ;;  %v1928_v5 = vld [vmem:[#allocation2 + $0x171] sm:$0xff]  ;;  %v677_v37 = vld [vmem:[#allocation2 + $0x180] sm:$0xff] }
  0x6b   : > { %v639_v48 = vmax.f32 %v575_v41, %v798_v20  ;;  %1547 = vmatprep.mubr.msk.f32.mxu1 %vm175_vm2, %v827_v63  ;;  %v828_v52 = vmax.f32 %v764_v44, %v796_v15  ;;  %v448_v55 = vmax.f32 %v384_v46, %v1893_v42  ;;  %v386_v56 = vmax.f32 %v1913_v16, %v671_v40  ;;  %v803_v27 = vld [vmem:[#allocation2 + $0x16a] sm:$0xff]  ;;  %v804_v30 = vld [vmem:[#allocation2 + $0x172] sm:$0xff] }
  0x6c   : > { %v766_v54 = vmax.f32 %v702_v45, %v1898_v51  ;;  %v829_v59 = vmax.f32 %v765_v32, %v797_v23  ;;  %v767_v61 = vmax.f32 %v703_v47, %v735_v28  ;;  %v449_v1 = vmax.f32 %v385_v11, %v1898_v51  ;;  %v805_v47 = vld [vmem:[#allocation2 + $0x182] sm:$0xff] }
  0x6d   : > { %v704_v0 = vmax.f32 %v639_v48, %v672_v49  ;;  %v512_v6 = vmax.f32 %v448_v55, %v797_v23  ;;  %v450_v8 = vmax.f32 %v386_v56, %v735_v28  ;;  %v387_v42 = vmax.f32 %v1919_v50, %v672_v49 }
  0x6e   : > { %v830_v3 = vmax.f32 %v766_v54, %v798_v20  ;;  %1548 = vmatmul.mubr.msk.f32.gmra.mrb[2].mxu1 %vm175_vm2, %v828_v52  ;;  %v831_v9 = vmax.f32 %v767_v61, %v799_v62  ;;  %v513_v14 = vmax.f32 %v449_v1, %v798_v20  ;;  %v388_v15 = vmax.f32 %v1925_v57, %v673_v38 }
  0x6f   : > { %v768_v12 = vmax.f32 %v704_v0, %v736_v36  ;;  %1550 = vmatprep.mubr.msk.f32.mxu1 %vm175_vm2, %v829_v59  ;;  %v576_v51 = vmax.f32 %v512_v6, %v671_v40  ;;  %v514_v53 = vmax.f32 %v450_v8, %v799_v62  ;;  %v451_v18 = vmax.f32 %v387_v42, %v736_v36  ;;  %v679_v0 = vld [vmem:[#allocation2 + $0x198] sm:$0xff]  ;;  %v680_v42 = vld [vmem:[#allocation2 + $0x1a0] sm:$0xff] }
  0x70   : > { %v389_v21 = vmax.f32 %v1928_v5, %v674_v2  ;;  %v577_v22 = vmax.f32 %v513_v14, %v672_v49  ;;  %v452_v23 = vmax.f32 %v388_v15, %v1913_v16  ;;  %v390_v24 = vmax.f32 %v1931_v58, %v675_v43  ;;  %v678_v49 = vld [vmem:[#allocation2 + $0x188] sm:$0xff] }
  0x71   : > { %v832_v60 = vmax.f32 %v768_v12, %v800_v13  ;;  %v640_v25 = vmax.f32 %v576_v51, %v799_v62  ;;  %v578_v26 = vmax.f32 %v514_v53, %v673_v38  ;;  %v515_v28 = vmax.f32 %v451_v18, %v800_v13  ;;  %v806_v62 = vld [vmem:[#allocation2 + $0x18a] sm:$0xff]  ;;  %v744_v15 = vld [vmem:[#allocation2 + $0x1a1] sm:$0xff] }
  0x72   : > { %v453_v29 = vmax.f32 %v389_v21, %v1919_v50  ;;  %1551 = vmatmul.mubr.msk.f32.gmra.mrb[4].mxu1 %vm175_vm2, %v830_v3  ;;  %v641_v31 = vmax.f32 %v577_v22, %v800_v13  ;;  %v516_v4 = vmax.f32 %v452_v23, %v801_v17  ;;  %v454_v33 = vmax.f32 %v390_v24, %v1925_v57  ;;  %v807_v53 = vld [vmem:[#allocation2 + $0x19a] sm:$0xff]  ;;  %v808_v21 = vld [vmem:[#allocation2 + $0x1a2] sm:$0xff] }
  0x73   : > { %v391_v34 = vmax.f32 %v1937_v7, %v676_v19  ;;  %1553 = vmatprep.mubr.msk.f32.mxu1 %vm175_vm2, %v831_v9  ;;  %v705_v35 = vmax.f32 %v640_v25, %v673_v38  ;;  %v642_v20 = vmax.f32 %v578_v26, %v801_v17  ;;  %v579_v36 = vmax.f32 %v515_v28, %v674_v2 }
  0x74   : > { %v517_v39 = vmax.f32 %v453_v29, %v802_v10  ;;  %v706_v40 = vmax.f32 %v641_v31, %v674_v2  ;;  %v580_v41 = vmax.f32 %v516_v4, %v675_v43  ;;  %v518_v63 = vmax.f32 %v454_v33, %v803_v27 }
  0x75   : > { %v455_v44 = vmax.f32 %v391_v34, %v1928_v5  ;;  %v769_v45 = vmax.f32 %v705_v35, %v1913_v16  ;;  %v707_v46 = vmax.f32 %v642_v20, %v675_v43  ;;  %v643_v32 = vmax.f32 %v579_v36, %v802_v10  ;;  %v743_v43 = vld [vmem:[#allocation2 + $0x199] sm:$0xff] }
  0x76   : > { %v581_v48 = vmax.f32 %v517_v39, %v676_v19  ;;  %1554 = vmatmul.mubr.msk.f32.gmra.mrb[6].mxu1 %vm175_vm2, %v832_v60  ;;  %v770_v11 = vmax.f32 %v706_v40, %v1919_v50  ;;  %v644_v52 = vmax.f32 %v580_v41, %v803_v27  ;;  %v582_v54 = vmax.f32 %v518_v63, %v677_v37 }
  0x77   : > { %v519_v55 = vmax.f32 %v455_v44, %v804_v30  ;;  %v833_v38 = vmax.f32 %v769_v45, %v801_v17  ;;  %v771_v56 = vmax.f32 %v707_v46, %v1925_v57  ;;  %v708_v59 = vmax.f32 %v643_v32, %v676_v19 }
  0x78   : > { %v645_v61 = vmax.f32 %v581_v48, %v804_v30  ;;  %v834_v16 = vmax.f32 %v770_v11, %v802_v10  ;;  %v709_v1 = vmax.f32 %v644_v52, %v677_v37  ;;  %v646_v2 = vmax.f32 %v582_v54, %v805_v47 }
  0x79   : > { %v583_v3 = vmax.f32 %v519_v55, %v678_v49  ;;  %1556 = vmatprep.mubr.msk.f32.mxu1 %vm175_vm2, %v833_v38  ;;  %v835_v6 = vmax.f32 %v771_v56, %v803_v27  ;;  %v772_v8 = vmax.f32 %v708_v59, %v1928_v5 }
  0x7a   : > { %v710_v50 = vmax.f32 %v645_v61, %v678_v49  ;;  %1557 = vmatmul.mubr.msk.f32.gmra.mrb[8].mxu1 %vm175_vm2, %v834_v16  ;;  %v773_v57 = vmax.f32 %v709_v1, %v1931_v58  ;;  %v711_v9 = vmax.f32 %v646_v2, %v679_v0 }
  0x7b   : > { %v647_v12 = vmax.f32 %v583_v3, %v806_v62  ;;  %1559 = vmatprep.mubr.msk.f32.mxu1 %vm175_vm2, %v835_v6  ;;  %v836_v13 = vmax.f32 %v772_v8, %v804_v30 }
  0x7c   : > { %v774_v14 = vmax.f32 %v710_v50, %v1937_v7  ;;  %v837_v51 = vmax.f32 %v773_v57, %v805_v47  ;;  %v775_v17 = vmax.f32 %v711_v9, %v743_v43 }
  0x7d   : > { %v712_v5 = vmax.f32 %v647_v12, %v680_v42 }
  0x7e   : > { %1560 = vmatmul.mubr.msk.f32.gmra.mrb[10].mxu1 %vm175_vm2, %v836_v13  ;;  %v838_v18 = vmax.f32 %v774_v14, %v806_v62  ;;  %v839_v58 = vmax.f32 %v775_v17, %v807_v53 }
  0x7f   : > { %v776_v19 = vmax.f32 %v712_v5, %v744_v15  ;;  %1562 = vmatprep.mubr.msk.f32.mxu1 %vm175_vm2, %v837_v51 }
  0x81   : > { %v840_v60 = vmax.f32 %v776_v19, %v808_v21 }
  0x82   : > { %1563 = vmatmul.mubr.msk.f32.gmra.mrb[12].mxu1 %vm175_vm2, %v838_v18 }
  0x83   : > { %1565 = vmatprep.mubr.msk.f32.mxu1 %vm175_vm2, %v839_v58 }
  0x86   : > { %1566 = vmatmul.mubr.msk.f32.gmra.mrb[14].mxu1 %vm175_vm2, %v840_v60 }
 0x11d   : > { %v1522_v7 = vpop.f32.mrb[0].mxu0 }
 0x11e   : > { %1169 = vst.msk [vmem:[%s1626_s21 + $0x8] sm:$0xff] %vm1167_vm4, %v1522_v7  ;;  %v1202_v22 = vsel %vm1167_vm4, %v1522_v7, 0.0  ;;  %v1275_v10 = vmul.f32 %v1522_v7, %v1522_v7  ;;  %v1008_v23 = vpop.f32.mrb[1].mxu0 }
 0x11f   : > { %1168 = vst.msk [vmem:[%s1626_s21] sm:$0xff] %vm1167_vm4, %v1008_v23  ;;  %v1201_v24 = vsel %vm1167_vm4, %v1008_v23, 0.0  ;;  %v1274_v25 = vmul.f32 %v1008_v23, %v1008_v23 }
 0x120   : > { %v1307_v26 = vsel %vm1167_vm4, %v1275_v10, 0.0  ;;  %v1203_v27 = vadd.f32 %v1202_v22, %v1201_v24 }
 0x121   : > { %v1306_v28 = vsel %vm1167_vm4, %v1274_v25, 0.0  ;;  %v1525_v29 = vpop.f32.mrb[2].mxu0 }
 0x122   : > { %v1308_v31 = vadd.f32 %v1307_v26, %v1306_v28  ;;  %1171 = vst.msk [vmem:[%s1626_s21 + $0x18] sm:$0xff] %vm1167_vm4, %v1525_v29  ;;  %v1018_v4 = vpop.f32.mrb[3].mxu0  ;;  %v1277_v33 = vmul.f32 %v1525_v29, %v1525_v29  ;;  %v1206_v36 = vsel %vm1167_vm4, %v1525_v29, 0.0 }
 0x123   : > { %1170 = vst.msk [vmem:[%s1626_s21 + $0x10] sm:$0xff] %vm1167_vm4, %v1018_v4  ;;  %v1204_v34 = vsel %vm1167_vm4, %v1018_v4, 0.0  ;;  %v1276_v35 = vmul.f32 %v1018_v4, %v1018_v4 }
 0x124   : > { %v1205_v20 = vadd.f32 %v1204_v34, %v1203_v27  ;;  %v1311_v63 = vsel %vm1167_vm4, %v1277_v33, 0.0 }
 0x125   : > { %v1309_v30 = vsel %vm1167_vm4, %v1276_v35, 0.0  ;;  %v1528_v37 = vpop.f32.mrb[4].mxu0 }
 0x126   : > { %v1310_v39 = vadd.f32 %v1309_v30, %v1308_v31  ;;  %1173 = vst.msk [vmem:[%s1626_s21 + $0x28] sm:$0xff] %vm1167_vm4, %v1528_v37  ;;  %v1028_v40 = vpop.f32.mrb[5].mxu0  ;;  %v1207_v41 = vadd.f32 %v1206_v36, %v1205_v20  ;;  %v1279_v44 = vmul.f32 %v1528_v37, %v1528_v37  ;;  %v1210_v48 = vsel %vm1167_vm4, %v1528_v37, 0.0 }
 0x127   : > { %1172 = vst.msk [vmem:[%s1626_s21 + $0x20] sm:$0xff] %vm1167_vm4, %v1028_v40  ;;  %v1208_v45 = vsel %vm1167_vm4, %v1028_v40, 0.0  ;;  %v1278_v46 = vmul.f32 %v1028_v40, %v1028_v40 }
 0x128   : > { %v1209_v32 = vadd.f32 %v1208_v45, %v1207_v41  ;;  %v1312_v47 = vadd.f32 %v1311_v63, %v1310_v39  ;;  %v1315_v38 = vsel %vm1167_vm4, %v1279_v44, 0.0 }
 0x129   : > { %v1313_v49 = vsel %vm1167_vm4, %v1278_v46, 0.0  ;;  %v1531_v11 = vpop.f32.mrb[6].mxu0 }
 0x12a   : > { %v1314_v52 = vadd.f32 %v1313_v49, %v1312_v47  ;;  %1175 = vst.msk [vmem:[%s1626_s21 + $0x38] sm:$0xff] %vm1167_vm4, %v1531_v11  ;;  %v1038_v54 = vpop.f32.mrb[7].mxu0  ;;  %v1211_v55 = vadd.f32 %v1210_v48, %v1209_v32  ;;  %v1281_v56 = vmul.f32 %v1531_v11, %v1531_v11  ;;  %v1214_v16 = vsel %vm1167_vm4, %v1531_v11, 0.0 }
 0x12b   : > { %1174 = vst.msk [vmem:[%s1626_s21 + $0x30] sm:$0xff] %vm1167_vm4, %v1038_v54  ;;  %v1212_v59 = vsel %vm1167_vm4, %v1038_v54, 0.0  ;;  %v1280_v61 = vmul.f32 %v1038_v54, %v1038_v54 }
 0x12c   : > { %v1213_v62 = vadd.f32 %v1212_v59, %v1211_v55  ;;  %v1316_v0 = vadd.f32 %v1315_v38, %v1314_v52  ;;  %v1319_v50 = vsel %vm1167_vm4, %v1281_v56, 0.0 }
 0x12d   : > { %v1317_v1 = vsel %vm1167_vm4, %v1280_v61, 0.0  ;;  %v1534_v2 = vpop.f32.mrb[8].mxu0 }
 0x12e   : > { %v1318_v3 = vadd.f32 %v1317_v1, %v1316_v0  ;;  %1177 = vst.msk [vmem:[%s1626_s21 + $0x48] sm:$0xff] %vm1167_vm4, %v1534_v2  ;;  %v1048_v6 = vpop.f32.mrb[9].mxu0  ;;  %v1215_v8 = vadd.f32 %v1214_v16, %v1213_v62  ;;  %v1283_v43 = vmul.f32 %v1534_v2, %v1534_v2  ;;  %v1218_v13 = vsel %vm1167_vm4, %v1534_v2, 0.0 }
 0x12f   : > { %1176 = vst.msk [vmem:[%s1626_s21 + $0x40] sm:$0xff] %vm1167_vm4, %v1048_v6  ;;  %v1216_v42 = vsel %vm1167_vm4, %v1048_v6, 0.0  ;;  %v1282_v57 = vmul.f32 %v1048_v6, %v1048_v6 }
 0x130   : > { %v1217_v9 = vadd.f32 %v1216_v42, %v1215_v8  ;;  %v1320_v12 = vadd.f32 %v1319_v50, %v1318_v3  ;;  %v1323_v5 = vsel %vm1167_vm4, %v1283_v43, 0.0 }
 0x131   : > { %v1321_v14 = vsel %vm1167_vm4, %v1282_v57, 0.0  ;;  %v1537_v15 = vpop.f32.mrb[10].mxu0 }
 0x132   : > { %v1322_v51 = vadd.f32 %v1321_v14, %v1320_v12  ;;  %1179 = vst.msk [vmem:[%s1626_s21 + $0x58] sm:$0xff] %vm1167_vm4, %v1537_v15  ;;  %v1058_v17 = vpop.f32.mrb[11].mxu0  ;;  %v1219_v53 = vadd.f32 %v1218_v13, %v1217_v9  ;;  %v1285_v18 = vmul.f32 %v1537_v15, %v1537_v15  ;;  %v1222_v7 = vsel %vm1167_vm4, %v1537_v15, 0.0 }
 0x133   : > { %1178 = vst.msk [vmem:[%s1626_s21 + $0x50] sm:$0xff] %vm1167_vm4, %v1058_v17  ;;  %v1220_v19 = vsel %vm1167_vm4, %v1058_v17, 0.0  ;;  %v1284_v58 = vmul.f32 %v1058_v17, %v1058_v17 }
 0x134   : > { %v1221_v21 = vadd.f32 %v1220_v19, %v1219_v53  ;;  %v1324_v60 = vadd.f32 %v1323_v5, %v1322_v51  ;;  %v1327_v26 = vsel %vm1167_vm4, %v1285_v18, 0.0 }
 0x135   : > { %v1325_v22 = vsel %vm1167_vm4, %v1284_v58, 0.0  ;;  %v1540_v10 = vpop.f32.mrb[12].mxu0 }
 0x136   : > { %v1326_v23 = vadd.f32 %v1325_v22, %v1324_v60  ;;  %1181 = vst.msk [vmem:[%s1626_s21 + $0x68] sm:$0xff] %vm1167_vm4, %v1540_v10  ;;  %v1068_v24 = vpop.f32.mrb[13].mxu0  ;;  %v1223_v25 = vadd.f32 %v1222_v7, %v1221_v21  ;;  %v1287_v27 = vmul.f32 %v1540_v10, %v1540_v10  ;;  %v1226_v33 = vsel %vm1167_vm4, %v1540_v10, 0.0 }
 0x137   : > { %1180 = vst.msk [vmem:[%s1626_s21 + $0x60] sm:$0xff] %vm1167_vm4, %v1068_v24  ;;  %v1224_v28 = vsel %vm1167_vm4, %v1068_v24, 0.0  ;;  %v1286_v29 = vmul.f32 %v1068_v24, %v1068_v24 }
 0x138   : > { %v1225_v31 = vadd.f32 %v1224_v28, %v1223_v25  ;;  %v1328_v4 = vadd.f32 %v1327_v26, %v1326_v23  ;;  %v1331_v37 = vsel %vm1167_vm4, %v1287_v27, 0.0 }
 0x139   : > { %v1329_v34 = vsel %vm1167_vm4, %v1286_v29, 0.0  ;;  %v1543_v35 = vpop.f32.mrb[14].mxu0 }
 0x13a   : > { %v1330_v20 = vadd.f32 %v1329_v34, %v1328_v4  ;;  %1183 = vst.msk [vmem:[%s1626_s21 + $0x78] sm:$0xff] %vm1167_vm4, %v1543_v35  ;;  %v1078_v36 = vpop.f32.mrb[15].mxu0  ;;  %v1227_v30 = vadd.f32 %v1226_v33, %v1225_v31  ;;  %v1289_v39 = vmul.f32 %v1543_v35, %v1543_v35  ;;  %v1230_v46 = vsel %vm1167_vm4, %v1543_v35, 0.0 }
 0x13b   : > { %1182 = vst.msk [vmem:[%s1626_s21 + $0x70] sm:$0xff] %vm1167_vm4, %v1078_v36  ;;  %v1228_v40 = vsel %vm1167_vm4, %v1078_v36, 0.0  ;;  %v1288_v41 = vmul.f32 %v1078_v36, %v1078_v36 }
 0x13c   : > { %v1229_v63 = vadd.f32 %v1228_v40, %v1227_v30  ;;  %v1332_v44 = vadd.f32 %v1331_v37, %v1330_v20  ;;  %v1335_v54 = vsel %vm1167_vm4, %v1289_v39, 0.0 }
 0x13d   : > { %v1546_v45 = vpop.f32.mrb[0].mxu1  ;;  %v1333_v32 = vsel %vm1167_vm4, %v1288_v41, 0.0 }
 0x13e   : > { %1185 = vst.msk [vmem:[%s1626_s21 + $0x88] sm:$0xff] %vm1167_vm4, %v1546_v45  ;;  %v1088_v47 = vpop.f32.mrb[1].mxu1  ;;  %v1231_v48 = vadd.f32 %v1230_v46, %v1229_v63  ;;  %v1334_v49 = vadd.f32 %v1333_v32, %v1332_v44  ;;  %v1291_v55 = vmul.f32 %v1546_v45, %v1546_v45  ;;  %v1234_v62 = vsel %vm1167_vm4, %v1546_v45, 0.0 }
 0x13f   : > { %1184 = vst.msk [vmem:[%s1626_s21 + $0x80] sm:$0xff] %vm1167_vm4, %v1088_v47  ;;  %v1232_v11 = vsel %vm1167_vm4, %v1088_v47, 0.0  ;;  %v1290_v52 = vmul.f32 %v1088_v47, %v1088_v47 }
 0x140   : > { %v1336_v38 = vadd.f32 %v1335_v54, %v1334_v49  ;;  %v1233_v56 = vadd.f32 %v1232_v11, %v1231_v48  ;;  %v1339_v6 = vsel %vm1167_vm4, %v1291_v55, 0.0 }
 0x141   : > { %v1337_v59 = vsel %vm1167_vm4, %v1290_v52, 0.0  ;;  %v1549_v61 = vpop.f32.mrb[2].mxu1 }
 0x142   : > { %1187 = vst.msk [vmem:[%s1626_s21 + $0x98] sm:$0xff] %vm1167_vm4, %v1549_v61  ;;  %v1098_v0 = vpop.f32.mrb[3].mxu1  ;;  %v1338_v16 = vadd.f32 %v1337_v59, %v1336_v38  ;;  %v1235_v1 = vadd.f32 %v1234_v62, %v1233_v56  ;;  %v1293_v8 = vmul.f32 %v1549_v61, %v1549_v61  ;;  %v1238_v9 = vsel %vm1167_vm4, %v1549_v61, 0.0 }
 0x143   : > { %1186 = vst.msk [vmem:[%s1626_s21 + $0x90] sm:$0xff] %vm1167_vm4, %v1098_v0  ;;  %v1236_v2 = vsel %vm1167_vm4, %v1098_v0, 0.0  ;;  %v1292_v3 = vmul.f32 %v1098_v0, %v1098_v0 }
 0x144   : > { %v1237_v50 = vadd.f32 %v1236_v2, %v1235_v1  ;;  %v1340_v43 = vadd.f32 %v1339_v6, %v1338_v16  ;;  %v1343_v17 = vsel %vm1167_vm4, %v1293_v8, 0.0 }
 0x145   : > { %v1341_v42 = vsel %vm1167_vm4, %v1292_v3, 0.0  ;;  %v1552_v57 = vpop.f32.mrb[4].mxu1 }
 0x146   : > { %1189 = vst.msk [vmem:[%s1626_s21 + $0xa8] sm:$0xff] %vm1167_vm4, %v1552_v57  ;;  %v1108_v12 = vpop.f32.mrb[5].mxu1  ;;  %v1342_v13 = vadd.f32 %v1341_v42, %v1340_v43  ;;  %v1239_v14 = vadd.f32 %v1238_v9, %v1237_v50  ;;  %v1295_v53 = vmul.f32 %v1552_v57, %v1552_v57  ;;  %v1242_v21 = vsel %vm1167_vm4, %v1552_v57, 0.0 }
 0x147   : > { %1188 = vst.msk [vmem:[%s1626_s21 + $0xa0] sm:$0xff] %vm1167_vm4, %v1108_v12  ;;  %v1240_v15 = vsel %vm1167_vm4, %v1108_v12, 0.0  ;;  %v1294_v51 = vmul.f32 %v1108_v12, %v1108_v12 }
 0x148   : > { %v1241_v5 = vadd.f32 %v1240_v15, %v1239_v14  ;;  %v1344_v18 = vadd.f32 %v1343_v17, %v1342_v13  ;;  %v1347_v24 = vsel %vm1167_vm4, %v1295_v53, 0.0 }
 0x149   : > { %v1345_v19 = vsel %vm1167_vm4, %v1294_v51, 0.0  ;;  %v1555_v58 = vpop.f32.mrb[6].mxu1 }
 0x14a   : > { %1191 = vst.msk [vmem:[%s1626_s21 + $0xb8] sm:$0xff] %vm1167_vm4, %v1555_v58  ;;  %v1118_v60 = vpop.f32.mrb[7].mxu1  ;;  %v1346_v7 = vadd.f32 %v1345_v19, %v1344_v18  ;;  %v1243_v22 = vadd.f32 %v1242_v21, %v1241_v5  ;;  %v1297_v25 = vmul.f32 %v1555_v58, %v1555_v58  ;;  %v1246_v31 = vsel %vm1167_vm4, %v1555_v58, 0.0 }
 0x14b   : > { %1190 = vst.msk [vmem:[%s1626_s21 + $0xb0] sm:$0xff] %vm1167_vm4, %v1118_v60  ;;  %v1244_v10 = vsel %vm1167_vm4, %v1118_v60, 0.0  ;;  %v1296_v23 = vmul.f32 %v1118_v60, %v1118_v60 }
 0x14c   : > { %v1245_v26 = vadd.f32 %v1244_v10, %v1243_v22  ;;  %v1348_v27 = vadd.f32 %v1347_v24, %v1346_v7  ;;  %v1351_v36 = vsel %vm1167_vm4, %v1297_v25, 0.0 }
 0x14d   : > { %v1349_v28 = vsel %vm1167_vm4, %v1296_v23, 0.0  ;;  %v1558_v29 = vpop.f32.mrb[8].mxu1 }
 0x14e   : > { %1193 = vst.msk [vmem:[%s1626_s21 + $0xc8] sm:$0xff] %vm1167_vm4, %v1558_v29  ;;  %v1128_v4 = vpop.f32.mrb[9].mxu1  ;;  %v1350_v33 = vadd.f32 %v1349_v28, %v1348_v27  ;;  %v1247_v34 = vadd.f32 %v1246_v31, %v1245_v26  ;;  %v1299_v30 = vmul.f32 %v1558_v29, %v1558_v29  ;;  %v1250_v63 = vsel %vm1167_vm4, %v1558_v29, 0.0  ;;  %v1200_v27 = vld [vmem:[%s2108_s3] sm:$0x1] }
 0x14f   : > { %1192 = vst.msk [vmem:[%s1626_s21 + $0xc0] sm:$0xff] %vm1167_vm4, %v1128_v4  ;;  %v1248_v35 = vsel %vm1167_vm4, %v1128_v4, 0.0  ;;  %v1298_v20 = vmul.f32 %v1128_v4, %v1128_v4  ;;  %v1273_v31 = vld [vmem:[%s2108_s3 + $0x1] sm:$0x1] }
 0x150   : > { %v1249_v37 = vadd.f32 %v1248_v35, %v1247_v34  ;;  %v1352_v39 = vadd.f32 %v1351_v36, %v1350_v33  ;;  %v1355_v48 = vsel %vm1167_vm4, %v1299_v30, 0.0 }
 0x151   : > { %v1353_v40 = vsel %vm1167_vm4, %v1298_v20, 0.0  ;;  %v1561_v41 = vpop.f32.mrb[10].mxu1 }
 0x152   : > { %1195 = vst.msk [vmem:[%s1626_s21 + $0xd8] sm:$0xff] %vm1167_vm4, %v1561_v41  ;;  %v1138_v44 = vpop.f32.mrb[11].mxu1  ;;  %v1354_v45 = vadd.f32 %v1353_v40, %v1352_v39  ;;  %v1251_v46 = vadd.f32 %v1250_v63, %v1249_v37  ;;  %v1301_v49 = vmul.f32 %v1561_v41, %v1561_v41  ;;  %v1254_v38 = vsel %vm1167_vm4, %v1561_v41, 0.0 }
 0x153   : > { %1194 = vst.msk [vmem:[%s1626_s21 + $0xd0] sm:$0xff] %vm1167_vm4, %v1138_v44  ;;  %v1252_v32 = vsel %vm1167_vm4, %v1138_v44, 0.0  ;;  %v1300_v47 = vmul.f32 %v1138_v44, %v1138_v44 }
 0x154   : > { %v1253_v11 = vadd.f32 %v1252_v32, %v1251_v46  ;;  %v1356_v52 = vadd.f32 %v1355_v48, %v1354_v45  ;;  %v1359_v16 = vsel %vm1167_vm4, %v1301_v49, 0.0 }
 0x155   : > { %v1357_v54 = vsel %vm1167_vm4, %v1300_v47, 0.0  ;;  %v1564_v55 = vpop.f32.mrb[12].mxu1 }
 0x156   : > { %1197 = vst.msk [vmem:[%s1626_s21 + $0xe8] sm:$0xff] %vm1167_vm4, %v1564_v55  ;;  %v1148_v56 = vpop.f32.mrb[13].mxu1  ;;  %v1358_v59 = vadd.f32 %v1357_v54, %v1356_v52  ;;  %v1255_v61 = vadd.f32 %v1254_v38, %v1253_v11  ;;  %v1303_v1 = vmul.f32 %v1564_v55, %v1564_v55  ;;  %v1258_v50 = vsel %vm1167_vm4, %v1564_v55, 0.0 }
 0x157   : > { %1196 = vst.msk [vmem:[%s1626_s21 + $0xe0] sm:$0xff] %vm1167_vm4, %v1148_v56  ;;  %v1256_v62 = vsel %vm1167_vm4, %v1148_v56, 0.0  ;;  %v1302_v0 = vmul.f32 %v1148_v56, %v1148_v56 }
 0x158   : > { %v1257_v2 = vadd.f32 %v1256_v62, %v1255_v61  ;;  %v1360_v3 = vadd.f32 %v1359_v16, %v1358_v59  ;;  %v1363_v14 = vsel %vm1167_vm4, %v1303_v1, 0.0 }
 0x159   : > { %v1361_v6 = vsel %vm1167_vm4, %v1302_v0, 0.0  ;;  %v1567_v8 = vpop.f32.mrb[14].mxu1 }
 0x15a   : > { %1199 = vst.msk [vmem:[%s1626_s21 + $0xf8] sm:$0xff] %vm1167_vm4, %v1567_v8  ;;  %v1305_v43 = vmul.f32 %v1567_v8, %v1567_v8  ;;  %v1158_v42 = vpop.f32.mrb[15].mxu1  ;;  %v1362_v57 = vadd.f32 %v1361_v6, %v1360_v3  ;;  %v1259_v9 = vadd.f32 %v1258_v50, %v1257_v2  ;;  %v1262_v5 = vsel %vm1167_vm4, %v1567_v8, 0.0 }
 0x15b   : > { %1198 = vst.msk [vmem:[%s1626_s21 + $0xf0] sm:$0xff] %vm1167_vm4, %v1158_v42  ;;  %v1260_v12 = vsel %vm1167_vm4, %v1158_v42, 0.0  ;;  %v1304_v13 = vmul.f32 %v1158_v42, %v1158_v42 }
 0x15c   : > { %v1367_v15 = vsel %vm1167_vm4, %v1305_v43, 0.0  ;;  %v1261_v51 = vadd.f32 %v1260_v12, %v1259_v9  ;;  %v1364_v17 = vadd.f32 %v1363_v14, %v1362_v57 }
 0x15d   : > { %v1365_v53 = vsel %vm1167_vm4, %v1304_v13, 0.0 }
 0x15e   : > { %v1263_v18 = vadd.f32 %v1262_v5, %v1261_v51  ;;  %v1366_v19 = vadd.f32 %v1365_v53, %v1364_v17 }
 0x160   : > { %v1264_v58 = vrot.slane %v1263_v18, 4  ;;  %v1368_v21 = vadd.f32 %v1367_v15, %v1366_v19 }
 0x162   : > { %v1265_v60 = vadd.f32 %v1264_v58, %v1263_v18  ;;  %v1369_v7 = vrot.slane %v1368_v21, 4 }
 0x164   : > { %v1266_v22 = vrot.slane %v1265_v60, 2  ;;  %v1370_v10 = vadd.f32 %v1369_v7, %v1368_v21 }
 0x166   : > { %v1267_v23 = vadd.f32 %v1266_v22, %v1265_v60  ;;  %v1371_v24 = vrot.slane %v1370_v10, 2 }
 0x168   : > { %v1268_v25 = vrot.slane %v1267_v23, 1  ;;  %v1372_v26 = vadd.f32 %v1371_v24, %v1370_v10 }
 0x16a   : > { %v1269_v28 = vadd.f32 %v1268_v25, %v1267_v23  ;;  %v1373_v29 = vrot.slane %v1372_v26, 1 }
 0x16c   : > { %v1270_v4 = vadd.f32 %v1269_v28, %v1200_v27  ;;  %v1374_v33 = vadd.f32 %v1373_v29, %v1372_v26 }
 0x16e   : > { %1272 = vst.msk [vmem:[%s2108_s3] sm:$0x1] %vm1271_vm5, %v1270_v4  ;;  %v1375_v34 = vadd.f32 %v1374_v33, %v1273_v31 }
 0x170   : > { %1376 = vst.msk [vmem:[%s2108_s3 + $0x1] sm:$0x1] %vm1271_vm5, %v1375_v34 }
 0x171 PF: > { %s14_s12 = sadd.s32 1, %s1586_s12  }
 0x172   : > { %p11_p5 = scmp.ge.s32.totalorder %s14_s12, 4  }
 0x174   :  { %13 = sbr.rel (!%p11_p5) target bundleno = 1 (0x1), region = 72 }

// kernel: inception_forward.9
= control target key start
LH: loop header
LB: loop body
LE: loop exit
PB: predicated region body
PF: predicated region fallthrough
CT: control target
= control target key end

     0   :  { %s5964_s18 = smov 0   ;;  %s7550_s0 = inlined_call_operand.vmem [shape: f32[2,16,16,8], index: 0, kind: input, shape index: {}]   ;;  %s7551_s1 = inlined_call_operand.vmem [shape: f32[3,3,8,8], index: 1, kind: input, shape index: {}]   ;;  %s7552_s2 = inlined_call_operand.vmem [shape: f32[1,8], index: 2, kind: input, shape index: {}]   ;;  %s7553_s3 = inlined_call_operand.vmem [shape: f32[1,8], index: 3, kind: input, shape index: {}]   ;;  %s7554_s4 = inlined_call_operand.vmem [shape: f32[2,16,16,8], index: 4, kind: output, shape index: {0}]   ;;  %s7555_s5 = inlined_call_operand.vmem [shape: f32[2,8], index: 5, kind: output, shape index: {1}]  }
   0x1 LB: > { %s4853_s19 = sadd.s32 4294967295, %s5930_s18   ;;  %p4857_p0 = scmp.ge.s32.totalorder %s5930_s18, 1  ;;  %s5930_s18 = sphi %s5964_s18, %s16_s18  }
   0x2   : > { %p185_p1 = scmp.lt.s32.totalorder %s5930_s18, 3 }
   0x4   : > { %p186_p2 = pnand %p4857_p0, %p185_p1 }
   0x6   : > { %189 = sbr.rel (%p186_p2) target bundleno = 616 (0x268), region = 36 }
   0xd   : > { %p213_p3 = scmp.lt.s32.totalorder %s4853_s19, 1  ;;  %p4862_p4 = scmp.ne.s32.totalorder %s4853_s19, 0 }
   0xe   : > { %vm227_vm0 = vcmask (!%p4862_p4), 58368   ;;  %v5932_v0 = vmov (!%p4862_p4), 0.0  }
   0xf   : > { %s214_s20 = scalar_select %p213_p3, %s4853_s19, 1 }
  0x10   : > { %226 = sbr.rel (%p4862_p4) target bundleno = 23 (0x17), region = 40  ;;  %228 = vst.msk [vmem:[%s7555_s5] sm:$0x3] (!%p4862_p4), %vm227_vm0, %v5932_v0 }
  0x11   : > { %s5163_s21 = sshll.u32 %s214_s20, 8 }
  0x12   : > { %s5975_s24 = scalar_lea.vmem %s7550_s0, %s5163_s21  ;;  %s5980_s27 = scalar_lea.vmem %s7554_s4, %s5163_s21 }
  0x17 PF: > { %v5988_v1 = vld [vmem:[%s7551_s1] sm:$0xff]  ;;  %v243_v2 = vld [vmem:[%s5975_s24 + $0x70] sm:$0xff]  ;;  %vm371_vm1 = vcmask 64512   ;;  %v5933_v6 = vmov 0.0   ;;  %v6144_v7 = vld [vmem:[%s7551_s1 + $0x8] sm:$0xff]  ;;  %vm374_vm2 = vcmask 58368  }
  0x18   : > { %v5994_v3 = vld [vmem:[%s7552_s2] ss:$0 sm:$0xff]  ;;  %5912 = vmatprep.subr.mxu1 %v5988_v1  ;;  %397 = vst.msk [vmem:[#allocation2 + $0xc0] sm:$0xff] %vm371_vm1, %v5933_v6  ;;  %398 = vst.msk [vmem:[#allocation2 + $0xc8] sm:$0xff] %vm371_vm1, %v5933_v6  ;;  %v244_v8 = vld [vmem:[%s5975_s24 + $0x78] sm:$0xff]  ;;  %5462 = vmatprep.subr.mxu0 %v5988_v1  ;;  %vm4686_vm3 = vcmask 57344  }
  0x19   : > { %v5998_v4 = vmul.f32 %v5994_v3, %v243_v2  ;;  %v6003_v5 = vld [vmem:[%s7553_s3] ss:$0 sm:$0xff]  ;;  %372 = vst.msk [vmem:[#allocation2] sm:$0xff] %vm371_vm1, %v5933_v6  ;;  %373 = vst.msk [vmem:[#allocation2 + $0x8] sm:$0xff] %vm371_vm1, %v5933_v6  ;;  %5913 = vmatpush3.msra.mxu1 %v5988_v1  ;;  %v283_v9 = vmul.f32 %v5994_v3, %v244_v8  ;;  %v246_v11 = vld [vmem:[%s5975_s24 + $0x88] sm:$0xff]  ;;  %5463 = vmatpush3.msra.mxu0 %v5988_v1 }
  0x1a   : > { %376 = vst.msk [vmem:[#allocation2 + $0x18] sm:$0xff] %vm371_vm1, %v5933_v6  ;;  %377 = vst.msk [vmem:[#allocation2 + $0x20] sm:$0xff] %vm371_vm1, %v5933_v6  ;;  %v245_v10 = vld [vmem:[%s5975_s24 + $0x80] sm:$0xff]  ;;  %v247_v12 = vld [vmem:[%s5975_s24 + $0x90] sm:$0xff]  ;;  %5512 = vmatprep.subr.mxu1 %v6144_v7  ;;  %v285_v15 = vmul.f32 %v5994_v3, %v246_v11 }
  0x1b   : > { %379 = vst.msk [vmem:[#allocation2 + $0x30] sm:$0xff] %vm371_vm1, %v5933_v6  ;;  %380 = vst.msk [vmem:[#allocation2 + $0x38] sm:$0xff] %vm371_vm1, %v5933_v6  ;;  %v321_v13 = vadd.f32 %v6003_v5, %v5998_v4  ;;  %v284_v14 = vmul.f32 %v5994_v3, %v245_v10  ;;  %v286_v16 = vmul.f32 %v5994_v3, %v247_v12  ;;  %v248_v17 = vld [vmem:[%s5975_s24 + $0x98] sm:$0xff]  ;;  %v4930_v18 = vld [vmem:[%s7551_s1 + $0x10] sm:$0xff] }
  0x1c   : > { %382 = vst.msk [vmem:[#allocation2 + $0x48] sm:$0xff] %vm371_vm1, %v5933_v6  ;;  %383 = vst.msk [vmem:[#allocation2 + $0x50] sm:$0xff] %vm371_vm1, %v5933_v6  ;;  %v249_v19 = vld [vmem:[%s5975_s24 + $0xa0] sm:$0xff]  ;;  %v322_v20 = vadd.f32 %v6003_v5, %v283_v9  ;;  %v287_v21 = vmul.f32 %v5994_v3, %v248_v17  ;;  %5562 = vmatprep.subr.mxu0 %v4930_v18  ;;  %v250_v24 = vld [vmem:[%s5975_s24 + $0xa8] sm:$0xff]  ;;  %v324_v27 = vadd.f32 %v6003_v5, %v285_v15 }
  0x1d   : > { %385 = vst.msk [vmem:[#allocation2 + $0x60] sm:$0xff] %vm371_vm1, %v5933_v6  ;;  %386 = vst.msk [vmem:[#allocation2 + $0x68] sm:$0xff] %vm371_vm1, %v5933_v6  ;;  %v288_v22 = vmul.f32 %v5994_v3, %v249_v19  ;;  %v229_v23 = vld [vmem:[%s5975_s24] sm:$0xff]  ;;  %v353_v25 = vmax.f32 %v321_v13, 0.0  ;;  %v323_v26 = vadd.f32 %v6003_v5, %v284_v14  ;;  %v325_v28 = vadd.f32 %v6003_v5, %v286_v16  ;;  %v230_v29 = vld [vmem:[%s5975_s24 + $0x8] sm:$0xff] }
  0x1e   : > { %388 = vst.msk [vmem:[#allocation2 + $0x78] sm:$0xff] %vm371_vm1, %v5933_v6  ;;  %389 = vst.msk [vmem:[#allocation2 + $0x80] sm:$0xff] %vm371_vm1, %v5933_v6  ;;  %v354_v30 = vmax.f32 %v322_v20, 0.0  ;;  %v326_v31 = vadd.f32 %v6003_v5, %v287_v21  ;;  %v268_v33 = vmul.f32 %v5994_v3, %v229_v23  ;;  %v251_v34 = vld [vmem:[%s5975_s24 + $0xb0] sm:$0xff]  ;;  %v252_v36 = vld [vmem:[%s5975_s24 + $0xb8] sm:$0xff]  ;;  %v356_v38 = vmax.f32 %v324_v27, 0.0 }
  0x1f   : > { %391 = vst.msk [vmem:[#allocation2 + $0x90] sm:$0xff] %vm371_vm1, %v5933_v6  ;;  %392 = vst.msk [vmem:[#allocation2 + $0x98] sm:$0xff] %vm371_vm1, %v5933_v6  ;;  %v327_v32 = vadd.f32 %v6003_v5, %v288_v22  ;;  %v231_v35 = vld [vmem:[%s5975_s24 + $0x10] sm:$0xff]  ;;  %v355_v37 = vmax.f32 %v323_v26, 0.0  ;;  %v357_v39 = vmax.f32 %v325_v28, 0.0  ;;  %v289_v40 = vmul.f32 %v5994_v3, %v250_v24  ;;  %v232_v41 = vld [vmem:[%s5975_s24 + $0x18] sm:$0xff] }
  0x20   : > { %394 = vst.msk [vmem:[#allocation2 + $0xa8] sm:$0xff] %vm371_vm1, %v5933_v6  ;;  %395 = vst.msk [vmem:[#allocation2 + $0xb0] sm:$0xff] %vm371_vm1, %v5933_v6  ;;  %v253_v42 = vld [vmem:[%s5975_s24 + $0xc0] sm:$0xff]  ;;  %v358_v44 = vmax.f32 %v326_v31, 0.0  ;;  %v493_v45 = vld [vmem:[#allocation2 + $0x8] sm:$0xff]  ;;  %v307_v47 = vadd.f32 %v6003_v5, %v268_v33  ;;  %v269_v48 = vmul.f32 %v5994_v3, %v230_v29  ;;  %v290_v50 = vmul.f32 %v5994_v3, %v251_v34 }
  0x21   : > { %400 = vst.msk [vmem:[#allocation2 + $0xd8] sm:$0xff] %vm371_vm1, %v5933_v6  ;;  %401 = vst.msk [vmem:[#allocation2 + $0xe0] sm:$0xff] %vm371_vm1, %v5933_v6  ;;  %v492_v43 = vld [vmem:[#allocation2] sm:$0xff]  ;;  %v359_v46 = vmax.f32 %v327_v32, 0.0  ;;  %v328_v49 = vadd.f32 %v6003_v5, %v289_v40  ;;  %v270_v51 = vmul.f32 %v5994_v3, %v231_v35  ;;  %v291_v52 = vmul.f32 %v5994_v3, %v252_v36  ;;  %v254_v58 = vld [vmem:[%s5975_s24 + $0xc8] sm:$0xff] }
  0x22   : > { %403 = vst.msk [vmem:[#allocation2 + $0xf0] sm:$0xff] %vm371_vm1, %v5933_v6  ;;  %404 = vst.msk [vmem:[#allocation2 + $0xf8] sm:$0xff] %vm371_vm1, %v5933_v6  ;;  %5464 = vmatprep.mubr.msk.f32.mxu0 %vm371_vm1, %v492_v43  ;;  %v233_v53 = vld [vmem:[%s5975_s24 + $0x20] sm:$0xff]  ;;  %v339_v54 = vmax.f32 %v307_v47, 0.0  ;;  %v308_v55 = vadd.f32 %v6003_v5, %v269_v48  ;;  %v271_v56 = vmul.f32 %v5994_v3, %v232_v41  ;;  %v234_v63 = vld [vmem:[%s5975_s24 + $0x28] sm:$0xff] }
  0x23   : > { %406 = vst.msk [vmem:[#allocation2 + $0x108] sm:$0xff] %vm371_vm1, %v5933_v6  ;;  %407 = vst.msk [vmem:[#allocation2 + $0x110] sm:$0xff] %vm371_vm1, %v5933_v6  ;;  %5465 = vmatmul.mubr.msk.f32.vlgmr.msra.gmra.mrb[0].mxu0 %vm371_vm1, %v493_v45  ;;  %v292_v57 = vmul.f32 %v5994_v3, %v253_v42  ;;  %v360_v59 = vmax.f32 %v328_v49, 0.0  ;;  %v329_v60 = vadd.f32 %v6003_v5, %v290_v50  ;;  %v235_v8 = vld [vmem:[%s5975_s24 + $0x30] sm:$0xff]  ;;  %v256_v9 = vld [vmem:[%s5975_s24 + $0xd8] sm:$0xff] }
  0x24   : > { %409 = vst.msk [vmem:[#allocation2 + $0x120] sm:$0xff] %vm371_vm1, %v5933_v6  ;;  %410 = vst.msk [vmem:[#allocation2 + $0x128] sm:$0xff] %vm371_vm1, %v5933_v6  ;;  %5563 = vmatpush3.msra.mxu0 %v4930_v18  ;;  %v309_v61 = vadd.f32 %v6003_v5, %v270_v51  ;;  %v330_v62 = vadd.f32 %v6003_v5, %v291_v52  ;;  %v340_v0 = vmax.f32 %v308_v55, 0.0  ;;  %v236_v14 = vld [vmem:[%s5975_s24 + $0x38] sm:$0xff]  ;;  %v257_v15 = vld [vmem:[%s5975_s24 + $0xe0] sm:$0xff] }
  0x25   : > { %412 = vst.msk [vmem:[#allocation2 + $0x138] sm:$0xff] %vm371_vm1, %v5933_v6  ;;  %413 = vst.msk [vmem:[#allocation2 + $0x140] sm:$0xff] %vm371_vm1, %v5933_v6  ;;  %v310_v1 = vadd.f32 %v6003_v5, %v271_v56  ;;  %v331_v2 = vadd.f32 %v6003_v5, %v292_v57  ;;  %v272_v4 = vmul.f32 %v5994_v3, %v233_v53  ;;  %v361_v10 = vmax.f32 %v329_v60, 0.0  ;;  %v6262_v21 = vld [vmem:[%s7551_s1 + $0x20] sm:$0xff]  ;;  %v6279_v28 = vld [vmem:[%s7551_s1 + $0x18] sm:$0xff] }
  0x26   : > { %415 = vst.msk [vmem:[#allocation2 + $0x150] sm:$0xff] %vm371_vm1, %v5933_v6  ;;  %416 = vst.msk [vmem:[#allocation2 + $0x158] sm:$0xff] %vm371_vm1, %v5933_v6  ;;  %v341_v11 = vmax.f32 %v309_v61, 0.0  ;;  %v362_v12 = vmax.f32 %v330_v62, 0.0  ;;  %v293_v13 = vmul.f32 %v5994_v3, %v254_v58  ;;  %v273_v20 = vmul.f32 %v5994_v3, %v234_v63  ;;  %v237_v27 = vld [vmem:[%s5975_s24 + $0x40] sm:$0xff]  ;;  %v258_v34 = vld [vmem:[%s5975_s24 + $0xe8] sm:$0xff]  ;;  %5662 = vmatprep.subr.mxu0 %v6262_v21 }
  0x27   : > { %418 = vst.msk [vmem:[#allocation2 + $0x168] sm:$0xff] %vm371_vm1, %v5933_v6  ;;  %419 = vst.msk [vmem:[#allocation2 + $0x170] sm:$0xff] %vm371_vm1, %v5933_v6  ;;  %v342_v17 = vmax.f32 %v310_v1, 0.0  ;;  %v363_v18 = vmax.f32 %v331_v2, 0.0  ;;  %v311_v19 = vadd.f32 %v6003_v5, %v272_v4  ;;  %v295_v26 = vmul.f32 %v5994_v3, %v256_v9  ;;  %v238_v40 = vld [vmem:[%s5975_s24 + $0x48] sm:$0xff]  ;;  %v239_v41 = vld [vmem:[%s5975_s24 + $0x50] sm:$0xff] }
  0x28   : > { %421 = vst.msk [vmem:[#allocation2 + $0x180] sm:$0xff] %vm371_vm1, %v5933_v6  ;;  %422 = vst.msk [vmem:[#allocation2 + $0x188] sm:$0xff] %vm371_vm1, %v5933_v6  ;;  %v332_v23 = vadd.f32 %v6003_v5, %v293_v13  ;;  %v312_v31 = vadd.f32 %v6003_v5, %v273_v20  ;;  %v275_v32 = vmul.f32 %v5994_v3, %v236_v14  ;;  %v241_v47 = vld [vmem:[%s5975_s24 + $0x60] sm:$0xff]  ;;  %v242_v53 = vld [vmem:[%s5975_s24 + $0x68] sm:$0xff] }
  0x29   : > { %424 = vst.msk [vmem:[#allocation2 + $0x198] sm:$0xff] %vm371_vm1, %v5933_v6  ;;  %425 = vst.msk [vmem:[#allocation2 + $0x1a0] sm:$0xff] %vm371_vm1, %v5933_v6  ;;  %v296_v33 = vmul.f32 %v5994_v3, %v257_v15  ;;  %v276_v45 = vmul.f32 %v5994_v3, %v237_v27  ;;  %v297_v52 = vmul.f32 %v5994_v3, %v258_v34 }
  0x2a   : > { %460 = vst.msk [vmem:[#allocation3] sm:$0xff] %vm371_vm1, %v5933_v6  ;;  %461 = vst.msk [vmem:[#allocation3 + $0x8] sm:$0xff] %vm371_vm1, %v5933_v6  ;;  %v364_v36 = vmax.f32 %v332_v23, 0.0  ;;  %v314_v43 = vadd.f32 %v6003_v5, %v275_v32  ;;  %v277_v57 = vmul.f32 %v5994_v3, %v238_v40  ;;  %v278_v61 = vmul.f32 %v5994_v3, %v239_v41 }
  0x2b   : > { %462 = vst.msk [vmem:[#allocation3 + $0x10] sm:$0xff] %vm371_vm1, %v5933_v6  ;;  %463 = vst.msk [vmem:[#allocation3 + $0x18] sm:$0xff] %vm371_vm1, %v5933_v6  ;;  %v315_v56 = vadd.f32 %v6003_v5, %v276_v45  ;;  %v336_v60 = vadd.f32 %v6003_v5, %v297_v52  ;;  %v280_v63 = vmul.f32 %v5994_v3, %v241_v47  ;;  %v1393_v45 = vld [vmem:[#allocation2 + $0x2] sm:$0xff]  ;;  %v259_v47 = vld [vmem:[%s5975_s24 + $0xf0] sm:$0xff] }
  0x2c   : > { %464 = vst.msk [vmem:[#allocation3 + $0x20] sm:$0xff] %vm371_vm1, %v5933_v6  ;;  %465 = vst.msk [vmem:[#allocation3 + $0x28] sm:$0xff] %vm371_vm1, %v5933_v6  ;;  %v316_v4 = vadd.f32 %v6003_v5, %v277_v57 }
  0x2d   : > { %466 = vst.msk [vmem:[#allocation3 + $0x30] sm:$0xff] %vm371_vm1, %v5933_v6  ;;  %467 = vst.msk [vmem:[#allocation3 + $0x38] sm:$0xff] %vm371_vm1, %v5933_v6  ;;  %v347_v2 = vmax.f32 %v315_v56, 0.0  ;;  %v368_v9 = vmax.f32 %v336_v60, 0.0  ;;  %v6469_v60 = vld [vmem:[%s7551_s1 + $0x30] sm:$0xff] }
  0x2e   : > { %468 = vst.msk [vmem:[#allocation3 + $0x40] sm:$0xff] %vm371_vm1, %v5933_v6  ;;  %469 = vst.msk [vmem:[#allocation3 + $0x48] sm:$0xff] %vm371_vm1, %v5933_v6  ;;  %v348_v13 = vmax.f32 %v316_v4, 0.0 }
  0x2f   : > { %470 = vst.msk [vmem:[#allocation3 + $0x50] sm:$0xff] %vm371_vm1, %v5933_v6  ;;  %471 = vst.msk [vmem:[#allocation3 + $0x58] sm:$0xff] %vm371_vm1, %v5933_v6 }
  0x30   : > { %472 = vst.msk [vmem:[#allocation3 + $0x60] sm:$0xff] %vm371_vm1, %v5933_v6  ;;  %473 = vst.msk [vmem:[#allocation3 + $0x68] sm:$0xff] %vm371_vm1, %v5933_v6 }
  0x31   : > { %474 = vst.msk [vmem:[#allocation3 + $0x70] sm:$0xff] %vm371_vm1, %v5933_v6  ;;  %475 = vst.msk [vmem:[#allocation3 + $0x78] sm:$0xff] %vm371_vm1, %v5933_v6 }
  0x32   : > { %476 = vst.msk [vmem:[#allocation3 + $0x80] sm:$0xff] %vm371_vm1, %v5933_v6  ;;  %477 = vst.msk [vmem:[#allocation3 + $0x88] sm:$0xff] %vm371_vm1, %v5933_v6 }
  0x33   : > { %478 = vst.msk [vmem:[#allocation3 + $0x90] sm:$0xff] %vm371_vm1, %v5933_v6  ;;  %479 = vst.msk [vmem:[#allocation3 + $0x98] sm:$0xff] %vm371_vm1, %v5933_v6 }
  0x34   : > { %480 = vst.msk [vmem:[#allocation3 + $0xa0] sm:$0xff] %vm371_vm1, %v5933_v6  ;;  %481 = vst.msk [vmem:[#allocation3 + $0xa8] sm:$0xff] %vm371_vm1, %v5933_v6 }
  0x35   : > { %482 = vst.msk [vmem:[#allocation3 + $0xb0] sm:$0xff] %vm371_vm1, %v5933_v6  ;;  %483 = vst.msk [vmem:[#allocation3 + $0xb8] sm:$0xff] %vm371_vm1, %v5933_v6 }
  0x36   : > { %484 = vst.msk [vmem:[#allocation3 + $0xc0] sm:$0xff] %vm371_vm1, %v5933_v6  ;;  %485 = vst.msk [vmem:[#allocation3 + $0xc8] sm:$0xff] %vm371_vm1, %v5933_v6 }
  0x37   : > { %486 = vst.msk [vmem:[#allocation3 + $0xd0] sm:$0xff] %vm371_vm1, %v5933_v6  ;;  %487 = vst.msk [vmem:[#allocation3 + $0xd8] sm:$0xff] %vm371_vm1, %v5933_v6 }
  0x38   : > { %488 = vst.msk [vmem:[#allocation3 + $0xe0] sm:$0xff] %vm371_vm1, %v5933_v6  ;;  %489 = vst.msk [vmem:[#allocation3 + $0xe8] sm:$0xff] %vm371_vm1, %v5933_v6 }
  0x39   : > { %490 = vst.msk [vmem:[#allocation3 + $0xf0] sm:$0xff] %vm371_vm1, %v5933_v6  ;;  %491 = vst.msk [vmem:[#allocation3 + $0xf8] sm:$0xff] %vm371_vm1, %v5933_v6 }
  0x3a   : > { %399 = vst.msk [vmem:[#allocation2 + $0xd0] sm:$0x3] %vm374_vm2, %v5933_v6  ;;  %375 = vst.msk [vmem:[#allocation2 + $0x10] sm:$0x3] %vm374_vm2, %v5933_v6 }
  0x3b   : > { %378 = vst.msk [vmem:[#allocation2 + $0x28] sm:$0x3] %vm374_vm2, %v5933_v6  ;;  %381 = vst.msk [vmem:[#allocation2 + $0x40] sm:$0x3] %vm374_vm2, %v5933_v6 }
  0x3c   : > { %384 = vst.msk [vmem:[#allocation2 + $0x58] sm:$0x3] %vm374_vm2, %v5933_v6  ;;  %387 = vst.msk [vmem:[#allocation2 + $0x70] sm:$0x3] %vm374_vm2, %v5933_v6 }
  0x3d   : > { %390 = vst.msk [vmem:[#allocation2 + $0x88] sm:$0x3] %vm374_vm2, %v5933_v6  ;;  %393 = vst.msk [vmem:[#allocation2 + $0xa0] sm:$0x3] %vm374_vm2, %v5933_v6 }
  0x3e   : > { %396 = vst.msk [vmem:[#allocation2 + $0xb8] sm:$0x3] %vm374_vm2, %v5933_v6  ;;  %402 = vst.msk [vmem:[#allocation2 + $0xe8] sm:$0x3] %vm374_vm2, %v5933_v6 }
  0x3f   : > { %405 = vst.msk [vmem:[#allocation2 + $0x100] sm:$0x3] %vm374_vm2, %v5933_v6  ;;  %408 = vst.msk [vmem:[#allocation2 + $0x118] sm:$0x3] %vm374_vm2, %v5933_v6 }
  0x40   : > { %411 = vst.msk [vmem:[#allocation2 + $0x130] sm:$0x3] %vm374_vm2, %v5933_v6  ;;  %414 = vst.msk [vmem:[#allocation2 + $0x148] sm:$0x3] %vm374_vm2, %v5933_v6 }
  0x41   : > { %417 = vst.msk [vmem:[#allocation2 + $0x160] sm:$0x3] %vm374_vm2, %v5933_v6  ;;  %420 = vst.msk [vmem:[#allocation2 + $0x178] sm:$0x3] %vm374_vm2, %v5933_v6 }
  0x42   : > { %423 = vst.msk [vmem:[#allocation2 + $0x190] sm:$0x3] %vm374_vm2, %v5933_v6  ;;  %426 = vst.msk [vmem:[#allocation2 + $0x1a8] sm:$0x3] %vm374_vm2, %v5933_v6  ;;  %v255_v6 = vld [vmem:[%s5975_s24 + $0xd0] sm:$0xff] }
  0x43   : > { %442 = vst.msk [vmem:[#allocation2 + $0xc1] sm:$0xff] %vm371_vm1, %v353_v25  ;;  %443 = vst.msk [vmem:[#allocation2 + $0xc9] sm:$0xff] %vm371_vm1, %v354_v30  ;;  %v294_v24 = vmul.f32 %v5994_v3, %v255_v6  ;;  %v274_v25 = vmul.f32 %v5994_v3, %v235_v8  ;;  %v343_v30 = vmax.f32 %v311_v19, 0.0  ;;  %v281_v6 = vmul.f32 %v5994_v3, %v242_v53  ;;  %v1394_v53 = vld [vmem:[#allocation2 + $0xa] sm:$0xff] }
  0x44   : > { %444 = vst.msk [vmem:[#allocation2 + $0xd9] sm:$0xff] %vm371_vm1, %v355_v37  ;;  %445 = vst.msk [vmem:[#allocation2 + $0xe1] sm:$0xff] %vm371_vm1, %v356_v38 }
  0x45   : > { %446 = vst.msk [vmem:[#allocation2 + $0xf1] sm:$0xff] %vm371_vm1, %v357_v39  ;;  %447 = vst.msk [vmem:[#allocation2 + $0xf9] sm:$0xff] %vm371_vm1, %v358_v44  ;;  %v333_v37 = vadd.f32 %v6003_v5, %v294_v24  ;;  %v313_v38 = vadd.f32 %v6003_v5, %v274_v25  ;;  %v334_v39 = vadd.f32 %v6003_v5, %v295_v26 }
  0x46   : > { %448 = vst.msk [vmem:[#allocation2 + $0x109] sm:$0xff] %vm371_vm1, %v359_v46  ;;  %428 = vst.msk [vmem:[#allocation2 + $0x19] sm:$0xff] %vm371_vm1, %v339_v54  ;;  %v335_v44 = vadd.f32 %v6003_v5, %v296_v33  ;;  %v240_v46 = vld [vmem:[%s5975_s24 + $0x58] sm:$0xff]  ;;  %v346_v54 = vmax.f32 %v314_v43, 0.0  ;;  %v320_v14 = vadd.f32 %v6003_v5, %v281_v6  ;;  %v942_v43 = vld [vmem:[#allocation2 + $0x1] sm:$0xff] }
  0x47   : > { %449 = vst.msk [vmem:[#allocation2 + $0x111] sm:$0xff] %vm371_vm1, %v360_v59  ;;  %429 = vst.msk [vmem:[#allocation2 + $0x21] sm:$0xff] %vm371_vm1, %v340_v0  ;;  %v365_v49 = vmax.f32 %v333_v37, 0.0  ;;  %v345_v50 = vmax.f32 %v313_v38, 0.0  ;;  %v366_v51 = vmax.f32 %v334_v39, 0.0  ;;  %v279_v62 = vmul.f32 %v5994_v3, %v240_v46  ;;  %v943_v46 = vld [vmem:[#allocation2 + $0x9] sm:$0xff] }
  0x48   : > { %450 = vst.msk [vmem:[#allocation2 + $0x121] sm:$0xff] %vm371_vm1, %v361_v10  ;;  %430 = vst.msk [vmem:[#allocation2 + $0x31] sm:$0xff] %vm371_vm1, %v341_v11  ;;  %v367_v55 = vmax.f32 %v335_v44, 0.0  ;;  %v317_v10 = vadd.f32 %v6003_v5, %v278_v61  ;;  %v352_v24 = vmax.f32 %v320_v14, 0.0 }
  0x49   : > { %451 = vst.msk [vmem:[#allocation2 + $0x129] sm:$0xff] %vm371_vm1, %v362_v12  ;;  %431 = vst.msk [vmem:[#allocation2 + $0x39] sm:$0xff] %vm371_vm1, %v342_v17  ;;  %v318_v11 = vadd.f32 %v6003_v5, %v279_v62  ;;  %v319_v12 = vadd.f32 %v6003_v5, %v280_v63 }
  0x4a   : > { %v6254_v16 = vld [vmem:[#allocation2 + $0xc0] sm:$0xff]  ;;  %v6266_v22 = vld [vmem:[#allocation2 + $0xc8] sm:$0xff]  ;;  %452 = vst.msk [vmem:[#allocation2 + $0x139] sm:$0xff] %vm371_vm1, %v363_v18  ;;  %432 = vst.msk [vmem:[#allocation2 + $0x49] sm:$0xff] %vm371_vm1, %v343_v30  ;;  %v349_v18 = vmax.f32 %v317_v10, 0.0 }
  0x4b   : > { %5488 = vmatprep.mubr.msk.f32.mxu1 %vm371_vm1, %v6254_v16  ;;  %v6283_v29 = vld [vmem:[#allocation2 + $0xd8] sm:$0xff]  ;;  %v6295_v35 = vld [vmem:[#allocation2 + $0xe0] sm:$0xff]  ;;  %453 = vst.msk [vmem:[#allocation2 + $0x141] sm:$0xff] %vm371_vm1, %v364_v36  ;;  %454 = vst.msk [vmem:[#allocation2 + $0x151] sm:$0xff] %vm371_vm1, %v365_v49  ;;  %v350_v19 = vmax.f32 %v318_v11, 0.0  ;;  %v351_v20 = vmax.f32 %v319_v12, 0.0 }
  0x4c   : > { %5489 = vmatmul.mubr.msk.f32.vlgmr.msra.gmra.mrb[0].mxu1 %vm371_vm1, %v6266_v22  ;;  %v6302_v42 = vld [vmem:[#allocation2 + $0xf0] sm:$0xff]  ;;  %v6325_v58 = vld [vmem:[#allocation2 + $0xf8] sm:$0xff]  ;;  %434 = vst.msk [vmem:[#allocation2 + $0x61] sm:$0xff] %vm371_vm1, %v345_v50  ;;  %455 = vst.msk [vmem:[#allocation2 + $0x159] sm:$0xff] %vm371_vm1, %v366_v51  ;;  %v298_v51 = vmul.f32 %v5994_v3, %v259_v47 }
  0x4d   : > { %5513 = vmatpush3.msra.mxu1 %v6144_v7  ;;  %5491 = vmatprep.mubr.msk.f32.mxu1 %vm371_vm1, %v6283_v29  ;;  %v344_v7 = vmax.f32 %v312_v31, 0.0  ;;  %v6311_v48 = vld [vmem:[#allocation2 + $0x18] sm:$0xff]  ;;  %v6336_v0 = vld [vmem:[#allocation2 + $0x108] sm:$0xff]  ;;  %435 = vst.msk [vmem:[#allocation2 + $0x69] sm:$0xff] %vm371_vm1, %v346_v54  ;;  %456 = vst.msk [vmem:[#allocation2 + $0x169] sm:$0xff] %vm371_vm1, %v367_v55 }
  0x4e   : > { %5612 = vmatprep.subr.mxu1 %v6279_v28  ;;  %5467 = vmatprep.mubr.msk.f32.mxu0 %vm371_vm1, %v6311_v48  ;;  %v6327_v59 = vld [vmem:[#allocation2 + $0x20] sm:$0xff]  ;;  %436 = vst.msk [vmem:[#allocation2 + $0x79] sm:$0xff] %vm371_vm1, %v347_v2  ;;  %v6359_v15 = vld [vmem:[#allocation2 + $0x110] sm:$0xff]  ;;  %457 = vst.msk [vmem:[#allocation2 + $0x171] sm:$0xff] %vm371_vm1, %v368_v9  ;;  %v337_v56 = vadd.f32 %v6003_v5, %v298_v51 }
  0x4f   : > { %433 = vst.msk [vmem:[#allocation2 + $0x51] sm:$0xff] %vm371_vm1, %v344_v7  ;;  %5468 = vmatmul.mubr.msk.f32.gmra.mrb[2].mxu0 %vm371_vm1, %v6327_v59  ;;  %v6340_v1 = vld [vmem:[#allocation2 + $0x30] sm:$0xff]  ;;  %v6364_v23 = vld [vmem:[#allocation2 + $0x120] sm:$0xff]  ;;  %437 = vst.msk [vmem:[#allocation2 + $0x81] sm:$0xff] %vm371_vm1, %v348_v13 }
  0x50   : > { %5492 = vmatmul.mubr.msk.f32.gmra.mrb[2].mxu1 %vm371_vm1, %v6295_v35  ;;  %5470 = vmatprep.mubr.msk.f32.mxu0 %vm371_vm1, %v6340_v1  ;;  %v6348_v8 = vld [vmem:[#allocation2 + $0x38] sm:$0xff]  ;;  %438 = vst.msk [vmem:[#allocation2 + $0x91] sm:$0xff] %vm371_vm1, %v349_v18  ;;  %439 = vst.msk [vmem:[#allocation2 + $0x99] sm:$0xff] %vm371_vm1, %v350_v19  ;;  %v6383_v27 = vld [vmem:[#allocation2 + $0x128] sm:$0xff]  ;;  %v369_v62 = vmax.f32 %v337_v56, 0.0 }
  0x51   : > { %5494 = vmatprep.mubr.msk.f32.mxu1 %vm371_vm1, %v6302_v42  ;;  %v6361_v17 = vld [vmem:[#allocation2 + $0x48] sm:$0xff]  ;;  %440 = vst.msk [vmem:[#allocation2 + $0xa9] sm:$0xff] %vm371_vm1, %v351_v20  ;;  %441 = vst.msk [vmem:[#allocation2 + $0xb1] sm:$0xff] %vm371_vm1, %v352_v24  ;;  %v6385_v30 = vld [vmem:[#allocation2 + $0x138] sm:$0xff] }
  0x52   : > { %v6399_v33 = vld [vmem:[#allocation2 + $0x140] sm:$0xff]  ;;  %v6401_v34 = vld [vmem:[#allocation2 + $0x150] sm:$0xff]  ;;  %v260_v49 = vld [vmem:[%s5975_s24 + $0xf8] sm:$0xff]  ;;  %458 = vst.msk [vmem:[#allocation2 + $0x181] sm:$0xff] %vm371_vm1, %v369_v62 }
  0x53   : > { %5471 = vmatmul.mubr.msk.f32.gmra.mrb[4].mxu0 %vm371_vm1, %v6348_v8  ;;  %v6378_v26 = vld [vmem:[#allocation2 + $0x60] sm:$0xff]  ;;  %v6415_v38 = vld [vmem:[#allocation2 + $0x158] sm:$0xff]  ;;  %v299_v52 = vmul.f32 %v5994_v3, %v260_v49  ;;  %v6454_v54 = vld [vmem:[%s7551_s1 + $0x28] sm:$0xff] }
  0x54   : > { %5495 = vmatmul.mubr.msk.f32.gmra.mrb[4].mxu1 %vm371_vm1, %v6325_v58  ;;  %5473 = vmatprep.mubr.msk.f32.mxu0 %vm371_vm1, %v6361_v17  ;;  %v6391_v31 = vld [vmem:[#allocation2 + $0x68] sm:$0xff]  ;;  %v6444_v50 = vld [vmem:[#allocation2 + $0x19] sm:$0xff]  ;;  %v6471_v61 = vld [vmem:[#allocation2 + $0x31] sm:$0xff] }
  0x55   : > { %5497 = vmatprep.mubr.msk.f32.mxu1 %vm371_vm1, %v6336_v0  ;;  %v6395_v32 = vld [vmem:[#allocation2 + $0x78] sm:$0xff]  ;;  %v6417_v39 = vld [vmem:[#allocation2 + $0x168] sm:$0xff]  ;;  %v6431_v7 = vld [vmem:[#allocation2 + $0x170] sm:$0xff]  ;;  %v338_v57 = vadd.f32 %v6003_v5, %v299_v52 }
  0x56   : > { %v6371_v25 = vld [vmem:[#allocation2 + $0x50] sm:$0xff]  ;;  %v6407_v36 = vld [vmem:[#allocation2 + $0x80] sm:$0xff]  ;;  %7593 = vst [vmem:[#allocation4_spill] sm:$0xff] %v6417_v39  ;;  %7594 = vst [vmem:[#allocation5_spill] sm:$0xff] %v6431_v7 }
  0x57   : > { %5474 = vmatmul.mubr.msk.f32.gmra.mrb[6].mxu0 %vm371_vm1, %v6371_v25  ;;  %v6411_v37 = vld [vmem:[#allocation2 + $0x90] sm:$0xff]  ;;  %v6423_v40 = vld [vmem:[#allocation2 + $0x98] sm:$0xff]  ;;  %v6464_v3 = vld [vmem:[#allocation2 + $0x21] sm:$0xff]  ;;  %v370_v5 = vmax.f32 %v338_v57, 0.0 }
  0x58   : > { %5498 = vmatmul.mubr.msk.f32.gmra.mrb[6].mxu1 %vm371_vm1, %v6359_v15  ;;  %5476 = vmatprep.mubr.msk.f32.mxu0 %vm371_vm1, %v6378_v26  ;;  %v6427_v41 = vld [vmem:[#allocation2 + $0xa8] sm:$0xff]  ;;  %v6437_v44 = vld [vmem:[#allocation2 + $0xb0] sm:$0xff]  ;;  %v6457_v55 = vld [vmem:[#allocation2 + $0x1a] sm:$0xff] }
  0x59   : > { %5500 = vmatprep.mubr.msk.f32.mxu1 %vm371_vm1, %v6364_v23  ;;  %7595 = vst [vmem:[#allocation6_spill] sm:$0xff] %v6457_v55  ;;  %v6482_v63 = vld [vmem:[#allocation2 + $0x32] sm:$0xff]  ;;  %459 = vst.msk [vmem:[#allocation2 + $0x189] sm:$0xff] %vm371_vm1, %v370_v5  ;;  %v6491_v2 = vld [vmem:[#allocation2 + $0x49] sm:$0xff] }
  0x5a   : > { %7597 = vst [vmem:[#allocation8_spill] sm:$0xff] %v6482_v63  ;;  %v6497_v4 = vld [vmem:[#allocation2 + $0x3a] sm:$0xff]  ;;  %v6501_v6 = vld [vmem:[#allocation2 + $0x4a] sm:$0xff]  ;;  %v6513_v11 = vld [vmem:[#allocation2 + $0x52] sm:$0xff] }
  0x5b   : > { %5477 = vmatmul.mubr.msk.f32.gmra.mrb[8].mxu0 %vm371_vm1, %v6391_v31  ;;  %7598 = vst [vmem:[#allocation9_spill] sm:$0xff] %v6497_v4  ;;  %7599 = vst [vmem:[#allocation10_spill] sm:$0xff] %v6501_v6  ;;  %v6505_v9 = vld [vmem:[#allocation2 + $0x51] sm:$0xff]  ;;  %v6507_v10 = vld [vmem:[#allocation2 + $0x61] sm:$0xff] }
  0x5c   : > { %5501 = vmatmul.mubr.msk.f32.gmra.mrb[8].mxu1 %vm371_vm1, %v6383_v27  ;;  %5479 = vmatprep.mubr.msk.f32.mxu0 %vm371_vm1, %v6395_v32  ;;  %7600 = vst [vmem:[#allocation11_spill] sm:$0xff] %v6513_v11  ;;  %v6517_v12 = vld [vmem:[#allocation2 + $0x62] sm:$0xff]  ;;  %v6523_v14 = vld [vmem:[#allocation2 + $0x79] sm:$0xff]  ;;  %v6529_v18 = vld [vmem:[#allocation2 + $0x6a] sm:$0xff] }
  0x5d   : > { %5503 = vmatprep.mubr.msk.f32.mxu1 %vm371_vm1, %v6385_v30  ;;  %7601 = vst [vmem:[#allocation12_spill] sm:$0xff] %v6517_v12  ;;  %v6521_v13 = vld [vmem:[#allocation2 + $0x69] sm:$0xff]  ;;  %7602 = vst [vmem:[#allocation13_spill] sm:$0xff] %v6529_v18  ;;  %v6533_v19 = vld [vmem:[#allocation2 + $0x7a] sm:$0xff] }
  0x5e   : > { %7603 = vst [vmem:[#allocation14_spill] sm:$0xff] %v6533_v19  ;;  %v6537_v20 = vld [vmem:[#allocation2 + $0x81] sm:$0xff]  ;;  %v6539_v24 = vld [vmem:[#allocation2 + $0x91] sm:$0xff]  ;;  %v6555_v47 = vld [vmem:[#allocation2 + $0xa9] sm:$0xff] }
  0x5f   : > { %5480 = vmatmul.mubr.msk.f32.gmra.mrb[10].mxu0 %vm371_vm1, %v6407_v36  ;;  %v6561_v49 = vld [vmem:[#allocation2 + $0x9a] sm:$0xff]  ;;  %v6565_v51 = vld [vmem:[#allocation2 + $0xaa] sm:$0xff]  ;;  %v6577_v56 = vld [vmem:[#allocation2 + $0xb2] sm:$0xff] }
  0x60   : > { %5504 = vmatmul.mubr.msk.f32.gmra.mrb[10].mxu1 %vm371_vm1, %v6399_v33  ;;  %5482 = vmatprep.mubr.msk.f32.mxu0 %vm371_vm1, %v6411_v37  ;;  %7606 = vst [vmem:[#allocation17_spill] sm:$0xff] %v6561_v49  ;;  %7607 = vst [vmem:[#allocation18_spill] sm:$0xff] %v6565_v51  ;;  %v6569_v52 = vld [vmem:[#allocation2 + $0xb1] sm:$0xff]  ;;  %v6581_v57 = vld [vmem:[#allocation2 + $0xc2] sm:$0xff] }
  0x61   : > { %5506 = vmatprep.mubr.msk.f32.mxu1 %vm371_vm1, %v6401_v34  ;;  %7608 = vst [vmem:[#allocation19_spill] sm:$0xff] %v6577_v56  ;;  %7609 = vst [vmem:[#allocation20_spill] sm:$0xff] %v6581_v57  ;;  %v6585_v62 = vld [vmem:[#allocation2 + $0xc9] sm:$0xff]  ;;  %v6587_v5 = vld [vmem:[#allocation2 + $0xd9] sm:$0xff] }
  0x63   : > { %5483 = vmatmul.mubr.msk.f32.gmra.mrb[12].mxu0 %vm371_vm1, %v6423_v40 }
  0x64   : > { %5507 = vmatmul.mubr.msk.f32.gmra.mrb[12].mxu1 %vm371_vm1, %v6415_v38  ;;  %5485 = vmatprep.mubr.msk.f32.mxu0 %vm371_vm1, %v6427_v41 }
  0x65   : > { %5509 = vmatprep.mubr.msk.f32.mxu1 %vm371_vm1, %v6417_v39  ;;  %v6697_v39 = vld [vmem:[#allocation2 + $0x171] sm:$0xff] }
  0x67   : > { %5486 = vmatmul.mubr.msk.f32.gmra.mrb[14].mxu0 %vm371_vm1, %v6437_v44 }
  0x68   : > { %5510 = vmatmul.mubr.msk.f32.gmra.mrb[14].mxu1 %vm371_vm1, %v6431_v7  ;;  %5564 = vmatprep.mubr.msk.f32.mxu0 %vm371_vm1, %v1393_v45  ;;  %v6549_v45 = vld [vmem:[#allocation2 + $0x92] sm:$0xff]  ;;  %v6683_v7 = vld [vmem:[#allocation2 + $0x169] sm:$0xff] }
  0x69   : > { %5514 = vmatprep.mubr.msk.f32.mxu1 %vm371_vm1, %v942_v43  ;;  %v6545_v43 = vld [vmem:[#allocation2 + $0x82] sm:$0xff]  ;;  %7605 = vst [vmem:[#allocation16_spill] sm:$0xff] %v6549_v45 }
  0x6a   : > { %7604 = vst [vmem:[#allocation15_spill] sm:$0xff] %v6545_v43 }
  0x6b   : > { %5565 = vmatmul.mubr.msk.f32.vlgmr.msra.gmra.mrb[16].mxu0 %vm371_vm1, %v1394_v53  ;;  %v6571_v53 = vld [vmem:[#allocation2 + $0xc1] sm:$0xff] }
  0x6c   : > { %5515 = vmatmul.mubr.msk.f32.vlgmr.msra.gmra.mrb[16].mxu1 %vm371_vm1, %v943_v46  ;;  %5663 = vmatpush3.msra.mxu0 %v6262_v21  ;;  %v6489_v21 = vld [vmem:[#allocation2 + $0x39] sm:$0xff] }
  0x6d   : > { %5613 = vmatpush3.msra.mxu1 %v6279_v28  ;;  %5517 = vmatprep.mubr.msk.f32.mxu1 %vm371_vm1, %v6444_v50  ;;  %v6478_v28 = vld [vmem:[#allocation2 + $0x22] sm:$0xff]  ;;  %v6553_v46 = vld [vmem:[#allocation2 + $0x99] sm:$0xff] }
  0x6e   : > { %5712 = vmatprep.subr.mxu1 %v6454_v54  ;;  %5567 = vmatprep.mubr.msk.f32.mxu0 %vm371_vm1, %v6457_v55  ;;  %7596 = vst [vmem:[#allocation7_spill] sm:$0xff] %v6478_v28  ;;  %v6681_v55 = vld [vmem:[#allocation2 + $0x159] sm:$0xff] }
  0x6f   : > { %5762 = vmatprep.subr.mxu0 %v6469_v60  ;;  %5568 = vmatmul.mubr.msk.f32.gmra.mrb[18].mxu0 %vm371_vm1, %v6478_v28  ;;  %v6667_v28 = vld [vmem:[#allocation2 + $0x151] sm:$0xff] }
  0x70   : > { %5518 = vmatmul.mubr.msk.f32.gmra.mrb[18].mxu1 %vm371_vm1, %v6464_v3  ;;  %5570 = vmatprep.mubr.msk.f32.mxu0 %vm371_vm1, %v6482_v63  ;;  %v6665_v63 = vld [vmem:[#allocation2 + $0x141] sm:$0xff] }
  0x71   : > { %5520 = vmatprep.mubr.msk.f32.mxu1 %vm371_vm1, %v6471_v61 }
  0x73   : > { %5571 = vmatmul.mubr.msk.f32.gmra.mrb[20].mxu0 %vm371_vm1, %v6497_v4  ;;  %v6651_v4 = vld [vmem:[#allocation2 + $0x139] sm:$0xff] }
  0x74   : > { %5521 = vmatmul.mubr.msk.f32.gmra.mrb[20].mxu1 %vm371_vm1, %v6489_v21  ;;  %5573 = vmatprep.mubr.msk.f32.mxu0 %vm371_vm1, %v6501_v6  ;;  %v6649_v6 = vld [vmem:[#allocation2 + $0x129] sm:$0xff] }
  0x75   : > { %5523 = vmatprep.mubr.msk.f32.mxu1 %vm371_vm1, %v6491_v2 }
  0x77   : > { %5574 = vmatmul.mubr.msk.f32.gmra.mrb[22].mxu0 %vm371_vm1, %v6513_v11  ;;  %v6635_v11 = vld [vmem:[#allocation2 + $0x121] sm:$0xff] }
  0x78   : > { %5524 = vmatmul.mubr.msk.f32.gmra.mrb[22].mxu1 %vm371_vm1, %v6505_v9  ;;  %5576 = vmatprep.mubr.msk.f32.mxu0 %vm371_vm1, %v6517_v12  ;;  %v6633_v12 = vld [vmem:[#allocation2 + $0x111] sm:$0xff] }
  0x79   : > { %5526 = vmatprep.mubr.msk.f32.mxu1 %vm371_vm1, %v6507_v10 }
  0x7b   : > { %5577 = vmatmul.mubr.msk.f32.gmra.mrb[24].mxu0 %vm371_vm1, %v6529_v18  ;;  %v6619_v18 = vld [vmem:[#allocation2 + $0x109] sm:$0xff] }
  0x7c   : > { %5527 = vmatmul.mubr.msk.f32.gmra.mrb[24].mxu1 %vm371_vm1, %v6521_v13  ;;  %5579 = vmatprep.mubr.msk.f32.mxu0 %vm371_vm1, %v6533_v19  ;;  %v6617_v19 = vld [vmem:[#allocation2 + $0xf9] sm:$0xff] }
  0x7d   : > { %5529 = vmatprep.mubr.msk.f32.mxu1 %vm371_vm1, %v6523_v14 }
  0x7f   : > { %5580 = vmatmul.mubr.msk.f32.gmra.mrb[26].mxu0 %vm371_vm1, %v6545_v43  ;;  %v6603_v43 = vld [vmem:[#allocation2 + $0xf1] sm:$0xff] }
  0x80   : > { %5530 = vmatmul.mubr.msk.f32.gmra.mrb[26].mxu1 %vm371_vm1, %v6537_v20  ;;  %5582 = vmatprep.mubr.msk.f32.mxu0 %vm371_vm1, %v6549_v45  ;;  %v6601_v45 = vld [vmem:[#allocation2 + $0xe1] sm:$0xff] }
  0x81   : > { %5532 = vmatprep.mubr.msk.f32.mxu1 %vm371_vm1, %v6539_v24 }
  0x83   : > { %5583 = vmatmul.mubr.msk.f32.gmra.mrb[28].mxu0 %vm371_vm1, %v6561_v49  ;;  %v6597_v49 = vld [vmem:[#allocation2 + $0xda] sm:$0xff] }
  0x84   : > { %5533 = vmatmul.mubr.msk.f32.gmra.mrb[28].mxu1 %vm371_vm1, %v6553_v46  ;;  %5585 = vmatprep.mubr.msk.f32.mxu0 %vm371_vm1, %v6565_v51  ;;  %v6593_v51 = vld [vmem:[#allocation2 + $0xca] sm:$0xff]  ;;  %7611 = vst [vmem:[#allocation22_spill] sm:$0xff] %v6597_v49 }
  0x85   : > { %5535 = vmatprep.mubr.msk.f32.mxu1 %vm371_vm1, %v6555_v47  ;;  %7610 = vst [vmem:[#allocation21_spill] sm:$0xff] %v6593_v51 }
  0x87   : > { %5586 = vmatmul.mubr.msk.f32.gmra.mrb[30].mxu0 %vm371_vm1, %v6577_v56  ;;  %v6613_v56 = vld [vmem:[#allocation2 + $0xf2] sm:$0xff] }
  0x88   : > { %5536 = vmatmul.mubr.msk.f32.gmra.mrb[30].mxu1 %vm371_vm1, %v6569_v52  ;;  %5588 = vmatprep.mubr.msk.f32.mxu0 %vm371_vm1, %v6581_v57  ;;  %v6609_v57 = vld [vmem:[#allocation2 + $0xe2] sm:$0xff]  ;;  %7613 = vst [vmem:[#allocation24_spill] sm:$0xff] %v6613_v56 }
  0x89   : > { %5538 = vmatprep.mubr.msk.f32.mxu1 %vm371_vm1, %v6571_v53  ;;  %7612 = vst [vmem:[#allocation23_spill] sm:$0xff] %v6609_v57 }
  0x8b   : > { %5589 = vmatmul.mubr.msk.f32.gmra.mrb[32].mxu0 %vm371_vm1, %v6593_v51  ;;  %v6629_v51 = vld [vmem:[#allocation2 + $0x10a] sm:$0xff] }
  0x8c   : > { %5539 = vmatmul.mubr.msk.f32.gmra.mrb[32].mxu1 %vm371_vm1, %v6585_v62  ;;  %5591 = vmatprep.mubr.msk.f32.mxu0 %vm371_vm1, %v6597_v49  ;;  %v6625_v49 = vld [vmem:[#allocation2 + $0xfa] sm:$0xff]  ;;  %7615 = vst [vmem:[#allocation26_spill] sm:$0xff] %v6629_v51 }
  0x8d   : > { %5541 = vmatprep.mubr.msk.f32.mxu1 %vm371_vm1, %v6587_v5  ;;  %7614 = vst [vmem:[#allocation25_spill] sm:$0xff] %v6625_v49 }
  0x8f   : > { %5592 = vmatmul.mubr.msk.f32.gmra.mrb[34].mxu0 %vm371_vm1, %v6609_v57  ;;  %v6645_v57 = vld [vmem:[#allocation2 + $0x122] sm:$0xff] }
  0x90   : > { %5542 = vmatmul.mubr.msk.f32.gmra.mrb[34].mxu1 %vm371_vm1, %v6601_v45  ;;  %5594 = vmatprep.mubr.msk.f32.mxu0 %vm371_vm1, %v6613_v56  ;;  %v6641_v56 = vld [vmem:[#allocation2 + $0x112] sm:$0xff]  ;;  %7617 = vst [vmem:[#allocation28_spill] sm:$0xff] %v6645_v57 }
  0x91   : > { %5544 = vmatprep.mubr.msk.f32.mxu1 %vm371_vm1, %v6603_v43  ;;  %7616 = vst [vmem:[#allocation27_spill] sm:$0xff] %v6641_v56 }
  0x93   : > { %5595 = vmatmul.mubr.msk.f32.gmra.mrb[36].mxu0 %vm371_vm1, %v6625_v49  ;;  %v6661_v49 = vld [vmem:[#allocation2 + $0x13a] sm:$0xff] }
  0x94   : > { %5545 = vmatmul.mubr.msk.f32.gmra.mrb[36].mxu1 %vm371_vm1, %v6617_v19  ;;  %5597 = vmatprep.mubr.msk.f32.mxu0 %vm371_vm1, %v6629_v51  ;;  %v6657_v51 = vld [vmem:[#allocation2 + $0x12a] sm:$0xff]  ;;  %7619 = vst [vmem:[#allocation30_spill] sm:$0xff] %v6661_v49 }
  0x95   : > { %5547 = vmatprep.mubr.msk.f32.mxu1 %vm371_vm1, %v6619_v18  ;;  %7618 = vst [vmem:[#allocation29_spill] sm:$0xff] %v6657_v51 }
  0x97   : > { %5598 = vmatmul.mubr.msk.f32.gmra.mrb[38].mxu0 %vm371_vm1, %v6641_v56  ;;  %v6677_v56 = vld [vmem:[#allocation2 + $0x152] sm:$0xff] }
  0x98   : > { %5548 = vmatmul.mubr.msk.f32.gmra.mrb[38].mxu1 %vm371_vm1, %v6633_v12  ;;  %5600 = vmatprep.mubr.msk.f32.mxu0 %vm371_vm1, %v6645_v57  ;;  %v6673_v57 = vld [vmem:[#allocation2 + $0x142] sm:$0xff] }
  0x99   : > { %5550 = vmatprep.mubr.msk.f32.mxu1 %vm371_vm1, %v6635_v11  ;;  %7620 = vst [vmem:[#allocation31_spill] sm:$0xff] %v6673_v57 }
  0x9b   : > { %5601 = vmatmul.mubr.msk.f32.gmra.mrb[40].mxu0 %vm371_vm1, %v6657_v51  ;;  %v6693_v51 = vld [vmem:[#allocation2 + $0x16a] sm:$0xff] }
  0x9c   : > { %5551 = vmatmul.mubr.msk.f32.gmra.mrb[40].mxu1 %vm371_vm1, %v6649_v6  ;;  %5603 = vmatprep.mubr.msk.f32.mxu0 %vm371_vm1, %v6661_v49  ;;  %v6689_v49 = vld [vmem:[#allocation2 + $0x15a] sm:$0xff] }
  0x9d   : > { %5553 = vmatprep.mubr.msk.f32.mxu1 %vm371_vm1, %v6651_v4  ;;  %7621 = vst [vmem:[#allocation32_spill] sm:$0xff] %v6689_v49 }
  0x9f   : > { %5604 = vmatmul.mubr.msk.f32.gmra.mrb[42].mxu0 %vm371_vm1, %v6673_v57  ;;  %v6703_v57 = vld [vmem:[#allocation2 + $0x172] sm:$0xff] }
  0xa0   : > { %5554 = vmatmul.mubr.msk.f32.gmra.mrb[42].mxu1 %vm371_vm1, %v6665_v63  ;;  %5606 = vmatprep.mubr.msk.f32.mxu0 %vm371_vm1, %v6677_v56 }
  0xa1   : > { %5556 = vmatprep.mubr.msk.f32.mxu1 %vm371_vm1, %v6667_v28 }
  0xa3   : > { %5607 = vmatmul.mubr.msk.f32.gmra.mrb[44].mxu0 %vm371_vm1, %v6689_v49  ;;  %v6716_v49 = vld [vmem:[%s7551_s1 + $0x38] sm:$0xff] }
  0xa4   : > { %5557 = vmatmul.mubr.msk.f32.gmra.mrb[44].mxu1 %vm371_vm1, %v6681_v55  ;;  %5609 = vmatprep.mubr.msk.f32.mxu0 %vm371_vm1, %v6693_v51 }
  0xa5   : > { %5559 = vmatprep.mubr.msk.f32.mxu1 %vm371_vm1, %v6683_v7 }
  0xa7   : > { %5610 = vmatmul.mubr.msk.f32.gmra.mrb[46].mxu0 %vm371_vm1, %v6703_v57 }
  0xa8   : > { %5560 = vmatmul.mubr.msk.f32.gmra.mrb[46].mxu1 %vm371_vm1, %v6697_v39  ;;  %5664 = vmatprep.mubr.msk.f32.mxu0 %vm371_vm1, %v6444_v50  ;;  %v7632_v50 = vld [vmem:[#allocation14_spill] sm:$0xff] }
  0xa9   : > { %5614 = vmatprep.mubr.msk.f32.mxu1 %vm371_vm1, %v6311_v48  ;;  %v6726_v48 = vld [vmem:[%s7551_s1 + $0x40] sm:$0xff] }
  0xab   : > { %5665 = vmatmul.mubr.msk.f32.vlgmr.msra.gmra.mrb[48].mxu0 %vm371_vm1, %v6464_v3  ;;  %v7639_v3 = vld [vmem:[#allocation21_spill] sm:$0xff] }
  0xac   : > { %5615 = vmatmul.mubr.msk.f32.vlgmr.msra.gmra.mrb[48].mxu1 %vm371_vm1, %v6327_v59  ;;  %5763 = vmatpush3.msra.mxu0 %v6469_v60  ;;  %v7624_v59 = vld [vmem:[#allocation6_spill] sm:$0xff]  ;;  %v3214_v60 = vld [vmem:[#allocation2 + $0xf0] sm:$0xff] }
  0xad   : > { %5713 = vmatpush3.msra.mxu1 %v6454_v54  ;;  %5617 = vmatprep.mubr.msk.f32.mxu1 %vm371_vm1, %v6340_v1  ;;  %v7637_v54 = vld [vmem:[#allocation19_spill] sm:$0xff] }
  0xae   : > { %5812 = vmatprep.subr.mxu1 %v6716_v49  ;;  %5667 = vmatprep.mubr.msk.f32.mxu0 %vm371_vm1, %v6471_v61 }
  0xaf   : > { %5862 = vmatprep.subr.mxu0 %v6726_v48  ;;  %5668 = vmatmul.mubr.msk.f32.gmra.mrb[50].mxu0 %vm371_vm1, %v6489_v21 }
  0xb0   : > { %5618 = vmatmul.mubr.msk.f32.gmra.mrb[50].mxu1 %vm371_vm1, %v6348_v8  ;;  %5670 = vmatprep.mubr.msk.f32.mxu0 %vm371_vm1, %v6491_v2 }
  0xb1   : > { %5620 = vmatprep.mubr.msk.f32.mxu1 %vm371_vm1, %v6361_v17 }
  0xb3   : > { %5671 = vmatmul.mubr.msk.f32.gmra.mrb[52].mxu0 %vm371_vm1, %v6505_v9 }
  0xb4   : > { %5621 = vmatmul.mubr.msk.f32.gmra.mrb[52].mxu1 %vm371_vm1, %v6371_v25  ;;  %5673 = vmatprep.mubr.msk.f32.mxu0 %vm371_vm1, %v6507_v10 }
  0xb5   : > { %5623 = vmatprep.mubr.msk.f32.mxu1 %vm371_vm1, %v6378_v26 }
  0xb7   : > { %5674 = vmatmul.mubr.msk.f32.gmra.mrb[54].mxu0 %vm371_vm1, %v6521_v13 }
  0xb8   : > { %5624 = vmatmul.mubr.msk.f32.gmra.mrb[54].mxu1 %vm371_vm1, %v6391_v31  ;;  %5676 = vmatprep.mubr.msk.f32.mxu0 %vm371_vm1, %v6523_v14 }
  0xb9   : > { %5626 = vmatprep.mubr.msk.f32.mxu1 %vm371_vm1, %v6395_v32 }
  0xbb   : > { %5677 = vmatmul.mubr.msk.f32.gmra.mrb[56].mxu0 %vm371_vm1, %v6537_v20 }
  0xbc   : > { %5627 = vmatmul.mubr.msk.f32.gmra.mrb[56].mxu1 %vm371_vm1, %v6407_v36  ;;  %5679 = vmatprep.mubr.msk.f32.mxu0 %vm371_vm1, %v6539_v24 }
  0xbd   : > { %5629 = vmatprep.mubr.msk.f32.mxu1 %vm371_vm1, %v6411_v37 }
  0xbf   : > { %5680 = vmatmul.mubr.msk.f32.gmra.mrb[58].mxu0 %vm371_vm1, %v6553_v46 }
  0xc0   : > { %5630 = vmatmul.mubr.msk.f32.gmra.mrb[58].mxu1 %vm371_vm1, %v6423_v40  ;;  %5682 = vmatprep.mubr.msk.f32.mxu0 %vm371_vm1, %v6555_v47 }
  0xc1   : > { %5632 = vmatprep.mubr.msk.f32.mxu1 %vm371_vm1, %v6427_v41 }
  0xc3   : > { %5683 = vmatmul.mubr.msk.f32.gmra.mrb[60].mxu0 %vm371_vm1, %v6569_v52  ;;  %v524_v52 = vld [vmem:[#allocation3] sm:$0xff] }
  0xc4   : > { %5633 = vmatmul.mubr.msk.f32.gmra.mrb[60].mxu1 %vm371_vm1, %v6437_v44  ;;  %5685 = vmatprep.mubr.msk.f32.mxu0 %vm371_vm1, %v6571_v53  ;;  %v7648_v53 = vld [vmem:[#allocation30_spill] sm:$0xff] }
  0xc5   : > { %5635 = vmatprep.mubr.msk.f32.mxu1 %vm371_vm1, %v6254_v16  ;;  %v7622_v16 = vld [vmem:[#allocation4_spill] sm:$0xff] }
  0xc7   : > { %5686 = vmatmul.mubr.msk.f32.gmra.mrb[62].mxu0 %vm371_vm1, %v6585_v62 }
  0xc8   : > { %5636 = vmatmul.mubr.msk.f32.gmra.mrb[62].mxu1 %vm371_vm1, %v6266_v22  ;;  %5688 = vmatprep.mubr.msk.f32.mxu0 %vm371_vm1, %v6587_v5  ;;  %v6835_v22 = vld [vmem:[#allocation2 + $0x180] sm:$0xff] }
  0xc9   : > { %5638 = vmatprep.mubr.msk.f32.mxu1 %vm371_vm1, %v6283_v29  ;;  %v7623_v29 = vld [vmem:[#allocation5_spill] sm:$0xff] }
  0xcb   : > { %5689 = vmatmul.mubr.msk.f32.gmra.mrb[64].mxu0 %vm371_vm1, %v6601_v45  ;;  %v525_v45 = vld [vmem:[#allocation3 + $0x8] sm:$0xff] }
  0xcc   : > { %5639 = vmatmul.mubr.msk.f32.gmra.mrb[64].mxu1 %vm371_vm1, %v6295_v35  ;;  %5691 = vmatprep.mubr.msk.f32.mxu0 %vm371_vm1, %v6603_v43  ;;  %v6843_v35 = vld [vmem:[#allocation2 + $0x181] sm:$0xff]  ;;  %v7646_v43 = vld [vmem:[#allocation28_spill] sm:$0xff] }
  0xcd   : > { %5641 = vmatprep.mubr.msk.f32.mxu1 %vm371_vm1, %v6302_v42  ;;  %v6847_v42 = vld [vmem:[#allocation2 + $0x188] sm:$0xff] }
  0xcf   : > { %5692 = vmatmul.mubr.msk.f32.gmra.mrb[66].mxu0 %vm371_vm1, %v6617_v19  ;;  %v7645_v19 = vld [vmem:[#allocation27_spill] sm:$0xff] }
  0xd0   : > { %5642 = vmatmul.mubr.msk.f32.gmra.mrb[66].mxu1 %vm371_vm1, %v6325_v58  ;;  %5694 = vmatprep.mubr.msk.f32.mxu0 %vm371_vm1, %v6619_v18  ;;  %v6853_v58 = vld [vmem:[#allocation2 + $0x189] sm:$0xff]  ;;  %v7644_v18 = vld [vmem:[#allocation26_spill] sm:$0xff] }
  0xd1   : > { %5644 = vmatprep.mubr.msk.f32.mxu1 %vm371_vm1, %v6336_v0  ;;  %v7625_v0 = vld [vmem:[#allocation7_spill] sm:$0xff] }
  0xd3   : > { %5695 = vmatmul.mubr.msk.f32.gmra.mrb[68].mxu0 %vm371_vm1, %v6633_v12  ;;  %v7643_v12 = vld [vmem:[#allocation25_spill] sm:$0xff] }
  0xd4   : > { %5645 = vmatmul.mubr.msk.f32.gmra.mrb[68].mxu1 %vm371_vm1, %v6359_v15  ;;  %5697 = vmatprep.mubr.msk.f32.mxu0 %vm371_vm1, %v6635_v11  ;;  %v7626_v15 = vld [vmem:[#allocation8_spill] sm:$0xff] }
  0xd5   : > { %5647 = vmatprep.mubr.msk.f32.mxu1 %vm371_vm1, %v6364_v23  ;;  %v3217_v11 = vld [vmem:[#allocation2 + $0x110] sm:$0xff] }
  0xd7   : > { %5698 = vmatmul.mubr.msk.f32.gmra.mrb[70].mxu0 %vm371_vm1, %v6649_v6  ;;  %v7642_v6 = vld [vmem:[#allocation24_spill] sm:$0xff] }
  0xd8   : > { %5648 = vmatmul.mubr.msk.f32.gmra.mrb[70].mxu1 %vm371_vm1, %v6383_v27  ;;  %5700 = vmatprep.mubr.msk.f32.mxu0 %vm371_vm1, %v6651_v4  ;;  %v3216_v4 = vld [vmem:[#allocation2 + $0x108] sm:$0xff] }
  0xd9   : > { %5650 = vmatprep.mubr.msk.f32.mxu1 %vm371_vm1, %v6385_v30 }
  0xdb   : > { %5701 = vmatmul.mubr.msk.f32.gmra.mrb[72].mxu0 %vm371_vm1, %v6665_v63  ;;  %v7641_v63 = vld [vmem:[#allocation23_spill] sm:$0xff] }
  0xdc   : > { %5651 = vmatmul.mubr.msk.f32.gmra.mrb[72].mxu1 %vm371_vm1, %v6399_v33  ;;  %5703 = vmatprep.mubr.msk.f32.mxu0 %vm371_vm1, %v6667_v28  ;;  %v3215_v28 = vld [vmem:[#allocation2 + $0xf8] sm:$0xff] }
  0xdd   : > { %5653 = vmatprep.mubr.msk.f32.mxu1 %vm371_vm1, %v6401_v34 }
  0xdf   : > { %5704 = vmatmul.mubr.msk.f32.gmra.mrb[74].mxu0 %vm371_vm1, %v6681_v55  ;;  %v7638_v55 = vld [vmem:[#allocation20_spill] sm:$0xff] }
  0xe0   : > { %5654 = vmatmul.mubr.msk.f32.gmra.mrb[74].mxu1 %vm371_vm1, %v6415_v38  ;;  %5706 = vmatprep.mubr.msk.f32.mxu0 %vm371_vm1, %v6683_v7  ;;  %v7629_v7 = vld [vmem:[#allocation11_spill] sm:$0xff] }
  0xe1   : > { %5656 = vmatprep.mubr.msk.f32.mxu1 %vm371_vm1, %v7622_v16 }
  0xe3   : > { %5707 = vmatmul.mubr.msk.f32.gmra.mrb[76].mxu0 %vm371_vm1, %v6697_v39  ;;  %v7627_v39 = vld [vmem:[#allocation9_spill] sm:$0xff] }
  0xe4   : > { %5657 = vmatmul.mubr.msk.f32.gmra.mrb[76].mxu1 %vm371_vm1, %v7623_v29  ;;  %5709 = vmatprep.mubr.msk.f32.mxu0 %vm371_vm1, %v6843_v35 }
  0xe5   : > { %5659 = vmatprep.mubr.msk.f32.mxu1 %vm371_vm1, %v6835_v22 }
  0xe7   : > { %5710 = vmatmul.mubr.msk.f32.gmra.mrb[78].mxu0 %vm371_vm1, %v6853_v58 }
  0xe8   : > { %5660 = vmatmul.mubr.msk.f32.gmra.mrb[78].mxu1 %vm371_vm1, %v6847_v42  ;;  %5764 = vmatprep.mubr.msk.f32.mxu0 %vm371_vm1, %v6340_v1  ;;  %v7628_v1 = vld [vmem:[#allocation10_spill] sm:$0xff] }
  0xe9   : > { %5714 = vmatprep.mubr.msk.f32.mxu1 %vm371_vm1, %v7624_v59  ;;  %v540_v59 = vld [vmem:[#allocation3 + $0x80] sm:$0xff] }
  0xeb   : > { %5765 = vmatmul.mubr.msk.f32.vlgmr.msra.gmra.mrb[80].mxu0 %vm371_vm1, %v6348_v8  ;;  %v7630_v8 = vld [vmem:[#allocation12_spill] sm:$0xff] }
  0xec   : > { %5715 = vmatmul.mubr.msk.f32.vlgmr.msra.gmra.mrb[80].mxu1 %vm371_vm1, %v7625_v0  ;;  %5863 = vmatpush3.msra.mxu0 %v6726_v48  ;;  %v7649_v48 = vld [vmem:[#allocation31_spill] sm:$0xff] }
  0xed   : > { %5813 = vmatpush3.msra.mxu1 %v6716_v49  ;;  %5717 = vmatprep.mubr.msk.f32.mxu1 %vm371_vm1, %v7626_v15  ;;  %v7647_v49 = vld [vmem:[#allocation29_spill] sm:$0xff] }
  0xee   : > { %5767 = vmatprep.mubr.msk.f32.mxu0 %vm371_vm1, %v6361_v17  ;;  %v7631_v17 = vld [vmem:[#allocation13_spill] sm:$0xff] }
  0xef   : > { %5768 = vmatmul.mubr.msk.f32.gmra.mrb[82].mxu0 %vm371_vm1, %v6371_v25  ;;  %v7633_v25 = vld [vmem:[#allocation15_spill] sm:$0xff] }
  0xf0   : > { %5718 = vmatmul.mubr.msk.f32.gmra.mrb[82].mxu1 %vm371_vm1, %v7627_v39  ;;  %5770 = vmatprep.mubr.msk.f32.mxu0 %vm371_vm1, %v6378_v26  ;;  %v7634_v26 = vld [vmem:[#allocation16_spill] sm:$0xff] }
  0xf1   : > { %5720 = vmatprep.mubr.msk.f32.mxu1 %vm371_vm1, %v7628_v1 }
  0xf3   : > { %5771 = vmatmul.mubr.msk.f32.gmra.mrb[84].mxu0 %vm371_vm1, %v6391_v31  ;;  %v7635_v31 = vld [vmem:[#allocation17_spill] sm:$0xff] }
  0xf4   : > { %5721 = vmatmul.mubr.msk.f32.gmra.mrb[84].mxu1 %vm371_vm1, %v7629_v7  ;;  %5773 = vmatprep.mubr.msk.f32.mxu0 %vm371_vm1, %v6395_v32  ;;  %v3210_v32 = vld [vmem:[#allocation2 + $0xc0] sm:$0xff] }
  0xf5   : > { %5723 = vmatprep.mubr.msk.f32.mxu1 %vm371_vm1, %v7630_v8 }
  0xf7   : > { %5774 = vmatmul.mubr.msk.f32.gmra.mrb[86].mxu0 %vm371_vm1, %v6407_v36  ;;  %v7636_v36 = vld [vmem:[#allocation18_spill] sm:$0xff] }
  0xf8   : > { %5724 = vmatmul.mubr.msk.f32.gmra.mrb[86].mxu1 %vm371_vm1, %v7631_v17  ;;  %5776 = vmatprep.mubr.msk.f32.mxu0 %vm371_vm1, %v6411_v37  ;;  %v3211_v37 = vld [vmem:[#allocation2 + $0xc8] sm:$0xff] }
  0xf9   : > { %5726 = vmatprep.mubr.msk.f32.mxu1 %vm371_vm1, %v7632_v50  ;;  %v7650_v50 = vld [vmem:[#allocation32_spill] sm:$0xff] }
  0xfb   : > { %5777 = vmatmul.mubr.msk.f32.gmra.mrb[88].mxu0 %vm371_vm1, %v6423_v40  ;;  %v3212_v40 = vld [vmem:[#allocation2 + $0xd8] sm:$0xff] }
  0xfc   : > { %5727 = vmatmul.mubr.msk.f32.gmra.mrb[88].mxu1 %vm371_vm1, %v7633_v25  ;;  %5779 = vmatprep.mubr.msk.f32.mxu0 %vm371_vm1, %v6427_v41  ;;  %v3213_v41 = vld [vmem:[#allocation2 + $0xe0] sm:$0xff] }
  0xfd   : > { %5729 = vmatprep.mubr.msk.f32.mxu1 %vm371_vm1, %v7634_v26  ;;  %v543_v26 = vld [vmem:[#allocation3 + $0x98] sm:$0xff] }
  0xff   : > { %5780 = vmatmul.mubr.msk.f32.gmra.mrb[90].mxu0 %vm371_vm1, %v6437_v44  ;;  %v7640_v44 = vld [vmem:[#allocation22_spill] sm:$0xff] }
 0x100   : > { %5730 = vmatmul.mubr.msk.f32.gmra.mrb[90].mxu1 %vm371_vm1, %v7635_v31  ;;  %5782 = vmatprep.mubr.msk.f32.mxu0 %vm371_vm1, %v3210_v32  ;;  %v6968_v31 = vld [vmem:[#allocation2 + $0x182] sm:$0xff] }
 0x101   : > { %5732 = vmatprep.mubr.msk.f32.mxu1 %vm371_vm1, %v7636_v36 }
 0x103   : > { %5783 = vmatmul.mubr.msk.f32.gmra.mrb[92].mxu0 %vm371_vm1, %v3211_v37  ;;  %v3228_v37 = vld [vmem:[#allocation2 + $0x198] sm:$0xff] }
 0x104   : > { %5733 = vmatmul.mubr.msk.f32.gmra.mrb[92].mxu1 %vm371_vm1, %v7637_v54  ;;  %5785 = vmatprep.mubr.msk.f32.mxu0 %vm371_vm1, %v3212_v40  ;;  %v545_v40 = vld [vmem:[#allocation3 + $0xa8] sm:$0xff] }
 0x105   : > { %5735 = vmatprep.mubr.msk.f32.mxu1 %vm371_vm1, %v7638_v55 }
 0x107   : > { %5786 = vmatmul.mubr.msk.f32.gmra.mrb[94].mxu0 %vm371_vm1, %v3213_v41  ;;  %v544_v41 = vld [vmem:[#allocation3 + $0xa0] sm:$0xff] }
 0x108   : > { %5736 = vmatmul.mubr.msk.f32.gmra.mrb[94].mxu1 %vm371_vm1, %v7639_v3  ;;  %5788 = vmatprep.mubr.msk.f32.mxu0 %vm371_vm1, %v3214_v60 }
 0x109   : > { %5738 = vmatprep.mubr.msk.f32.mxu1 %vm371_vm1, %v7640_v44  ;;  %v529_v44 = vld [vmem:[#allocation3 + $0x28] sm:$0xff] }
 0x10b   : > { %5789 = vmatmul.mubr.msk.f32.gmra.mrb[96].mxu0 %vm371_vm1, %v3215_v28  ;;  %v3229_v28 = vld [vmem:[#allocation2 + $0x1a0] sm:$0xff] }
 0x10c   : > { %5739 = vmatmul.mubr.msk.f32.gmra.mrb[96].mxu1 %vm371_vm1, %v7641_v63  ;;  %5791 = vmatprep.mubr.msk.f32.mxu0 %vm371_vm1, %v3216_v4 }
 0x10d   : > { %5741 = vmatprep.mubr.msk.f32.mxu1 %vm371_vm1, %v7642_v6  ;;  %v528_v6 = vld [vmem:[#allocation3 + $0x20] sm:$0xff] }
 0x10f   : > { %5792 = vmatmul.mubr.msk.f32.gmra.mrb[98].mxu0 %vm371_vm1, %v3217_v11 }
 0x110   : > { %5742 = vmatmul.mubr.msk.f32.gmra.mrb[98].mxu1 %vm371_vm1, %v7643_v12  ;;  %5794 = vmatprep.mubr.msk.f32.mxu0 %vm371_vm1, %v6364_v23  ;;  %v5466_v23 = vpop.f32.mrb[0].mxu0  ;;  %v547_v12 = vld [vmem:[#allocation3 + $0xb8] sm:$0xff] }
 0x111   : > { %5744 = vmatprep.mubr.msk.f32.mxu1 %vm371_vm1, %v7644_v18  ;;  %v879_v62 = vadd.f32 %v5466_v23, %v525_v45  ;;  %v719_v5 = vpop.f32.mrb[1].mxu0  ;;  %v546_v18 = vld [vmem:[#allocation3 + $0xb0] sm:$0xff] }
 0x112   : > { %v530_v23 = vld [vmem:[#allocation3 + $0x30] sm:$0xff] }
 0x113   : > { %5795 = vmatmul.mubr.msk.f32.gmra.mrb[100].mxu0 %vm371_vm1, %v6383_v27  ;;  %v878_v27 = vadd.f32 %v719_v5, %v524_v52  ;;  %911 = vst.msk [vmem:[#allocation3 + $0x8] sm:$0xff] %vm371_vm1, %v879_v62  ;;  %v531_v52 = vld [vmem:[#allocation3 + $0x38] sm:$0xff]  ;;  %v549_v5 = vld [vmem:[#allocation3 + $0xc8] sm:$0xff] }
 0x114   : > { %5745 = vmatmul.mubr.msk.f32.gmra.mrb[100].mxu1 %vm371_vm1, %v7645_v19  ;;  %5797 = vmatprep.mubr.msk.f32.mxu0 %vm371_vm1, %v6385_v30  ;;  %v541_v30 = vld [vmem:[#allocation3 + $0x88] sm:$0xff] }
 0x115   : > { %5747 = vmatprep.mubr.msk.f32.mxu1 %vm371_vm1, %v7646_v43  ;;  %910 = vst.msk [vmem:[#allocation3] sm:$0xff] %vm371_vm1, %v878_v27 }
 0x117   : > { %5798 = vmatmul.mubr.msk.f32.gmra.mrb[102].mxu0 %vm371_vm1, %v6399_v33 }
 0x118   : > { %5748 = vmatmul.mubr.msk.f32.gmra.mrb[102].mxu1 %vm371_vm1, %v7647_v49  ;;  %5800 = vmatprep.mubr.msk.f32.mxu0 %vm371_vm1, %v6401_v34 }
 0x119   : > { %5750 = vmatprep.mubr.msk.f32.mxu1 %vm371_vm1, %v7648_v53 }
 0x11b   : > { %5801 = vmatmul.mubr.msk.f32.gmra.mrb[104].mxu0 %vm371_vm1, %v6415_v38 }
 0x11c   : > { %5751 = vmatmul.mubr.msk.f32.gmra.mrb[104].mxu1 %vm371_vm1, %v7649_v48  ;;  %5803 = vmatprep.mubr.msk.f32.mxu0 %vm371_vm1, %v7622_v16  ;;  %v527_v16 = vld [vmem:[#allocation3 + $0x18] sm:$0xff]  ;;  %v548_v48 = vld [vmem:[#allocation3 + $0xc0] sm:$0xff] }
 0x11d   : > { %5753 = vmatprep.mubr.msk.f32.mxu1 %vm371_vm1, %v6677_v56  ;;  %v542_v56 = vld [vmem:[#allocation3 + $0x90] sm:$0xff] }
 0x11f   : > { %v5490_v33 = vpop.f32.mrb[0].mxu1  ;;  %5804 = vmatmul.mubr.msk.f32.gmra.mrb[106].mxu0 %vm371_vm1, %v7623_v29  ;;  %v6979_v29 = vld [vmem:[#allocation2 + $0x18a] sm:$0xff] }
 0x120   : > { %v895_v34 = vadd.f32 %v5490_v33, %v541_v30  ;;  %v799_v0 = vpop.f32.mrb[1].mxu1  ;;  %5754 = vmatmul.mubr.msk.f32.gmra.mrb[106].mxu1 %vm371_vm1, %v7650_v50  ;;  %5806 = vmatprep.mubr.msk.f32.mxu0 %vm371_vm1, %v6835_v22  ;;  %v533_v33 = vld [vmem:[#allocation3 + $0x48] sm:$0xff] }
 0x121   : > { %v894_v25 = vadd.f32 %v799_v0, %v540_v59  ;;  %5756 = vmatprep.mubr.msk.f32.mxu1 %vm371_vm1, %v6693_v51  ;;  %v526_v51 = vld [vmem:[#allocation3 + $0x10] sm:$0xff]  ;;  %v532_v0 = vld [vmem:[#allocation3 + $0x40] sm:$0xff] }
 0x122   : > { %927 = vst.msk [vmem:[#allocation3 + $0x88] sm:$0xff] %vm371_vm1, %v895_v34  ;;  %v5469_v55 = vpop.f32.mrb[2].mxu0 }
 0x123   : > { %926 = vst.msk [vmem:[#allocation3 + $0x80] sm:$0xff] %vm371_vm1, %v894_v25  ;;  %v5493_v38 = vpop.f32.mrb[2].mxu1  ;;  %v881_v3 = vadd.f32 %v5469_v55, %v527_v16  ;;  %v729_v22 = vpop.f32.mrb[3].mxu0  ;;  %5807 = vmatmul.mubr.msk.f32.gmra.mrb[108].mxu0 %vm371_vm1, %v6847_v42  ;;  %v551_v25 = vld [vmem:[#allocation3 + $0xd8] sm:$0xff] }
 0x124   : > { %v897_v32 = vadd.f32 %v5493_v38, %v543_v26  ;;  %v809_v36 = vpop.f32.mrb[3].mxu1  ;;  %5757 = vmatmul.mubr.msk.f32.gmra.mrb[108].mxu1 %vm371_vm1, %v6703_v57  ;;  %v880_v60 = vadd.f32 %v729_v22, %v526_v51  ;;  %5809 = vmatprep.mubr.msk.f32.mxu0 %vm371_vm1, %v3228_v37  ;;  %v550_v26 = vld [vmem:[#allocation3 + $0xd0] sm:$0xff]  ;;  %v535_v16 = vld [vmem:[#allocation3 + $0x58] sm:$0xff] }
 0x125   : > { %v896_v54 = vadd.f32 %v809_v36, %v542_v56  ;;  %5759 = vmatprep.mubr.msk.f32.mxu1 %vm371_vm1, %v6968_v31  ;;  %913 = vst.msk [vmem:[#allocation3 + $0x18] sm:$0xff] %vm371_vm1, %v881_v3  ;;  %v534_v36 = vld [vmem:[#allocation3 + $0x50] sm:$0xff]  ;;  %v537_v3 = vld [vmem:[#allocation3 + $0x68] sm:$0xff] }
 0x126   : > { %929 = vst.msk [vmem:[#allocation3 + $0x98] sm:$0xff] %vm371_vm1, %v897_v32  ;;  %912 = vst.msk [vmem:[#allocation3 + $0x10] sm:$0xff] %vm371_vm1, %v880_v60  ;;  %v5472_v42 = vpop.f32.mrb[4].mxu0  ;;  %v4106_v51 = vld [vmem:[#allocation2 + $0x7a] sm:$0xff]  ;;  %v4107_v22 = vld [vmem:[#allocation2 + $0x82] sm:$0xff] }
 0x127   : > { %928 = vst.msk [vmem:[#allocation3 + $0x90] sm:$0xff] %vm371_vm1, %v896_v54  ;;  %v5496_v57 = vpop.f32.mrb[4].mxu1  ;;  %v883_v19 = vadd.f32 %v5472_v42, %v529_v44  ;;  %v739_v43 = vpop.f32.mrb[5].mxu0  ;;  %5810 = vmatmul.mubr.msk.f32.gmra.mrb[110].mxu0 %vm371_vm1, %v3229_v28  ;;  %v553_v54 = vld [vmem:[#allocation3 + $0xe8] sm:$0xff]  ;;  %v536_v60 = vld [vmem:[#allocation3 + $0x60] sm:$0xff]  ;;  %v539_v42 = vld [vmem:[#allocation3 + $0x78] sm:$0xff] }
 0x128   : > { %v899_v63 = vadd.f32 %v5496_v57, %v545_v40  ;;  %v819_v4 = vpop.f32.mrb[5].mxu1  ;;  %5760 = vmatmul.mubr.msk.f32.gmra.mrb[110].mxu1 %vm371_vm1, %v6979_v29  ;;  %v882_v49 = vadd.f32 %v739_v43, %v528_v6  ;;  %5864 = vmatprep.mubr.msk.f32.mxu0 %vm371_vm1, %v7626_v15  ;;  %v4108_v44 = vld [vmem:[#allocation2 + $0x92] sm:$0xff]  ;;  %v538_v43 = vld [vmem:[#allocation3 + $0x70] sm:$0xff] }
 0x129   : > { %v898_v11 = vadd.f32 %v819_v4, %v544_v41  ;;  %5814 = vmatprep.mubr.msk.f32.mxu1 %vm371_vm1, %v6471_v61  ;;  %915 = vst.msk [vmem:[#allocation3 + $0x28] sm:$0xff] %vm371_vm1, %v883_v19  ;;  %v554_v4 = vld [vmem:[#allocation3 + $0xf0] sm:$0xff] }
 0x12a   : > { %931 = vst.msk [vmem:[#allocation3 + $0xa8] sm:$0xff] %vm371_vm1, %v899_v63  ;;  %914 = vst.msk [vmem:[#allocation3 + $0x20] sm:$0xff] %vm371_vm1, %v882_v49  ;;  %v5475_v27 = vpop.f32.mrb[6].mxu0  ;;  %v555_v63 = vld [vmem:[#allocation3 + $0xf8] sm:$0xff] }
 0x12b   : > { %930 = vst.msk [vmem:[#allocation3 + $0xa0] sm:$0xff] %vm371_vm1, %v898_v11  ;;  %v5499_v45 = vpop.f32.mrb[6].mxu1  ;;  %v885_v15 = vadd.f32 %v5475_v27, %v531_v52  ;;  %v749_v30 = vpop.f32.mrb[7].mxu0  ;;  %5865 = vmatmul.mubr.msk.f32.vlgmr.msra.gmra.mrb[112].mxu0 %vm371_vm1, %v7627_v39  ;;  %v3660_v52 = vld [vmem:[#allocation2 + $0xb1] sm:$0xff] }
 0x12c   : > { %v901_v53 = vadd.f32 %v5499_v45, %v547_v12  ;;  %v829_v61 = vpop.f32.mrb[7].mxu1  ;;  %5815 = vmatmul.mubr.msk.f32.vlgmr.msra.gmra.mrb[112].mxu1 %vm371_vm1, %v6489_v21  ;;  %v884_v59 = vadd.f32 %v749_v30, %v530_v23  ;;  %5867 = vmatprep.mubr.msk.f32.mxu0 %vm371_vm1, %v7628_v1  ;;  %v4110_v45 = vld [vmem:[#allocation2 + $0xaa] sm:$0xff] }
 0x12d   : > { %v900_v62 = vadd.f32 %v829_v61, %v546_v18  ;;  %5817 = vmatprep.mubr.msk.f32.mxu1 %vm371_vm1, %v6491_v2  ;;  %917 = vst.msk [vmem:[#allocation3 + $0x38] sm:$0xff] %vm371_vm1, %v885_v15  ;;  %v4109_v18 = vld [vmem:[#allocation2 + $0x9a] sm:$0xff]  ;;  %v974_v15 = vld [vmem:[#allocation3] sm:$0xff] }
 0x12e   : > { %933 = vst.msk [vmem:[#allocation3 + $0xb8] sm:$0xff] %vm371_vm1, %v901_v53  ;;  %916 = vst.msk [vmem:[#allocation3 + $0x30] sm:$0xff] %vm371_vm1, %v884_v59  ;;  %v5478_v39 = vpop.f32.mrb[8].mxu0  ;;  %v3661_v61 = vld [vmem:[#allocation2 + $0xc1] sm:$0xff] }
 0x12f   : > { %932 = vst.msk [vmem:[#allocation3 + $0xb0] sm:$0xff] %vm371_vm1, %v900_v62  ;;  %v5502_v21 = vpop.f32.mrb[8].mxu1  ;;  %v887_v1 = vadd.f32 %v5478_v39, %v533_v33  ;;  %v759_v56 = vpop.f32.mrb[9].mxu0  ;;  %5868 = vmatmul.mubr.msk.f32.gmra.mrb[114].mxu0 %vm371_vm1, %v7629_v7  ;;  %v3662_v33 = vld [vmem:[#allocation2 + $0xc9] sm:$0xff] }
 0x130   : > { %v903_v2 = vadd.f32 %v5502_v21, %v549_v5  ;;  %v839_v34 = vpop.f32.mrb[9].mxu1  ;;  %5818 = vmatmul.mubr.msk.f32.gmra.mrb[114].mxu1 %vm371_vm1, %v6505_v9  ;;  %v886_v38 = vadd.f32 %v759_v56, %v532_v0  ;;  %5870 = vmatprep.mubr.msk.f32.mxu0 %vm371_vm1, %v7630_v8  ;;  %v552_v8 = vld [vmem:[#allocation3 + $0xe0] sm:$0xff]  ;;  %v4112_v21 = vld [vmem:[#allocation2 + $0xc2] sm:$0xff] }
 0x131   : > { %v902_v50 = vadd.f32 %v839_v34, %v548_v48  ;;  %5820 = vmatprep.mubr.msk.f32.mxu1 %vm371_vm1, %v6507_v10  ;;  %919 = vst.msk [vmem:[#allocation3 + $0x48] sm:$0xff] %vm371_vm1, %v887_v1  ;;  %v4111_v48 = vld [vmem:[#allocation2 + $0xb2] sm:$0xff]  ;;  %v4113_v39 = vld [vmem:[#allocation2 + $0xca] sm:$0xff]  ;;  %v976_v1 = vld [vmem:[#allocation3 + $0x10] sm:$0xff] }
 0x132   : > { %935 = vst.msk [vmem:[#allocation3 + $0xc8] sm:$0xff] %vm371_vm1, %v903_v2  ;;  %918 = vst.msk [vmem:[#allocation3 + $0x40] sm:$0xff] %vm371_vm1, %v886_v38  ;;  %v5481_v7 = vpop.f32.mrb[10].mxu0  ;;  %v3663_v34 = vld [vmem:[#allocation2 + $0xd9] sm:$0xff] }
 0x133   : > { %934 = vst.msk [vmem:[#allocation3 + $0xc0] sm:$0xff] %vm371_vm1, %v902_v50  ;;  %v5505_v9 = vpop.f32.mrb[10].mxu1  ;;  %v889_v40 = vadd.f32 %v5481_v7, %v535_v16  ;;  %v769_v55 = vpop.f32.mrb[11].mxu0  ;;  %5871 = vmatmul.mubr.msk.f32.gmra.mrb[116].mxu0 %vm371_vm1, %v7631_v17  ;;  %v977_v50 = vld [vmem:[#allocation3 + $0x18] sm:$0xff] }
 0x134   : > { %v905_v10 = vadd.f32 %v5505_v9, %v551_v25  ;;  %v849_v32 = vpop.f32.mrb[11].mxu1  ;;  %5821 = vmatmul.mubr.msk.f32.gmra.mrb[116].mxu1 %vm371_vm1, %v6521_v13  ;;  %v888_v41 = vadd.f32 %v769_v55, %v534_v36  ;;  %5873 = vmatprep.mubr.msk.f32.mxu0 %vm371_vm1, %v4106_v51  ;;  %v4114_v9 = vld [vmem:[#allocation2 + $0xda] sm:$0xff]  ;;  %v4116_v55 = vld [vmem:[#allocation2 + $0xf2] sm:$0xff] }
 0x135   : > { %v904_v37 = vadd.f32 %v849_v32, %v550_v26  ;;  %5823 = vmatprep.mubr.msk.f32.mxu1 %vm371_vm1, %v6523_v14  ;;  %921 = vst.msk [vmem:[#allocation3 + $0x58] sm:$0xff] %vm371_vm1, %v889_v40  ;;  %v3664_v16 = vld [vmem:[#allocation2 + $0xe1] sm:$0xff]  ;;  %v3665_v32 = vld [vmem:[#allocation2 + $0xf1] sm:$0xff] }
 0x136   : > { %937 = vst.msk [vmem:[#allocation3 + $0xd8] sm:$0xff] %vm371_vm1, %v905_v10  ;;  %920 = vst.msk [vmem:[#allocation3 + $0x50] sm:$0xff] %vm371_vm1, %v888_v41  ;;  %v5484_v17 = vpop.f32.mrb[12].mxu0  ;;  %v979_v51 = vld [vmem:[#allocation3 + $0x28] sm:$0xff] }
 0x137   : > { %936 = vst.msk [vmem:[#allocation3 + $0xd0] sm:$0xff] %vm371_vm1, %v904_v37  ;;  %v5508_v13 = vpop.f32.mrb[12].mxu1  ;;  %v891_v6 = vadd.f32 %v5484_v17, %v537_v3  ;;  %v779_v11 = vpop.f32.mrb[13].mxu0  ;;  %5874 = vmatmul.mubr.msk.f32.gmra.mrb[118].mxu0 %vm371_vm1, %v4107_v22  ;;  %v3666_v3 = vld [vmem:[#allocation2 + $0xf9] sm:$0xff] }
 0x138   : > { %v907_v14 = vadd.f32 %v5508_v13, %v553_v54  ;;  %v859_v57 = vpop.f32.mrb[13].mxu1  ;;  %5824 = vmatmul.mubr.msk.f32.gmra.mrb[118].mxu1 %vm371_vm1, %v6537_v20  ;;  %v890_v12 = vadd.f32 %v779_v11, %v536_v60  ;;  %5876 = vmatprep.mubr.msk.f32.mxu0 %vm371_vm1, %v4108_v44  ;;  %v4115_v54 = vld [vmem:[#allocation2 + $0xe2] sm:$0xff] }
 0x139   : > { %v906_v28 = vadd.f32 %v859_v57, %v552_v8  ;;  %5826 = vmatprep.mubr.msk.f32.mxu1 %vm371_vm1, %v6539_v24  ;;  %923 = vst.msk [vmem:[#allocation3 + $0x68] sm:$0xff] %vm371_vm1, %v891_v6  ;;  %v978_v8 = vld [vmem:[#allocation3 + $0x20] sm:$0xff]  ;;  %v980_v11 = vld [vmem:[#allocation3 + $0x30] sm:$0xff] }
 0x13a   : > { %939 = vst.msk [vmem:[#allocation3 + $0xe8] sm:$0xff] %vm371_vm1, %v907_v14  ;;  %922 = vst.msk [vmem:[#allocation3 + $0x60] sm:$0xff] %vm371_vm1, %v890_v12  ;;  %v5487_v53 = vpop.f32.mrb[14].mxu0  ;;  %v3667_v60 = vld [vmem:[#allocation2 + $0x109] sm:$0xff] }
 0x13b   : > { %938 = vst.msk [vmem:[#allocation3 + $0xe0] sm:$0xff] %vm371_vm1, %v906_v28  ;;  %v5511_v20 = vpop.f32.mrb[14].mxu1  ;;  %v893_v23 = vadd.f32 %v5487_v53, %v539_v42  ;;  %v789_v62 = vpop.f32.mrb[15].mxu0  ;;  %5877 = vmatmul.mubr.msk.f32.gmra.mrb[120].mxu0 %vm371_vm1, %v4109_v18  ;;  %v4118_v12 = vld [vmem:[#allocation2 + $0x10a] sm:$0xff] }
 0x13c   : > { %v909_v19 = vadd.f32 %v5511_v20, %v555_v63  ;;  %v869_v24 = vpop.f32.mrb[15].mxu1  ;;  %5827 = vmatmul.mubr.msk.f32.gmra.mrb[120].mxu1 %vm371_vm1, %v6553_v46  ;;  %v975_v46 = vld [vmem:[#allocation3 + $0x8] sm:$0xff]  ;;  %v892_v27 = vadd.f32 %v789_v62, %v538_v43  ;;  %5879 = vmatprep.mubr.msk.f32.mxu0 %vm371_vm1, %v4110_v45  ;;  %v981_v63 = vld [vmem:[#allocation3 + $0x38] sm:$0xff] }
 0x13d   : > { %v908_v49 = vadd.f32 %v869_v24, %v554_v4  ;;  %5829 = vmatprep.mubr.msk.f32.mxu1 %vm371_vm1, %v6555_v47  ;;  %925 = vst.msk [vmem:[#allocation3 + $0x78] sm:$0xff] %vm371_vm1, %v893_v23  ;;  %v4117_v4 = vld [vmem:[#allocation2 + $0xfa] sm:$0xff]  ;;  %v4119_v62 = vld [vmem:[#allocation2 + $0x112] sm:$0xff] }
 0x13e   : > { %941 = vst.msk [vmem:[#allocation3 + $0xf8] sm:$0xff] %vm371_vm1, %v909_v19  ;;  %924 = vst.msk [vmem:[#allocation3 + $0x70] sm:$0xff] %vm371_vm1, %v892_v27  ;;  %v5566_v2 = vpop.f32.mrb[16].mxu0  ;;  %v3668_v19 = vld [vmem:[#allocation2 + $0x111] sm:$0xff] }
 0x13f   : > { %940 = vst.msk [vmem:[#allocation3 + $0xf0] sm:$0xff] %vm371_vm1, %v908_v49  ;;  %v5516_v5 = vpop.f32.mrb[16].mxu1  ;;  %v1621_v0 = vpop.f32.mrb[17].mxu0  ;;  %5880 = vmatmul.mubr.msk.f32.gmra.mrb[122].mxu0 %vm371_vm1, %v4111_v48  ;;  %v3669_v49 = vld [vmem:[#allocation2 + $0x121] sm:$0xff] }
 0x140   : > { %v1330_v47 = vadd.f32 %v5516_v5, %v975_v46  ;;  %v1170_v30 = vpop.f32.mrb[17].mxu1  ;;  %5830 = vmatmul.mubr.msk.f32.gmra.mrb[122].mxu1 %vm371_vm1, %v3660_v52  ;;  %5882 = vmatprep.mubr.msk.f32.mxu0 %vm371_vm1, %v4112_v21  ;;  %v982_v5 = vld [vmem:[#allocation3 + $0x40] sm:$0xff]  ;;  %v4120_v48 = vld [vmem:[#allocation2 + $0x122] sm:$0xff] }
 0x141   : > { %v1329_v59 = vadd.f32 %v1170_v30, %v974_v15  ;;  %5832 = vmatprep.mubr.msk.f32.mxu1 %vm371_vm1, %v3661_v61  ;;  %v983_v61 = vld [vmem:[#allocation3 + $0x48] sm:$0xff]  ;;  %v3670_v30 = vld [vmem:[#allocation2 + $0x129] sm:$0xff] }
 0x142   : > { %1362 = vst.msk [vmem:[#allocation3 + $0x8] sm:$0xff] %vm371_vm1, %v1330_v47  ;;  %v5569_v10 = vpop.f32.mrb[18].mxu0 }
 0x143   : > { %1361 = vst.msk [vmem:[#allocation3] sm:$0xff] %vm371_vm1, %v1329_v59  ;;  %v5519_v25 = vpop.f32.mrb[18].mxu1  ;;  %v1631_v36 = vpop.f32.mrb[19].mxu0  ;;  %5883 = vmatmul.mubr.msk.f32.gmra.mrb[124].mxu0 %vm371_vm1, %v4113_v39  ;;  %v4121_v39 = vld [vmem:[#allocation2 + $0x12a] sm:$0xff] }
 0x144   : > { %v1332_v26 = vadd.f32 %v5519_v25, %v977_v50  ;;  %v1180_v56 = vpop.f32.mrb[19].mxu1  ;;  %5833 = vmatmul.mubr.msk.f32.gmra.mrb[124].mxu1 %vm371_vm1, %v3662_v33  ;;  %5885 = vmatprep.mubr.msk.f32.mxu0 %vm371_vm1, %v4114_v9  ;;  %v985_v50 = vld [vmem:[#allocation3 + $0x58] sm:$0xff]  ;;  %v4122_v9 = vld [vmem:[#allocation2 + $0x13a] sm:$0xff] }
 0x145   : > { %v1331_v38 = vadd.f32 %v1180_v56, %v976_v1  ;;  %5835 = vmatprep.mubr.msk.f32.mxu1 %vm371_vm1, %v3663_v34  ;;  %v984_v1 = vld [vmem:[#allocation3 + $0x50] sm:$0xff] }
 0x146   : > { %1364 = vst.msk [vmem:[#allocation3 + $0x18] sm:$0xff] %vm371_vm1, %v1332_v26  ;;  %v5572_v22 = vpop.f32.mrb[20].mxu0 }
 0x147   : > { %1363 = vst.msk [vmem:[#allocation3 + $0x10] sm:$0xff] %vm371_vm1, %v1331_v38  ;;  %v5522_v37 = vpop.f32.mrb[20].mxu1  ;;  %v1641_v44 = vpop.f32.mrb[21].mxu0  ;;  %5886 = vmatmul.mubr.msk.f32.gmra.mrb[126].mxu0 %vm371_vm1, %v4115_v54 }
 0x148   : > { %v1334_v7 = vadd.f32 %v5522_v37, %v979_v51  ;;  %v1190_v40 = vpop.f32.mrb[21].mxu1  ;;  %5836 = vmatmul.mubr.msk.f32.gmra.mrb[126].mxu1 %vm371_vm1, %v3664_v16  ;;  %5888 = vmatprep.mubr.msk.f32.mxu0 %vm371_vm1, %v4116_v55  ;;  %v3673_v37 = vld [vmem:[#allocation2 + $0x151] sm:$0xff]  ;;  %v4123_v55 = vld [vmem:[#allocation2 + $0x142] sm:$0xff] }
 0x149   : > { %v1333_v13 = vadd.f32 %v1190_v40, %v978_v8  ;;  %v1426_v41 = vld [vmem:[#allocation3 + $0x8] sm:$0xff]  ;;  %5838 = vmatprep.mubr.msk.f32.mxu1 %vm371_vm1, %v3665_v32 }
 0x14a   : > { %1366 = vst.msk [vmem:[#allocation3 + $0x28] sm:$0xff] %vm371_vm1, %v1334_v7  ;;  %v1781_v14 = vadd.f32 %v5566_v2, %v1426_v41  ;;  %v1425_v57 = vld [vmem:[#allocation3] sm:$0xff]  ;;  %v5575_v24 = vpop.f32.mrb[22].mxu0  ;;  %v3671_v2 = vld [vmem:[#allocation2 + $0x139] sm:$0xff] }
 0x14b   : > { %1365 = vst.msk [vmem:[#allocation3 + $0x20] sm:$0xff] %vm371_vm1, %v1333_v13  ;;  %v1780_v28 = vadd.f32 %v1621_v0, %v1425_v57  ;;  %v5525_v17 = vpop.f32.mrb[22].mxu1  ;;  %v1651_v52 = vpop.f32.mrb[23].mxu0  ;;  %5889 = vmatmul.mubr.msk.f32.gmra.mrb[128].mxu0 %vm371_vm1, %v4117_v4  ;;  %v987_v8 = vld [vmem:[#allocation3 + $0x68] sm:$0xff]  ;;  %v986_v41 = vld [vmem:[#allocation3 + $0x60] sm:$0xff] }
 0x14c   : > { %1813 = vst.msk [vmem:[#allocation3 + $0x8] sm:$0xff] %vm371_vm1, %v1781_v14  ;;  %v1336_v6 = vadd.f32 %v5525_v17, %v981_v63  ;;  %v1200_v20 = vpop.f32.mrb[23].mxu1  ;;  %5839 = vmatmul.mubr.msk.f32.gmra.mrb[128].mxu1 %vm371_vm1, %v3666_v3  ;;  %5891 = vmatprep.mubr.msk.f32.mxu0 %vm371_vm1, %v4118_v12  ;;  %v3675_v17 = vld [vmem:[#allocation2 + $0x169] sm:$0xff]  ;;  %v4125_v12 = vld [vmem:[#allocation2 + $0x15a] sm:$0xff] }
 0x14d   : > { %1812 = vst.msk [vmem:[#allocation3] sm:$0xff] %vm371_vm1, %v1780_v28  ;;  %v1335_v42 = vadd.f32 %v1200_v20, %v980_v11  ;;  %v1428_v18 = vld [vmem:[#allocation3 + $0x18] sm:$0xff]  ;;  %5841 = vmatprep.mubr.msk.f32.mxu1 %vm371_vm1, %v3667_v60  ;;  %v3674_v60 = vld [vmem:[#allocation2 + $0x159] sm:$0xff] }
 0x14e   : > { %1368 = vst.msk [vmem:[#allocation3 + $0x38] sm:$0xff] %vm371_vm1, %v1336_v6  ;;  %v1783_v43 = vadd.f32 %v5569_v10, %v1428_v18  ;;  %v1427_v45 = vld [vmem:[#allocation3 + $0x10] sm:$0xff]  ;;  %v5578_v21 = vpop.f32.mrb[24].mxu0  ;;  %v989_v11 = vld [vmem:[#allocation3 + $0x78] sm:$0xff] }
 0x14f   : > { %1367 = vst.msk [vmem:[#allocation3 + $0x30] sm:$0xff] %vm371_vm1, %v1335_v42  ;;  %v1782_v53 = vadd.f32 %v1631_v36, %v1427_v45  ;;  %v5528_v23 = vpop.f32.mrb[24].mxu1  ;;  %v1661_v34 = vpop.f32.mrb[25].mxu0  ;;  %5892 = vmatmul.mubr.msk.f32.gmra.mrb[130].mxu0 %vm371_vm1, %v4119_v62  ;;  %v3672_v10 = vld [vmem:[#allocation2 + $0x141] sm:$0xff] }
 0x150   : > { %1815 = vst.msk [vmem:[#allocation3 + $0x18] sm:$0xff] %vm371_vm1, %v1783_v43  ;;  %v1338_v46 = vadd.f32 %v5528_v23, %v983_v61  ;;  %v1210_v27 = vpop.f32.mrb[25].mxu1  ;;  %5842 = vmatmul.mubr.msk.f32.gmra.mrb[130].mxu1 %vm371_vm1, %v3668_v19  ;;  %5894 = vmatprep.mubr.msk.f32.mxu0 %vm371_vm1, %v4120_v48  ;;  %v988_v18 = vld [vmem:[#allocation3 + $0x70] sm:$0xff] }
 0x151   : > { %1814 = vst.msk [vmem:[#allocation3 + $0x10] sm:$0xff] %vm371_vm1, %v1782_v53  ;;  %v1337_v47 = vadd.f32 %v1210_v27, %v982_v5  ;;  %v1430_v15 = vld [vmem:[#allocation3 + $0x28] sm:$0xff]  ;;  %5844 = vmatprep.mubr.msk.f32.mxu1 %vm371_vm1, %v3669_v49 }
 0x152   : > { %1370 = vst.msk [vmem:[#allocation3 + $0x48] sm:$0xff] %vm371_vm1, %v1338_v46  ;;  %v1785_v59 = vadd.f32 %v5572_v22, %v1430_v15  ;;  %v1429_v33 = vld [vmem:[#allocation3 + $0x20] sm:$0xff]  ;;  %v5581_v32 = vpop.f32.mrb[26].mxu0  ;;  %v991_v46 = vld [vmem:[#allocation3 + $0x88] sm:$0xff] }
 0x153   : > { %1369 = vst.msk [vmem:[#allocation3 + $0x40] sm:$0xff] %vm371_vm1, %v1337_v47  ;;  %v1784_v0 = vadd.f32 %v1641_v44, %v1429_v33  ;;  %v5531_v25 = vpop.f32.mrb[26].mxu1  ;;  %v1671_v54 = vpop.f32.mrb[27].mxu0  ;;  %5895 = vmatmul.mubr.msk.f32.gmra.mrb[132].mxu0 %vm371_vm1, %v4121_v39  ;;  %v4124_v22 = vld [vmem:[#allocation2 + $0x152] sm:$0xff] }
 0x154   : > { %1817 = vst.msk [vmem:[#allocation3 + $0x28] sm:$0xff] %vm371_vm1, %v1785_v59  ;;  %v1340_v26 = vadd.f32 %v5531_v25, %v985_v50  ;;  %v1220_v56 = vpop.f32.mrb[27].mxu1  ;;  %5845 = vmatmul.mubr.msk.f32.gmra.mrb[132].mxu1 %vm371_vm1, %v3670_v30  ;;  %5897 = vmatprep.mubr.msk.f32.mxu0 %vm371_vm1, %v4122_v9  ;;  %v3676_v49 = vld [vmem:[#allocation2 + $0x171] sm:$0xff]  ;;  %v993_v25 = vld [vmem:[#allocation3 + $0x98] sm:$0xff] }
 0x155   : > { %1816 = vst.msk [vmem:[#allocation3 + $0x20] sm:$0xff] %vm371_vm1, %v1784_v0  ;;  %v1339_v38 = vadd.f32 %v1220_v56, %v984_v1  ;;  %v1432_v16 = vld [vmem:[#allocation3 + $0x38] sm:$0xff]  ;;  %5847 = vmatprep.mubr.msk.f32.mxu1 %vm371_vm1, %v3671_v2  ;;  %v4127_v27 = vld [vmem:[#allocation2 + $0x172] sm:$0xff]  ;;  %v4130_v56 = vld [vmem:[#allocation2 + $0x19a] sm:$0xff] }
 0x156   : > { %1372 = vst.msk [vmem:[#allocation3 + $0x58] sm:$0xff] %vm371_vm1, %v1340_v26  ;;  %v1787_v36 = vadd.f32 %v5575_v24, %v1432_v16  ;;  %v1431_v51 = vld [vmem:[#allocation3 + $0x30] sm:$0xff]  ;;  %v5584_v44 = vpop.f32.mrb[28].mxu0  ;;  %v4126_v24 = vld [vmem:[#allocation2 + $0x16a] sm:$0xff] }
 0x157   : > { %1371 = vst.msk [vmem:[#allocation3 + $0x50] sm:$0xff] %vm371_vm1, %v1339_v38  ;;  %v1786_v7 = vadd.f32 %v1651_v52, %v1431_v51  ;;  %v5534_v40 = vpop.f32.mrb[28].mxu1  ;;  %v1681_v4 = vpop.f32.mrb[29].mxu0  ;;  %5898 = vmatmul.mubr.msk.f32.gmra.mrb[134].mxu0 %vm371_vm1, %v4123_v55  ;;  %v990_v47 = vld [vmem:[#allocation3 + $0x80] sm:$0xff]  ;;  %v992_v26 = vld [vmem:[#allocation3 + $0x90] sm:$0xff]  ;;  %v995_v51 = vld [vmem:[#allocation3 + $0xa8] sm:$0xff] }
 0x158   : > { %1819 = vst.msk [vmem:[#allocation3 + $0x38] sm:$0xff] %vm371_vm1, %v1787_v36  ;;  %v1342_v13 = vadd.f32 %v5534_v40, %v987_v8  ;;  %v1230_v3 = vpop.f32.mrb[29].mxu1  ;;  %5848 = vmatmul.mubr.msk.f32.gmra.mrb[134].mxu1 %vm371_vm1, %v3672_v10  ;;  %5900 = vmatprep.mubr.msk.f32.mxu0 %vm371_vm1, %v4124_v22  ;;  %v3680_v16 = vld [vmem:[#allocation2 + $0x1a1] sm:$0xff]  ;;  %v994_v8 = vld [vmem:[#allocation3 + $0xa0] sm:$0xff] }
 0x159   : > { %1818 = vst.msk [vmem:[#allocation3 + $0x30] sm:$0xff] %vm371_vm1, %v1786_v7  ;;  %v1341_v14 = vadd.f32 %v1230_v3, %v986_v41  ;;  %v1434_v57 = vld [vmem:[#allocation3 + $0x48] sm:$0xff]  ;;  %5850 = vmatprep.mubr.msk.f32.mxu1 %vm371_vm1, %v3673_v37 }
 0x15a   : > { %1374 = vst.msk [vmem:[#allocation3 + $0x68] sm:$0xff] %vm371_vm1, %v1342_v13  ;;  %v1789_v28 = vadd.f32 %v5578_v21, %v1434_v57  ;;  %v1433_v63 = vld [vmem:[#allocation3 + $0x40] sm:$0xff]  ;;  %v5587_v52 = vpop.f32.mrb[30].mxu0  ;;  %v997_v57 = vld [vmem:[#allocation3 + $0xb8] sm:$0xff] }
 0x15b   : > { %1373 = vst.msk [vmem:[#allocation3 + $0x60] sm:$0xff] %vm371_vm1, %v1341_v14  ;;  %v1788_v6 = vadd.f32 %v1661_v34, %v1433_v63  ;;  %v5537_v20 = vpop.f32.mrb[30].mxu1  ;;  %v1691_v23 = vpop.f32.mrb[31].mxu0  ;;  %5901 = vmatmul.mubr.msk.f32.gmra.mrb[136].mxu0 %vm371_vm1, %v4125_v12  ;;  %v3679_v34 = vld [vmem:[#allocation2 + $0x199] sm:$0xff] }
 0x15c   : > { %1821 = vst.msk [vmem:[#allocation3 + $0x48] sm:$0xff] %vm371_vm1, %v1789_v28  ;;  %v1344_v42 = vadd.f32 %v5537_v20, %v989_v11  ;;  %v1240_v19 = vpop.f32.mrb[31].mxu1  ;;  %5851 = vmatmul.mubr.msk.f32.gmra.mrb[136].mxu1 %vm371_vm1, %v3674_v60  ;;  %5903 = vmatprep.mubr.msk.f32.mxu0 %vm371_vm1, %v4126_v24  ;;  %v996_v28 = vld [vmem:[#allocation3 + $0xb0] sm:$0xff] }
 0x15d   : > { %1820 = vst.msk [vmem:[#allocation3 + $0x40] sm:$0xff] %vm371_vm1, %v1788_v6  ;;  %v1343_v43 = vadd.f32 %v1240_v19, %v988_v18  ;;  %v1436_v45 = vld [vmem:[#allocation3 + $0x58] sm:$0xff]  ;;  %5853 = vmatprep.mubr.msk.f32.mxu1 %vm371_vm1, %v3675_v17  ;;  %v999_v18 = vld [vmem:[#allocation3 + $0xc8] sm:$0xff] }
 0x15e   : > { %1376 = vst.msk [vmem:[#allocation3 + $0x78] sm:$0xff] %vm371_vm1, %v1344_v42  ;;  %v1791_v53 = vadd.f32 %v5581_v32, %v1436_v45  ;;  %v1435_v61 = vld [vmem:[#allocation3 + $0x50] sm:$0xff]  ;;  %v5590_v59 = vpop.f32.mrb[32].mxu0 }
 0x15f   : > { %1375 = vst.msk [vmem:[#allocation3 + $0x70] sm:$0xff] %vm371_vm1, %v1343_v43  ;;  %v1790_v62 = vadd.f32 %v1671_v54, %v1435_v61  ;;  %v5540_v5 = vpop.f32.mrb[32].mxu1  ;;  %v1701_v0 = vpop.f32.mrb[33].mxu0  ;;  %5904 = vmatmul.mubr.msk.f32.gmra.mrb[138].mxu0 %vm371_vm1, %v4127_v27  ;;  %v4131_v54 = vld [vmem:[#allocation2 + $0x1a2] sm:$0xff]  ;;  %v998_v43 = vld [vmem:[#allocation3 + $0xc0] sm:$0xff] }
 0x160   : > { %1823 = vst.msk [vmem:[#allocation3 + $0x58] sm:$0xff] %vm371_vm1, %v1791_v53  ;;  %v1346_v48 = vadd.f32 %v5540_v5, %v991_v46  ;;  %v1250_v15 = vpop.f32.mrb[33].mxu1  ;;  %5854 = vmatmul.mubr.msk.f32.gmra.mrb[138].mxu1 %vm371_vm1, %v3676_v49  ;;  %5906 = vmatprep.mubr.msk.f32.mxu0 %vm371_vm1, %v6968_v31  ;;  %v1001_v5 = vld [vmem:[#allocation3 + $0xd8] sm:$0xff] }
 0x161   : > { %1822 = vst.msk [vmem:[#allocation3 + $0x50] sm:$0xff] %vm371_vm1, %v1790_v62  ;;  %v1345_v30 = vadd.f32 %v1250_v15, %v990_v47  ;;  %v1438_v21 = vld [vmem:[#allocation3 + $0x68] sm:$0xff]  ;;  %5856 = vmatprep.mubr.msk.f32.mxu1 %vm371_vm1, %v6843_v35  ;;  %v1000_v47 = vld [vmem:[#allocation3 + $0xd0] sm:$0xff] }
 0x162   : > { %1378 = vst.msk [vmem:[#allocation3 + $0x88] sm:$0xff] %vm371_vm1, %v1346_v48  ;;  %v1793_v33 = vadd.f32 %v5584_v44, %v1438_v21  ;;  %v1437_v2 = vld [vmem:[#allocation3 + $0x60] sm:$0xff]  ;;  %v5593_v10 = vpop.f32.mrb[34].mxu0 }
 0x163   : > { %1377 = vst.msk [vmem:[#allocation3 + $0x80] sm:$0xff] %vm371_vm1, %v1345_v30  ;;  %v1792_v50 = vadd.f32 %v1681_v4, %v1437_v2  ;;  %v5543_v39 = vpop.f32.mrb[34].mxu1  ;;  %v1711_v36 = vpop.f32.mrb[35].mxu0  ;;  %5907 = vmatmul.mubr.msk.f32.gmra.mrb[140].mxu0 %vm371_vm1, %v6979_v29 }
 0x164   : > { %1825 = vst.msk [vmem:[#allocation3 + $0x68] sm:$0xff] %vm371_vm1, %v1793_v33  ;;  %v1348_v35 = vadd.f32 %v5543_v39, %v993_v25  ;;  %v1260_v1 = vpop.f32.mrb[35].mxu1  ;;  %5857 = vmatmul.mubr.msk.f32.gmra.mrb[140].mxu1 %vm371_vm1, %v6853_v58  ;;  %5909 = vmatprep.mubr.msk.f32.mxu0 %vm371_vm1, %v4130_v56 }
 0x165   : > { %1824 = vst.msk [vmem:[#allocation3 + $0x60] sm:$0xff] %vm371_vm1, %v1792_v50  ;;  %v1347_v9 = vadd.f32 %v1260_v1, %v992_v26  ;;  %v1440_v38 = vld [vmem:[#allocation3 + $0x78] sm:$0xff]  ;;  %5859 = vmatprep.mubr.msk.f32.mxu1 %vm371_vm1, %v3679_v34  ;;  %v1003_v50 = vld [vmem:[#allocation3 + $0xe8] sm:$0xff] }
 0x166   : > { %1380 = vst.msk [vmem:[#allocation3 + $0x98] sm:$0xff] %vm371_vm1, %v1348_v35  ;;  %v1795_v31 = vadd.f32 %v5587_v52, %v1440_v38  ;;  %v1439_v32 = vld [vmem:[#allocation3 + $0x70] sm:$0xff]  ;;  %v5596_v29 = vpop.f32.mrb[36].mxu0  ;;  %v1002_v35 = vld [vmem:[#allocation3 + $0xe0] sm:$0xff] }
 0x167   : > { %1379 = vst.msk [vmem:[#allocation3 + $0x90] sm:$0xff] %vm371_vm1, %v1347_v9  ;;  %v1794_v58 = vadd.f32 %v1691_v23, %v1439_v32  ;;  %v5546_v37 = vpop.f32.mrb[36].mxu1  ;;  %v1721_v22 = vpop.f32.mrb[37].mxu0  ;;  %5910 = vmatmul.mubr.msk.f32.gmra.mrb[142].mxu0 %vm371_vm1, %v4131_v54  ;;  %v1005_v32 = vld [vmem:[#allocation3 + $0xf8] sm:$0xff] }
 0x168   : > { %1827 = vst.msk [vmem:[#allocation3 + $0x78] sm:$0xff] %vm371_vm1, %v1795_v31  ;;  %v1350_v7 = vadd.f32 %v5546_v37, %v995_v51  ;;  %v1270_v40 = vpop.f32.mrb[37].mxu1  ;;  %5860 = vmatmul.mubr.msk.f32.gmra.mrb[142].mxu1 %vm371_vm1, %v3680_v16  ;;  %v1004_v51 = vld [vmem:[#allocation3 + $0xf0] sm:$0xff] }
 0x169   : > { %1826 = vst.msk [vmem:[#allocation3 + $0x70] sm:$0xff] %vm371_vm1, %v1794_v58  ;;  %v1349_v55 = vadd.f32 %v1270_v40, %v994_v8  ;;  %v1442_v13 = vld [vmem:[#allocation3 + $0x88] sm:$0xff] }
 0x16a   : > { %1382 = vst.msk [vmem:[#allocation3 + $0xa8] sm:$0xff] %vm371_vm1, %v1350_v7  ;;  %v1797_v41 = vadd.f32 %v5590_v59, %v1442_v13  ;;  %v1441_v3 = vld [vmem:[#allocation3 + $0x80] sm:$0xff]  ;;  %v5599_v6 = vpop.f32.mrb[38].mxu0 }
 0x16b   : > { %1381 = vst.msk [vmem:[#allocation3 + $0xa0] sm:$0xff] %vm371_vm1, %v1349_v55  ;;  %v1796_v14 = vadd.f32 %v1701_v0, %v1441_v3  ;;  %v5549_v60 = vpop.f32.mrb[38].mxu1  ;;  %v1731_v12 = vpop.f32.mrb[39].mxu0 }
 0x16c   : > { %1829 = vst.msk [vmem:[#allocation3 + $0x88] sm:$0xff] %vm371_vm1, %v1797_v41  ;;  %v1352_v44 = vadd.f32 %v5549_v60, %v997_v57  ;;  %v1280_v63 = vpop.f32.mrb[39].mxu1  ;;  %v1877_v41 = vld [vmem:[#allocation3 + $0x8] sm:$0xff] }
 0x16d   : > { %1828 = vst.msk [vmem:[#allocation3 + $0x80] sm:$0xff] %vm371_vm1, %v1796_v14  ;;  %v1351_v17 = vadd.f32 %v1280_v63, %v996_v28  ;;  %v1444_v4 = vld [vmem:[#allocation3 + $0x98] sm:$0xff]  ;;  %v1876_v14 = vld [vmem:[#allocation3] sm:$0xff] }
 0x16e   : > { %1384 = vst.msk [vmem:[#allocation3 + $0xb8] sm:$0xff] %vm371_vm1, %v1352_v44  ;;  %v1799_v11 = vadd.f32 %v5593_v10, %v1444_v4  ;;  %v1443_v20 = vld [vmem:[#allocation3 + $0x90] sm:$0xff]  ;;  %v5602_v53 = vpop.f32.mrb[40].mxu0 }
 0x16f   : > { %1383 = vst.msk [vmem:[#allocation3 + $0xb0] sm:$0xff] %vm371_vm1, %v1351_v17  ;;  %v1798_v42 = vadd.f32 %v1711_v36, %v1443_v20  ;;  %v5552_v19 = vpop.f32.mrb[40].mxu1  ;;  %v1741_v62 = vpop.f32.mrb[41].mxu0 }
 0x170   : > { %1831 = vst.msk [vmem:[#allocation3 + $0x98] sm:$0xff] %vm371_vm1, %v1799_v11  ;;  %v1354_v24 = vadd.f32 %v5552_v19, %v999_v18  ;;  %v1290_v45 = vpop.f32.mrb[41].mxu1  ;;  %v1879_v11 = vld [vmem:[#allocation3 + $0x18] sm:$0xff] }
 0x171   : > { %1830 = vst.msk [vmem:[#allocation3 + $0x90] sm:$0xff] %vm371_vm1, %v1798_v42  ;;  %v1353_v49 = vadd.f32 %v1290_v45, %v998_v43  ;;  %v1446_v52 = vld [vmem:[#allocation3 + $0xa8] sm:$0xff]  ;;  %v1878_v42 = vld [vmem:[#allocation3 + $0x10] sm:$0xff] }
 0x172   : > { %1386 = vst.msk [vmem:[#allocation3 + $0xc8] sm:$0xff] %vm371_vm1, %v1354_v24  ;;  %v1801_v61 = vadd.f32 %v5596_v29, %v1446_v52  ;;  %v1445_v23 = vld [vmem:[#allocation3 + $0xa0] sm:$0xff]  ;;  %v5605_v59 = vpop.f32.mrb[42].mxu0 }
 0x173   : > { %1385 = vst.msk [vmem:[#allocation3 + $0xc0] sm:$0xff] %vm371_vm1, %v1353_v49  ;;  %v1800_v46 = vadd.f32 %v1721_v22, %v1445_v23  ;;  %v5555_v27 = vpop.f32.mrb[42].mxu1  ;;  %v1751_v34 = vpop.f32.mrb[43].mxu0 }
 0x174   : > { %1833 = vst.msk [vmem:[#allocation3 + $0xa8] sm:$0xff] %vm371_vm1, %v1801_v61  ;;  %v1356_v48 = vadd.f32 %v5555_v27, %v1001_v5  ;;  %v1300_v15 = vpop.f32.mrb[43].mxu1  ;;  %v1881_v61 = vld [vmem:[#allocation3 + $0x28] sm:$0xff] }
 0x175   : > { %1832 = vst.msk [vmem:[#allocation3 + $0xa0] sm:$0xff] %vm371_vm1, %v1800_v46  ;;  %v1355_v30 = vadd.f32 %v1300_v15, %v1000_v47  ;;  %v1448_v21 = vld [vmem:[#allocation3 + $0xb8] sm:$0xff]  ;;  %v1880_v46 = vld [vmem:[#allocation3 + $0x20] sm:$0xff] }
 0x176   : > { %1388 = vst.msk [vmem:[#allocation3 + $0xd8] sm:$0xff] %vm371_vm1, %v1356_v48  ;;  %v1803_v33 = vadd.f32 %v5599_v6, %v1448_v21  ;;  %v1447_v2 = vld [vmem:[#allocation3 + $0xb0] sm:$0xff]  ;;  %v5608_v9 = vpop.f32.mrb[44].mxu0 }
 0x177   : > { %1387 = vst.msk [vmem:[#allocation3 + $0xd0] sm:$0xff] %vm371_vm1, %v1355_v30  ;;  %v1802_v0 = vadd.f32 %v1731_v12, %v1447_v2  ;;  %v5558_v25 = vpop.f32.mrb[44].mxu1  ;;  %v1761_v10 = vpop.f32.mrb[45].mxu0 }
 0x178   : > { %1835 = vst.msk [vmem:[#allocation3 + $0xb8] sm:$0xff] %vm371_vm1, %v1803_v33  ;;  %v1358_v39 = vadd.f32 %v5558_v25, %v1003_v50  ;;  %v1310_v26 = vpop.f32.mrb[45].mxu1  ;;  %v1883_v33 = vld [vmem:[#allocation3 + $0x38] sm:$0xff] }
 0x179   : > { %1834 = vst.msk [vmem:[#allocation3 + $0xb0] sm:$0xff] %vm371_vm1, %v1802_v0  ;;  %v1357_v1 = vadd.f32 %v1310_v26, %v1002_v35  ;;  %v1450_v56 = vld [vmem:[#allocation3 + $0xc8] sm:$0xff]  ;;  %v1882_v0 = vld [vmem:[#allocation3 + $0x30] sm:$0xff] }
 0x17a   : > { %1390 = vst.msk [vmem:[#allocation3 + $0xe8] sm:$0xff] %vm371_vm1, %v1358_v39  ;;  %v1805_v38 = vadd.f32 %v5602_v53, %v1450_v56  ;;  %v1449_v16 = vld [vmem:[#allocation3 + $0xc0] sm:$0xff]  ;;  %v5611_v8 = vpop.f32.mrb[46].mxu0 }
 0x17b   : > { %1389 = vst.msk [vmem:[#allocation3 + $0xe0] sm:$0xff] %vm371_vm1, %v1357_v1  ;;  %v1804_v31 = vadd.f32 %v1741_v62, %v1449_v16  ;;  %v5561_v36 = vpop.f32.mrb[46].mxu1  ;;  %v1771_v13 = vpop.f32.mrb[47].mxu0 }
 0x17c   : > { %1837 = vst.msk [vmem:[#allocation3 + $0xc8] sm:$0xff] %vm371_vm1, %v1805_v38  ;;  %v1360_v58 = vadd.f32 %v5561_v36, %v1005_v32  ;;  %v1320_v37 = vpop.f32.mrb[47].mxu1  ;;  %v1885_v38 = vld [vmem:[#allocation3 + $0x48] sm:$0xff] }
 0x17d   : > { %1836 = vst.msk [vmem:[#allocation3 + $0xc0] sm:$0xff] %vm371_vm1, %v1804_v31  ;;  %v1359_v54 = vadd.f32 %v1320_v37, %v1004_v51  ;;  %v1452_v7 = vld [vmem:[#allocation3 + $0xd8] sm:$0xff]  ;;  %v1884_v31 = vld [vmem:[#allocation3 + $0x40] sm:$0xff] }
 0x17e   : > { %1392 = vst.msk [vmem:[#allocation3 + $0xf8] sm:$0xff] %vm371_vm1, %v1360_v58  ;;  %v1807_v40 = vadd.f32 %v5605_v59, %v1452_v7  ;;  %v1451_v55 = vld [vmem:[#allocation3 + $0xd0] sm:$0xff]  ;;  %v5666_v28 = vpop.f32.mrb[48].mxu0 }
 0x17f   : > { %1391 = vst.msk [vmem:[#allocation3 + $0xf0] sm:$0xff] %vm371_vm1, %v1359_v54  ;;  %v1806_v29 = vadd.f32 %v1751_v34, %v1451_v55  ;;  %v5616_v3 = vpop.f32.mrb[48].mxu1  ;;  %v2523_v4 = vpop.f32.mrb[49].mxu0 }
 0x180   : > { %1839 = vst.msk [vmem:[#allocation3 + $0xd8] sm:$0xff] %vm371_vm1, %v1807_v40  ;;  %v2232_v22 = vadd.f32 %v5616_v3, %v1877_v41  ;;  %v2072_v57 = vpop.f32.mrb[49].mxu1  ;;  %v1887_v40 = vld [vmem:[#allocation3 + $0x58] sm:$0xff] }
 0x181   : > { %1838 = vst.msk [vmem:[#allocation3 + $0xd0] sm:$0xff] %vm371_vm1, %v1806_v29  ;;  %v1454_v60 = vld [vmem:[#allocation3 + $0xe8] sm:$0xff]  ;;  %v2231_v44 = vadd.f32 %v2072_v57, %v1876_v14  ;;  %v1886_v29 = vld [vmem:[#allocation3 + $0x50] sm:$0xff] }
 0x182   : > { %2264 = vst.msk [vmem:[#allocation3 + $0x8] sm:$0xff] %vm371_vm1, %v2232_v22  ;;  %v1809_v63 = vadd.f32 %v5608_v9, %v1454_v60  ;;  %v1453_v17 = vld [vmem:[#allocation3 + $0xe0] sm:$0xff]  ;;  %v5669_v43 = vpop.f32.mrb[50].mxu0 }
 0x183   : > { %2263 = vst.msk [vmem:[#allocation3] sm:$0xff] %vm371_vm1, %v2231_v44  ;;  %v1808_v6 = vadd.f32 %v1761_v10, %v1453_v17  ;;  %v5619_v20 = vpop.f32.mrb[50].mxu1  ;;  %v2533_v52 = vpop.f32.mrb[51].mxu0 }
 0x184   : > { %1841 = vst.msk [vmem:[#allocation3 + $0xe8] sm:$0xff] %vm371_vm1, %v1809_v63  ;;  %v2234_v12 = vadd.f32 %v5619_v20, %v1879_v11  ;;  %v2082_v18 = vpop.f32.mrb[51].mxu1  ;;  %v1889_v63 = vld [vmem:[#allocation3 + $0x68] sm:$0xff] }
 0x185   : > { %1840 = vst.msk [vmem:[#allocation3 + $0xe0] sm:$0xff] %vm371_vm1, %v1808_v6  ;;  %v1456_v19 = vld [vmem:[#allocation3 + $0xf8] sm:$0xff]  ;;  %v2233_v24 = vadd.f32 %v2082_v18, %v1878_v42  ;;  %v1888_v6 = vld [vmem:[#allocation3 + $0x60] sm:$0xff] }
 0x186   : > { %2266 = vst.msk [vmem:[#allocation3 + $0x18] sm:$0xff] %vm371_vm1, %v2234_v12  ;;  %v1811_v45 = vadd.f32 %v5611_v8, %v1456_v19  ;;  %v1455_v49 = vld [vmem:[#allocation3 + $0xf0] sm:$0xff]  ;;  %v5672_v47 = vpop.f32.mrb[52].mxu0 }
 0x187   : > { %2265 = vst.msk [vmem:[#allocation3 + $0x10] sm:$0xff] %vm371_vm1, %v2233_v24  ;;  %v1810_v53 = vadd.f32 %v1771_v13, %v1455_v49  ;;  %v5622_v23 = vpop.f32.mrb[52].mxu1  ;;  %v2543_v21 = vpop.f32.mrb[53].mxu0 }
 0x188   : > { %1843 = vst.msk [vmem:[#allocation3 + $0xf8] sm:$0xff] %vm371_vm1, %v1811_v45  ;;  %v2236_v62 = vadd.f32 %v5622_v23, %v1881_v61  ;;  %v2092_v5 = vpop.f32.mrb[53].mxu1  ;;  %v1891_v45 = vld [vmem:[#allocation3 + $0x78] sm:$0xff] }
 0x189   : > { %1842 = vst.msk [vmem:[#allocation3 + $0xf0] sm:$0xff] %vm371_vm1, %v1810_v53  ;;  %v2235_v27 = vadd.f32 %v2092_v5, %v1880_v46  ;;  %v2328_v48 = vld [vmem:[#allocation3 + $0x8] sm:$0xff]  ;;  %v1890_v53 = vld [vmem:[#allocation3 + $0x70] sm:$0xff] }
 0x18a   : > { %2268 = vst.msk [vmem:[#allocation3 + $0x28] sm:$0xff] %vm371_vm1, %v2236_v62  ;;  %v2683_v15 = vadd.f32 %v5666_v28, %v2328_v48  ;;  %v2327_v30 = vld [vmem:[#allocation3] sm:$0xff]  ;;  %v5675_v35 = vpop.f32.mrb[54].mxu0 }
 0x18b   : > { %2267 = vst.msk [vmem:[#allocation3 + $0x20] sm:$0xff] %vm371_vm1, %v2235_v27  ;;  %v2682_v59 = vadd.f32 %v2523_v4, %v2327_v30  ;;  %v5625_v2 = vpop.f32.mrb[54].mxu1  ;;  %v2553_v56 = vpop.f32.mrb[55].mxu0 }
 0x18c   : > { %2715 = vst.msk [vmem:[#allocation3 + $0x8] sm:$0xff] %vm371_vm1, %v2683_v15  ;;  %v2238_v34 = vadd.f32 %v5625_v2, %v1883_v33  ;;  %v2102_v50 = vpop.f32.mrb[55].mxu1  ;;  %v1893_v15 = vld [vmem:[#allocation3 + $0x88] sm:$0xff] }
 0x18d   : > { %2714 = vst.msk [vmem:[#allocation3] sm:$0xff] %vm371_vm1, %v2682_v59  ;;  %v2237_v25 = vadd.f32 %v2102_v50, %v1882_v0  ;;  %v2330_v39 = vld [vmem:[#allocation3 + $0x18] sm:$0xff]  ;;  %v1892_v59 = vld [vmem:[#allocation3 + $0x80] sm:$0xff] }
 0x18e   : > { %2270 = vst.msk [vmem:[#allocation3 + $0x38] sm:$0xff] %vm371_vm1, %v2238_v34  ;;  %v2685_v26 = vadd.f32 %v5669_v43, %v2330_v39  ;;  %v2329_v1 = vld [vmem:[#allocation3 + $0x10] sm:$0xff]  ;;  %v5678_v51 = vpop.f32.mrb[56].mxu0 }
 0x18f   : > { %2269 = vst.msk [vmem:[#allocation3 + $0x30] sm:$0xff] %vm371_vm1, %v2237_v25  ;;  %v2684_v9 = vadd.f32 %v2533_v52, %v2329_v1  ;;  %v5628_v16 = vpop.f32.mrb[56].mxu1  ;;  %v2563_v7 = vpop.f32.mrb[57].mxu0 }
 0x190   : > { %2717 = vst.msk [vmem:[#allocation3 + $0x18] sm:$0xff] %vm371_vm1, %v2685_v26  ;;  %v2240_v10 = vadd.f32 %v5628_v16, %v1885_v38  ;;  %v2112_v32 = vpop.f32.mrb[57].mxu1  ;;  %v1895_v26 = vld [vmem:[#allocation3 + $0x98] sm:$0xff] }
 0x191   : > { %2716 = vst.msk [vmem:[#allocation3 + $0x10] sm:$0xff] %vm371_vm1, %v2684_v9  ;;  %v2239_v36 = vadd.f32 %v2112_v32, %v1884_v31  ;;  %v2332_v58 = vld [vmem:[#allocation3 + $0x28] sm:$0xff]  ;;  %v1894_v9 = vld [vmem:[#allocation3 + $0x90] sm:$0xff] }
 0x192   : > { %2272 = vst.msk [vmem:[#allocation3 + $0x48] sm:$0xff] %vm371_vm1, %v2240_v10  ;;  %v2687_v37 = vadd.f32 %v5672_v47, %v2332_v58  ;;  %v2331_v54 = vld [vmem:[#allocation3 + $0x20] sm:$0xff]  ;;  %v5681_v14 = vpop.f32.mrb[58].mxu0 }
 0x193   : > { %2271 = vst.msk [vmem:[#allocation3 + $0x40] sm:$0xff] %vm371_vm1, %v2239_v36  ;;  %v2686_v8 = vadd.f32 %v2543_v21, %v2331_v54  ;;  %v5631_v55 = vpop.f32.mrb[58].mxu1  ;;  %v2573_v44 = vpop.f32.mrb[59].mxu0 }
 0x194   : > { %2719 = vst.msk [vmem:[#allocation3 + $0x28] sm:$0xff] %vm371_vm1, %v2687_v37  ;;  %v2242_v13 = vadd.f32 %v5631_v55, %v1887_v40  ;;  %v2122_v41 = vpop.f32.mrb[59].mxu1  ;;  %v1897_v37 = vld [vmem:[#allocation3 + $0xa8] sm:$0xff] }
 0x195   : > { %2718 = vst.msk [vmem:[#allocation3 + $0x20] sm:$0xff] %vm371_vm1, %v2686_v8  ;;  %v2241_v3 = vadd.f32 %v2122_v41, %v1886_v29  ;;  %v2334_v22 = vld [vmem:[#allocation3 + $0x38] sm:$0xff]  ;;  %v1896_v8 = vld [vmem:[#allocation3 + $0xa0] sm:$0xff] }
 0x196   : > { %2274 = vst.msk [vmem:[#allocation3 + $0x58] sm:$0xff] %vm371_vm1, %v2242_v13  ;;  %v2689_v57 = vadd.f32 %v5675_v35, %v2334_v22  ;;  %v2333_v60 = vld [vmem:[#allocation3 + $0x30] sm:$0xff]  ;;  %v5684_v42 = vpop.f32.mrb[60].mxu0 }
 0x197   : > { %2273 = vst.msk [vmem:[#allocation3 + $0x50] sm:$0xff] %vm371_vm1, %v2241_v3  ;;  %v2688_v28 = vadd.f32 %v2553_v56, %v2333_v60  ;;  %v5634_v17 = vpop.f32.mrb[60].mxu1  ;;  %v2583_v24 = vpop.f32.mrb[61].mxu0 }
 0x198   : > { %2721 = vst.msk [vmem:[#allocation3 + $0x38] sm:$0xff] %vm371_vm1, %v2689_v57  ;;  %v2244_v4 = vadd.f32 %v5634_v17, %v1889_v63  ;;  %v2132_v11 = vpop.f32.mrb[61].mxu1  ;;  %v1899_v57 = vld [vmem:[#allocation3 + $0xb8] sm:$0xff] }
 0x199   : > { %2720 = vst.msk [vmem:[#allocation3 + $0x30] sm:$0xff] %vm371_vm1, %v2688_v28  ;;  %v2243_v20 = vadd.f32 %v2132_v11, %v1888_v6  ;;  %v2336_v12 = vld [vmem:[#allocation3 + $0x48] sm:$0xff]  ;;  %v1898_v28 = vld [vmem:[#allocation3 + $0xb0] sm:$0xff] }
 0x19a   : > { %2276 = vst.msk [vmem:[#allocation3 + $0x68] sm:$0xff] %vm371_vm1, %v2244_v4  ;;  %v2691_v18 = vadd.f32 %v5678_v51, %v2336_v12  ;;  %v2335_v19 = vld [vmem:[#allocation3 + $0x40] sm:$0xff]  ;;  %v5687_v46 = vpop.f32.mrb[62].mxu0 }
 0x19b   : > { %2275 = vst.msk [vmem:[#allocation3 + $0x60] sm:$0xff] %vm371_vm1, %v2243_v20  ;;  %v2690_v43 = vadd.f32 %v2563_v7, %v2335_v19  ;;  %v5637_v49 = vpop.f32.mrb[62].mxu1  ;;  %v2593_v48 = vpop.f32.mrb[63].mxu0 }
 0x19c   : > { %2723 = vst.msk [vmem:[#allocation3 + $0x48] sm:$0xff] %vm371_vm1, %v2691_v18  ;;  %v2246_v52 = vadd.f32 %v5637_v49, %v1891_v45  ;;  %v2142_v61 = vpop.f32.mrb[63].mxu1  ;;  %v1901_v18 = vld [vmem:[#allocation3 + $0xc8] sm:$0xff] }
 0x19d   : > { %2722 = vst.msk [vmem:[#allocation3 + $0x40] sm:$0xff] %vm371_vm1, %v2690_v43  ;;  %v2245_v23 = vadd.f32 %v2142_v61, %v1890_v53  ;;  %v2338_v62 = vld [vmem:[#allocation3 + $0x58] sm:$0xff]  ;;  %v1900_v43 = vld [vmem:[#allocation3 + $0xc0] sm:$0xff] }
 0x19e   : > { %2278 = vst.msk [vmem:[#allocation3 + $0x78] sm:$0xff] %vm371_vm1, %v2246_v52  ;;  %v2693_v5 = vadd.f32 %v5681_v14, %v2338_v62  ;;  %v2337_v27 = vld [vmem:[#allocation3 + $0x50] sm:$0xff]  ;;  %v5690_v0 = vpop.f32.mrb[64].mxu0 }
 0x19f   : > { %2277 = vst.msk [vmem:[#allocation3 + $0x70] sm:$0xff] %vm371_vm1, %v2245_v23  ;;  %v2692_v47 = vadd.f32 %v2573_v44, %v2337_v27  ;;  %v5640_v30 = vpop.f32.mrb[64].mxu1  ;;  %v2603_v39 = vpop.f32.mrb[65].mxu0 }
 0x1a0   : > { %2725 = vst.msk [vmem:[#allocation3 + $0x58] sm:$0xff] %vm371_vm1, %v2693_v5  ;;  %v2248_v21 = vadd.f32 %v5640_v30, %v1893_v15  ;;  %v2152_v33 = vpop.f32.mrb[65].mxu1  ;;  %v1903_v5 = vld [vmem:[#allocation3 + $0xd8] sm:$0xff] }
 0x1a1   : > { %2724 = vst.msk [vmem:[#allocation3 + $0x50] sm:$0xff] %vm371_vm1, %v2692_v47  ;;  %v2247_v2 = vadd.f32 %v2152_v33, %v1892_v59  ;;  %v2340_v34 = vld [vmem:[#allocation3 + $0x68] sm:$0xff]  ;;  %v1902_v47 = vld [vmem:[#allocation3 + $0xd0] sm:$0xff] }
 0x1a2   : > { %2280 = vst.msk [vmem:[#allocation3 + $0x88] sm:$0xff] %vm371_vm1, %v2248_v21  ;;  %v2695_v50 = vadd.f32 %v5684_v42, %v2340_v34  ;;  %v2339_v25 = vld [vmem:[#allocation3 + $0x60] sm:$0xff]  ;;  %v5693_v31 = vpop.f32.mrb[66].mxu0 }
 0x1a3   : > { %2279 = vst.msk [vmem:[#allocation3 + $0x80] sm:$0xff] %vm371_vm1, %v2247_v2  ;;  %v2694_v35 = vadd.f32 %v2583_v24, %v2339_v25  ;;  %v5643_v1 = vpop.f32.mrb[66].mxu1  ;;  %v2613_v58 = vpop.f32.mrb[67].mxu0 }
 0x1a4   : > { %2727 = vst.msk [vmem:[#allocation3 + $0x68] sm:$0xff] %vm371_vm1, %v2695_v50  ;;  %v2250_v56 = vadd.f32 %v5643_v1, %v1895_v26  ;;  %v2162_v38 = vpop.f32.mrb[67].mxu1  ;;  %v1905_v50 = vld [vmem:[#allocation3 + $0xe8] sm:$0xff] }
 0x1a5   : > { %2726 = vst.msk [vmem:[#allocation3 + $0x60] sm:$0xff] %vm371_vm1, %v2694_v35  ;;  %v2249_v16 = vadd.f32 %v2162_v38, %v1894_v9  ;;  %v2342_v10 = vld [vmem:[#allocation3 + $0x78] sm:$0xff]  ;;  %v1904_v35 = vld [vmem:[#allocation3 + $0xe0] sm:$0xff] }
 0x1a6   : > { %2282 = vst.msk [vmem:[#allocation3 + $0x98] sm:$0xff] %vm371_vm1, %v2250_v56  ;;  %v2697_v32 = vadd.f32 %v5687_v46, %v2342_v10  ;;  %v2341_v36 = vld [vmem:[#allocation3 + $0x70] sm:$0xff]  ;;  %v5696_v29 = vpop.f32.mrb[68].mxu0 }
 0x1a7   : > { %2281 = vst.msk [vmem:[#allocation3 + $0x90] sm:$0xff] %vm371_vm1, %v2249_v16  ;;  %v2696_v51 = vadd.f32 %v2593_v48, %v2341_v36  ;;  %v5646_v54 = vpop.f32.mrb[68].mxu1  ;;  %v2623_v22 = vpop.f32.mrb[69].mxu0 }
 0x1a8   : > { %2729 = vst.msk [vmem:[#allocation3 + $0x78] sm:$0xff] %vm371_vm1, %v2697_v32  ;;  %v2252_v7 = vadd.f32 %v5646_v54, %v1897_v37  ;;  %v2172_v40 = vpop.f32.mrb[69].mxu1  ;;  %v1907_v32 = vld [vmem:[#allocation3 + $0xf8] sm:$0xff] }
 0x1a9   : > { %2728 = vst.msk [vmem:[#allocation3 + $0x70] sm:$0xff] %vm371_vm1, %v2696_v51  ;;  %v2251_v55 = vadd.f32 %v2172_v40, %v1896_v8  ;;  %v2344_v13 = vld [vmem:[#allocation3 + $0x88] sm:$0xff]  ;;  %v1906_v51 = vld [vmem:[#allocation3 + $0xf0] sm:$0xff] }
 0x1aa   : > { %2284 = vst.msk [vmem:[#allocation3 + $0xa8] sm:$0xff] %vm371_vm1, %v2252_v7  ;;  %v2699_v41 = vadd.f32 %v5690_v0, %v2344_v13  ;;  %v2343_v3 = vld [vmem:[#allocation3 + $0x80] sm:$0xff]  ;;  %v5699_v6 = vpop.f32.mrb[70].mxu0 }
 0x1ab   : > { %2283 = vst.msk [vmem:[#allocation3 + $0xa0] sm:$0xff] %vm371_vm1, %v2251_v55  ;;  %v2698_v14 = vadd.f32 %v2603_v39, %v2343_v3  ;;  %v5649_v60 = vpop.f32.mrb[70].mxu1  ;;  %v2633_v12 = vpop.f32.mrb[71].mxu0 }
 0x1ac   : > { %2731 = vst.msk [vmem:[#allocation3 + $0x88] sm:$0xff] %vm371_vm1, %v2699_v41  ;;  %v2254_v44 = vadd.f32 %v5649_v60, %v1899_v57  ;;  %v2182_v63 = vpop.f32.mrb[71].mxu1  ;;  %v2779_v41 = vld [vmem:[#allocation3 + $0x8] sm:$0xff] }
 0x1ad   : > { %2730 = vst.msk [vmem:[#allocation3 + $0x80] sm:$0xff] %vm371_vm1, %v2698_v14  ;;  %v2253_v17 = vadd.f32 %v2182_v63, %v1898_v28  ;;  %v2346_v4 = vld [vmem:[#allocation3 + $0x98] sm:$0xff]  ;;  %v2778_v14 = vld [vmem:[#allocation3] sm:$0xff] }
 0x1ae   : > { %2286 = vst.msk [vmem:[#allocation3 + $0xb8] sm:$0xff] %vm371_vm1, %v2254_v44  ;;  %v2701_v11 = vadd.f32 %v5693_v31, %v2346_v4  ;;  %v2345_v20 = vld [vmem:[#allocation3 + $0x90] sm:$0xff]  ;;  %v5702_v53 = vpop.f32.mrb[72].mxu0 }
 0x1af   : > { %2285 = vst.msk [vmem:[#allocation3 + $0xb0] sm:$0xff] %vm371_vm1, %v2253_v17  ;;  %v2700_v42 = vadd.f32 %v2613_v58, %v2345_v20  ;;  %v5652_v19 = vpop.f32.mrb[72].mxu1  ;;  %v2643_v62 = vpop.f32.mrb[73].mxu0 }
 0x1b0   : > { %2733 = vst.msk [vmem:[#allocation3 + $0x98] sm:$0xff] %vm371_vm1, %v2701_v11  ;;  %v2256_v24 = vadd.f32 %v5652_v19, %v1901_v18  ;;  %v2192_v45 = vpop.f32.mrb[73].mxu1  ;;  %v2781_v11 = vld [vmem:[#allocation3 + $0x18] sm:$0xff] }
 0x1b1   : > { %2732 = vst.msk [vmem:[#allocation3 + $0x90] sm:$0xff] %vm371_vm1, %v2700_v42  ;;  %v2255_v49 = vadd.f32 %v2192_v45, %v1900_v43  ;;  %v2348_v52 = vld [vmem:[#allocation3 + $0xa8] sm:$0xff]  ;;  %v2780_v42 = vld [vmem:[#allocation3 + $0x10] sm:$0xff] }
 0x1b2   : > { %2288 = vst.msk [vmem:[#allocation3 + $0xc8] sm:$0xff] %vm371_vm1, %v2256_v24  ;;  %v2703_v61 = vadd.f32 %v5696_v29, %v2348_v52  ;;  %v2347_v23 = vld [vmem:[#allocation3 + $0xa0] sm:$0xff]  ;;  %v5705_v59 = vpop.f32.mrb[74].mxu0 }
 0x1b3   : > { %2287 = vst.msk [vmem:[#allocation3 + $0xc0] sm:$0xff] %vm371_vm1, %v2255_v49  ;;  %v2702_v46 = vadd.f32 %v2623_v22, %v2347_v23  ;;  %v5655_v27 = vpop.f32.mrb[74].mxu1  ;;  %v2653_v34 = vpop.f32.mrb[75].mxu0 }
 0x1b4   : > { %2735 = vst.msk [vmem:[#allocation3 + $0xa8] sm:$0xff] %vm371_vm1, %v2703_v61  ;;  %v2258_v48 = vadd.f32 %v5655_v27, %v1903_v5  ;;  %v2202_v15 = vpop.f32.mrb[75].mxu1  ;;  %v2783_v61 = vld [vmem:[#allocation3 + $0x28] sm:$0xff] }
 0x1b5   : > { %2734 = vst.msk [vmem:[#allocation3 + $0xa0] sm:$0xff] %vm371_vm1, %v2702_v46  ;;  %v2257_v30 = vadd.f32 %v2202_v15, %v1902_v47  ;;  %v2350_v21 = vld [vmem:[#allocation3 + $0xb8] sm:$0xff]  ;;  %v2782_v46 = vld [vmem:[#allocation3 + $0x20] sm:$0xff] }
 0x1b6   : > { %2290 = vst.msk [vmem:[#allocation3 + $0xd8] sm:$0xff] %vm371_vm1, %v2258_v48  ;;  %v2705_v33 = vadd.f32 %v5699_v6, %v2350_v21  ;;  %v2349_v2 = vld [vmem:[#allocation3 + $0xb0] sm:$0xff]  ;;  %v5708_v9 = vpop.f32.mrb[76].mxu0 }
 0x1b7   : > { %2289 = vst.msk [vmem:[#allocation3 + $0xd0] sm:$0xff] %vm371_vm1, %v2257_v30  ;;  %v2704_v0 = vadd.f32 %v2633_v12, %v2349_v2  ;;  %v5658_v25 = vpop.f32.mrb[76].mxu1  ;;  %v2663_v10 = vpop.f32.mrb[77].mxu0 }
 0x1b8   : > { %2737 = vst.msk [vmem:[#allocation3 + $0xb8] sm:$0xff] %vm371_vm1, %v2705_v33  ;;  %v2260_v39 = vadd.f32 %v5658_v25, %v1905_v50  ;;  %v2212_v26 = vpop.f32.mrb[77].mxu1  ;;  %v2785_v33 = vld [vmem:[#allocation3 + $0x38] sm:$0xff] }
 0x1b9   : > { %2736 = vst.msk [vmem:[#allocation3 + $0xb0] sm:$0xff] %vm371_vm1, %v2704_v0  ;;  %v2259_v1 = vadd.f32 %v2212_v26, %v1904_v35  ;;  %v2352_v56 = vld [vmem:[#allocation3 + $0xc8] sm:$0xff]  ;;  %v2784_v0 = vld [vmem:[#allocation3 + $0x30] sm:$0xff] }
 0x1ba   : > { %2292 = vst.msk [vmem:[#allocation3 + $0xe8] sm:$0xff] %vm371_vm1, %v2260_v39  ;;  %v2707_v38 = vadd.f32 %v5702_v53, %v2352_v56  ;;  %v2351_v16 = vld [vmem:[#allocation3 + $0xc0] sm:$0xff]  ;;  %v5711_v8 = vpop.f32.mrb[78].mxu0 }
 0x1bb   : > { %2291 = vst.msk [vmem:[#allocation3 + $0xe0] sm:$0xff] %vm371_vm1, %v2259_v1  ;;  %v2706_v31 = vadd.f32 %v2643_v62, %v2351_v16  ;;  %v5661_v36 = vpop.f32.mrb[78].mxu1  ;;  %v2673_v13 = vpop.f32.mrb[79].mxu0 }
 0x1bc   : > { %2739 = vst.msk [vmem:[#allocation3 + $0xc8] sm:$0xff] %vm371_vm1, %v2707_v38  ;;  %v2262_v58 = vadd.f32 %v5661_v36, %v1907_v32  ;;  %v2222_v37 = vpop.f32.mrb[79].mxu1  ;;  %v2787_v38 = vld [vmem:[#allocation3 + $0x48] sm:$0xff] }
 0x1bd   : > { %2738 = vst.msk [vmem:[#allocation3 + $0xc0] sm:$0xff] %vm371_vm1, %v2706_v31  ;;  %v2261_v54 = vadd.f32 %v2222_v37, %v1906_v51  ;;  %v2354_v7 = vld [vmem:[#allocation3 + $0xd8] sm:$0xff]  ;;  %v2786_v31 = vld [vmem:[#allocation3 + $0x40] sm:$0xff] }
 0x1be   : > { %2294 = vst.msk [vmem:[#allocation3 + $0xf8] sm:$0xff] %vm371_vm1, %v2262_v58  ;;  %v2709_v40 = vadd.f32 %v5705_v59, %v2354_v7  ;;  %v2353_v55 = vld [vmem:[#allocation3 + $0xd0] sm:$0xff]  ;;  %v5766_v28 = vpop.f32.mrb[80].mxu0 }
 0x1bf   : > { %2293 = vst.msk [vmem:[#allocation3 + $0xf0] sm:$0xff] %vm371_vm1, %v2261_v54  ;;  %v2708_v29 = vadd.f32 %v2653_v34, %v2353_v55  ;;  %v5716_v3 = vpop.f32.mrb[80].mxu1  ;;  %v3426_v4 = vpop.f32.mrb[81].mxu0 }
 0x1c0   : > { %2741 = vst.msk [vmem:[#allocation3 + $0xd8] sm:$0xff] %vm371_vm1, %v2709_v40  ;;  %v3134_v22 = vadd.f32 %v5716_v3, %v2779_v41  ;;  %v2974_v57 = vpop.f32.mrb[81].mxu1  ;;  %v2789_v40 = vld [vmem:[#allocation3 + $0x58] sm:$0xff] }
 0x1c1   : > { %2740 = vst.msk [vmem:[#allocation3 + $0xd0] sm:$0xff] %vm371_vm1, %v2708_v29  ;;  %v2356_v60 = vld [vmem:[#allocation3 + $0xe8] sm:$0xff]  ;;  %v3133_v44 = vadd.f32 %v2974_v57, %v2778_v14  ;;  %v2788_v29 = vld [vmem:[#allocation3 + $0x50] sm:$0xff] }
 0x1c2   : > { %3166 = vst.msk [vmem:[#allocation3 + $0x8] sm:$0xff] %vm371_vm1, %v3134_v22  ;;  %v2711_v63 = vadd.f32 %v5708_v9, %v2356_v60  ;;  %v2355_v17 = vld [vmem:[#allocation3 + $0xe0] sm:$0xff]  ;;  %v5769_v43 = vpop.f32.mrb[82].mxu0 }
 0x1c3   : > { %3165 = vst.msk [vmem:[#allocation3] sm:$0xff] %vm371_vm1, %v3133_v44  ;;  %v2710_v6 = vadd.f32 %v2663_v10, %v2355_v17  ;;  %v5719_v20 = vpop.f32.mrb[82].mxu1  ;;  %v3436_v52 = vpop.f32.mrb[83].mxu0 }
 0x1c4   : > { %2743 = vst.msk [vmem:[#allocation3 + $0xe8] sm:$0xff] %vm371_vm1, %v2711_v63  ;;  %v3136_v12 = vadd.f32 %v5719_v20, %v2781_v11  ;;  %v2984_v18 = vpop.f32.mrb[83].mxu1  ;;  %v2791_v63 = vld [vmem:[#allocation3 + $0x68] sm:$0xff] }
 0x1c5   : > { %2742 = vst.msk [vmem:[#allocation3 + $0xe0] sm:$0xff] %vm371_vm1, %v2710_v6  ;;  %v2358_v19 = vld [vmem:[#allocation3 + $0xf8] sm:$0xff]  ;;  %v3135_v24 = vadd.f32 %v2984_v18, %v2780_v42  ;;  %v2790_v6 = vld [vmem:[#allocation3 + $0x60] sm:$0xff] }
 0x1c6   : > { %3168 = vst.msk [vmem:[#allocation3 + $0x18] sm:$0xff] %vm371_vm1, %v3136_v12  ;;  %v2713_v45 = vadd.f32 %v5711_v8, %v2358_v19  ;;  %v2357_v49 = vld [vmem:[#allocation3 + $0xf0] sm:$0xff]  ;;  %v5772_v47 = vpop.f32.mrb[84].mxu0 }
 0x1c7   : > { %3167 = vst.msk [vmem:[#allocation3 + $0x10] sm:$0xff] %vm371_vm1, %v3135_v24  ;;  %v2712_v53 = vadd.f32 %v2673_v13, %v2357_v49  ;;  %v5722_v23 = vpop.f32.mrb[84].mxu1  ;;  %v3446_v21 = vpop.f32.mrb[85].mxu0 }
 0x1c8   : > { %2745 = vst.msk [vmem:[#allocation3 + $0xf8] sm:$0xff] %vm371_vm1, %v2713_v45  ;;  %v3138_v62 = vadd.f32 %v5722_v23, %v2783_v61  ;;  %v2994_v5 = vpop.f32.mrb[85].mxu1  ;;  %v2793_v45 = vld [vmem:[#allocation3 + $0x78] sm:$0xff] }
 0x1c9   : > { %2744 = vst.msk [vmem:[#allocation3 + $0xf0] sm:$0xff] %vm371_vm1, %v2712_v53  ;;  %v3137_v27 = vadd.f32 %v2994_v5, %v2782_v46  ;;  %v3231_v48 = vld [vmem:[#allocation3 + $0x8] sm:$0xff]  ;;  %v2792_v53 = vld [vmem:[#allocation3 + $0x70] sm:$0xff] }
 0x1ca   : > { %3170 = vst.msk [vmem:[#allocation3 + $0x28] sm:$0xff] %vm371_vm1, %v3138_v62  ;;  %v3586_v15 = vadd.f32 %v5766_v28, %v3231_v48  ;;  %v3230_v30 = vld [vmem:[#allocation3] sm:$0xff]  ;;  %v5775_v35 = vpop.f32.mrb[86].mxu0 }
 0x1cb   : > { %3169 = vst.msk [vmem:[#allocation3 + $0x20] sm:$0xff] %vm371_vm1, %v3137_v27  ;;  %v3585_v59 = vadd.f32 %v3426_v4, %v3230_v30  ;;  %v5725_v2 = vpop.f32.mrb[86].mxu1  ;;  %v3456_v56 = vpop.f32.mrb[87].mxu0 }
 0x1cc   : > { %3618 = vst.msk [vmem:[#allocation3 + $0x8] sm:$0xff] %vm371_vm1, %v3586_v15  ;;  %v3140_v34 = vadd.f32 %v5725_v2, %v2785_v33  ;;  %v3004_v50 = vpop.f32.mrb[87].mxu1  ;;  %v2795_v15 = vld [vmem:[#allocation3 + $0x88] sm:$0xff] }
 0x1cd   : > { %3617 = vst.msk [vmem:[#allocation3] sm:$0xff] %vm371_vm1, %v3585_v59  ;;  %v3139_v25 = vadd.f32 %v3004_v50, %v2784_v0  ;;  %v3233_v39 = vld [vmem:[#allocation3 + $0x18] sm:$0xff]  ;;  %v2794_v59 = vld [vmem:[#allocation3 + $0x80] sm:$0xff] }
 0x1ce   : > { %3172 = vst.msk [vmem:[#allocation3 + $0x38] sm:$0xff] %vm371_vm1, %v3140_v34  ;;  %v3588_v26 = vadd.f32 %v5769_v43, %v3233_v39  ;;  %v3232_v1 = vld [vmem:[#allocation3 + $0x10] sm:$0xff]  ;;  %v5778_v51 = vpop.f32.mrb[88].mxu0 }
 0x1cf   : > { %3171 = vst.msk [vmem:[#allocation3 + $0x30] sm:$0xff] %vm371_vm1, %v3139_v25  ;;  %v3587_v9 = vadd.f32 %v3436_v52, %v3232_v1  ;;  %v5728_v16 = vpop.f32.mrb[88].mxu1  ;;  %v3466_v7 = vpop.f32.mrb[89].mxu0 }
 0x1d0   : > { %3620 = vst.msk [vmem:[#allocation3 + $0x18] sm:$0xff] %vm371_vm1, %v3588_v26  ;;  %v3142_v10 = vadd.f32 %v5728_v16, %v2787_v38  ;;  %v3014_v32 = vpop.f32.mrb[89].mxu1  ;;  %v2797_v26 = vld [vmem:[#allocation3 + $0x98] sm:$0xff] }
 0x1d1   : > { %3619 = vst.msk [vmem:[#allocation3 + $0x10] sm:$0xff] %vm371_vm1, %v3587_v9  ;;  %v3141_v36 = vadd.f32 %v3014_v32, %v2786_v31  ;;  %v3235_v58 = vld [vmem:[#allocation3 + $0x28] sm:$0xff]  ;;  %v2796_v9 = vld [vmem:[#allocation3 + $0x90] sm:$0xff] }
 0x1d2   : > { %3174 = vst.msk [vmem:[#allocation3 + $0x48] sm:$0xff] %vm371_vm1, %v3142_v10  ;;  %v3590_v37 = vadd.f32 %v5772_v47, %v3235_v58  ;;  %v3234_v54 = vld [vmem:[#allocation3 + $0x20] sm:$0xff]  ;;  %v5781_v14 = vpop.f32.mrb[90].mxu0 }
 0x1d3   : > { %3173 = vst.msk [vmem:[#allocation3 + $0x40] sm:$0xff] %vm371_vm1, %v3141_v36  ;;  %v3589_v8 = vadd.f32 %v3446_v21, %v3234_v54  ;;  %v5731_v55 = vpop.f32.mrb[90].mxu1  ;;  %v3476_v44 = vpop.f32.mrb[91].mxu0 }
 0x1d4   : > { %3622 = vst.msk [vmem:[#allocation3 + $0x28] sm:$0xff] %vm371_vm1, %v3590_v37  ;;  %v3144_v13 = vadd.f32 %v5731_v55, %v2789_v40  ;;  %v3024_v41 = vpop.f32.mrb[91].mxu1  ;;  %v2799_v37 = vld [vmem:[#allocation3 + $0xa8] sm:$0xff] }
 0x1d5   : > { %3621 = vst.msk [vmem:[#allocation3 + $0x20] sm:$0xff] %vm371_vm1, %v3589_v8  ;;  %v3143_v3 = vadd.f32 %v3024_v41, %v2788_v29  ;;  %v3237_v22 = vld [vmem:[#allocation3 + $0x38] sm:$0xff]  ;;  %v2798_v8 = vld [vmem:[#allocation3 + $0xa0] sm:$0xff] }
 0x1d6   : > { %3176 = vst.msk [vmem:[#allocation3 + $0x58] sm:$0xff] %vm371_vm1, %v3144_v13  ;;  %v3592_v57 = vadd.f32 %v5775_v35, %v3237_v22  ;;  %v3236_v60 = vld [vmem:[#allocation3 + $0x30] sm:$0xff]  ;;  %v5784_v42 = vpop.f32.mrb[92].mxu0 }
 0x1d7   : > { %3175 = vst.msk [vmem:[#allocation3 + $0x50] sm:$0xff] %vm371_vm1, %v3143_v3  ;;  %v3591_v28 = vadd.f32 %v3456_v56, %v3236_v60  ;;  %v5734_v17 = vpop.f32.mrb[92].mxu1  ;;  %v3486_v24 = vpop.f32.mrb[93].mxu0 }
 0x1d8   : > { %3624 = vst.msk [vmem:[#allocation3 + $0x38] sm:$0xff] %vm371_vm1, %v3592_v57  ;;  %v3146_v4 = vadd.f32 %v5734_v17, %v2791_v63  ;;  %v3034_v11 = vpop.f32.mrb[93].mxu1  ;;  %v2801_v57 = vld [vmem:[#allocation3 + $0xb8] sm:$0xff] }
 0x1d9   : > { %3623 = vst.msk [vmem:[#allocation3 + $0x30] sm:$0xff] %vm371_vm1, %v3591_v28  ;;  %v3145_v20 = vadd.f32 %v3034_v11, %v2790_v6  ;;  %v3239_v12 = vld [vmem:[#allocation3 + $0x48] sm:$0xff]  ;;  %v2800_v28 = vld [vmem:[#allocation3 + $0xb0] sm:$0xff] }
 0x1da   : > { %3178 = vst.msk [vmem:[#allocation3 + $0x68] sm:$0xff] %vm371_vm1, %v3146_v4  ;;  %v3594_v18 = vadd.f32 %v5778_v51, %v3239_v12  ;;  %v3238_v19 = vld [vmem:[#allocation3 + $0x40] sm:$0xff]  ;;  %v5787_v46 = vpop.f32.mrb[94].mxu0 }
 0x1db   : > { %3177 = vst.msk [vmem:[#allocation3 + $0x60] sm:$0xff] %vm371_vm1, %v3145_v20  ;;  %v3593_v43 = vadd.f32 %v3466_v7, %v3238_v19  ;;  %v5737_v49 = vpop.f32.mrb[94].mxu1  ;;  %v3496_v48 = vpop.f32.mrb[95].mxu0 }
 0x1dc   : > { %3626 = vst.msk [vmem:[#allocation3 + $0x48] sm:$0xff] %vm371_vm1, %v3594_v18  ;;  %v3148_v52 = vadd.f32 %v5737_v49, %v2793_v45  ;;  %v3044_v61 = vpop.f32.mrb[95].mxu1  ;;  %v2803_v18 = vld [vmem:[#allocation3 + $0xc8] sm:$0xff] }
 0x1dd   : > { %3625 = vst.msk [vmem:[#allocation3 + $0x40] sm:$0xff] %vm371_vm1, %v3593_v43  ;;  %v3147_v23 = vadd.f32 %v3044_v61, %v2792_v53  ;;  %v3241_v62 = vld [vmem:[#allocation3 + $0x58] sm:$0xff]  ;;  %v2802_v43 = vld [vmem:[#allocation3 + $0xc0] sm:$0xff] }
 0x1de   : > { %3180 = vst.msk [vmem:[#allocation3 + $0x78] sm:$0xff] %vm371_vm1, %v3148_v52  ;;  %v3596_v5 = vadd.f32 %v5781_v14, %v3241_v62  ;;  %v3240_v27 = vld [vmem:[#allocation3 + $0x50] sm:$0xff]  ;;  %v5790_v0 = vpop.f32.mrb[96].mxu0 }
 0x1df   : > { %3179 = vst.msk [vmem:[#allocation3 + $0x70] sm:$0xff] %vm371_vm1, %v3147_v23  ;;  %v3595_v47 = vadd.f32 %v3476_v44, %v3240_v27  ;;  %v5740_v30 = vpop.f32.mrb[96].mxu1  ;;  %v3506_v39 = vpop.f32.mrb[97].mxu0 }
 0x1e0   : > { %3628 = vst.msk [vmem:[#allocation3 + $0x58] sm:$0xff] %vm371_vm1, %v3596_v5  ;;  %v3150_v21 = vadd.f32 %v5740_v30, %v2795_v15  ;;  %v3054_v33 = vpop.f32.mrb[97].mxu1  ;;  %v2805_v5 = vld [vmem:[#allocation3 + $0xd8] sm:$0xff] }
 0x1e1   : > { %3627 = vst.msk [vmem:[#allocation3 + $0x50] sm:$0xff] %vm371_vm1, %v3595_v47  ;;  %v3149_v2 = vadd.f32 %v3054_v33, %v2794_v59  ;;  %v3243_v34 = vld [vmem:[#allocation3 + $0x68] sm:$0xff]  ;;  %v2804_v47 = vld [vmem:[#allocation3 + $0xd0] sm:$0xff] }
 0x1e2   : > { %3182 = vst.msk [vmem:[#allocation3 + $0x88] sm:$0xff] %vm371_vm1, %v3150_v21  ;;  %v3598_v50 = vadd.f32 %v5784_v42, %v3243_v34  ;;  %v3242_v25 = vld [vmem:[#allocation3 + $0x60] sm:$0xff]  ;;  %v5793_v31 = vpop.f32.mrb[98].mxu0 }
 0x1e3   : > { %3181 = vst.msk [vmem:[#allocation3 + $0x80] sm:$0xff] %vm371_vm1, %v3149_v2  ;;  %v3597_v35 = vadd.f32 %v3486_v24, %v3242_v25  ;;  %v5743_v1 = vpop.f32.mrb[98].mxu1  ;;  %v3516_v58 = vpop.f32.mrb[99].mxu0 }
 0x1e4   : > { %3630 = vst.msk [vmem:[#allocation3 + $0x68] sm:$0xff] %vm371_vm1, %v3598_v50  ;;  %v3152_v56 = vadd.f32 %v5743_v1, %v2797_v26  ;;  %v3064_v38 = vpop.f32.mrb[99].mxu1  ;;  %v2807_v50 = vld [vmem:[#allocation3 + $0xe8] sm:$0xff] }
 0x1e5   : > { %3629 = vst.msk [vmem:[#allocation3 + $0x60] sm:$0xff] %vm371_vm1, %v3597_v35  ;;  %v3151_v16 = vadd.f32 %v3064_v38, %v2796_v9  ;;  %v3245_v10 = vld [vmem:[#allocation3 + $0x78] sm:$0xff]  ;;  %v2806_v35 = vld [vmem:[#allocation3 + $0xe0] sm:$0xff] }
 0x1e6   : > { %3184 = vst.msk [vmem:[#allocation3 + $0x98] sm:$0xff] %vm371_vm1, %v3152_v56  ;;  %v3600_v32 = vadd.f32 %v5787_v46, %v3245_v10  ;;  %v3244_v36 = vld [vmem:[#allocation3 + $0x70] sm:$0xff]  ;;  %v5796_v29 = vpop.f32.mrb[100].mxu0 }
 0x1e7   : > { %3183 = vst.msk [vmem:[#allocation3 + $0x90] sm:$0xff] %vm371_vm1, %v3151_v16  ;;  %v3599_v51 = vadd.f32 %v3496_v48, %v3244_v36  ;;  %v5746_v54 = vpop.f32.mrb[100].mxu1  ;;  %v3526_v22 = vpop.f32.mrb[101].mxu0 }
 0x1e8   : > { %3632 = vst.msk [vmem:[#allocation3 + $0x78] sm:$0xff] %vm371_vm1, %v3600_v32  ;;  %v3154_v7 = vadd.f32 %v5746_v54, %v2799_v37  ;;  %v3074_v40 = vpop.f32.mrb[101].mxu1  ;;  %v2809_v32 = vld [vmem:[#allocation3 + $0xf8] sm:$0xff] }
 0x1e9   : > { %3631 = vst.msk [vmem:[#allocation3 + $0x70] sm:$0xff] %vm371_vm1, %v3599_v51  ;;  %v3153_v55 = vadd.f32 %v3074_v40, %v2798_v8  ;;  %v3247_v13 = vld [vmem:[#allocation3 + $0x88] sm:$0xff]  ;;  %v2808_v51 = vld [vmem:[#allocation3 + $0xf0] sm:$0xff] }
 0x1ea   : > { %3186 = vst.msk [vmem:[#allocation3 + $0xa8] sm:$0xff] %vm371_vm1, %v3154_v7  ;;  %v3602_v41 = vadd.f32 %v5790_v0, %v3247_v13  ;;  %v3246_v3 = vld [vmem:[#allocation3 + $0x80] sm:$0xff]  ;;  %v5799_v6 = vpop.f32.mrb[102].mxu0 }
 0x1eb   : > { %3185 = vst.msk [vmem:[#allocation3 + $0xa0] sm:$0xff] %vm371_vm1, %v3153_v55  ;;  %v3601_v14 = vadd.f32 %v3506_v39, %v3246_v3  ;;  %v5749_v60 = vpop.f32.mrb[102].mxu1  ;;  %v3536_v12 = vpop.f32.mrb[103].mxu0 }
 0x1ec   : > { %3634 = vst.msk [vmem:[#allocation3 + $0x88] sm:$0xff] %vm371_vm1, %v3602_v41  ;;  %v3156_v44 = vadd.f32 %v5749_v60, %v2801_v57  ;;  %v3084_v63 = vpop.f32.mrb[103].mxu1  ;;  %v3682_v41 = vld [vmem:[#allocation3 + $0x8] sm:$0xff] }
 0x1ed   : > { %3633 = vst.msk [vmem:[#allocation3 + $0x80] sm:$0xff] %vm371_vm1, %v3601_v14  ;;  %v3155_v17 = vadd.f32 %v3084_v63, %v2800_v28  ;;  %v3249_v4 = vld [vmem:[#allocation3 + $0x98] sm:$0xff]  ;;  %v3681_v14 = vld [vmem:[#allocation3] sm:$0xff] }
 0x1ee   : > { %3188 = vst.msk [vmem:[#allocation3 + $0xb8] sm:$0xff] %vm371_vm1, %v3156_v44  ;;  %v3604_v11 = vadd.f32 %v5793_v31, %v3249_v4  ;;  %v3248_v20 = vld [vmem:[#allocation3 + $0x90] sm:$0xff]  ;;  %v5802_v53 = vpop.f32.mrb[104].mxu0 }
 0x1ef   : > { %3187 = vst.msk [vmem:[#allocation3 + $0xb0] sm:$0xff] %vm371_vm1, %v3155_v17  ;;  %v3603_v42 = vadd.f32 %v3516_v58, %v3248_v20  ;;  %v5752_v19 = vpop.f32.mrb[104].mxu1  ;;  %v3546_v62 = vpop.f32.mrb[105].mxu0 }
 0x1f0   : > { %3636 = vst.msk [vmem:[#allocation3 + $0x98] sm:$0xff] %vm371_vm1, %v3604_v11  ;;  %v3158_v24 = vadd.f32 %v5752_v19, %v2803_v18  ;;  %v3094_v45 = vpop.f32.mrb[105].mxu1  ;;  %v3684_v11 = vld [vmem:[#allocation3 + $0x18] sm:$0xff] }
 0x1f1   : > { %3635 = vst.msk [vmem:[#allocation3 + $0x90] sm:$0xff] %vm371_vm1, %v3603_v42  ;;  %v3157_v49 = vadd.f32 %v3094_v45, %v2802_v43  ;;  %v3251_v52 = vld [vmem:[#allocation3 + $0xa8] sm:$0xff]  ;;  %v3683_v42 = vld [vmem:[#allocation3 + $0x10] sm:$0xff] }
 0x1f2   : > { %3190 = vst.msk [vmem:[#allocation3 + $0xc8] sm:$0xff] %vm371_vm1, %v3158_v24  ;;  %v3606_v61 = vadd.f32 %v5796_v29, %v3251_v52  ;;  %v3250_v23 = vld [vmem:[#allocation3 + $0xa0] sm:$0xff]  ;;  %v5805_v59 = vpop.f32.mrb[106].mxu0 }
 0x1f3   : > { %3189 = vst.msk [vmem:[#allocation3 + $0xc0] sm:$0xff] %vm371_vm1, %v3157_v49  ;;  %v3605_v46 = vadd.f32 %v3526_v22, %v3250_v23  ;;  %v5755_v27 = vpop.f32.mrb[106].mxu1  ;;  %v3556_v34 = vpop.f32.mrb[107].mxu0 }
 0x1f4   : > { %3638 = vst.msk [vmem:[#allocation3 + $0xa8] sm:$0xff] %vm371_vm1, %v3606_v61  ;;  %v3160_v48 = vadd.f32 %v5755_v27, %v2805_v5  ;;  %v3104_v15 = vpop.f32.mrb[107].mxu1  ;;  %v3686_v61 = vld [vmem:[#allocation3 + $0x28] sm:$0xff] }
 0x1f5   : > { %3637 = vst.msk [vmem:[#allocation3 + $0xa0] sm:$0xff] %vm371_vm1, %v3605_v46  ;;  %v3159_v30 = vadd.f32 %v3104_v15, %v2804_v47  ;;  %v3253_v21 = vld [vmem:[#allocation3 + $0xb8] sm:$0xff]  ;;  %v3685_v46 = vld [vmem:[#allocation3 + $0x20] sm:$0xff] }
 0x1f6   : > { %3192 = vst.msk [vmem:[#allocation3 + $0xd8] sm:$0xff] %vm371_vm1, %v3160_v48  ;;  %v3608_v33 = vadd.f32 %v5799_v6, %v3253_v21  ;;  %v3252_v2 = vld [vmem:[#allocation3 + $0xb0] sm:$0xff]  ;;  %v5808_v9 = vpop.f32.mrb[108].mxu0 }
 0x1f7   : > { %3191 = vst.msk [vmem:[#allocation3 + $0xd0] sm:$0xff] %vm371_vm1, %v3159_v30  ;;  %v3607_v0 = vadd.f32 %v3536_v12, %v3252_v2  ;;  %v5758_v25 = vpop.f32.mrb[108].mxu1  ;;  %v3566_v10 = vpop.f32.mrb[109].mxu0 }
 0x1f8   : > { %3640 = vst.msk [vmem:[#allocation3 + $0xb8] sm:$0xff] %vm371_vm1, %v3608_v33  ;;  %v3162_v39 = vadd.f32 %v5758_v25, %v2807_v50  ;;  %v3114_v26 = vpop.f32.mrb[109].mxu1  ;;  %v3688_v33 = vld [vmem:[#allocation3 + $0x38] sm:$0xff] }
 0x1f9   : > { %3639 = vst.msk [vmem:[#allocation3 + $0xb0] sm:$0xff] %vm371_vm1, %v3607_v0  ;;  %v3161_v1 = vadd.f32 %v3114_v26, %v2806_v35  ;;  %v3255_v56 = vld [vmem:[#allocation3 + $0xc8] sm:$0xff]  ;;  %v3687_v0 = vld [vmem:[#allocation3 + $0x30] sm:$0xff] }
 0x1fa   : > { %3194 = vst.msk [vmem:[#allocation3 + $0xe8] sm:$0xff] %vm371_vm1, %v3162_v39  ;;  %v3610_v38 = vadd.f32 %v5802_v53, %v3255_v56  ;;  %v3254_v16 = vld [vmem:[#allocation3 + $0xc0] sm:$0xff]  ;;  %v5811_v8 = vpop.f32.mrb[110].mxu0 }
 0x1fb   : > { %3193 = vst.msk [vmem:[#allocation3 + $0xe0] sm:$0xff] %vm371_vm1, %v3161_v1  ;;  %v3609_v31 = vadd.f32 %v3546_v62, %v3254_v16  ;;  %v5761_v36 = vpop.f32.mrb[110].mxu1  ;;  %v3576_v13 = vpop.f32.mrb[111].mxu0 }
 0x1fc   : > { %3642 = vst.msk [vmem:[#allocation3 + $0xc8] sm:$0xff] %vm371_vm1, %v3610_v38  ;;  %v3164_v58 = vadd.f32 %v5761_v36, %v2809_v32  ;;  %v3124_v37 = vpop.f32.mrb[111].mxu1  ;;  %v3690_v38 = vld [vmem:[#allocation3 + $0x48] sm:$0xff] }
 0x1fd   : > { %3641 = vst.msk [vmem:[#allocation3 + $0xc0] sm:$0xff] %vm371_vm1, %v3609_v31  ;;  %v3163_v54 = vadd.f32 %v3124_v37, %v2808_v51  ;;  %v3257_v7 = vld [vmem:[#allocation3 + $0xd8] sm:$0xff]  ;;  %v3689_v31 = vld [vmem:[#allocation3 + $0x40] sm:$0xff] }
 0x1fe   : > { %3196 = vst.msk [vmem:[#allocation3 + $0xf8] sm:$0xff] %vm371_vm1, %v3164_v58  ;;  %v3612_v40 = vadd.f32 %v5805_v59, %v3257_v7  ;;  %v3256_v55 = vld [vmem:[#allocation3 + $0xd0] sm:$0xff]  ;;  %v5866_v28 = vpop.f32.mrb[112].mxu0 }
 0x1ff   : > { %3195 = vst.msk [vmem:[#allocation3 + $0xf0] sm:$0xff] %vm371_vm1, %v3163_v54  ;;  %v3611_v29 = vadd.f32 %v3556_v34, %v3256_v55  ;;  %v5816_v3 = vpop.f32.mrb[112].mxu1  ;;  %v4328_v4 = vpop.f32.mrb[113].mxu0  ;;  %v3692_v55 = vld [vmem:[#allocation3 + $0x58] sm:$0xff] }
 0x200   : > { %3644 = vst.msk [vmem:[#allocation3 + $0xd8] sm:$0xff] %vm371_vm1, %v3612_v40  ;;  %v4037_v22 = vadd.f32 %v5816_v3, %v3682_v41  ;;  %v3877_v57 = vpop.f32.mrb[113].mxu1 }
 0x201   : > { %3643 = vst.msk [vmem:[#allocation3 + $0xd0] sm:$0xff] %vm371_vm1, %v3611_v29  ;;  %v3259_v60 = vld [vmem:[#allocation3 + $0xe8] sm:$0xff]  ;;  %v4036_v44 = vadd.f32 %v3877_v57, %v3681_v14 }
 0x202   : > { %4069 = vst.msk [vmem:[#allocation3 + $0x8] sm:$0xff] %vm371_vm1, %v4037_v22  ;;  %v3614_v63 = vadd.f32 %v5808_v9, %v3259_v60  ;;  %v3258_v17 = vld [vmem:[#allocation3 + $0xe0] sm:$0xff]  ;;  %v5869_v43 = vpop.f32.mrb[114].mxu0  ;;  %v3691_v22 = vld [vmem:[#allocation3 + $0x50] sm:$0xff] }
 0x203   : > { %4068 = vst.msk [vmem:[#allocation3] sm:$0xff] %vm371_vm1, %v4036_v44  ;;  %v3613_v6 = vadd.f32 %v3566_v10, %v3258_v17  ;;  %v5819_v20 = vpop.f32.mrb[114].mxu1  ;;  %v4338_v52 = vpop.f32.mrb[115].mxu0 }
 0x204   : > { %3646 = vst.msk [vmem:[#allocation3 + $0xe8] sm:$0xff] %vm371_vm1, %v3614_v63  ;;  %v4039_v12 = vadd.f32 %v5819_v20, %v3684_v11  ;;  %v3887_v18 = vpop.f32.mrb[115].mxu1 }
 0x205   : > { %3645 = vst.msk [vmem:[#allocation3 + $0xe0] sm:$0xff] %vm371_vm1, %v3613_v6  ;;  %v3261_v19 = vld [vmem:[#allocation3 + $0xf8] sm:$0xff]  ;;  %v4038_v24 = vadd.f32 %v3887_v18, %v3683_v42 }
 0x206   : > { %4071 = vst.msk [vmem:[#allocation3 + $0x18] sm:$0xff] %vm371_vm1, %v4039_v12  ;;  %v3616_v45 = vadd.f32 %v5811_v8, %v3261_v19  ;;  %v3260_v49 = vld [vmem:[#allocation3 + $0xf0] sm:$0xff]  ;;  %v5872_v47 = vpop.f32.mrb[116].mxu0  ;;  %v3694_v19 = vld [vmem:[#allocation3 + $0x68] sm:$0xff] }
 0x207   : > { %4070 = vst.msk [vmem:[#allocation3 + $0x10] sm:$0xff] %vm371_vm1, %v4038_v24  ;;  %v3615_v53 = vadd.f32 %v3576_v13, %v3260_v49  ;;  %v5822_v23 = vpop.f32.mrb[116].mxu1  ;;  %v4348_v21 = vpop.f32.mrb[117].mxu0 }
 0x208   : > { %3648 = vst.msk [vmem:[#allocation3 + $0xf8] sm:$0xff] %vm371_vm1, %v3616_v45  ;;  %v4041_v62 = vadd.f32 %v5822_v23, %v3686_v61  ;;  %v3897_v5 = vpop.f32.mrb[117].mxu1 }
 0x209   : > { %3647 = vst.msk [vmem:[#allocation3 + $0xf0] sm:$0xff] %vm371_vm1, %v3615_v53  ;;  %v4040_v27 = vadd.f32 %v3897_v5, %v3685_v46  ;;  %v4133_v48 = vld [vmem:[#allocation3 + $0x8] sm:$0xff]  ;;  %v3693_v53 = vld [vmem:[#allocation3 + $0x60] sm:$0xff] }
 0x20a   : > { %4073 = vst.msk [vmem:[#allocation3 + $0x28] sm:$0xff] %vm371_vm1, %v4041_v62  ;;  %v4488_v15 = vadd.f32 %v5866_v28, %v4133_v48  ;;  %v4132_v30 = vld [vmem:[#allocation3] sm:$0xff]  ;;  %v5875_v35 = vpop.f32.mrb[118].mxu0 }
 0x20b   : > { %4072 = vst.msk [vmem:[#allocation3 + $0x20] sm:$0xff] %vm371_vm1, %v4040_v27  ;;  %v4487_v59 = vadd.f32 %v4328_v4, %v4132_v30  ;;  %v5825_v2 = vpop.f32.mrb[118].mxu1  ;;  %v4358_v56 = vpop.f32.mrb[119].mxu0 }
 0x20c   : > { %4520 = vst.msk [vmem:[#allocation3 + $0x8] sm:$0xff] %vm371_vm1, %v4488_v15  ;;  %v4043_v34 = vadd.f32 %v5825_v2, %v3688_v33  ;;  %v3907_v50 = vpop.f32.mrb[119].mxu1 }
 0x20d   : > { %4519 = vst.msk [vmem:[#allocation3] sm:$0xff] %vm371_vm1, %v4487_v59  ;;  %v4042_v25 = vadd.f32 %v3907_v50, %v3687_v0  ;;  %v4135_v39 = vld [vmem:[#allocation3 + $0x18] sm:$0xff] }
 0x20e   : > { %4075 = vst.msk [vmem:[#allocation3 + $0x38] sm:$0xff] %vm371_vm1, %v4043_v34  ;;  %v4490_v26 = vadd.f32 %v5869_v43, %v4135_v39  ;;  %v4134_v1 = vld [vmem:[#allocation3 + $0x10] sm:$0xff]  ;;  %v5878_v51 = vpop.f32.mrb[120].mxu0 }
 0x20f   : > { %4074 = vst.msk [vmem:[#allocation3 + $0x30] sm:$0xff] %vm371_vm1, %v4042_v25  ;;  %v4489_v9 = vadd.f32 %v4338_v52, %v4134_v1  ;;  %v5828_v16 = vpop.f32.mrb[120].mxu1  ;;  %v4368_v7 = vpop.f32.mrb[121].mxu0  ;;  %v3696_v1 = vld [vmem:[#allocation3 + $0x78] sm:$0xff] }
 0x210   : > { %4522 = vst.msk [vmem:[#allocation3 + $0x18] sm:$0xff] %vm371_vm1, %v4490_v26  ;;  %v4045_v10 = vadd.f32 %v5828_v16, %v3690_v38  ;;  %v3917_v32 = vpop.f32.mrb[121].mxu1 }
 0x211   : > { %4521 = vst.msk [vmem:[#allocation3 + $0x10] sm:$0xff] %vm371_vm1, %v4489_v9  ;;  %v4044_v36 = vadd.f32 %v3917_v32, %v3689_v31  ;;  %v4137_v58 = vld [vmem:[#allocation3 + $0x28] sm:$0xff] }
 0x212   : > { %4077 = vst.msk [vmem:[#allocation3 + $0x48] sm:$0xff] %vm371_vm1, %v4045_v10  ;;  %v4492_v37 = vadd.f32 %v5872_v47, %v4137_v58  ;;  %v4136_v54 = vld [vmem:[#allocation3 + $0x20] sm:$0xff]  ;;  %v5881_v17 = vpop.f32.mrb[122].mxu0 }
 0x213   : > { %v4552_v8 = vld [vmem:[#allocation3 + $0x8] sm:$0xff]  ;;  %4076 = vst.msk [vmem:[#allocation3 + $0x40] sm:$0xff] %vm371_vm1, %v4044_v36  ;;  %v4491_v40 = vadd.f32 %v4348_v21, %v4136_v54  ;;  %v5831_v13 = vpop.f32.mrb[122].mxu1  ;;  %v7315_v11 = vpop.f32.mrb[123].mxu0 }
 0x214   : > { %4584 = vst.msk [vmem:[%s5980_s27 + $0x8] sm:$0xff] %vm371_vm1, %v4552_v8  ;;  %v4690_v29 = vmul.f32 %v4552_v8, %v4552_v8  ;;  %v4551_v41 = vld [vmem:[#allocation3] sm:$0xff]  ;;  %4524 = vst.msk [vmem:[#allocation3 + $0x28] sm:$0xff] %vm371_vm1, %v4492_v37  ;;  %v4047_v3 = vadd.f32 %v5831_v13, %v3692_v55  ;;  %v3927_v14 = vpop.f32.mrb[123].mxu1  ;;  %v4617_v57 = vsel %vm371_vm1, %v4552_v8, 0.0 }
 0x215   : > { %4583 = vst.msk [vmem:[%s5980_s27] sm:$0xff] %vm371_vm1, %v4551_v41  ;;  %v4616_v60 = vsel %vm371_vm1, %v4551_v41, 0.0  ;;  %v4689_v44 = vmul.f32 %v4551_v41, %v4551_v41  ;;  %4523 = vst.msk [vmem:[#allocation3 + $0x20] sm:$0xff] %vm371_vm1, %v4491_v40  ;;  %v4046_v28 = vadd.f32 %v3927_v14, %v3691_v22  ;;  %v4139_v63 = vld [vmem:[#allocation3 + $0x38] sm:$0xff] }
 0x216   : > { %4079 = vst.msk [vmem:[#allocation3 + $0x58] sm:$0xff] %vm371_vm1, %v4047_v3  ;;  %v4494_v4 = vadd.f32 %v5875_v35, %v4139_v63  ;;  %v4138_v6 = vld [vmem:[#allocation3 + $0x30] sm:$0xff]  ;;  %v4722_v20 = vsel %vm371_vm1, %v4690_v29, 0.0  ;;  %v4618_v43 = vadd.f32 %v4617_v57, %v4616_v60  ;;  %v7327_v27 = vpop.f32.mrb[124].mxu0  ;;  %v3698_v60 = vld [vmem:[#allocation3 + $0x88] sm:$0xff] }
 0x217   : > { %v4721_v12 = vsel %vm371_vm1, %v4689_v44, 0.0  ;;  %v4554_v42 = vld [vmem:[#allocation3 + $0x18] sm:$0xff]  ;;  %4078 = vst.msk [vmem:[#allocation3 + $0x50] sm:$0xff] %vm371_vm1, %v4046_v28  ;;  %v4493_v18 = vadd.f32 %v4358_v56, %v4138_v6  ;;  %v5834_v24 = vpop.f32.mrb[124].mxu1  ;;  %v7330_v21 = vpop.f32.mrb[125].mxu0  ;;  %v3695_v56 = vld [vmem:[#allocation3 + $0x70] sm:$0xff] }
 0x218   : > { %4586 = vst.msk [vmem:[%s5980_s27 + $0x18] sm:$0xff] %vm371_vm1, %v4554_v42  ;;  %v4692_v45 = vmul.f32 %v4554_v42, %v4554_v42  ;;  %v4553_v49 = vld [vmem:[#allocation3 + $0x10] sm:$0xff]  ;;  %4526 = vst.msk [vmem:[#allocation3 + $0x38] sm:$0xff] %vm371_vm1, %v4494_v4  ;;  %v4049_v52 = vadd.f32 %v5834_v24, %v3694_v19  ;;  %v3937_v61 = vpop.f32.mrb[125].mxu1  ;;  %v4723_v48 = vadd.f32 %v4722_v20, %v4721_v12  ;;  %v4621_v59 = vsel %vm371_vm1, %v4554_v42, 0.0  ;;  %v3697_v44 = vld [vmem:[#allocation3 + $0x80] sm:$0xff] }
 0x219   : > { %4585 = vst.msk [vmem:[%s5980_s27 + $0x10] sm:$0xff] %vm371_vm1, %v4553_v49  ;;  %v4619_v23 = vsel %vm371_vm1, %v4553_v49, 0.0  ;;  %v4691_v62 = vmul.f32 %v4553_v49, %v4553_v49  ;;  %4525 = vst.msk [vmem:[#allocation3 + $0x30] sm:$0xff] %vm371_vm1, %v4493_v18  ;;  %v4048_v46 = vadd.f32 %v3937_v61, %v3693_v53  ;;  %v4141_v5 = vld [vmem:[#allocation3 + $0x48] sm:$0xff] }
 0x21a   : > { %v4620_v47 = vadd.f32 %v4619_v23, %v4618_v43  ;;  %4081 = vst.msk [vmem:[#allocation3 + $0x68] sm:$0xff] %vm371_vm1, %v4049_v52  ;;  %v4496_v15 = vadd.f32 %v5878_v51, %v4141_v5  ;;  %v4140_v30 = vld [vmem:[#allocation3 + $0x40] sm:$0xff]  ;;  %v4726_v50 = vsel %vm371_vm1, %v4692_v45, 0.0  ;;  %v7343_v36 = vpop.f32.mrb[126].mxu0 }
 0x21b   : > { %v4724_v33 = vsel %vm371_vm1, %v4691_v62, 0.0  ;;  %v4556_v2 = vld [vmem:[#allocation3 + $0x28] sm:$0xff]  ;;  %4080 = vst.msk [vmem:[#allocation3 + $0x60] sm:$0xff] %vm371_vm1, %v4048_v46  ;;  %v4495_v34 = vadd.f32 %v4368_v7, %v4140_v30  ;;  %v5837_v0 = vpop.f32.mrb[126].mxu1  ;;  %v7345_v7 = vpop.f32.mrb[127].mxu0 }
 0x21c   : > { %v4725_v25 = vadd.f32 %v4724_v33, %v4723_v48  ;;  %4588 = vst.msk [vmem:[%s5980_s27 + $0x28] sm:$0xff] %vm371_vm1, %v4556_v2  ;;  %v4694_v39 = vmul.f32 %v4556_v2, %v4556_v2  ;;  %v4555_v35 = vld [vmem:[#allocation3 + $0x20] sm:$0xff]  ;;  %v4622_v26 = vadd.f32 %v4621_v59, %v4620_v47  ;;  %4528 = vst.msk [vmem:[#allocation3 + $0x48] sm:$0xff] %vm371_vm1, %v4496_v15  ;;  %v3947_v9 = vpop.f32.mrb[127].mxu1  ;;  %v4625_v8 = vsel %vm371_vm1, %v4556_v2, 0.0  ;;  %v3699_v48 = vld [vmem:[#allocation3 + $0x90] sm:$0xff] }
 0x21d   : > { %4587 = vst.msk [vmem:[%s5980_s27 + $0x20] sm:$0xff] %vm371_vm1, %v4555_v35  ;;  %v4623_v38 = vsel %vm371_vm1, %v4555_v35, 0.0  ;;  %v4693_v16 = vmul.f32 %v4555_v35, %v4555_v35  ;;  %4527 = vst.msk [vmem:[#allocation3 + $0x40] sm:$0xff] %vm371_vm1, %v4495_v34  ;;  %v4051_v10 = vadd.f32 %v5837_v0, %v3696_v1  ;;  %v4050_v31 = vadd.f32 %v3947_v9, %v3695_v56  ;;  %v4143_v32 = vld [vmem:[#allocation3 + $0x58] sm:$0xff] }
 0x21e   : > { %v4624_v58 = vadd.f32 %v4623_v38, %v4622_v26  ;;  %v4727_v51 = vadd.f32 %v4726_v50, %v4725_v25  ;;  %v4498_v37 = vadd.f32 %v5881_v17, %v4143_v32  ;;  %v4142_v54 = vld [vmem:[#allocation3 + $0x50] sm:$0xff]  ;;  %v4730_v41 = vsel %vm371_vm1, %v4694_v39, 0.0  ;;  %v7360_v20 = vpop.f32.mrb[128].mxu0 }
 0x21f   : > { %v4728_v40 = vsel %vm371_vm1, %v4693_v16, 0.0  ;;  %v4558_v55 = vld [vmem:[#allocation3 + $0x38] sm:$0xff]  ;;  %4083 = vst.msk [vmem:[#allocation3 + $0x78] sm:$0xff] %vm371_vm1, %v4051_v10  ;;  %4082 = vst.msk [vmem:[#allocation3 + $0x70] sm:$0xff] %vm371_vm1, %v4050_v31  ;;  %v4497_v13 = vadd.f32 %v7315_v11, %v4142_v54  ;;  %v5840_v29 = vpop.f32.mrb[128].mxu1  ;;  %v7363_v24 = vpop.f32.mrb[129].mxu0 }
 0x220   : > { %v4729_v3 = vadd.f32 %v4728_v40, %v4727_v51  ;;  %4590 = vst.msk [vmem:[%s5980_s27 + $0x38] sm:$0xff] %vm371_vm1, %v4558_v55  ;;  %v4696_v22 = vmul.f32 %v4558_v55, %v4558_v55  ;;  %v4557_v14 = vld [vmem:[#allocation3 + $0x30] sm:$0xff]  ;;  %v4626_v57 = vadd.f32 %v4625_v8, %v4624_v58  ;;  %4530 = vst.msk [vmem:[#allocation3 + $0x58] sm:$0xff] %vm371_vm1, %v4498_v37  ;;  %v3957_v28 = vpop.f32.mrb[129].mxu1  ;;  %v4629_v43 = vsel %vm371_vm1, %v4558_v55, 0.0  ;;  %v3702_v58 = vld [vmem:[#allocation3 + $0xa8] sm:$0xff] }
 0x221   : > { %4589 = vst.msk [vmem:[%s5980_s27 + $0x30] sm:$0xff] %vm371_vm1, %v4557_v14  ;;  %v4627_v63 = vsel %vm371_vm1, %v4557_v14, 0.0  ;;  %v4695_v17 = vmul.f32 %v4557_v14, %v4557_v14  ;;  %4529 = vst.msk [vmem:[#allocation3 + $0x50] sm:$0xff] %vm371_vm1, %v4497_v13  ;;  %v4053_v4 = vadd.f32 %v5840_v29, %v3698_v60  ;;  %v4052_v6 = vadd.f32 %v3957_v28, %v3697_v44  ;;  %v4145_v11 = vld [vmem:[#allocation3 + $0x68] sm:$0xff]  ;;  %v3701_v51 = vld [vmem:[#allocation3 + $0xa0] sm:$0xff] }
 0x222   : > { %v4628_v12 = vadd.f32 %v4627_v63, %v4626_v57  ;;  %v4731_v42 = vadd.f32 %v4730_v41, %v4729_v3  ;;  %v4500_v18 = vadd.f32 %v7327_v27, %v4145_v11  ;;  %v4144_v19 = vld [vmem:[#allocation3 + $0x60] sm:$0xff]  ;;  %v4734_v61 = vsel %vm371_vm1, %v4696_v22, 0.0  ;;  %v3700_v27 = vld [vmem:[#allocation3 + $0x98] sm:$0xff]  ;;  %v7378_v33 = vpop.f32.mrb[130].mxu0 }
 0x223   : > { %v4732_v45 = vsel %vm371_vm1, %v4695_v17, 0.0  ;;  %v4560_v49 = vld [vmem:[#allocation3 + $0x48] sm:$0xff]  ;;  %4085 = vst.msk [vmem:[#allocation3 + $0x88] sm:$0xff] %vm371_vm1, %v4053_v4  ;;  %4084 = vst.msk [vmem:[#allocation3 + $0x80] sm:$0xff] %vm371_vm1, %v4052_v6  ;;  %v4499_v52 = vadd.f32 %v7330_v21, %v4144_v19  ;;  %v5843_v53 = vpop.f32.mrb[130].mxu1  ;;  %v7380_v25 = vpop.f32.mrb[131].mxu0 }
 0x224   : > { %v4733_v23 = vadd.f32 %v4732_v45, %v4731_v42  ;;  %4592 = vst.msk [vmem:[%s5980_s27 + $0x48] sm:$0xff] %vm371_vm1, %v4560_v49  ;;  %v4698_v62 = vmul.f32 %v4560_v49, %v4560_v49  ;;  %v4559_v46 = vld [vmem:[#allocation3 + $0x40] sm:$0xff]  ;;  %v4630_v5 = vadd.f32 %v4629_v43, %v4628_v12  ;;  %4532 = vst.msk [vmem:[#allocation3 + $0x68] sm:$0xff] %vm371_vm1, %v4500_v18  ;;  %v3967_v47 = vpop.f32.mrb[131].mxu1  ;;  %v4633_v39 = vsel %vm371_vm1, %v4560_v49, 0.0  ;;  %v3704_v12 = vld [vmem:[#allocation3 + $0xb8] sm:$0xff] }
 0x225   : > { %4591 = vst.msk [vmem:[%s5980_s27 + $0x40] sm:$0xff] %vm371_vm1, %v4559_v46  ;;  %v4631_v15 = vsel %vm371_vm1, %v4559_v46, 0.0  ;;  %v4697_v30 = vmul.f32 %v4559_v46, %v4559_v46  ;;  %4531 = vst.msk [vmem:[#allocation3 + $0x60] sm:$0xff] %vm371_vm1, %v4499_v52  ;;  %v4055_v21 = vadd.f32 %v5843_v53, %v3700_v27  ;;  %v4054_v59 = vadd.f32 %v3967_v47, %v3699_v48  ;;  %v3703_v42 = vld [vmem:[#allocation3 + $0xb0] sm:$0xff]  ;;  %v3706_v48 = vld [vmem:[#allocation3 + $0xc8] sm:$0xff] }
 0x226   : > { %v4632_v2 = vadd.f32 %v4631_v15, %v4630_v5  ;;  %v4735_v34 = vadd.f32 %v4734_v61, %v4733_v23  ;;  %v4147_v0 = vld [vmem:[#allocation3 + $0x78] sm:$0xff]  ;;  %v4146_v50 = vld [vmem:[#allocation3 + $0x70] sm:$0xff]  ;;  %v4738_v38 = vsel %vm371_vm1, %v4698_v62, 0.0  ;;  %v7396_v40 = vpop.f32.mrb[132].mxu0 }
 0x227   : > { %v4736_v35 = vsel %vm371_vm1, %v4697_v30, 0.0  ;;  %v4562_v26 = vld [vmem:[#allocation3 + $0x58] sm:$0xff]  ;;  %4087 = vst.msk [vmem:[#allocation3 + $0x98] sm:$0xff] %vm371_vm1, %v4055_v21  ;;  %4086 = vst.msk [vmem:[#allocation3 + $0x90] sm:$0xff] %vm371_vm1, %v4054_v59  ;;  %v4502_v1 = vadd.f32 %v7343_v36, %v4147_v0  ;;  %v4501_v56 = vadd.f32 %v7345_v7, %v4146_v50  ;;  %v5846_v9 = vpop.f32.mrb[132].mxu1  ;;  %v7398_v3 = vpop.f32.mrb[133].mxu0 }
 0x228   : > { %v4737_v16 = vadd.f32 %v4736_v35, %v4735_v34  ;;  %4594 = vst.msk [vmem:[%s5980_s27 + $0x58] sm:$0xff] %vm371_vm1, %v4562_v26  ;;  %v4700_v10 = vmul.f32 %v4562_v26, %v4562_v26  ;;  %v4561_v31 = vld [vmem:[#allocation3 + $0x50] sm:$0xff]  ;;  %v4634_v32 = vadd.f32 %v4633_v39, %v4632_v2  ;;  %v3977_v37 = vpop.f32.mrb[133].mxu1  ;;  %v4057_v36 = vadd.f32 %v5846_v9, %v3702_v58 }
 0x229   : > { %4593 = vst.msk [vmem:[%s5980_s27 + $0x50] sm:$0xff] %vm371_vm1, %v4561_v31  ;;  %v4635_v54 = vsel %vm371_vm1, %v4561_v31, 0.0  ;;  %v4699_v8 = vmul.f32 %v4561_v31, %v4561_v31  ;;  %4534 = vst.msk [vmem:[#allocation3 + $0x78] sm:$0xff] %vm371_vm1, %v4502_v1  ;;  %v4056_v7 = vadd.f32 %v3977_v37, %v3701_v51  ;;  %v4637_v22 = vsel %vm371_vm1, %v4562_v26, 0.0  ;;  %v3708_v51 = vld [vmem:[#allocation3 + $0xd8] sm:$0xff] }
 0x22a   : > { %4533 = vst.msk [vmem:[#allocation3 + $0x70] sm:$0xff] %vm371_vm1, %v4501_v56  ;;  %v4636_v55 = vadd.f32 %v4635_v54, %v4634_v32  ;;  %v4739_v13 = vadd.f32 %v4738_v38, %v4737_v16  ;;  %v4149_v29 = vld [vmem:[#allocation3 + $0x88] sm:$0xff]  ;;  %v4148_v41 = vld [vmem:[#allocation3 + $0x80] sm:$0xff]  ;;  %4089 = vst.msk [vmem:[#allocation3 + $0xa8] sm:$0xff] %vm371_vm1, %v4057_v36  ;;  %v4742_v63 = vsel %vm371_vm1, %v4700_v10, 0.0  ;;  %v7414_v45 = vpop.f32.mrb[134].mxu0 }
 0x22b   : > { %v4740_v14 = vsel %vm371_vm1, %v4699_v8, 0.0  ;;  %v4564_v57 = vld [vmem:[#allocation3 + $0x68] sm:$0xff]  ;;  %4088 = vst.msk [vmem:[#allocation3 + $0xa0] sm:$0xff] %vm371_vm1, %v4056_v7  ;;  %v4504_v60 = vadd.f32 %v7360_v20, %v4149_v29  ;;  %v4503_v44 = vadd.f32 %v7363_v24, %v4148_v41  ;;  %v5849_v28 = vpop.f32.mrb[134].mxu1  ;;  %v7416_v23 = vpop.f32.mrb[135].mxu0 }
 0x22c   : > { %v4741_v17 = vadd.f32 %v4740_v14, %v4739_v13  ;;  %4596 = vst.msk [vmem:[%s5980_s27 + $0x68] sm:$0xff] %vm371_vm1, %v4564_v57  ;;  %v4702_v4 = vmul.f32 %v4564_v57, %v4564_v57  ;;  %v4563_v6 = vld [vmem:[#allocation3 + $0x60] sm:$0xff]  ;;  %v4638_v11 = vadd.f32 %v4637_v22, %v4636_v55  ;;  %v3987_v18 = vpop.f32.mrb[135].mxu1  ;;  %v4059_v20 = vadd.f32 %v5849_v28, %v3704_v12  ;;  %v3707_v22 = vld [vmem:[#allocation3 + $0xd0] sm:$0xff] }
 0x22d   : > { %4595 = vst.msk [vmem:[%s5980_s27 + $0x60] sm:$0xff] %vm371_vm1, %v4563_v6  ;;  %v4639_v19 = vsel %vm371_vm1, %v4563_v6, 0.0  ;;  %v4701_v43 = vmul.f32 %v4563_v6, %v4563_v6  ;;  %4536 = vst.msk [vmem:[#allocation3 + $0x88] sm:$0xff] %vm371_vm1, %v4504_v60  ;;  %v4058_v24 = vadd.f32 %v3987_v18, %v3703_v42  ;;  %v4641_v62 = vsel %vm371_vm1, %v4564_v57, 0.0  ;;  %v3710_v42 = vld [vmem:[#allocation3 + $0xe8] sm:$0xff] }
 0x22e   : > { %4535 = vst.msk [vmem:[#allocation3 + $0x80] sm:$0xff] %vm371_vm1, %v4503_v44  ;;  %v4640_v49 = vadd.f32 %v4639_v19, %v4638_v11  ;;  %v4743_v52 = vadd.f32 %v4742_v63, %v4741_v17  ;;  %v4151_v53 = vld [vmem:[#allocation3 + $0x98] sm:$0xff]  ;;  %v4150_v61 = vld [vmem:[#allocation3 + $0x90] sm:$0xff]  ;;  %4091 = vst.msk [vmem:[#allocation3 + $0xb8] sm:$0xff] %vm371_vm1, %v4059_v20  ;;  %v4746_v0 = vsel %vm371_vm1, %v4702_v4, 0.0  ;;  %v7432_v35 = vpop.f32.mrb[136].mxu0 }
 0x22f   : > { %v4744_v46 = vsel %vm371_vm1, %v4701_v43, 0.0  ;;  %4090 = vst.msk [vmem:[#allocation3 + $0xb0] sm:$0xff] %vm371_vm1, %v4058_v24  ;;  %v4506_v5 = vadd.f32 %v7378_v33, %v4151_v53  ;;  %v4505_v27 = vadd.f32 %v7380_v25, %v4150_v61  ;;  %v5852_v47 = vpop.f32.mrb[136].mxu1  ;;  %v3705_v25 = vld [vmem:[#allocation3 + $0xc0] sm:$0xff]  ;;  %v7435_v16 = vpop.f32.mrb[137].mxu0 }
 0x230   : > { %v4745_v15 = vadd.f32 %v4744_v46, %v4743_v52  ;;  %v4566_v30 = vld [vmem:[#allocation3 + $0x78] sm:$0xff]  ;;  %v4642_v59 = vadd.f32 %v4641_v62, %v4640_v49  ;;  %v4061_v2 = vadd.f32 %v5852_v47, %v3706_v48  ;;  %v3997_v34 = vpop.f32.mrb[137].mxu1  ;;  %v3709_v62 = vld [vmem:[#allocation3 + $0xe0] sm:$0xff] }
 0x231   : > { %v4565_v21 = vld [vmem:[#allocation3 + $0x70] sm:$0xff]  ;;  %4598 = vst.msk [vmem:[%s5980_s27 + $0x78] sm:$0xff] %vm371_vm1, %v4566_v30  ;;  %v4704_v50 = vmul.f32 %v4566_v30, %v4566_v30  ;;  %4538 = vst.msk [vmem:[#allocation3 + $0x98] sm:$0xff] %vm371_vm1, %v4506_v5  ;;  %v4060_v56 = vadd.f32 %v3997_v34, %v3705_v25  ;;  %v4153_v9 = vld [vmem:[#allocation3 + $0xa8] sm:$0xff]  ;;  %v4645_v10 = vsel %vm371_vm1, %v4566_v30, 0.0 }
 0x232   : > { %4597 = vst.msk [vmem:[%s5980_s27 + $0x70] sm:$0xff] %vm371_vm1, %v4565_v21  ;;  %v4643_v39 = vsel %vm371_vm1, %v4565_v21, 0.0  ;;  %v4703_v33 = vmul.f32 %v4565_v21, %v4565_v21  ;;  %4537 = vst.msk [vmem:[#allocation3 + $0x90] sm:$0xff] %vm371_vm1, %v4505_v27  ;;  %v4747_v1 = vadd.f32 %v4746_v0, %v4745_v15  ;;  %v4152_v38 = vld [vmem:[#allocation3 + $0xa0] sm:$0xff]  ;;  %v4508_v32 = vadd.f32 %v7396_v40, %v4153_v9  ;;  %v7450_v14 = vpop.f32.mrb[138].mxu0  ;;  %v3712_v34 = vld [vmem:[#allocation3 + $0xf8] sm:$0xff] }
 0x233   : > { %v4644_v26 = vadd.f32 %v4643_v39, %v4642_v59  ;;  %4093 = vst.msk [vmem:[#allocation3 + $0xc8] sm:$0xff] %vm371_vm1, %v4061_v2  ;;  %v4507_v58 = vadd.f32 %v7398_v3, %v4152_v38  ;;  %v5855_v37 = vpop.f32.mrb[138].mxu1  ;;  %4092 = vst.msk [vmem:[#allocation3 + $0xc0] sm:$0xff] %vm371_vm1, %v4060_v56  ;;  %v4750_v29 = vsel %vm371_vm1, %v4704_v50, 0.0  ;;  %v7453_v17 = vpop.f32.mrb[139].mxu0 }
 0x234   : > { %v4748_v31 = vsel %vm371_vm1, %v4703_v33, 0.0  ;;  %v4568_v8 = vld [vmem:[#allocation3 + $0x88] sm:$0xff]  ;;  %v4063_v55 = vadd.f32 %v5855_v37, %v3708_v51  ;;  %v4007_v13 = vpop.f32.mrb[139].mxu1  ;;  %4540 = vst.msk [vmem:[#allocation3 + $0xa8] sm:$0xff] %vm371_vm1, %v4508_v32 }
 0x235   : > { %v4749_v54 = vadd.f32 %v4748_v31, %v4747_v1  ;;  %v4567_v36 = vld [vmem:[#allocation3 + $0x80] sm:$0xff]  ;;  %v4646_v7 = vadd.f32 %v4645_v10, %v4644_v26  ;;  %4600 = vst.msk [vmem:[%s5980_s27 + $0x88] sm:$0xff] %vm371_vm1, %v4568_v8  ;;  %v4706_v41 = vmul.f32 %v4568_v8, %v4568_v8  ;;  %4539 = vst.msk [vmem:[#allocation3 + $0xa0] sm:$0xff] %vm371_vm1, %v4507_v58  ;;  %v4155_v28 = vld [vmem:[#allocation3 + $0xb8] sm:$0xff]  ;;  %v4649_v4 = vsel %vm371_vm1, %v4568_v8, 0.0 }
 0x236   : > { %4599 = vst.msk [vmem:[%s5980_s27 + $0x80] sm:$0xff] %vm371_vm1, %v4567_v36  ;;  %v4647_v40 = vsel %vm371_vm1, %v4567_v36, 0.0  ;;  %v4705_v3 = vmul.f32 %v4567_v36, %v4567_v36  ;;  %4095 = vst.msk [vmem:[#allocation3 + $0xd8] sm:$0xff] %vm371_vm1, %v4063_v55  ;;  %v4062_v44 = vadd.f32 %v4007_v13, %v3707_v22  ;;  %v4154_v63 = vld [vmem:[#allocation3 + $0xb0] sm:$0xff]  ;;  %v4510_v11 = vadd.f32 %v7414_v45, %v4155_v28  ;;  %v5908_v5 = vpop.f32.mrb[140].mxu0 }
 0x237   : > { %v4648_v57 = vadd.f32 %v4647_v40, %v4646_v7  ;;  %v4751_v60 = vadd.f32 %v4750_v29, %v4749_v54  ;;  %v4509_v12 = vadd.f32 %v7416_v23, %v4154_v63  ;;  %v5858_v18 = vpop.f32.mrb[140].mxu1  ;;  %v4754_v53 = vsel %vm371_vm1, %v4706_v41, 0.0  ;;  %v4468_v30 = vpop.f32.mrb[141].mxu0  ;;  %v3711_v31 = vld [vmem:[#allocation3 + $0xf0] sm:$0xff] }
 0x238   : > { %v4752_v6 = vsel %vm371_vm1, %v4705_v3, 0.0  ;;  %v4570_v43 = vld [vmem:[#allocation3 + $0x98] sm:$0xff]  ;;  %4094 = vst.msk [vmem:[#allocation3 + $0xd0] sm:$0xff] %vm371_vm1, %v4062_v44  ;;  %v4065_v49 = vadd.f32 %v5858_v18, %v3710_v42  ;;  %v4017_v52 = vpop.f32.mrb[141].mxu1  ;;  %4542 = vst.msk [vmem:[#allocation3 + $0xb8] sm:$0xff] %vm371_vm1, %v4510_v11 }
 0x239   : > { %v4753_v19 = vadd.f32 %v4752_v6, %v4751_v60  ;;  %v4569_v20 = vld [vmem:[#allocation3 + $0x90] sm:$0xff]  ;;  %v4650_v24 = vadd.f32 %v4649_v4, %v4648_v57  ;;  %4602 = vst.msk [vmem:[%s5980_s27 + $0x98] sm:$0xff] %vm371_vm1, %v4570_v43  ;;  %v4708_v61 = vmul.f32 %v4570_v43, %v4570_v43  ;;  %4541 = vst.msk [vmem:[#allocation3 + $0xb0] sm:$0xff] %vm371_vm1, %v4509_v12  ;;  %v4653_v21 = vsel %vm371_vm1, %v4570_v43, 0.0 }
 0x23a   : > { %4601 = vst.msk [vmem:[%s5980_s27 + $0x90] sm:$0xff] %vm371_vm1, %v4569_v20  ;;  %v4651_v45 = vsel %vm371_vm1, %v4569_v20, 0.0  ;;  %v4707_v23 = vmul.f32 %v4569_v20, %v4569_v20  ;;  %v4157_v46 = vld [vmem:[#allocation3 + $0xc8] sm:$0xff]  ;;  %4097 = vst.msk [vmem:[#allocation3 + $0xe8] sm:$0xff] %vm371_vm1, %v4065_v49  ;;  %v4064_v47 = vadd.f32 %v4017_v52, %v3709_v62  ;;  %v4156_v2 = vld [vmem:[#allocation3 + $0xc0] sm:$0xff]  ;;  %v5911_v58 = vpop.f32.mrb[142].mxu0 }
 0x23b   : > { %v4652_v27 = vadd.f32 %v4651_v45, %v4650_v24  ;;  %v4755_v48 = vadd.f32 %v4754_v53, %v4753_v19  ;;  %v4512_v15 = vadd.f32 %v7432_v35, %v4157_v46  ;;  %v5861_v0 = vpop.f32.mrb[142].mxu1  ;;  %v4572_v39 = vld [vmem:[#allocation3 + $0xa8] sm:$0xff]  ;;  %v4511_v35 = vadd.f32 %v7435_v16, %v4156_v2  ;;  %v4478_v8 = vpop.f32.mrb[143].mxu0 }
 0x23c   : > { %v4756_v59 = vsel %vm371_vm1, %v4707_v23, 0.0  ;;  %v4571_v33 = vld [vmem:[#allocation3 + $0xa0] sm:$0xff]  ;;  %4096 = vst.msk [vmem:[#allocation3 + $0xe0] sm:$0xff] %vm371_vm1, %v4064_v47  ;;  %v4067_v26 = vadd.f32 %v5861_v0, %v3712_v34  ;;  %v4027_v1 = vpop.f32.mrb[143].mxu1  ;;  %v4758_v56 = vsel %vm371_vm1, %v4708_v61, 0.0  ;;  %4604 = vst.msk [vmem:[%s5980_s27 + $0xa8] sm:$0xff] %vm371_vm1, %v4572_v39  ;;  %v4710_v9 = vmul.f32 %v4572_v39, %v4572_v39 }
 0x23d   : > { %v4757_v50 = vadd.f32 %v4756_v59, %v4755_v48  ;;  %v4654_v25 = vadd.f32 %v4653_v21, %v4652_v27  ;;  %4544 = vst.msk [vmem:[#allocation3 + $0xc8] sm:$0xff] %vm371_vm1, %v4512_v15  ;;  %4603 = vst.msk [vmem:[%s5980_s27 + $0xa0] sm:$0xff] %vm371_vm1, %v4571_v33  ;;  %v4655_v38 = vsel %vm371_vm1, %v4571_v33, 0.0  ;;  %v4709_v10 = vmul.f32 %v4571_v33, %v4571_v33  ;;  %v4159_v32 = vld [vmem:[#allocation3 + $0xd8] sm:$0xff] }
 0x23e   : > { %4543 = vst.msk [vmem:[#allocation3 + $0xc0] sm:$0xff] %vm371_vm1, %v4511_v35  ;;  %4099 = vst.msk [vmem:[#allocation3 + $0xf8] sm:$0xff] %vm371_vm1, %v4067_v26  ;;  %v4066_v16 = vadd.f32 %v4027_v1, %v3711_v31  ;;  %v4514_v54 = vadd.f32 %v7450_v14, %v4159_v32  ;;  %v4657_v36 = vsel %vm371_vm1, %v4572_v39, 0.0  ;;  %v4762_v22 = vsel %vm371_vm1, %v4710_v9, 0.0 }
 0x23f   : > { %v4656_v51 = vadd.f32 %v4655_v38, %v4654_v25  ;;  %v4759_v37 = vadd.f32 %v4758_v56, %v4757_v50  ;;  %v4760_v7 = vsel %vm371_vm1, %v4709_v10, 0.0  ;;  %v4158_v55 = vld [vmem:[#allocation3 + $0xd0] sm:$0xff]  ;;  %v4574_v29 = vld [vmem:[#allocation3 + $0xb8] sm:$0xff] }
 0x240   : > { %v4573_v41 = vld [vmem:[#allocation3 + $0xb0] sm:$0xff]  ;;  %4098 = vst.msk [vmem:[#allocation3 + $0xf0] sm:$0xff] %vm371_vm1, %v4066_v16  ;;  %4546 = vst.msk [vmem:[#allocation3 + $0xd8] sm:$0xff] %vm371_vm1, %v4514_v54  ;;  %v4513_v3 = vadd.f32 %v7453_v17, %v4158_v55  ;;  %v4712_v14 = vmul.f32 %v4574_v29, %v4574_v29  ;;  %v4661_v17 = vsel %vm371_vm1, %v4574_v29, 0.0 }
 0x241   : > { %v4761_v13 = vadd.f32 %v4760_v7, %v4759_v37  ;;  %v4658_v40 = vadd.f32 %v4657_v36, %v4656_v51  ;;  %4606 = vst.msk [vmem:[%s5980_s27 + $0xb8] sm:$0xff] %vm371_vm1, %v4574_v29  ;;  %4605 = vst.msk [vmem:[%s5980_s27 + $0xb0] sm:$0xff] %vm371_vm1, %v4573_v41  ;;  %v4659_v57 = vsel %vm371_vm1, %v4573_v41, 0.0  ;;  %v4711_v60 = vmul.f32 %v4573_v41, %v4573_v41  ;;  %v4161_v44 = vld [vmem:[#allocation3 + $0xe8] sm:$0xff] }
 0x242   : > { %4545 = vst.msk [vmem:[#allocation3 + $0xd0] sm:$0xff] %vm371_vm1, %v4513_v3  ;;  %v4516_v4 = vadd.f32 %v5908_v5, %v4161_v44  ;;  %v4766_v19 = vsel %vm371_vm1, %v4712_v14, 0.0 }
 0x243   : > { %v4660_v28 = vadd.f32 %v4659_v57, %v4658_v40  ;;  %v4763_v63 = vadd.f32 %v4762_v22, %v4761_v13  ;;  %v4764_v6 = vsel %vm371_vm1, %v4711_v60, 0.0  ;;  %v4160_v12 = vld [vmem:[#allocation3 + $0xe0] sm:$0xff] }
 0x244   : > { %v4576_v11 = vld [vmem:[#allocation3 + $0xc8] sm:$0xff]  ;;  %4548 = vst.msk [vmem:[#allocation3 + $0xe8] sm:$0xff] %vm371_vm1, %v4516_v4  ;;  %v4515_v20 = vadd.f32 %v4468_v30, %v4160_v12 }
 0x245   : > { %v4765_v42 = vadd.f32 %v4764_v6, %v4763_v63  ;;  %4608 = vst.msk [vmem:[%s5980_s27 + $0xc8] sm:$0xff] %vm371_vm1, %v4576_v11  ;;  %v4662_v18 = vadd.f32 %v4661_v17, %v4660_v28  ;;  %v4575_v43 = vld [vmem:[#allocation3 + $0xc0] sm:$0xff]  ;;  %v4163_v24 = vld [vmem:[#allocation3 + $0xf8] sm:$0xff]  ;;  %v4714_v49 = vmul.f32 %v4576_v11, %v4576_v11  ;;  %v4665_v5 = vsel %vm371_vm1, %v4576_v11, 0.0 }
 0x246   : > { %4607 = vst.msk [vmem:[%s5980_s27 + $0xc0] sm:$0xff] %vm371_vm1, %v4575_v43  ;;  %v4663_v52 = vsel %vm371_vm1, %v4575_v43, 0.0  ;;  %v4713_v53 = vmul.f32 %v4575_v43, %v4575_v43  ;;  %4547 = vst.msk [vmem:[#allocation3 + $0xe0] sm:$0xff] %vm371_vm1, %v4515_v20  ;;  %v4518_v62 = vadd.f32 %v5911_v58, %v4163_v24  ;;  %v4688_v20 = vld [vmem:[%s7555_s5 + $0x1] sm:$0x1] }
 0x247   : > { %v4767_v61 = vadd.f32 %v4766_v19, %v4765_v42  ;;  %v4664_v45 = vadd.f32 %v4663_v52, %v4662_v18  ;;  %v4578_v23 = vld [vmem:[#allocation3 + $0xd8] sm:$0xff]  ;;  %v4162_v46 = vld [vmem:[#allocation3 + $0xf0] sm:$0xff]  ;;  %v4770_v21 = vsel %vm371_vm1, %v4714_v49, 0.0 }
 0x248   : > { %v4768_v27 = vsel %vm371_vm1, %v4713_v53, 0.0  ;;  %4610 = vst.msk [vmem:[%s5980_s27 + $0xd8] sm:$0xff] %vm371_vm1, %v4578_v23  ;;  %v4517_v48 = vadd.f32 %v4478_v8, %v4162_v46  ;;  %4550 = vst.msk [vmem:[#allocation3 + $0xf8] sm:$0xff] %vm371_vm1, %v4518_v62  ;;  %v4716_v59 = vmul.f32 %v4578_v23, %v4578_v23  ;;  %v4669_v33 = vsel %vm371_vm1, %v4578_v23, 0.0  ;;  %v4615_v18 = vld [vmem:[%s7555_s5] sm:$0x1] }
 0x249   : > { %v4769_v47 = vadd.f32 %v4768_v27, %v4767_v61  ;;  %v4577_v15 = vld [vmem:[#allocation3 + $0xd0] sm:$0xff]  ;;  %v4666_v30 = vadd.f32 %v4665_v5, %v4664_v45 }
 0x24a   : > { %4609 = vst.msk [vmem:[%s5980_s27 + $0xd0] sm:$0xff] %vm371_vm1, %v4577_v15  ;;  %v4667_v2 = vsel %vm371_vm1, %v4577_v15, 0.0  ;;  %v4715_v34 = vmul.f32 %v4577_v15, %v4577_v15  ;;  %4549 = vst.msk [vmem:[#allocation3 + $0xf0] sm:$0xff] %vm371_vm1, %v4517_v48  ;;  %v4774_v1 = vsel %vm371_vm1, %v4716_v59, 0.0 }
 0x24b   : > { %v4668_v0 = vadd.f32 %v4667_v2, %v4666_v30  ;;  %v4771_v50 = vadd.f32 %v4770_v21, %v4769_v47  ;;  %v4580_v39 = vld [vmem:[#allocation3 + $0xe8] sm:$0xff] }
 0x24c   : > { %v4772_v25 = vsel %vm371_vm1, %v4715_v34, 0.0  ;;  %4612 = vst.msk [vmem:[%s5980_s27 + $0xe8] sm:$0xff] %vm371_vm1, %v4580_v39  ;;  %v4718_v9 = vmul.f32 %v4580_v39, %v4580_v39  ;;  %v4673_v51 = vsel %vm371_vm1, %v4580_v39, 0.0 }
 0x24d   : > { %v4773_v35 = vadd.f32 %v4772_v25, %v4771_v50  ;;  %v4670_v26 = vadd.f32 %v4669_v33, %v4668_v0  ;;  %v4579_v56 = vld [vmem:[#allocation3 + $0xe0] sm:$0xff] }
 0x24e   : > { %4611 = vst.msk [vmem:[%s5980_s27 + $0xe0] sm:$0xff] %vm371_vm1, %v4579_v56  ;;  %v4671_v38 = vsel %vm371_vm1, %v4579_v56, 0.0  ;;  %v4717_v10 = vmul.f32 %v4579_v56, %v4579_v56  ;;  %v4778_v55 = vsel %vm371_vm1, %v4718_v9, 0.0 }
 0x24f   : > { %v4775_v31 = vadd.f32 %v4774_v1, %v4773_v35  ;;  %v4672_v32 = vadd.f32 %v4671_v38, %v4670_v26  ;;  %v4582_v58 = vld [vmem:[#allocation3 + $0xf8] sm:$0xff] }
 0x250   : > { %v4776_v37 = vsel %vm371_vm1, %v4717_v10, 0.0  ;;  %4614 = vst.msk [vmem:[%s5980_s27 + $0xf8] sm:$0xff] %vm371_vm1, %v4582_v58  ;;  %v4720_v13 = vmul.f32 %v4582_v58, %v4582_v58  ;;  %v4677_v3 = vsel %vm371_vm1, %v4582_v58, 0.0 }
 0x251   : > { %v4581_v16 = vld [vmem:[#allocation3 + $0xf0] sm:$0xff]  ;;  %v4777_v54 = vadd.f32 %v4776_v37, %v4775_v31  ;;  %v4674_v8 = vadd.f32 %v4673_v51, %v4672_v32 }
 0x252   : > { %4613 = vst.msk [vmem:[%s5980_s27 + $0xf0] sm:$0xff] %vm371_vm1, %v4581_v16  ;;  %v4675_v36 = vsel %vm371_vm1, %v4581_v16, 0.0  ;;  %v4719_v7 = vmul.f32 %v4581_v16, %v4581_v16  ;;  %v4782_v57 = vsel %vm371_vm1, %v4720_v13, 0.0 }
 0x253   : > { %v4676_v29 = vadd.f32 %v4675_v36, %v4674_v8  ;;  %v4779_v41 = vadd.f32 %v4778_v55, %v4777_v54 }
 0x254   : > { %v4780_v40 = vsel %vm371_vm1, %v4719_v7, 0.0 }
 0x255   : > { %v4678_v22 = vadd.f32 %v4677_v3, %v4676_v29  ;;  %v4781_v14 = vadd.f32 %v4780_v40, %v4779_v41 }
 0x257   : > { %v4679_v60 = vrot.slane %v4678_v22, 4  ;;  %v4783_v44 = vadd.f32 %v4782_v57, %v4781_v14 }
 0x259   : > { %v4680_v28 = vadd.f32 %v4679_v60, %v4678_v22  ;;  %v4784_v63 = vrot.slane %v4783_v44, 4 }
 0x25b   : > { %v4681_v4 = vrot.slane %v4680_v28, 2  ;;  %v4785_v17 = vadd.f32 %v4784_v63, %v4783_v44 }
 0x25d   : > { %v4682_v6 = vadd.f32 %v4681_v4, %v4680_v28  ;;  %v4786_v11 = vrot.slane %v4785_v17, 2 }
 0x25f   : > { %v4683_v12 = vrot.slane %v4682_v6, 1  ;;  %v4787_v42 = vadd.f32 %v4786_v11, %v4785_v17 }
 0x261   : > { %v4684_v19 = vadd.f32 %v4683_v12, %v4682_v6  ;;  %v4788_v43 = vrot.slane %v4787_v42, 1 }
 0x263   : > { %v4685_v24 = vadd.f32 %v4684_v19, %v4615_v18  ;;  %v4789_v49 = vadd.f32 %v4788_v43, %v4787_v42 }
 0x265   : > { %4687 = vst.msk [vmem:[%s7555_s5] sm:$0x1] %vm4686_vm3, %v4685_v24  ;;  %v4790_v52 = vadd.f32 %v4789_v49, %v4688_v20 }
 0x267   : > { %4791 = vst.msk [vmem:[%s7555_s5 + $0x1] sm:$0x1] %vm4686_vm3, %v4790_v52 }
 0x268 PF: > { %s16_s18 = sadd.s32 1, %s5930_s18  }
 0x269   : > { %p13_p5 = scmp.ge.s32.totalorder %s16_s18, 4  }
 0x26b   :  { %15 = sbr.rel (!%p13_p5) target bundleno = 1 (0x1), region = 88 }

</bundles_post_ra>
